<compile_context>
chip_gen: v6e
topology: v6e:2x2x1
jax: 0.10.0
libtpu: 0.0.40
codegen_flags: <defaults>
</compile_context>

<pallas_src>
import jax
import jax.numpy as jnp
from jax.experimental import pallas as pl
from jax.experimental.pallas import tpu as pltpu


# The wrapped fn is our own synthetic FeedForward, so we are free to pick the
# tanh-approx GELU (EUP-friendly).  The reference below uses the same flag, so
# kernel and reference always agree.
_GELU_APPROXIMATE = True


# ---------------------------------------------------------------------------
# Kernels
# ---------------------------------------------------------------------------
def _ffn_residual_kernel(x_ref, w1_ref, b1_ref, w2_ref, b2_ref, o_ref):
    """o = GELU(x @ W1 + b1) @ W2 + b2 + x   (weights fully VMEM-resident)."""
    x = x_ref[...]                                            # (TM, D) native dtype
    h = jnp.dot(x, w1_ref[...],
                preferred_element_type=jnp.float32,
                precision=jax.lax.Precision.HIGHEST)
    h = jax.nn.gelu(h + b1_ref[...].astype(jnp.float32),
                    approximate=_GELU_APPROXIMATE)
    y = jnp.dot(h.astype(w2_ref.dtype), w2_ref[...],
                preferred_element_type=jnp.float32,
                precision=jax.lax.Precision.HIGHEST)
    y = y + b2_ref[...].astype(jnp.float32) + x.astype(jnp.float32)
    o_ref[...] = y.astype(o_ref.dtype)


def _ffn_residual_kernel_htiled(x_ref, w1_ref, b1_ref, w2_ref, b2_ref, o_ref,
                                acc_ref):
    """Same computation with the hidden dim tiled on grid axis 1 (reduction)."""
    j = pl.program_id(1)

    @pl.when(j == 0)
    def _():
        acc_ref[...] = jnp.zeros_like(acc_ref)

    x = x_ref[...]                                            # (TM, D), VMEM-resident over j
    h = jnp.dot(x, w1_ref[...],                               # (TM, TH) panel
                preferred_element_type=jnp.float32,
                precision=jax.lax.Precision.HIGHEST)
    h = jax.nn.gelu(h + b1_ref[...].astype(jnp.float32),
                    approximate=_GELU_APPROXIMATE)
    acc_ref[...] += jnp.dot(h.astype(w2_ref.dtype), w2_ref[...],
                            preferred_element_type=jnp.float32,
                            precision=jax.lax.Precision.HIGHEST)

    @pl.when(j == pl.num_programs(1) - 1)
    def _():
        y = acc_ref[...] + b2_ref[...].astype(jnp.float32) + x.astype(jnp.float32)
        o_ref[...] = y.astype(o_ref.dtype)


# ---------------------------------------------------------------------------
# VMEM budgeting / tiling
# ---------------------------------------------------------------------------
def _vmem_budget_bytes():
    """Generation-aware usable-VMEM budget (also used as vmem_limit_bytes)."""
    cap = 64 * 1024 * 1024                      # conservative fallback = v7x per-TC VMEM
    try:
        info = pltpu.get_tpu_info()
        cap = int(getattr(info, "vmem_capacity_bytes", cap)) or cap
    except Exception:
        pass
    # ~82% of physical VMEM; the rest is headroom for Mosaic internal scratch.
    # (~105 MiB on v5e/v6e's 128 MiB, ~52 MiB on v7x's 64 MiB.)
    return int(cap * 0.82)


def _round_up(x, m):
    return ((x + m - 1) // m) * m


def _round_rows(tm, n):
    """Sublane-align a token tile; prefer 256-multiples (v6e/v7x 256-wide MXU)."""
    n_sub = _round_up(n, 8)
    tm = max(8, min(int(tm), 2048, n_sub))
    if tm >= 256:
        tm = (tm // 256) * 256
    elif tm >= 128:
        tm = 128
    else:
        tm = (tm // 8) * 8
    return max(8, min(tm, n_sub))


def _choose_tiling(n, d, h, x_dtype, w_dtype, b_dtype, budget):
    """Return (TM, TH).  TH == h selects the resident-weights single-H-block path."""
    xi = jnp.dtype(x_dtype).itemsize
    wi = jnp.dtype(w_dtype).itemsize
    bi = jnp.dtype(b_dtype).itemsize
    n_sub = _round_up(n, 8)
    min_rows = min(n_sub, 256)

    def per_token(th, acc):
        # 2x-buffered x tile + 2x-buffered out tile + f32 hidden (TM, TH)
        # + f32 y / residual epilogue copies (+ f32 accumulator scratch if used).
        return 4 * d * xi + th * 4 + 2 * d * 4 + (d * 4 if acc else 0)

    # ---- Path A: W1, W2, biases VMEM-resident (count double-buffering: 2x).
    resident = 2 * (2 * d * h * wi + (h + d) * bi)
    if resident + min_rows * per_token(h, acc=False) <= budget:
        tm = (budget - resident) // per_token(h, acc=False)
        tm = _round_rows(tm, n_sub)
        # Keep >= 2 token blocks for large N so a 2-TC chip (v7x) can split
        # the "parallel" axis across its TensorCores.
        if n >= 1024 and tm >= n:
            tm = _round_rows(_round_up(-(-n // 2), 256), n_sub)
        return tm, h

    # ---- Path B: hidden dim tiled on a second ("arbitrary") grid axis.
    # TH must divide H exactly (H is a reduction axis -> no ragged H blocks)
    # and be lane-aligned.
    candidates = [th for th in range(h, 0, -128) if h % th == 0 and th % 128 == 0]
    for th in candidates:
        res_t = 2 * (2 * d * th * wi + th * bi) + 2 * d * bi
        if res_t + min(n_sub, 128) * per_token(th, acc=True) <= budget:
            tm = (budget - res_t) // per_token(th, acc=True)
            return _round_rows(tm, n_sub), th

    # Last resort: smallest lane-aligned H panel (or full H) with minimal rows.
    th = candidates[-1] if candidates else h
    return _round_rows(8, n_sub), th


# ---------------------------------------------------------------------------
# Wrapper
# ---------------------------------------------------------------------------
def residual_ffn(x, w1, b1, w2, b2):
    """x: (B, S, D) -> (B, S, D), computing fn(x) + x inside one Pallas call."""
    B, S, D = x.shape
    H = w1.shape[1]
    N = B * S

    budget = _vmem_budget_bytes()
    TM, TH = _choose_tiling(N, D, H, x.dtype, w1.dtype, b1.dtype, budget)
    n_blocks = pl.cdiv(N, TM)     # ragged last block is masked; rows independent
    h_blocks = pl.cdiv(H, TH)

    x2d = x.reshape(N, D)
    b1_2d = b1.reshape(1, H)
    b2_2d = b2.reshape(1, D)

    xi = jnp.dtype(x.dtype).itemsize
    wi = jnp.dtype(w1.dtype).itemsize
    cost = pl.CostEstimate(
        flops=4 * N * D * H,                       # two matmuls
        transcendentals=N * H,                     # GELU
        bytes_accessed=(2 * N * D * xi             # x in + out
                        + 2 * D * H * wi           # W1, W2
                        + (H + D) * 4),            # biases
    )

    if h_blocks == 1:
        kernel = _ffn_residual_kernel
        dims = ("parallel",)
        grid_spec = pltpu.PrefetchScalarGridSpec(
            num_scalar_prefetch=0,
            grid=(n_blocks,),
            in_specs=[
                pl.BlockSpec((TM, D), lambda i: (i, 0)),   # x   (streamed tiles)
                pl.BlockSpec((D, H), lambda i: (0, 0)),    # W1  (VMEM-resident)
                pl.BlockSpec((1, H), lambda i: (0, 0)),    # b1
                pl.BlockSpec((H, D), lambda i: (0, 0)),    # W2
                pl.BlockSpec((1, D), lambda i: (0, 0)),    # b2
            ],
            out_specs=pl.BlockSpec((TM, D), lambda i: (i, 0)),
        )
    else:
        kernel = _ffn_residual_kernel_htiled
        dims = ("parallel", "arbitrary")           # H axis is a reduction
        grid_spec = pltpu.PrefetchScalarGridSpec(
            num_scalar_prefetch=0,
            grid=(n_blocks, h_blocks),
            in_specs=[
                pl.BlockSpec((TM, D), lambda i, j: (i, 0)),   # x (resident over j)
                pl.BlockSpec((D, TH), lambda i, j: (0, j)),   # W1 column panel
                pl.BlockSpec((1, TH), lambda i, j: (0, j)),   # b1 panel
                pl.BlockSpec((TH, D), lambda i, j: (j, 0)),   # W2 row panel
                pl.BlockSpec((1, D), lambda i, j: (0, 0)),    # b2
            ],
            out_specs=pl.BlockSpec((TM, D), lambda i, j: (i, 0)),
            scratch_shapes=[pltpu.VMEM((TM, D), jnp.float32)],
        )

    out2d = pl.pallas_call(
        kernel,
        out_shape=jax.ShapeDtypeStruct((N, D), x.dtype),
        grid_spec=grid_spec,
        compiler_params=pltpu.CompilerParams(
            dimension_semantics=dims,
            vmem_limit_bytes=budget,
        ),
        input_output_aliases={0: 0},               # output reuses x's HBM buffer
        cost_estimate=cost,
    )(x2d, w1, b1_2d, w2, b2_2d)

    return out2d.reshape(B, S, D)


def reference(x, w1, b1, w2, b2):
    """Pure-JAX reference of Residual(FeedForward)(x) = fn(x) + x."""
    hi = jax.lax.Precision.HIGHEST
    h = jax.nn.gelu(jnp.einsum("bsd,dh->bsh", x, w1, precision=hi) + b1,
                    approximate=_GELU_APPROXIMATE)
    y = jnp.einsum("bsh,hd->bsd", h, w2, precision=hi) + b2
    return y + x


if __name__ == "__main__":
    # Small transformer-ish shapes, 256-aligned so the 256-wide MXUs are filled.
    B, S, D, H = 2, 8, 256, 512
    key = jax.random.PRNGKey(0)
    kx, k1, k2, k3, k4 = jax.random.split(key, 5)

    x = jax.random.normal(kx, (B, S, D), dtype=jnp.float32)
    # Deterministic synthetic parameters for the wrapped fn (FeedForward).
    w1 = jax.random.normal(k1, (D, H), dtype=jnp.float32) * 0.05
    b1 = jax.random.normal(k2, (H,), dtype=jnp.float32) * 0.01
    w2 = jax.random.normal(k3, (H, D), dtype=jnp.float32) * 0.05
    b2 = jax.random.normal(k4, (D,), dtype=jnp.float32) * 0.01

    out = jax.jit(residual_ffn)(x, w1, b1, w2, b2)
    out = jax.block_until_ready(out)

    ref = reference(x, w1, b1, w2, b2)
    assert out.shape == x.shape and out.dtype == x.dtype
    assert jnp.allclose(out, ref, atol=2e-4, rtol=2e-4), "mismatch vs reference"

    print("KERNEL_OK")
</pallas_src>

<mosaic_0001>
module attributes {stable_mosaic.version = 11 : i64} {
  func.func @_ffn_residual_kernel(%arg0: i32, %arg1: memref<16x256xf32, #tpu.memory_space<vmem>>, %arg2: memref<256x512xf32, #tpu.memory_space<vmem>>, %arg3: memref<1x512xf32, #tpu.memory_space<vmem>>, %arg4: memref<512x256xf32, #tpu.memory_space<vmem>>, %arg5: memref<1x256xf32, #tpu.memory_space<vmem>>, %arg6: memref<16x256xf32, #tpu.memory_space<vmem>>) attributes {dimension_semantics = [#tpu.dimension_semantics<parallel>], iteration_bounds = array<i64: 1>, scalar_prefetch = 0 : i64, scratch_operands = 0 : i64, tpu.core_type = #tpu.core_type<tc>, window_params = [{transform_indices = @transform_0, window_bounds = array<i64: 16, 256>}, {pipeline_mode = #tpu.pipeline_mode<synchronous>, transform_indices = @transform_1, window_bounds = array<i64: 256, 512>}, {pipeline_mode = #tpu.pipeline_mode<synchronous>, transform_indices = @transform_2, window_bounds = array<i64: 1, 512>}, {pipeline_mode = #tpu.pipeline_mode<synchronous>, transform_indices = @transform_3, window_bounds = array<i64: 512, 256>}, {pipeline_mode = #tpu.pipeline_mode<synchronous>, transform_indices = @transform_4, window_bounds = array<i64: 1, 256>}, {transform_indices = @transform_5, window_bounds = array<i64: 16, 256>}]} {
    %c0 = arith.constant 0 : index
    %c0_0 = arith.constant 0 : index
    %0 = vector.load %arg1[%c0, %c0_0] : memref<16x256xf32, #tpu.memory_space<vmem>>, vector<16x256xf32>
    %c0_1 = arith.constant 0 : index
    %c0_2 = arith.constant 0 : index
    %1 = vector.load %arg2[%c0_1, %c0_2] : memref<256x512xf32, #tpu.memory_space<vmem>>, vector<256x512xf32>
    %cst = arith.constant dense<0.000000e+00> : vector<16x512xf32>
    %2 = tpu.matmul %0, %1, %cst {dimension_numbers = #tpu.dot_dimension_numbers<[1], [0], [0], [1], [0, 0, 1, 1], [], []>, precision = #tpu.contract_precision<fp32>} : vector<16x256xf32>, vector<256x512xf32>, vector<16x512xf32> -> vector<16x512xf32>
    %c0_3 = arith.constant 0 : index
    %c0_4 = arith.constant 0 : index
    %3 = vector.load %arg3[%c0_3, %c0_4] : memref<1x512xf32, #tpu.memory_space<vmem>>, vector<1x512xf32>
    %4 = vector.broadcast %3 : vector<1x512xf32> to vector<16x512xf32>
    %5 = arith.addf %2, %4 : vector<16x512xf32>
    %6 = arith.mulf %5, %5 : vector<16x512xf32>
    %7 = arith.mulf %5, %6 : vector<16x512xf32>
    %cst_5 = arith.constant 4.471500e-02 : f32
    %8 = vector.broadcast %cst_5 : f32 to vector<16x512xf32>
    %9 = arith.mulf %8, %7 : vector<16x512xf32>
    %10 = arith.addf %5, %9 : vector<16x512xf32>
    %cst_6 = arith.constant 0.797884583 : f32
    %11 = vector.broadcast %cst_6 : f32 to vector<16x512xf32>
    %12 = arith.mulf %11, %10 : vector<16x512xf32>
    %13 = math.tanh %12 : vector<16x512xf32>
    %cst_7 = arith.constant 1.000000e+00 : f32
    %14 = vector.broadcast %cst_7 : f32 to vector<16x512xf32>
    %15 = arith.addf %14, %13 : vector<16x512xf32>
    %cst_8 = arith.constant 5.000000e-01 : f32
    %16 = vector.broadcast %cst_8 : f32 to vector<16x512xf32>
    %17 = arith.mulf %16, %15 : vector<16x512xf32>
    %18 = arith.mulf %5, %17 : vector<16x512xf32>
    %c0_9 = arith.constant 0 : index
    %c0_10 = arith.constant 0 : index
    %19 = vector.load %arg4[%c0_9, %c0_10] : memref<512x256xf32, #tpu.memory_space<vmem>>, vector<512x256xf32>
    %cst_11 = arith.constant dense<0.000000e+00> : vector<16x256xf32>
    %20 = tpu.matmul %18, %19, %cst_11 {dimension_numbers = #tpu.dot_dimension_numbers<[1], [0], [0], [1], [0, 0, 1, 1], [], []>, precision = #tpu.contract_precision<fp32>} : vector<16x512xf32>, vector<512x256xf32>, vector<16x256xf32> -> vector<16x256xf32>
    %c0_12 = arith.constant 0 : index
    %c0_13 = arith.constant 0 : index
    %21 = vector.load %arg5[%c0_12, %c0_13] : memref<1x256xf32, #tpu.memory_space<vmem>>, vector<1x256xf32>
    %22 = vector.broadcast %21 : vector<1x256xf32> to vector<16x256xf32>
    %23 = arith.addf %20, %22 : vector<16x256xf32>
    %24 = arith.addf %23, %0 : vector<16x256xf32>
    %c0_14 = arith.constant 0 : index
    %c0_15 = arith.constant 0 : index
    %25 = vector.load %arg6[%c0_14, %c0_15] : memref<16x256xf32, #tpu.memory_space<vmem>>, vector<16x256xf32>
    tpu.vector_store %arg6[%c0_14, %c0_15], %24 {strides = array<i32>} : memref<16x256xf32, #tpu.memory_space<vmem>>, vector<16x256xf32>,
    return
  }
  func.func @transform_0(%arg0: i32) -> (i32, i32) {
    %c0_i32 = arith.constant 0 : i32
    %c0_i32_0 = arith.constant 0 : i32
    return %arg0, %c0_i32 : i32, i32
  }
  func.func @transform_1(%arg0: i32) -> (i32, i32) {
    %c0_i32 = arith.constant 0 : i32
    %c0_i32_0 = arith.constant 0 : i32
    %c0_i32_1 = arith.constant 0 : i32
    return %c0_i32, %c0_i32_0 : i32, i32
  }
  func.func @transform_2(%arg0: i32) -> (i32, i32) {
    %c0_i32 = arith.constant 0 : i32
    %c0_i32_0 = arith.constant 0 : i32
    %c0_i32_1 = arith.constant 0 : i32
    return %c0_i32, %c0_i32_0 : i32, i32
  }
  func.func @transform_3(%arg0: i32) -> (i32, i32) {
    %c0_i32 = arith.constant 0 : i32
    %c0_i32_0 = arith.constant 0 : i32
    %c0_i32_1 = arith.constant 0 : i32
    return %c0_i32, %c0_i32_0 : i32, i32
  }
  func.func @transform_4(%arg0: i32) -> (i32, i32) {
    %c0_i32 = arith.constant 0 : i32
    %c0_i32_0 = arith.constant 0 : i32
    %c0_i32_1 = arith.constant 0 : i32
    return %c0_i32, %c0_i32_0 : i32, i32
  }
  func.func @transform_5(%arg0: i32) -> (i32, i32) {
    %c0_i32 = arith.constant 0 : i32
    %c0_i32_0 = arith.constant 0 : i32
    return %arg0, %c0_i32 : i32, i32
  }
}

</mosaic_0001>

<bundles_post_ra>
// kernel: residual_ffn.1
= control target key start
LH: loop header
LB: loop body
LE: loop exit
PB: predicated region body
PF: predicated region fallthrough
CT: control target
= control target key end

     0   :  { %10 = vsyncpa [#allocation3], 0  ;;  %s11209_s0 = inlined_call_operand.vmem [shape: f32[16,256], index: 0, kind: input, shape index: {}, may-alias: {0,5}]   ;;  %s11210_s1 = inlined_call_operand.hbm [shape: f32[256,512], index: 1, kind: input, shape index: {}]   ;;  %s11211_s2 = inlined_call_operand.vmem [shape: f32[1,512], index: 2, kind: input, shape index: {}]   ;;  %s11212_s3 = inlined_call_operand.hbm [shape: f32[512,256], index: 3, kind: input, shape index: {}]   ;;  %s11213_s4 = inlined_call_operand.vmem [shape: f32[1,256], index: 4, kind: input, shape index: {}]   ;;  %s11214_s5 = inlined_call_operand.vmem [shape: f32[16,256], index: 5, kind: output, shape index: {}, may-alias: {0,5}]  }
   0x1   :  { %11 = vsyncpa [#allocation5], 0  ;;  %s5883_s18 = smov [#allocation2]  }
   0x2   :  { %s19_s19 = sshll.u32 %s5883_s18, 4  ;;  %s20_s19 = int_to_ptr.vmem [resolvable:$true] %s19_s19 }
   0x3   :  { %s5847_s20 = scalar_lea.vmem %s20_s19, 16384  ;;  %p5852_p1 = scmp.lt.s32.totalorder %s20_s19, %s20_s19 }
   0x4   :  { %p5848_p0 = scmp.ne.s32.totalorder %s20_s19, %s5847_s20  ;;  %p5853_p2 = scmp.lt.s32.totalorder %s5847_s20, %s5847_s20 }
   0x6   :  { %p5854_p3 = por %p5853_p2, %p5852_p1 }
   0x8   :  { %p5855_p4 = pnand %p5854_p3, %p5848_p0 }
   0xa   :  { %5858 = shalt.err (!%p5855_p4)
}
   0xb   :  { %s5884_s21 = smov 512   ;;  %s5885_s22 = smov 32  }
   0xc   :  { %25 = dma.hbm_to_vmem [thread:$0]  %s11210_s1, 16384, %s20_s19, [#allocation3], %s5884_s21, %s5884_s21, %s5885_s22  }
   0xd   :  { %s5886_s25 = smov [#allocation4]  }
   0xe   :  { %s33_s26 = sshll.u32 %s5886_s25, 4  ;;  %s34_s26 = int_to_ptr.vmem [resolvable:$true] %s33_s26 }
   0xf   :  { %s5867_s27 = scalar_lea.vmem %s34_s26, 16384  ;;  %p5872_p6 = scmp.lt.s32.totalorder %s34_s26, %s34_s26 }
  0x10   :  { %p5868_p5 = scmp.ne.s32.totalorder %s34_s26, %s5867_s27  ;;  %p5873_p7 = scmp.lt.s32.totalorder %s5867_s27, %s5867_s27 }
  0x12   :  { %p5874_p8 = por %p5873_p7, %p5872_p6 }
  0x14   :  { %p5875_p9 = pnand %p5874_p8, %p5868_p5 }
  0x16   :  { %5878 = shalt.err (!%p5875_p9)
}
  0x17   :  { %s5887_s28 = smov 256   ;;  %s5888_s29 = smov 16  }
  0x18   :  { %39 = dma.hbm_to_vmem [thread:$0]  %s11212_s3, 16384, %s34_s26, [#allocation5], %s5887_s28, %s5887_s28, %s5888_s29  }
  0x19   :  { %5879 = dma.done.wait [#allocation3], 16384  }
  0x1a   :  { %5880 = vsyncadd [#allocation3], 4294950912 }
  0x1b   :  { %5881 = dma.done.wait [#allocation5], 16384  }
  0x1c   :  { %5882 = vsyncadd [#allocation5], 4294950912  ;;  %v113_v0 = vld [vmem:[#allocation2 + $0x1e8] sm:$0xff]  ;;  %v112_v1 = vld [vmem:[#allocation2 + $0x1e0] sm:$0xff] }
  0x1d   :  { %v109_v2 = vld [vmem:[#allocation2 + $0x1c8] sm:$0xff]  ;;  %v5925_v3 = vand.u32 4294901760, %v113_v0  ;;  %v5927_v4 = vand.u32 4294901760, %v112_v1  ;;  %v108_v6 = vld [vmem:[#allocation2 + $0x1c0] sm:$0xff] }
  0x1e   :  { %v5929_v5 = vand.u32 4294901760, %v109_v2  ;;  %v105_v7 = vld [vmem:[#allocation2 + $0x1a8] sm:$0xff]  ;;  %v104_v8 = vld [vmem:[#allocation2 + $0x1a0] sm:$0xff]  ;;  %v5931_v9 = vand.u32 4294901760, %v108_v6 }
  0x1f   :  { %v5933_v10 = vand.u32 4294901760, %v105_v7  ;;  %v5935_v11 = vand.u32 4294901760, %v104_v8  ;;  %v101_v12 = vld [vmem:[#allocation2 + $0x188] sm:$0xff]  ;;  %v100_v13 = vld [vmem:[#allocation2 + $0x180] sm:$0xff]  ;;  %203 = vmatprep.subr.mxu0 %v5925_v3  ;;  %v5945_v18 = vsub.f32 %v113_v0, %v5925_v3  ;;  %v5958_v23 = vsub.f32 %v112_v1, %v5927_v4 }
  0x20   :  { %v97_v14 = vld [vmem:[#allocation2 + $0x168] sm:$0xff]  ;;  %v5938_v15 = vand.u32 4294901760, %v101_v12  ;;  %v5940_v16 = vand.u32 4294901760, %v100_v13  ;;  %v5947_v19 = vld [vmem:[#allocation2 + $0x160] sm:$0xff]  ;;  %205 = vmatpush1.msra.mxu0 %v5927_v4  ;;  %v5964_v25 = vsub.f32 %v109_v2, %v5929_v5  ;;  %v5978_v31 = vsub.f32 %v108_v6, %v5931_v9 }
  0x21   :  { %v5942_v17 = vand.u32 4294901760, %v97_v14  ;;  %v5949_v20 = vld [vmem:[#allocation2 + $0x148] sm:$0xff]  ;;  %v5951_v21 = vld [vmem:[#allocation2 + $0x140] sm:$0xff]  ;;  %v5955_v22 = vand.u32 4294901760, %v5947_v19  ;;  %207 = vmatprep.subr.mxu0 %v5929_v5  ;;  %v11228_v29 = vand.u32 4294901760, %v5945_v18  ;;  %v11226_v33 = vand.u32 4294901760, %v5958_v23 }
  0x22   :  { %v5961_v24 = vand.u32 4294901760, %v5949_v20  ;;  %v5966_v26 = vld [vmem:[#allocation2 + $0x128] sm:$0xff]  ;;  %v5968_v27 = vld [vmem:[#allocation2 + $0x120] sm:$0xff]  ;;  %v5975_v30 = vand.u32 4294901760, %v5951_v21  ;;  %209 = vmatpush1.msra.mxu0 %v5931_v9  ;;  %v11225_v34 = vand.u32 4294901760, %v5964_v25  ;;  %v5987_v35 = vsub.f32 %v105_v7, %v5933_v10 }
  0x23   :  { %v5970_v28 = vld [vmem:[#allocation2 + $0x108] sm:$0xff]  ;;  %v5981_v32 = vand.u32 4294901760, %v5966_v26  ;;  %v5990_v36 = vand.u32 4294901760, %v5968_v27  ;;  %v5992_v37 = vld [vmem:[#allocation2 + $0x100] sm:$0xff]  ;;  %211 = vmatprep.subr.mxu0 %v5933_v10  ;;  %v366_v38 = vsub.f32 %v5945_v18, %v11228_v29  ;;  %v11223_v39 = vand.u32 4294901760, %v5978_v31 }
  0x24   :  { %12083 = vst [vmem:[#allocation8_spill] sm:$0xff] %v5961_v24  ;;  %12084 = vst [vmem:[#allocation9_spill] sm:$0xff] %v5975_v30  ;;  %v6000_v40 = vsub.f32 %v104_v8, %v5935_v11  ;;  %v6003_v41 = vand.u32 4294901760, %v5970_v28  ;;  %213 = vmatpush1.msra.mxu0 %v5935_v11  ;;  %v372_v42 = vsub.f32 %v5958_v23, %v11226_v33  ;;  %v11221_v44 = vand.u32 4294901760, %v5987_v35  ;;  %v6016_v46 = vld [vmem:[#allocation2 + $0xe8] sm:$0xff]  ;;  %v6026_v51 = vld [vmem:[#allocation2 + $0xe0] sm:$0xff] }
  0x25   :  { %12085 = vst [vmem:[#allocation10_spill] sm:$0xff] %v5981_v32  ;;  %12086 = vst [vmem:[#allocation11_spill] sm:$0xff] %v5990_v36  ;;  %v378_v43 = vsub.f32 %v5964_v25, %v11225_v34  ;;  %v6014_v45 = vsub.f32 %v101_v12, %v5938_v15  ;;  %215 = vmatprep.subr.mxu0 %v5938_v15  ;;  %v367_v47 = vand.u32 4294901760, %v366_v38  ;;  %v6024_v50 = vand.u32 4294901760, %v5992_v37  ;;  %v6033_v56 = vld [vmem:[#allocation2 + $0xc8] sm:$0xff]  ;;  %v6045_v61 = vld [vmem:[#allocation2 + $0xc0] sm:$0xff] }
  0x26   :  { %12087 = vst [vmem:[#allocation12_spill] sm:$0xff] %v6003_v41  ;;  %v384_v48 = vsub.f32 %v5978_v31, %v11223_v39  ;;  %v11220_v49 = vand.u32 4294901760, %v6000_v40  ;;  %217 = vmatpush1.msra.mxu0 %v5940_v16  ;;  %v373_v52 = vand.u32 4294901760, %v372_v42  ;;  %v390_v54 = vsub.f32 %v5987_v35, %v11221_v44  ;;  %v6057_v2 = vld [vmem:[#allocation2 + $0xa8] sm:$0xff]  ;;  %v6158_v34 = vld [vmem:[#allocation2 + $0x40] sm:$0xff] }
  0x27   :  { %12088 = vst [vmem:[#allocation13_spill] sm:$0xff] %v6024_v50  ;;  %v379_v53 = vand.u32 4294901760, %v378_v43  ;;  %v11218_v55 = vand.u32 4294901760, %v6014_v45  ;;  %219 = vmatprep.subr.mxu0 %v5942_v17  ;;  %368 = vmatprep.subr.mxu1 %v367_v47  ;;  %v6040_v59 = vsub.f32 %v100_v13, %v5940_v16  ;;  %v6043_v60 = vand.u32 4294901760, %v6016_v46  ;;  %v6068_v13 = vld [vmem:[#allocation2 + $0xa0] sm:$0xff]  ;;  %v6148_v39 = vld [vmem:[#allocation2 + $0x48] sm:$0xff] }
  0x28   :  { %v385_v57 = vand.u32 4294901760, %v384_v48  ;;  %v396_v58 = vsub.f32 %v6000_v40, %v11220_v49  ;;  %221 = vmatpush1.msra.mxu0 %v5955_v22  ;;  %374 = vmatpush1.msra.mxu1 %v373_v52  ;;  %v391_v62 = vand.u32 4294901760, %v390_v54  ;;  %v6052_v0 = vsub.f32 %v97_v14, %v5942_v17  ;;  %v6135_v49 = vld [vmem:[#allocation2 + $0x60] sm:$0xff] }
  0x29   :  { %12089 = vst [vmem:[#allocation14_spill] sm:$0xff] %v6043_v60  ;;  %v402_v63 = vsub.f32 %v6014_v45, %v11218_v55  ;;  %v6055_v1 = vand.u32 4294901760, %v6026_v51  ;;  %223 = vmatprep.subr.mxu0 %v5961_v24  ;;  %380 = vmatprep.subr.mxu1 %v379_v53  ;;  %v11216_v7 = vand.u32 4294901760, %v6040_v59  ;;  %v6063_v8 = vsub.f32 %v5947_v19, %v5955_v22 }
  0x2a   :  { %v397_v6 = vand.u32 4294901760, %v396_v58  ;;  %v6066_v12 = vand.u32 4294901760, %v6033_v56  ;;  %225 = vmatpush1.msra.mxu0 %v5975_v30  ;;  %386 = vmatpush1.msra.mxu1 %v385_v57  ;;  %v11215_v38 = vand.u32 4294901760, %v6052_v0  ;;  %v6074_v42 = vsub.f32 %v5949_v20, %v5961_v24  ;;  %v6091_v20 = vld [vmem:[#allocation2 + $0x88] sm:$0xff] }
  0x2b   :  { %12090 = vst [vmem:[#allocation15_spill] sm:$0xff] %v6055_v1  ;;  %v403_v14 = vand.u32 4294901760, %v402_v63  ;;  %v6077_v43 = vand.u32 4294901760, %v6045_v61  ;;  %227 = vmatprep.subr.mxu0 %v5981_v32  ;;  %392 = vmatprep.subr.mxu1 %v391_v62  ;;  %v408_v19 = vsub.f32 %v6040_v59, %v11216_v7  ;;  %v11217_v47 = vand.u32 4294901760, %v6063_v8 }
  0x2c   :  { %12091 = vst [vmem:[#allocation16_spill] sm:$0xff] %v6066_v12  ;;  %v6086_v48 = vsub.f32 %v5951_v21, %v5975_v30  ;;  %v6089_v52 = vand.u32 4294901760, %v6057_v2  ;;  %229 = vmatpush1.msra.mxu0 %v5990_v36  ;;  %398 = vmatpush1.msra.mxu1 %v397_v6  ;;  %v414_v53 = vsub.f32 %v6052_v0, %v11215_v38  ;;  %v11219_v54 = vand.u32 4294901760, %v6074_v42  ;;  %v6114_v38 = vld [vmem:[#allocation2 + $0x80] sm:$0xff] }
  0x2d   :  { %12092 = vst [vmem:[#allocation17_spill] sm:$0xff] %v6077_v43  ;;  %v6100_v57 = vsub.f32 %v5966_v26, %v5981_v32  ;;  %v6103_v21 = vand.u32 4294901760, %v6068_v13  ;;  %231 = vmatprep.subr.mxu0 %v6003_v41  ;;  %404 = vmatprep.subr.mxu1 %v403_v14  ;;  %v409_v58 = vand.u32 4294901760, %v408_v19  ;;  %v420_v62 = vsub.f32 %v6063_v8, %v11217_v47  ;;  %v6124_v47 = vld [vmem:[#allocation2 + $0x68] sm:$0xff] }
  0x2e   :  { %12093 = vst [vmem:[#allocation18_spill] sm:$0xff] %v6089_v52  ;;  %v11222_v63 = vand.u32 4294901760, %v6086_v48  ;;  %v6112_v6 = vsub.f32 %v5968_v27, %v5990_v36  ;;  %233 = vmatpush1.msra.mxu0 %v6024_v50  ;;  %v415_v26 = vand.u32 4294901760, %v414_v53  ;;  %v426_v14 = vsub.f32 %v6074_v42, %v11219_v54  ;;  %v6238_v36 = vld [vmem:[#allocation2 + $0x3e8] sm:$0xff] }
  0x2f   :  { %12094 = vst [vmem:[#allocation19_spill] sm:$0xff] %v6103_v21  ;;  %v11224_v19 = vand.u32 4294901760, %v6100_v57  ;;  %v6122_v7 = vand.u32 4294901760, %v6091_v20  ;;  %410 = vmatpush1.msra.mxu1 %v409_v58  ;;  %235 = vmatprep.subr.mxu0 %v6043_v60  ;;  %v421_v27 = vand.u32 4294901760, %v420_v62  ;;  %v6133_v54 = vsub.f32 %v5970_v28, %v6003_v41 }
  0x30   :  { %v432_v55 = vsub.f32 %v6086_v48, %v11222_v63  ;;  %v11227_v53 = vand.u32 4294901760, %v6112_v6  ;;  %416 = vmatprep.subr.mxu1 %v415_v26  ;;  %237 = vmatpush1.msra.mxu0 %v6055_v1  ;;  %v427_v44 = vand.u32 4294901760, %v426_v14  ;;  %v6142_v62 = vand.u32 4294901760, %v6114_v38 }
  0x31   :  { %12095 = vst [vmem:[#allocation20_spill] sm:$0xff] %v6122_v7  ;;  %v438_v58 = vsub.f32 %v6100_v57, %v11224_v19  ;;  %v6146_v63 = vsub.f32 %v5992_v37, %v6024_v50  ;;  %422 = vmatpush1.msra.mxu1 %v421_v27  ;;  %239 = vmatprep.subr.mxu0 %v6066_v12  ;;  %v11231_v14 = vand.u32 4294901760, %v6133_v54  ;;  %v6156_v19 = vand.u32 4294901760, %v6124_v47 }
  0x32   :  { %12096 = vst [vmem:[#allocation21_spill] sm:$0xff] %v6142_v62  ;;  %v433_v28 = vand.u32 4294901760, %v432_v55  ;;  %v444_v26 = vsub.f32 %v6112_v6, %v11227_v53  ;;  %428 = vmatprep.subr.mxu1 %v427_v44  ;;  %241 = vmatpush1.msra.mxu0 %v6077_v43  ;;  %v6164_v55 = vsub.f32 %v6016_v46, %v6043_v60  ;;  %v6167_v33 = vand.u32 4294901760, %v6135_v49  ;;  %v6169_v53 = vld [vmem:[#allocation2 + $0x28] sm:$0xff] }
  0x33   :  { %12097 = vst [vmem:[#allocation22_spill] sm:$0xff] %v6156_v19  ;;  %v439_v37 = vand.u32 4294901760, %v438_v58  ;;  %v11234_v27 = vand.u32 4294901760, %v6146_v63  ;;  %243 = vmatprep.subr.mxu0 %v6089_v52  ;;  %v450_v44 = vsub.f32 %v6133_v54, %v11231_v14  ;;  %v6177_v58 = vsub.f32 %v6026_v51, %v6055_v1  ;;  %v6194_v51 = vld [vmem:[#allocation2 + $0x20] sm:$0xff] }
  0x34   :  { %12098 = vst [vmem:[#allocation23_spill] sm:$0xff] %v6167_v33  ;;  %434 = vmatpush1.msra.mxu1 %v433_v28  ;;  %v445_v29 = vand.u32 4294901760, %v444_v26  ;;  %v6180_v46 = vand.u32 4294901760, %v6148_v39  ;;  %245 = vmatpush1.msra.mxu0 %v6103_v21  ;;  %v6189_v60 = vsub.f32 %v6033_v56, %v6066_v12  ;;  %v6192_v14 = vand.u32 4294901760, %v6158_v34  ;;  %v6205_v56 = vld [vmem:[#allocation2 + $0x8] sm:$0xff] }
  0x35   :  { %440 = vmatprep.subr.mxu1 %v439_v37  ;;  %v456_v28 = vsub.f32 %v6146_v63, %v11234_v27  ;;  %247 = vmatprep.subr.mxu0 %v6122_v7  ;;  %v451_v37 = vand.u32 4294901760, %v450_v44  ;;  %v6200_v27 = vsub.f32 %v6045_v61, %v6077_v43  ;;  %v6203_v26 = vand.u32 4294901760, %v6169_v53  ;;  %v6228_v44 = vld [vmem:[#allocation2] sm:$0xff] }
  0x36   :  { %12099 = vst [vmem:[#allocation24_spill] sm:$0xff] %v6180_v46  ;;  %12100 = vst [vmem:[#allocation25_spill] sm:$0xff] %v6192_v14  ;;  %446 = vmatpush1.msra.mxu1 %v445_v29  ;;  %249 = vmatpush1.msra.mxu0 %v6142_v62  ;;  %v12103_v50 = vand.u32 4294901760, %v6164_v55  ;;  %v6214_v1 = vsub.f32 %v6057_v2, %v6089_v52  ;;  %v12105_v61 = vand.u32 4294901760, %v6177_v58  ;;  %v6236_v41 = vand.u32 4294901760, %v6205_v56 }
  0x37   :  { %12101 = vst [vmem:[#allocation26_spill] sm:$0xff] %v6200_v27  ;;  %12102 = vst [vmem:[#allocation27_spill] sm:$0xff] %v6203_v26  ;;  %v457_v12 = vand.u32 4294901760, %v456_v28  ;;  %452 = vmatprep.subr.mxu1 %v451_v37  ;;  %251 = vmatprep.subr.mxu0 %v6156_v19  ;;  %v6222_v28 = vand.u32 4294901760, %v6194_v51  ;;  %v12108_v37 = vand.u32 4294901760, %v6189_v60  ;;  %v6256_v24 = vand.u32 4294901760, %v6228_v44 }
  0x38   :  { %v462_v29 = vsub.f32 %v6164_v55, %v12103_v50  ;;  %12104 = vst [vmem:[#allocation28_spill] sm:$0xff] %v6214_v1  ;;  %v468_v43 = vsub.f32 %v6177_v58, %v12105_v61  ;;  %v6226_v50 = vsub.f32 %v6068_v13, %v6103_v21  ;;  %253 = vmatpush1.msra.mxu0 %v6167_v33  ;;  %12109 = vst [vmem:[#allocation31_spill] sm:$0xff] %v6236_v41 }
  0x39   :  { %12106 = vst [vmem:[#allocation29_spill] sm:$0xff] %v6222_v28  ;;  %458 = vmatpush1.msra.mxu1 %v457_v12  ;;  %v474_v52 = vsub.f32 %v6189_v60, %v12108_v37  ;;  %255 = vmatprep.subr.mxu0 %v6180_v46  ;;  %v12110_v13 = vand.u32 4294901760, %v6200_v27  ;;  %v6247_v21 = vsub.f32 %v6091_v20, %v6122_v7  ;;  %v6249_v37 = vld [vmem:[#allocation2 + $0x3e0] sm:$0xff]  ;;  %12113 = vst [vmem:[#allocation33_spill] sm:$0xff] %v6256_v24 }
  0x3a   :  { %12107 = vst [vmem:[#allocation30_spill] sm:$0xff] %v6226_v50  ;;  %v463_v2 = vand.u32 4294901760, %v462_v29  ;;  %v469_v32 = vand.u32 4294901760, %v468_v43  ;;  %257 = vmatpush1.msra.mxu0 %v6192_v14  ;;  %v12112_v43 = vand.u32 4294901760, %v6214_v1  ;;  %v6262_v29 = vld [vmem:[#allocation2 + $0x3c8] sm:$0xff] }
  0x3b   :  { %v480_v12 = vsub.f32 %v6200_v27, %v12110_v13  ;;  %12111 = vst [vmem:[#allocation32_spill] sm:$0xff] %v6247_v21  ;;  %v475_v61 = vand.u32 4294901760, %v474_v52  ;;  %v6260_v13 = vsub.f32 %v6114_v38, %v6142_v62  ;;  %259 = vmatprep.subr.mxu0 %v6203_v26  ;;  %v12115_v52 = vand.u32 4294901760, %v6226_v50 }
  0x3c   :  { %464 = vmatprep.subr.mxu1 %v463_v2  ;;  %v486_v30 = vsub.f32 %v6214_v1, %v12112_v43  ;;  %v6270_v43 = vand.u32 4294901760, %v6238_v36  ;;  %v6272_v1 = vld [vmem:[#allocation2 + $0x3c0] sm:$0xff]  ;;  %261 = vmatpush1.msra.mxu0 %v6222_v28  ;;  %v6281_v62 = vand.u32 4294901760, %v6249_v37 }
  0x3d   :  { %12114 = vst [vmem:[#allocation34_spill] sm:$0xff] %v6260_v13  ;;  %470 = vmatpush1.msra.mxu1 %v469_v32  ;;  %v481_v20 = vand.u32 4294901760, %v480_v12  ;;  %v492_v2 = vsub.f32 %v6226_v50, %v12115_v52  ;;  %v6278_v12 = vsub.f32 %v6124_v47, %v6156_v19  ;;  %v6283_v52 = vld [vmem:[#allocation2 + $0x3a8] sm:$0xff]  ;;  %263 = vmatprep.subr.mxu0 %v6236_v41  ;;  %v6294_v47 = vand.u32 4294901760, %v6262_v29 }
  0x3e   :  { %12116 = vst [vmem:[#allocation35_spill] sm:$0xff] %v6270_v43  ;;  %476 = vmatprep.subr.mxu1 %v475_v61  ;;  %v487_v38 = vand.u32 4294901760, %v486_v30  ;;  %12118 = vst [vmem:[#allocation37_spill] sm:$0xff] %v6281_v62  ;;  %v12119_v61 = vand.u32 4294901760, %v6247_v21  ;;  %v6291_v32 = vsub.f32 %v6135_v49, %v6167_v33  ;;  %265 = vmatpush1.msra.mxu0 %v6256_v24  ;;  %v12122_v19 = vand.u32 4294901760, %v6260_v13  ;;  %v6308_v49 = vld [vmem:[#allocation2 + $0x3a0] sm:$0xff] }
  0x3f   :  { %12117 = vst [vmem:[#allocation36_spill] sm:$0xff] %v6278_v12  ;;  %482 = vmatpush1.msra.mxu1 %v481_v20  ;;  %v493_v7 = vand.u32 4294901760, %v492_v2  ;;  %12121 = vst [vmem:[#allocation39_spill] sm:$0xff] %v6294_v47  ;;  %v6303_v50 = vsub.f32 %v6148_v39, %v6180_v46  ;;  %267 = vmatprep.subr.mxu0 %v6270_v43  ;;  %v6317_v2 = vand.u32 4294901760, %v6283_v52  ;;  %v6319_v39 = vld [vmem:[#allocation2 + $0x388] sm:$0xff] }
  0x40   :  { %v498_v30 = vsub.f32 %v6247_v21, %v12119_v61  ;;  %12120 = vst [vmem:[#allocation38_spill] sm:$0xff] %v6291_v32  ;;  %488 = vmatprep.subr.mxu1 %v487_v38  ;;  %v504_v20 = vsub.f32 %v6260_v13, %v12122_v19  ;;  %v6306_v61 = vand.u32 4294901760, %v6272_v1  ;;  %v11277_v38 = vand.u32 4294901760, %v6291_v32  ;;  %269 = vmatpush2.msra.mxu0 %v6281_v62 }
  0x41   :  { %12123 = vst [vmem:[#allocation40_spill] sm:$0xff] %v6303_v50  ;;  %494 = vmatpush1.msra.mxu1 %v493_v7  ;;  %v6314_v19 = vsub.f32 %v6158_v34, %v6192_v14  ;;  %12126 = vst [vmem:[#allocation43_spill] sm:$0xff] %v6317_v2  ;;  %v12127_v13 = vand.u32 4294901760, %v6278_v12  ;;  %271 = vmatprep.subr.mxu0 %v6294_v47  ;;  %v6336_v14 = vand.u32 4294901760, %v6308_v49  ;;  %v6342_v7 = vld [vmem:[#allocation2 + $0x380] sm:$0xff] }
  0x42   :  { %12124 = vst [vmem:[#allocation41_spill] sm:$0xff] %v6306_v61  ;;  %v499_v33 = vand.u32 4294901760, %v498_v30  ;;  %v505_v46 = vand.u32 4294901760, %v504_v20  ;;  %v6328_v30 = vsub.f32 %v6169_v53, %v6203_v26  ;;  %v516_v34 = vsub.f32 %v6291_v32, %v11277_v38  ;;  %273 = vmatpush2.msra.mxu0 %v6306_v61  ;;  %v6352_v32 = vld [vmem:[#allocation2 + $0x368] sm:$0xff] }
  0x43   :  { %12125 = vst [vmem:[#allocation42_spill] sm:$0xff] %v6314_v19  ;;  %v510_v21 = vsub.f32 %v6278_v12, %v12127_v13  ;;  %12129 = vst [vmem:[#allocation45_spill] sm:$0xff] %v6336_v14  ;;  %v6340_v13 = vsub.f32 %v6194_v51, %v6222_v28  ;;  %v6350_v20 = vand.u32 4294901760, %v6319_v39  ;;  %v12133_v51 = vand.u32 4294901760, %v6314_v19  ;;  %275 = vmatprep.subr.mxu0 %v6317_v2 }
  0x44   :  { %12128 = vst [vmem:[#allocation44_spill] sm:$0xff] %v6328_v30  ;;  %500 = vmatprep.subr.mxu1 %v499_v33  ;;  %v12131_v33 = vand.u32 4294901760, %v6303_v50  ;;  %v517_v12 = vand.u32 4294901760, %v516_v34  ;;  %277 = vmatpush2.msra.mxu0 %v6336_v14 }
  0x45   :  { %12130 = vst [vmem:[#allocation46_spill] sm:$0xff] %v6340_v13  ;;  %506 = vmatpush1.msra.mxu1 %v505_v46  ;;  %v511_v53 = vand.u32 4294901760, %v510_v21  ;;  %12132 = vst [vmem:[#allocation47_spill] sm:$0xff] %v6350_v20  ;;  %v528_v28 = vsub.f32 %v6314_v19, %v12133_v51  ;;  %v6361_v46 = vsub.f32 %v6205_v56, %v6236_v41  ;;  %v6370_v51 = vand.u32 4294901760, %v6342_v7  ;;  %v6376_v19 = vld [vmem:[#allocation2 + $0x348] sm:$0xff] }
  0x46   :  { %v522_v26 = vsub.f32 %v6303_v50, %v12131_v33  ;;  %v6363_v33 = vld [vmem:[#allocation2 + $0x360] sm:$0xff]  ;;  %v12135_v50 = vand.u32 4294901760, %v6328_v30  ;;  %v6374_v21 = vsub.f32 %v6228_v44, %v6256_v24  ;;  %279 = vmatprep.subr.mxu0 %v6350_v20  ;;  %v6384_v41 = vand.u32 4294901760, %v6352_v32  ;;  %v6397_v24 = vld [vmem:[#allocation2 + $0x328] sm:$0xff] }
  0x47   :  { %12134 = vst [vmem:[#allocation48_spill] sm:$0xff] %v6361_v46  ;;  %512 = vmatprep.subr.mxu1 %v511_v53  ;;  %12136 = vst [vmem:[#allocation49_spill] sm:$0xff] %v6370_v51  ;;  %v529_v56 = vand.u32 4294901760, %v528_v28  ;;  %v12138_v53 = vand.u32 4294901760, %v6340_v13  ;;  %281 = vmatpush2.msra.mxu0 %v6370_v51  ;;  %v6392_v28 = vsub.f32 %v6238_v36, %v6270_v43  ;;  %v6408_v36 = vand.u32 4294901760, %v6376_v19 }
  0x48   :  { %v523_v38 = vand.u32 4294901760, %v522_v26  ;;  %v534_v34 = vsub.f32 %v6328_v30, %v12135_v50  ;;  %12137 = vst [vmem:[#allocation50_spill] sm:$0xff] %v6374_v21  ;;  %518 = vmatpush1.msra.mxu1 %v517_v12  ;;  %12139 = vst [vmem:[#allocation51_spill] sm:$0xff] %v6384_v41  ;;  %v6386_v30 = vld [vmem:[#allocation2 + $0x340] sm:$0xff]  ;;  %v11300_v12 = vand.u32 4294901760, %v6374_v21  ;;  %283 = vmatprep.subr.mxu0 %v6384_v41 }
  0x49   :  { %v540_v26 = vsub.f32 %v6340_v13, %v12138_v53  ;;  %12140 = vst [vmem:[#allocation52_spill] sm:$0xff] %v6392_v28  ;;  %v6395_v53 = vand.u32 4294901760, %v6363_v33  ;;  %v12142_v13 = vand.u32 4294901760, %v6361_v46  ;;  %12144 = vst [vmem:[#allocation55_spill] sm:$0xff] %v6408_v36 }
  0x4a   :  { %524 = vmatprep.subr.mxu1 %v523_v38  ;;  %v535_v44 = vand.u32 4294901760, %v534_v34  ;;  %v6405_v34 = vsub.f32 %v6249_v37, %v6281_v62  ;;  %v552_v43 = vsub.f32 %v6374_v21, %v11300_v12  ;;  %v6422_v37 = vld [vmem:[#allocation2 + $0x320] sm:$0xff]  ;;  %v6428_v12 = vsub.f32 %v6272_v1, %v6306_v61 }
  0x4b   :  { %12141 = vst [vmem:[#allocation53_spill] sm:$0xff] %v6395_v53  ;;  %530 = vmatpush1.msra.mxu1 %v529_v56  ;;  %v541_v50 = vand.u32 4294901760, %v540_v26  ;;  %v546_v38 = vsub.f32 %v6361_v46, %v12142_v13  ;;  %285 = vmatpush2.msra.mxu0 %v6395_v53  ;;  %v6417_v13 = vsub.f32 %v6262_v29, %v6294_v47  ;;  %v6420_v26 = vand.u32 4294901760, %v6386_v30  ;;  %v6433_v29 = vld [vmem:[#allocation2 + $0x308] sm:$0xff] }
  0x4c   :  { %12143 = vst [vmem:[#allocation54_spill] sm:$0xff] %v6405_v34  ;;  %536 = vmatprep.subr.mxu1 %v535_v44  ;;  %v11311_v44 = vand.u32 4294901760, %v6405_v34  ;;  %287 = vmatprep.subr.mxu0 %v6408_v36  ;;  %12147 = vst [vmem:[#allocation58_spill] sm:$0xff] %v6428_v12  ;;  %v6431_v56 = vand.u32 4294901760, %v6397_v24  ;;  %v553_v47 = vand.u32 4294901760, %v552_v43  ;;  %v12149_v21 = vand.u32 4294901760, %v6392_v28 }
  0x4d   :  { %12145 = vst [vmem:[#allocation56_spill] sm:$0xff] %v6417_v13  ;;  %12146 = vst [vmem:[#allocation57_spill] sm:$0xff] %v6420_v26  ;;  %542 = vmatpush1.msra.mxu1 %v541_v50  ;;  %v547_v62 = vand.u32 4294901760, %v546_v38  ;;  %289 = vmatpush2.msra.mxu0 %v6420_v26  ;;  %v6442_v38 = vsub.f32 %v6283_v52, %v6317_v2  ;;  %v6450_v43 = vand.u32 4294901760, %v6422_v37  ;;  %v6456_v50 = vld [vmem:[#allocation2 + $0x300] sm:$0xff]  ;;  %v6463_v61 = vand.u32 4294901760, %v6433_v29 }
  0x4e   :  { %12148 = vst [vmem:[#allocation59_spill] sm:$0xff] %v6431_v56  ;;  %v558_v46 = vsub.f32 %v6392_v28, %v12149_v21  ;;  %v564_v1 = vsub.f32 %v6405_v34, %v11311_v44  ;;  %291 = vmatprep.subr.mxu0 %v6431_v56  ;;  %v6454_v21 = vsub.f32 %v6308_v49, %v6336_v14  ;;  %v6465_v34 = vld [vmem:[#allocation2 + $0x2e8] sm:$0xff]  ;;  %v12155_v27 = vand.u32 4294901760, %v6428_v12 }
  0x4f   :  { %12150 = vst [vmem:[#allocation60_spill] sm:$0xff] %v6442_v38  ;;  %548 = vmatprep.subr.mxu1 %v547_v62  ;;  %12151 = vst [vmem:[#allocation61_spill] sm:$0xff] %v6450_v43  ;;  %v12153_v62 = vand.u32 4294901760, %v6417_v13  ;;  %293 = vmatpush2.msra.mxu0 %v6450_v43  ;;  %v12157_v14 = vand.u32 4294901760, %v6442_v38 }
  0x50   :  { %12152 = vst [vmem:[#allocation62_spill] sm:$0xff] %v6454_v21  ;;  %554 = vmatpush1.msra.mxu1 %v553_v47  ;;  %v559_v52 = vand.u32 4294901760, %v558_v46  ;;  %12154 = vst [vmem:[#allocation63_spill] sm:$0xff] %v6463_v61  ;;  %v565_v28 = vand.u32 4294901760, %v564_v1  ;;  %v576_v49 = vsub.f32 %v6428_v12, %v12155_v27  ;;  %v6474_v46 = vsub.f32 %v6319_v39, %v6350_v20  ;;  %v6489_v12 = vld [vmem:[#allocation2 + $0x2c8] sm:$0xff] }
  0x51   :  { %v570_v2 = vsub.f32 %v6417_v13, %v12153_v62  ;;  %v6476_v62 = vld [vmem:[#allocation2 + $0x2e0] sm:$0xff]  ;;  %v582_v1 = vsub.f32 %v6442_v38, %v12157_v14  ;;  %295 = vmatprep.subr.mxu0 %v6463_v61  ;;  %v6483_v27 = vand.u32 4294901760, %v6456_v50  ;;  %v6487_v47 = vsub.f32 %v6342_v7, %v6370_v51 }
  0x52   :  { %12156 = vst [vmem:[#allocation64_spill] sm:$0xff] %v6474_v46  ;;  %560 = vmatprep.subr.mxu1 %v559_v52  ;;  %v577_v39 = vand.u32 4294901760, %v576_v49  ;;  %v12160_v52 = vand.u32 4294901760, %v6454_v21  ;;  %v6496_v14 = vand.u32 4294901760, %v6465_v34  ;;  %v6498_v38 = vld [vmem:[#allocation2 + $0x2c0] sm:$0xff]  ;;  %v6507_v49 = vand.u32 4294901760, %v6476_v62 }
  0x53   :  { %v571_v44 = vand.u32 4294901760, %v570_v2  ;;  %12158 = vst [vmem:[#allocation65_spill] sm:$0xff] %v6483_v27  ;;  %12159 = vst [vmem:[#allocation66_spill] sm:$0xff] %v6487_v47  ;;  %566 = vmatpush2.msra.mxu1 %v565_v28  ;;  %v583_v13 = vand.u32 4294901760, %v582_v1  ;;  %297 = vmatpush2.msra.mxu0 %v6483_v27  ;;  %v11334_v7 = vand.u32 4294901760, %v6487_v47  ;;  %v6504_v28 = vsub.f32 %v6352_v32, %v6384_v41 }
  0x54   :  { %v588_v2 = vsub.f32 %v6454_v21, %v12160_v52  ;;  %12161 = vst [vmem:[#allocation67_spill] sm:$0xff] %v6496_v14  ;;  %12163 = vst [vmem:[#allocation69_spill] sm:$0xff] %v6507_v49  ;;  %v6509_v52 = vld [vmem:[#allocation2 + $0x2a8] sm:$0xff]  ;;  %v12164_v51 = vand.u32 4294901760, %v6474_v46  ;;  %299 = vmatprep.subr.mxu0 %v6496_v14  ;;  %v6517_v1 = vsub.f32 %v6363_v33, %v6395_v53  ;;  %v6520_v32 = vand.u32 4294901760, %v6489_v12  ;;  %v6534_v33 = vld [vmem:[#allocation2 + $0x2a0] sm:$0xff] }
  0x55   :  { %572 = vmatprep.subr.mxu1 %v571_v44  ;;  %12162 = vst [vmem:[#allocation68_spill] sm:$0xff] %v6504_v28  ;;  %v600_v41 = vsub.f32 %v6487_v47, %v11334_v7  ;;  %301 = vmatpush2.msra.mxu0 %v6507_v49  ;;  %v6540_v7 = vsub.f32 %v6386_v30, %v6420_v26  ;;  %v12171_v47 = vand.u32 4294901760, %v6504_v28 }
  0x56   :  { %578 = vmatpush2.msra.mxu1 %v577_v39  ;;  %v589_v20 = vand.u32 4294901760, %v588_v2  ;;  %v594_v44 = vsub.f32 %v6474_v46, %v12164_v51  ;;  %12165 = vst [vmem:[#allocation70_spill] sm:$0xff] %v6517_v1  ;;  %12166 = vst [vmem:[#allocation71_spill] sm:$0xff] %v6520_v32  ;;  %v6529_v51 = vsub.f32 %v6376_v19, %v6408_v36  ;;  %v6532_v2 = vand.u32 4294901760, %v6498_v38  ;;  %v6545_v19 = vld [vmem:[#allocation2 + $0x288] sm:$0xff] }
  0x57   :  { %584 = vmatprep.subr.mxu1 %v583_v13  ;;  %v11345_v13 = vand.u32 4294901760, %v6517_v1  ;;  %303 = vmatprep.subr.mxu0 %v6520_v32  ;;  %12169 = vst [vmem:[#allocation74_spill] sm:$0xff] %v6540_v7  ;;  %v6543_v39 = vand.u32 4294901760, %v6509_v52  ;;  %v601_v36 = vand.u32 4294901760, %v600_v41  ;;  %v606_v46 = vsub.f32 %v6504_v28, %v12171_v47 }
  0x58   :  { %12167 = vst [vmem:[#allocation72_spill] sm:$0xff] %v6529_v51  ;;  %12168 = vst [vmem:[#allocation73_spill] sm:$0xff] %v6532_v2  ;;  %590 = vmatpush2.msra.mxu1 %v589_v20  ;;  %v595_v53 = vand.u32 4294901760, %v594_v44  ;;  %305 = vmatpush2.msra.mxu0 %v6532_v2  ;;  %v6554_v44 = vsub.f32 %v6397_v24, %v6431_v56  ;;  %v6562_v41 = vand.u32 4294901760, %v6534_v33  ;;  %v6568_v20 = vld [vmem:[#allocation2 + $0x280] sm:$0xff]  ;;  %v6575_v26 = vand.u32 4294901760, %v6545_v19 }
  0x59   :  { %12170 = vst [vmem:[#allocation75_spill] sm:$0xff] %v6543_v39  ;;  %v612_v30 = vsub.f32 %v6517_v1, %v11345_v13  ;;  %307 = vmatprep.subr.mxu0 %v6543_v39  ;;  %v6566_v47 = vsub.f32 %v6422_v37, %v6450_v43  ;;  %v607_v24 = vand.u32 4294901760, %v606_v46  ;;  %v6577_v1 = vld [vmem:[#allocation2 + $0x268] sm:$0xff]  ;;  %v12177_v21 = vand.u32 4294901760, %v6540_v7 }
  0x5a   :  { %12172 = vst [vmem:[#allocation76_spill] sm:$0xff] %v6554_v44  ;;  %596 = vmatprep.subr.mxu1 %v595_v53  ;;  %12173 = vst [vmem:[#allocation77_spill] sm:$0xff] %v6562_v41  ;;  %v12175_v53 = vand.u32 4294901760, %v6529_v51  ;;  %309 = vmatpush2.msra.mxu0 %v6562_v41  ;;  %v6586_v46 = vsub.f32 %v6433_v29, %v6463_v61  ;;  %v12179_v43 = vand.u32 4294901760, %v6554_v44 }
  0x5b   :  { %12174 = vst [vmem:[#allocation78_spill] sm:$0xff] %v6566_v47  ;;  %602 = vmatpush2.msra.mxu1 %v601_v36  ;;  %12176 = vst [vmem:[#allocation79_spill] sm:$0xff] %v6575_v26  ;;  %v613_v28 = vand.u32 4294901760, %v612_v30  ;;  %v624_v37 = vsub.f32 %v6540_v7, %v12177_v21  ;;  %311 = vmatprep.subr.mxu0 %v6575_v26  ;;  %v6595_v21 = vand.u32 4294901760, %v6568_v20  ;;  %v6601_v7 = vld [vmem:[#allocation2 + $0x248] sm:$0xff] }
  0x5c   :  { %v618_v56 = vsub.f32 %v6529_v51, %v12175_v53  ;;  %12178 = vst [vmem:[#allocation80_spill] sm:$0xff] %v6586_v46  ;;  %v6588_v53 = vld [vmem:[#allocation2 + $0x260] sm:$0xff]  ;;  %608 = vmatprep.subr.mxu1 %v607_v24  ;;  %v630_v30 = vsub.f32 %v6554_v44, %v12179_v43  ;;  %v6599_v36 = vsub.f32 %v6456_v50, %v6483_v27  ;;  %v12182_v24 = vand.u32 4294901760, %v6566_v47 }
  0x5d   :  { %12180 = vst [vmem:[#allocation81_spill] sm:$0xff] %v6595_v21  ;;  %614 = vmatpush2.msra.mxu1 %v613_v28  ;;  %v625_v29 = vand.u32 4294901760, %v624_v37  ;;  %v6608_v43 = vand.u32 4294901760, %v6577_v1  ;;  %v6610_v44 = vld [vmem:[#allocation2 + $0x240] sm:$0xff]  ;;  %313 = vmatpush2.msra.mxu0 %v6595_v21  ;;  %v6616_v28 = vsub.f32 %v6465_v34, %v6496_v14  ;;  %v6619_v37 = vand.u32 4294901760, %v6588_v53 }
  0x5e   :  { %v619_v13 = vand.u32 4294901760, %v618_v56  ;;  %12181 = vst [vmem:[#allocation82_spill] sm:$0xff] %v6599_v36  ;;  %v636_v56 = vsub.f32 %v6566_v47, %v12182_v24  ;;  %v631_v51 = vand.u32 4294901760, %v630_v30  ;;  %v11368_v50 = vand.u32 4294901760, %v6599_v36  ;;  %v6621_v24 = vld [vmem:[#allocation2 + $0x228] sm:$0xff] }
  0x5f   :  { %12183 = vst [vmem:[#allocation83_spill] sm:$0xff] %v6608_v43  ;;  %12184 = vst [vmem:[#allocation84_spill] sm:$0xff] %v6616_v28  ;;  %v12185_v27 = vand.u32 4294901760, %v6586_v46  ;;  %315 = vmatprep.subr.mxu0 %v6608_v43  ;;  %v6629_v30 = vsub.f32 %v6476_v62, %v6507_v49  ;;  %v6632_v34 = vand.u32 4294901760, %v6601_v7  ;;  %v6646_v62 = vld [vmem:[#allocation2 + $0x220] sm:$0xff] }
  0x60   :  { %620 = vmatprep.subr.mxu1 %v619_v13  ;;  %v637_v61 = vand.u32 4294901760, %v636_v56  ;;  %v648_v14 = vsub.f32 %v6599_v36, %v11368_v50  ;;  %317 = vmatpush2.msra.mxu0 %v6619_v37  ;;  %v6644_v56 = vand.u32 4294901760, %v6610_v44  ;;  %v6652_v50 = vsub.f32 %v6498_v38, %v6532_v2 }
  0x61   :  { %626 = vmatpush2.msra.mxu1 %v625_v29  ;;  %v642_v13 = vsub.f32 %v6586_v46, %v12185_v27  ;;  %12186 = vst [vmem:[#allocation85_spill] sm:$0xff] %v6629_v30  ;;  %12187 = vst [vmem:[#allocation86_spill] sm:$0xff] %v6632_v34  ;;  %v6641_v27 = vsub.f32 %v6489_v12, %v6520_v32  ;;  %319 = vmatprep.subr.mxu0 %v6632_v34  ;;  %v6655_v29 = vand.u32 4294901760, %v6621_v24  ;;  %v6657_v12 = vld [vmem:[#allocation2 + $0x208] sm:$0xff] }
  0x62   :  { %632 = vmatprep.subr.mxu1 %v631_v51  ;;  %12189 = vst [vmem:[#allocation88_spill] sm:$0xff] %v6644_v56  ;;  %v11379_v51 = vand.u32 4294901760, %v6629_v30  ;;  %12190 = vst [vmem:[#allocation89_spill] sm:$0xff] %v6652_v50  ;;  %v649_v32 = vand.u32 4294901760, %v648_v14  ;;  %v12192_v36 = vand.u32 4294901760, %v6616_v28  ;;  %321 = vmatpush2.msra.mxu0 %v6644_v56  ;;  %v6674_v14 = vand.u32 4294901760, %v6646_v62 }
  0x63   :  { %12188 = vst [vmem:[#allocation87_spill] sm:$0xff] %v6641_v27  ;;  %638 = vmatpush2.msra.mxu1 %v637_v61  ;;  %v643_v49 = vand.u32 4294901760, %v642_v13  ;;  %12191 = vst [vmem:[#allocation90_spill] sm:$0xff] %v6655_v29  ;;  %v6666_v13 = vsub.f32 %v6509_v52, %v6543_v39  ;;  %323 = vmatprep.subr.mxu0 %v6655_v29  ;;  %v6680_v61 = vld [vmem:[#allocation2 + $0x200] sm:$0xff]  ;;  %v6687_v2 = vand.u32 4294901760, %v6657_v12 }
  0x64   :  { %v654_v46 = vsub.f32 %v6616_v28, %v12192_v36  ;;  %v660_v38 = vsub.f32 %v6629_v30, %v11379_v51  ;;  %v6678_v36 = vsub.f32 %v6534_v33, %v6562_v41  ;;  %v49_v30 = vld [vmem:[%s11209_s0 + $0x8] sm:$0xff]  ;;  %v12196_v33 = vand.u32 4294901760, %v6652_v50  ;;  %325 = vmatpush2.msra.mxu0 %v6674_v14 }
  0x65   :  { %12193 = vst [vmem:[#allocation91_spill] sm:$0xff] %v6666_v13  ;;  %644 = vmatprep.subr.mxu1 %v643_v49  ;;  %v12195_v49 = vand.u32 4294901760, %v6641_v27  ;;  %327 = vmatprep.subr.mxu0 %v6687_v2 }
  0x66   :  { %12194 = vst [vmem:[#allocation92_spill] sm:$0xff] %v6678_v36  ;;  %650 = vmatpush2.msra.mxu1 %v649_v32  ;;  %v655_v52 = vand.u32 4294901760, %v654_v46  ;;  %v661_v28 = vand.u32 4294901760, %v660_v38  ;;  %v672_v41 = vsub.f32 %v6652_v50, %v12196_v33  ;;  %v6699_v46 = vsub.f32 %v6545_v19, %v6575_v26 }
  0x67   :  { %v666_v39 = vsub.f32 %v6641_v27, %v12195_v49  ;;  %v48_v49 = vld [vmem:[%s11209_s0] sm:$0xff]  ;;  %v12198_v38 = vand.u32 4294901760, %v6666_v13  ;;  %v6709_v33 = vand.u32 4294901760, %v6680_v61  ;;  %v6713_v32 = vsub.f32 %v6568_v20, %v6595_v21 }
  0x68   :  { %12197 = vst [vmem:[#allocation93_spill] sm:$0xff] %v6699_v46  ;;  %656 = vmatprep.subr.mxu1 %v655_v52  ;;  %v673_v19 = vand.u32 4294901760, %v672_v41  ;;  %v12199_v26 = vand.u32 4294901760, %v6678_v36  ;;  %v6719_v50 = vand.u32 4294901760, %v49_v30  ;;  %v6725_v20 = vsub.f32 %v6577_v1, %v6608_v43 }
  0x69   :  { %v667_v51 = vand.u32 4294901760, %v666_v39  ;;  %v678_v27 = vsub.f32 %v6666_v13, %v12198_v38  ;;  %662 = vmatpush2.msra.mxu1 %v661_v28  ;;  %v11397_v39 = vand.u32 4294901760, %v6699_v46  ;;  %329 = vmatpush2.msra.mxu0 %v6709_v33  ;;  %v11396_v13 = vand.u32 4294901760, %v6713_v32 }
  0x6a   :  { %v684_v52 = vsub.f32 %v6678_v36, %v12199_v26  ;;  %12200 = vst [vmem:[#allocation94_spill] sm:$0xff] %v6719_v50  ;;  %v6727_v28 = vand.u32 4294901760, %v48_v49  ;;  %v6733_v21 = vsub.f32 %v49_v30, %v6719_v50  ;;  %766 = vmatprep.subr.mxu0 %v5945_v18  ;;  %v6749_v30 = vsub.f32 %v6601_v7, %v6632_v34 }
  0x6b   :  { %668 = vmatprep.subr.mxu1 %v667_v51  ;;  %v679_v38 = vand.u32 4294901760, %v678_v27  ;;  %v690_v26 = vsub.f32 %v6699_v46, %v11397_v39  ;;  %v6738_v27 = vsub.f32 %v6588_v53, %v6619_v37  ;;  %v696_v1 = vsub.f32 %v6713_v32, %v11396_v13  ;;  %748 = vmatprep.mubr.f32.mxu1 %v6719_v50 }
  0x6c   :  { %12201 = vst [vmem:[#allocation95_spill] sm:$0xff] %v6727_v28  ;;  %674 = vmatpush2.msra.mxu1 %v673_v19  ;;  %v685_v41 = vand.u32 4294901760, %v684_v52  ;;  %12202 = vst [vmem:[#allocation96_spill] sm:$0xff] %v6733_v21  ;;  %v11400_v51 = vand.u32 4294901760, %v6725_v20  ;;  %v6745_v19 = vsub.f32 %v48_v49, %v6727_v28  ;;  %v6753_v53 = vand.u32 4294901760, %v6733_v21 }
  0x6d   :  { %680 = vmatprep.subr.mxu1 %v679_v38  ;;  %12204 = vst [vmem:[#allocation98_spill] sm:$0xff] %v6749_v30  ;;  %v691_v52 = vand.u32 4294901760, %v690_v26  ;;  %v11405_v38 = vand.u32 4294901760, %v6738_v27  ;;  %v6758_v13 = vsub.f32 %v6610_v44, %v6644_v56  ;;  %v697_v39 = vand.u32 4294901760, %v696_v1 }
  0x6e   :  { %12203 = vst [vmem:[#allocation97_spill] sm:$0xff] %v6745_v19  ;;  %686 = vmatpush2.msra.mxu1 %v685_v41  ;;  %12205 = vst [vmem:[#allocation99_spill] sm:$0xff] %v6753_v53  ;;  %v702_v49 = vsub.f32 %v6725_v20, %v11400_v51  ;;  %v6764_v7 = vand.u32 4294901760, %v6745_v19  ;;  %v11412_v41 = vand.u32 4294901760, %v6749_v30  ;;  %v333_v26 = vsub.f32 %v6733_v21, %v6753_v53 }
  0x6f   :  { %692 = vmatprep.subr.mxu1 %v691_v52  ;;  %v708_v50 = vsub.f32 %v6738_v27, %v11405_v38  ;;  %v6775_v1 = vsub.f32 %v6621_v24, %v6655_v29  ;;  %v6784_v53 = vsub.f32 %v6646_v62, %v6674_v14  ;;  %v12208_v34 = vand.u32 4294901760, %v6758_v13 }
  0x70   :  { %12206 = vst [vmem:[#allocation100_spill] sm:$0xff] %v6764_v7  ;;  %698 = vmatpush2.msra.mxu1 %v697_v39  ;;  %v703_v51 = vand.u32 4294901760, %v702_v49  ;;  %v339_v56 = vsub.f32 %v6745_v19, %v6764_v7  ;;  %v714_v52 = vsub.f32 %v6749_v30, %v11412_v41  ;;  %v6786_v38 = vand.u32 4294901760, %v333_v26 }
  0x71   :  { %v709_v44 = vand.u32 4294901760, %v708_v50  ;;  %v720_v24 = vsub.f32 %v6758_v13, %v12208_v34  ;;  %v11416_v39 = vand.u32 4294901760, %v6775_v1  ;;  %v11415_v29 = vand.u32 4294901760, %v6784_v53 }
  0x72   :  { %12207 = vst [vmem:[#allocation101_spill] sm:$0xff] %v6786_v38  ;;  %704 = vmatprep.subr.mxu1 %v703_v51  ;;  %v6792_v49 = vand.u32 4294901760, %v339_v56  ;;  %v715_v7 = vand.u32 4294901760, %v714_v52  ;;  %v6797_v41 = vsub.f32 %v6657_v12, %v6687_v2  ;;  %335 = vmatprep.mubr.f32.mxu0 %v6786_v38  ;;  %v6805_v62 = vsub.f32 %v6680_v61, %v6709_v33  ;;  %v12224_v38 = vld [vmem:[#allocation15_spill] sm:$0xff] }
  0x73   :  { %710 = vmatpush2.msra.mxu1 %v709_v44  ;;  %v721_v50 = vand.u32 4294901760, %v720_v24  ;;  %v726_v34 = vsub.f32 %v6775_v1, %v11416_v39  ;;  %v732_v56 = vsub.f32 %v6784_v53, %v11415_v29  ;;  %v12221_v29 = vld [vmem:[#allocation36_spill] sm:$0xff]  ;;  %v12222_v39 = vld [vmem:[#allocation14_spill] sm:$0xff] }
  0x74   :  { %12209 = vst [vmem:[#allocation102_spill] sm:$0xff] %v6792_v49  ;;  %341 = vmatmul.mubr.f32.vlgmr.msra.gmra.mxu0 %v6792_v49  ;;  %716 = vmatprep.subr.mxu1 %v715_v7  ;;  %v11414_v12 = vand.u32 4294901760, %v6797_v41  ;;  %v11413_v26 = vand.u32 4294901760, %v6805_v62  ;;  %v12223_v49 = vld [vmem:[#allocation38_spill] sm:$0xff] }
  0x75   :  { %769 = vmatpush1.msra.mxu0 %v5958_v23  ;;  %722 = vmatpush2.msra.mxu1 %v721_v50  ;;  %v727_v51 = vand.u32 4294901760, %v726_v34  ;;  %v733_v44 = vand.u32 4294901760, %v732_v56  ;;  %v12210_v50 = vld [vmem:[#allocation8_spill] sm:$0xff]  ;;  %v12211_v34 = vld [vmem:[#allocation26_spill] sm:$0xff]  ;;  %v12212_v56 = vld [vmem:[#allocation9_spill] sm:$0xff] }
  0x76   :  { %772 = vmatprep.subr.mxu0 %v5964_v25  ;;  %v738_v61 = vsub.f32 %v6797_v41, %v11414_v12  ;;  %v744_v7 = vsub.f32 %v6805_v62, %v11413_v26  ;;  %v12219_v26 = vld [vmem:[#allocation34_spill] sm:$0xff]  ;;  %v12220_v12 = vld [vmem:[#allocation13_spill] sm:$0xff] }
  0x77   :  { %775 = vmatpush1.msra.mxu0 %v5978_v31  ;;  %728 = vmatprep.subr.mxu1 %v727_v51  ;;  %v12213_v51 = vld [vmem:[#allocation28_spill] sm:$0xff] }
  0x78   :  { %778 = vmatprep.subr.mxu0 %v5987_v35  ;;  %734 = vmatpush2.msra.mxu1 %v733_v44  ;;  %v739_v52 = vand.u32 4294901760, %v738_v61  ;;  %v745_v24 = vand.u32 4294901760, %v744_v7  ;;  %v12214_v44 = vld [vmem:[#allocation10_spill] sm:$0xff]  ;;  %v12216_v7 = vld [vmem:[#allocation11_spill] sm:$0xff] }
  0x79   :  { %781 = vmatpush1.msra.mxu0 %v6000_v40  ;;  %v12215_v61 = vld [vmem:[#allocation30_spill] sm:$0xff] }
  0x7a   :  { %740 = vmatprep.subr.mxu1 %v739_v52  ;;  %784 = vmatprep.subr.mxu0 %v6014_v45  ;;  %v12217_v52 = vld [vmem:[#allocation32_spill] sm:$0xff] }
  0x7b   :  { %746 = vmatpush2.msra.mxu1 %v745_v24  ;;  %787 = vmatpush1.msra.mxu0 %v6040_v59  ;;  %v12218_v24 = vld [vmem:[#allocation12_spill] sm:$0xff] }
  0x7c   :  { %750 = vmatmul.mubr.f32.vlgmr.msra.gmra.mxu1 %v6727_v28  ;;  %790 = vmatprep.subr.mxu0 %v6052_v0  ;;  %v12225_v28 = vld [vmem:[#allocation40_spill] sm:$0xff] }
  0x7d   :  { %978 = vmatprep.subr.mxu1 %v5925_v3  ;;  %793 = vmatpush1.msra.mxu0 %v6063_v8 }
  0x7e   :  { %980 = vmatpush1.msra.mxu1 %v5927_v4  ;;  %796 = vmatprep.subr.mxu0 %v6074_v42 }
  0x7f   :  { %982 = vmatprep.subr.mxu1 %v5929_v5  ;;  %799 = vmatpush1.msra.mxu0 %v6086_v48 }
  0x80   :  { %984 = vmatpush1.msra.mxu1 %v5931_v9  ;;  %802 = vmatprep.subr.mxu0 %v6100_v57 }
  0x81   :  { %986 = vmatprep.subr.mxu1 %v5933_v10  ;;  %805 = vmatpush1.msra.mxu0 %v6112_v6 }
  0x82   :  { %988 = vmatpush1.msra.mxu1 %v5935_v11  ;;  %808 = vmatprep.subr.mxu0 %v6133_v54 }
  0x83   :  { %990 = vmatprep.subr.mxu1 %v5938_v15  ;;  %811 = vmatpush1.msra.mxu0 %v6146_v63 }
  0x84   :  { %992 = vmatpush1.msra.mxu1 %v5940_v16  ;;  %814 = vmatprep.subr.mxu0 %v6164_v55 }
  0x85   :  { %994 = vmatprep.subr.mxu1 %v5942_v17  ;;  %817 = vmatpush1.msra.mxu0 %v6177_v58 }
  0x86   :  { %996 = vmatpush1.msra.mxu1 %v5955_v22  ;;  %820 = vmatprep.subr.mxu0 %v6189_v60 }
  0x87   :  { %998 = vmatprep.subr.mxu1 %v12210_v50  ;;  %823 = vmatpush1.msra.mxu0 %v12211_v34 }
  0x88   :  { %1000 = vmatpush1.msra.mxu1 %v12212_v56  ;;  %826 = vmatprep.subr.mxu0 %v12213_v51  ;;  %v12260_v51 = vld [vmem:[#allocation39_spill] sm:$0xff]  ;;  %v12281_v56 = vld [vmem:[#allocation57_spill] sm:$0xff] }
  0x89   :  { %1002 = vmatprep.subr.mxu1 %v12214_v44  ;;  %829 = vmatpush1.msra.mxu0 %v12215_v61  ;;  %v12226_v61 = vld [vmem:[#allocation16_spill] sm:$0xff] }
  0x8a   :  { %1004 = vmatpush1.msra.mxu1 %v12216_v7  ;;  %832 = vmatprep.subr.mxu0 %v12217_v52  ;;  %v12227_v7 = vld [vmem:[#allocation42_spill] sm:$0xff]  ;;  %v12228_v52 = vld [vmem:[#allocation17_spill] sm:$0xff]  ;;  %v12259_v44 = vld [vmem:[#allocation72_spill] sm:$0xff] }
  0x8b   :  { %1006 = vmatprep.subr.mxu1 %v12218_v24  ;;  %835 = vmatpush1.msra.mxu0 %v12219_v26  ;;  %v12229_v24 = vld [vmem:[#allocation44_spill] sm:$0xff]  ;;  %v12230_v26 = vld [vmem:[#allocation18_spill] sm:$0xff] }
  0x8c   :  { %1008 = vmatpush1.msra.mxu1 %v12220_v12  ;;  %838 = vmatprep.subr.mxu0 %v12221_v29  ;;  %v12231_v12 = vld [vmem:[#allocation46_spill] sm:$0xff]  ;;  %v12232_v29 = vld [vmem:[#allocation19_spill] sm:$0xff] }
  0x8d   :  { %1010 = vmatprep.subr.mxu1 %v12222_v39  ;;  %841 = vmatpush1.msra.mxu0 %v12223_v49  ;;  %v12233_v39 = vld [vmem:[#allocation48_spill] sm:$0xff] }
  0x8e   :  { %1012 = vmatpush1.msra.mxu1 %v12224_v38  ;;  %844 = vmatprep.subr.mxu0 %v12225_v28  ;;  %v12234_v49 = vld [vmem:[#allocation20_spill] sm:$0xff]  ;;  %v12235_v38 = vld [vmem:[#allocation50_spill] sm:$0xff]  ;;  %v12236_v28 = vld [vmem:[#allocation21_spill] sm:$0xff] }
  0x8f   :  { %1014 = vmatprep.subr.mxu1 %v12226_v61  ;;  %847 = vmatpush1.msra.mxu0 %v12227_v7  ;;  %v12237_v61 = vld [vmem:[#allocation52_spill] sm:$0xff]  ;;  %v12238_v7 = vld [vmem:[#allocation22_spill] sm:$0xff] }
  0x90   :  { %1016 = vmatpush1.msra.mxu1 %v12228_v52  ;;  %850 = vmatprep.subr.mxu0 %v12229_v24  ;;  %v12239_v52 = vld [vmem:[#allocation54_spill] sm:$0xff]  ;;  %v12240_v24 = vld [vmem:[#allocation23_spill] sm:$0xff] }
  0x91   :  { %1018 = vmatprep.subr.mxu1 %v12230_v26  ;;  %853 = vmatpush1.msra.mxu0 %v12231_v12  ;;  %v12241_v26 = vld [vmem:[#allocation56_spill] sm:$0xff] }
  0x92   :  { %1020 = vmatpush1.msra.mxu1 %v12232_v29  ;;  %856 = vmatprep.subr.mxu0 %v12233_v39  ;;  %v12242_v12 = vld [vmem:[#allocation24_spill] sm:$0xff]  ;;  %v12243_v29 = vld [vmem:[#allocation58_spill] sm:$0xff]  ;;  %v12244_v39 = vld [vmem:[#allocation25_spill] sm:$0xff] }
  0x93   :  { %1022 = vmatprep.subr.mxu1 %v12234_v49  ;;  %859 = vmatpush1.msra.mxu0 %v12235_v38  ;;  %v12245_v49 = vld [vmem:[#allocation60_spill] sm:$0xff] }
  0x94   :  { %1024 = vmatpush1.msra.mxu1 %v12236_v28  ;;  %862 = vmatprep.subr.mxu0 %v12237_v61  ;;  %v51_v61 = vld [vmem:[%s11209_s0 + $0x18] sm:$0xff]  ;;  %v12254_v38 = vld [vmem:[#allocation68_spill] sm:$0xff] }
  0x95   :  { %1026 = vmatprep.subr.mxu1 %v12238_v7  ;;  %865 = vmatpush2.msra.mxu0 %v12239_v52  ;;  %v12246_v28 = vld [vmem:[#allocation27_spill] sm:$0xff]  ;;  %v12247_v7 = vld [vmem:[#allocation62_spill] sm:$0xff]  ;;  %v12248_v52 = vld [vmem:[#allocation29_spill] sm:$0xff] }
  0x96   :  { %1028 = vmatpush1.msra.mxu1 %v12240_v24  ;;  %868 = vmatprep.subr.mxu0 %v12241_v26  ;;  %v12249_v24 = vld [vmem:[#allocation64_spill] sm:$0xff]  ;;  %v12253_v26 = vld [vmem:[#allocation33_spill] sm:$0xff] }
  0x97   :  { %1030 = vmatprep.subr.mxu1 %v12242_v12  ;;  %871 = vmatpush2.msra.mxu0 %v12243_v29  ;;  %v50_v29 = vld [vmem:[%s11209_s0 + $0x10] sm:$0xff]  ;;  %v12250_v12 = vld [vmem:[#allocation31_spill] sm:$0xff] }
  0x98   :  { %1032 = vmatpush1.msra.mxu1 %v12244_v39  ;;  %874 = vmatprep.subr.mxu0 %v12245_v49  ;;  %v12251_v39 = vld [vmem:[#allocation66_spill] sm:$0xff]  ;;  %v6896_v49 = vand.u32 4294901760, %v51_v61 }
  0x99   :  { %1034 = vmatprep.subr.mxu1 %v12246_v28  ;;  %877 = vmatpush2.msra.mxu0 %v12247_v7  ;;  %v12255_v28 = vld [vmem:[#allocation35_spill] sm:$0xff]  ;;  %v12256_v7 = vld [vmem:[#allocation70_spill] sm:$0xff] }
  0x9a   :  { %1036 = vmatpush1.msra.mxu1 %v12248_v52  ;;  %880 = vmatprep.subr.mxu0 %v12249_v24  ;;  %12252 = vst [vmem:[#allocation8_spill] sm:$0xff] %v6896_v49  ;;  %v6902_v52 = vand.u32 4294901760, %v50_v29  ;;  %v12258_v24 = vld [vmem:[#allocation37_spill] sm:$0xff] }
  0x9b   :  { %1038 = vmatprep.subr.mxu1 %v12250_v12  ;;  %883 = vmatpush2.msra.mxu0 %v12251_v39  ;;  %v12261_v12 = vld [vmem:[#allocation74_spill] sm:$0xff]  ;;  %v6909_v39 = vsub.f32 %v51_v61, %v6896_v49 }
  0x9c   :  { %1040 = vmatpush1.msra.mxu1 %v12253_v26  ;;  %886 = vmatprep.subr.mxu0 %v12254_v38  ;;  %12257 = vst [vmem:[#allocation26_spill] sm:$0xff] %v6902_v52  ;;  %v12263_v26 = vld [vmem:[#allocation41_spill] sm:$0xff]  ;;  %v12264_v38 = vld [vmem:[#allocation76_spill] sm:$0xff] }
  0x9d   :  { %1042 = vmatprep.subr.mxu1 %v12255_v28  ;;  %889 = vmatpush2.msra.mxu0 %v12256_v7  ;;  %12262 = vst [vmem:[#allocation103_spill] sm:$0xff] %v6909_v39  ;;  %v12265_v28 = vld [vmem:[#allocation43_spill] sm:$0xff]  ;;  %v6916_v7 = vsub.f32 %v50_v29, %v6902_v52  ;;  %v6923_v61 = vand.u32 4294901760, %v6909_v39 }
  0x9e   :  { %1044 = vmatpush2.msra.mxu1 %v12258_v24  ;;  %892 = vmatprep.subr.mxu0 %v12259_v44  ;;  %v12267_v24 = vld [vmem:[#allocation45_spill] sm:$0xff]  ;;  %v12268_v44 = vld [vmem:[#allocation80_spill] sm:$0xff] }
  0x9f   :  { %1046 = vmatprep.subr.mxu1 %v12260_v51  ;;  %895 = vmatpush2.msra.mxu0 %v12261_v12  ;;  %12266 = vst [vmem:[#allocation104_spill] sm:$0xff] %v6916_v7  ;;  %v12269_v51 = vld [vmem:[#allocation47_spill] sm:$0xff]  ;;  %v12270_v12 = vld [vmem:[#allocation82_spill] sm:$0xff]  ;;  %12271 = vst [vmem:[#allocation105_spill] sm:$0xff] %v6923_v61  ;;  %v6930_v29 = vand.u32 4294901760, %v6916_v7 }
  0xa0   :  { %1048 = vmatpush2.msra.mxu1 %v12263_v26  ;;  %898 = vmatprep.subr.mxu0 %v12264_v38  ;;  %v12272_v26 = vld [vmem:[#allocation49_spill] sm:$0xff]  ;;  %v12273_v38 = vld [vmem:[#allocation84_spill] sm:$0xff] }
  0xa1   :  { %1050 = vmatprep.subr.mxu1 %v12265_v28  ;;  %901 = vmatpush2.msra.mxu0 %v6566_v47  ;;  %v12274_v28 = vld [vmem:[#allocation51_spill] sm:$0xff]  ;;  %v12275_v47 = vld [vmem:[#allocation85_spill] sm:$0xff]  ;;  %12276 = vst [vmem:[#allocation106_spill] sm:$0xff] %v6930_v29 }
  0xa2   :  { %1052 = vmatpush2.msra.mxu1 %v12267_v24  ;;  %904 = vmatprep.subr.mxu0 %v12268_v44  ;;  %v12277_v24 = vld [vmem:[#allocation53_spill] sm:$0xff]  ;;  %v12278_v44 = vld [vmem:[#allocation87_spill] sm:$0xff] }
  0xa3   :  { %1054 = vmatprep.subr.mxu1 %v12269_v51  ;;  %907 = vmatpush2.msra.mxu0 %v12270_v12  ;;  %v12279_v51 = vld [vmem:[#allocation55_spill] sm:$0xff]  ;;  %v12280_v12 = vld [vmem:[#allocation89_spill] sm:$0xff] }
  0xa4   :  { %1056 = vmatpush2.msra.mxu1 %v12272_v26  ;;  %910 = vmatprep.subr.mxu0 %v12273_v38  ;;  %v349_v26 = vsub.f32 %v6909_v39, %v6923_v61  ;;  %v12282_v38 = vld [vmem:[#allocation91_spill] sm:$0xff] }
  0xa5   :  { %1058 = vmatprep.subr.mxu1 %v12274_v28  ;;  %913 = vmatpush2.msra.mxu0 %v12275_v47  ;;  %v12283_v28 = vld [vmem:[#allocation59_spill] sm:$0xff]  ;;  %v12284_v47 = vld [vmem:[#allocation61_spill] sm:$0xff] }
  0xa6   :  { %1060 = vmatpush2.msra.mxu1 %v12277_v24  ;;  %916 = vmatprep.subr.mxu0 %v12278_v44  ;;  %v355_v24 = vsub.f32 %v6916_v7, %v6930_v29 }
  0xa7   :  { %1062 = vmatprep.subr.mxu1 %v12279_v51  ;;  %919 = vmatpush2.msra.mxu0 %v12280_v12  ;;  %v12285_v51 = vld [vmem:[#allocation63_spill] sm:$0xff]  ;;  %v6948_v12 = vand.u32 4294901760, %v349_v26  ;;  %v12292_v26 = vld [vmem:[#allocation73_spill] sm:$0xff] }
  0xa8   :  { %1064 = vmatpush2.msra.mxu1 %v12281_v56  ;;  %922 = vmatprep.subr.mxu0 %v12282_v38  ;;  %v12287_v56 = vld [vmem:[#allocation65_spill] sm:$0xff] }
  0xa9   :  { %1066 = vmatprep.subr.mxu1 %v12283_v28  ;;  %925 = vmatpush2.msra.mxu0 %v6678_v36  ;;  %12286 = vst [vmem:[#allocation87_spill] sm:$0xff] %v6948_v12  ;;  %v12288_v28 = vld [vmem:[#allocation67_spill] sm:$0xff]  ;;  %v6954_v36 = vand.u32 4294901760, %v355_v24  ;;  %v12290_v38 = vld [vmem:[#allocation69_spill] sm:$0xff] }
  0xaa   :  { %1068 = vmatpush2.msra.mxu1 %v12284_v47  ;;  %928 = vmatprep.subr.mxu0 %v6699_v46  ;;  %v12291_v46 = vld [vmem:[#allocation71_spill] sm:$0xff]  ;;  %v12294_v24 = vld [vmem:[#allocation77_spill] sm:$0xff] }
  0xab   :  { %1070 = vmatprep.subr.mxu1 %v12285_v51  ;;  %931 = vmatpush2.msra.mxu0 %v6713_v32  ;;  %12289 = vst [vmem:[#allocation61_spill] sm:$0xff] %v6954_v36 }
  0xac   :  { %1072 = vmatpush2.msra.mxu1 %v12287_v56  ;;  %934 = vmatprep.subr.mxu0 %v6725_v20 }
  0xad   :  { %1074 = vmatprep.subr.mxu1 %v12288_v28  ;;  %937 = vmatpush2.msra.mxu0 %v6738_v27  ;;  %v12293_v28 = vld [vmem:[#allocation75_spill] sm:$0xff] }
  0xae   :  { %1076 = vmatpush2.msra.mxu1 %v12290_v38  ;;  %940 = vmatprep.subr.mxu0 %v6749_v30  ;;  %v12295_v30 = vld [vmem:[#allocation79_spill] sm:$0xff] }
  0xaf   :  { %1078 = vmatprep.subr.mxu1 %v12291_v46  ;;  %351 = vmatprep.mubr.f32.mxu0 %v6948_v12  ;;  %v12296_v12 = vld [vmem:[#allocation81_spill] sm:$0xff] }
  0xb0   :  { %943 = vmatpush2.msra.mxu0 %v6758_v13  ;;  %1080 = vmatpush2.msra.mxu1 %v12292_v26 }
  0xb1   :  { %357 = vmatmul.mubr.f32.gmra.mxu0 %v6954_v36  ;;  %946 = vmatprep.subr.mxu0 %v6775_v1  ;;  %v12297_v36 = vand.u32 4294901760, %v5945_v18  ;;  %v12303_v18 = vld [vmem:[#allocation90_spill] sm:$0xff] }
  0xb2   :  { %1082 = vmatprep.subr.mxu1 %v12293_v28  ;;  %949 = vmatpush2.msra.mxu0 %v6784_v53 }
  0xb3   :  { %1084 = vmatpush2.msra.mxu1 %v12294_v24  ;;  %952 = vmatprep.subr.mxu0 %v6797_v41  ;;  %v12298_v24 = vand.u32 4294901760, %v5958_v23  ;;  %v12304_v23 = vand.u32 4294901760, %v5987_v35  ;;  %v12309_v35 = vld [vmem:[#allocation100_spill] sm:$0xff] }
  0xb4   :  { %1086 = vmatprep.subr.mxu1 %v12295_v30  ;;  %955 = vmatpush2.msra.mxu0 %v6805_v62  ;;  %v12299_v30 = vld [vmem:[#allocation86_spill] sm:$0xff] }
  0xb5   :  { %958 = vmatprep.mubr.f32.mxu0 %v6733_v21  ;;  %1088 = vmatpush2.msra.mxu1 %v12296_v12  ;;  %v12300_v21 = vand.u32 4294901760, %v5964_v25  ;;  %v12305_v25 = vand.u32 4294901760, %v6000_v40  ;;  %v12311_v40 = vand.u32 4294901760, %v6063_v8  ;;  %v12322_v8 = vld [vmem:[#allocation9_spill] sm:$0xff] }
  0xb6   :  { %961 = vmatmul.mubr.f32.vlgmr.msra.gmra.mxu0 %v6745_v19  ;;  %1090 = vmatprep.subr.mxu1 %v6608_v43  ;;  %v12301_v19 = vand.u32 4294901760, %v5978_v31  ;;  %v12302_v43 = vld [vmem:[#allocation88_spill] sm:$0xff]  ;;  %v12306_v31 = vand.u32 4294901760, %v6014_v45  ;;  %v12312_v45 = vand.u32 4294901760, %v6074_v42 }
  0xb7   :  { %1133 = vmatprep.subr.mxu0 %v12297_v36  ;;  %1092 = vmatpush2.msra.mxu1 %v6619_v37  ;;  %v12308_v36 = vand.u32 4294901760, %v6040_v59  ;;  %v12313_v59 = vand.u32 4294901760, %v6086_v48  ;;  %v12325_v48 = vld [vmem:[#allocation10_spill] sm:$0xff] }
  0xb8   :  { %1137 = vmatpush1.msra.mxu0 %v12298_v24  ;;  %756 = vmatprep.mubr.f32.mxu1 %v6896_v49  ;;  %v12337_v24 = vld [vmem:[#allocation14_spill] sm:$0xff] }
  0xb9   :  { %1094 = vmatprep.subr.mxu1 %v12299_v30  ;;  %1141 = vmatprep.subr.mxu0 %v12300_v21  ;;  %v12307_v21 = vld [vmem:[#allocation99_spill] sm:$0xff] }
  0xba   :  { %758 = vmatmul.mubr.f32.gmra.mxu1 %v6902_v52  ;;  %1145 = vmatpush1.msra.mxu0 %v12301_v19  ;;  %v12310_v19 = vand.u32 4294901760, %v6052_v0  ;;  %v12317_v0 = vand.u32 4294901760, %v6146_v63  ;;  %v12331_v63 = vld [vmem:[#allocation12_spill] sm:$0xff] }
  0xbb   :  { %1096 = vmatpush2.msra.mxu1 %v12302_v43  ;;  %968 = vmatprep.mubr.f32.mxu0 %v6909_v39 }
  0xbc   :  { %1098 = vmatprep.subr.mxu1 %v12303_v18  ;;  %1149 = vmatprep.subr.mxu0 %v12304_v23  ;;  %v12338_v23 = vld [vmem:[#allocation38_spill] sm:$0xff] }
  0xbd   :  { %971 = vmatmul.mubr.f32.gmra.mxu0 %v6916_v7  ;;  %1100 = vmatpush2.msra.mxu1 %v6674_v14 }
  0xbe   :  { %1153 = vmatpush1.msra.mxu0 %v12305_v25  ;;  %1102 = vmatprep.subr.mxu1 %v6687_v2  ;;  %v12339_v25 = vand.u32 4294901760, %v12338_v23  ;;  %v12370_v23 = vld [vmem:[#allocation25_spill] sm:$0xff] }
  0xbf   :  { %1157 = vmatprep.subr.mxu0 %v12306_v31  ;;  %1104 = vmatpush2.msra.mxu1 %v6709_v33  ;;  %v12340_v31 = vld [vmem:[#allocation15_spill] sm:$0xff] }
  0xc0   :  { %1108 = vmatprep.mubr.f32.mxu1 %v12307_v21  ;;  %1161 = vmatpush1.msra.mxu0 %v12308_v36  ;;  %v12341_v36 = vld [vmem:[#allocation40_spill] sm:$0xff]  ;;  %v12469_v21 = vld [vmem:[#allocation83_spill] sm:$0xff] }
  0xc1   :  { %1112 = vmatmul.mubr.f32.vlgmr.msra.gmra.mxu1 %v12309_v35  ;;  %1165 = vmatprep.subr.mxu0 %v12310_v19  ;;  %v12342_v19 = vand.u32 4294901760, %v12341_v36  ;;  %v12373_v36 = vld [vmem:[#allocation27_spill] sm:$0xff]  ;;  %v78_v35 = vld [vmem:[#allocation2 + $0xd0] sm:$0xff] }
  0xc2   :  { %1404 = vmatprep.subr.mxu1 %v5925_v3  ;;  %1169 = vmatpush1.msra.mxu0 %v12311_v40  ;;  %v12314_v3 = vand.u32 4294901760, %v6100_v57  ;;  %v12328_v57 = vld [vmem:[#allocation11_spill] sm:$0xff]  ;;  %v12343_v40 = vld [vmem:[#allocation16_spill] sm:$0xff] }
  0xc3   :  { %1406 = vmatpush1.msra.mxu1 %v5927_v4  ;;  %1173 = vmatprep.subr.mxu0 %v12312_v45  ;;  %v12315_v4 = vand.u32 4294901760, %v6112_v6  ;;  %v12332_v6 = vld [vmem:[#allocation34_spill] sm:$0xff] }
  0xc4   :  { %1408 = vmatprep.subr.mxu1 %v5929_v5  ;;  %1120 = vmatprep.mubr.f32.mxu1 %v6923_v61  ;;  %v12316_v5 = vand.u32 4294901760, %v6133_v54  ;;  %v12344_v45 = vld [vmem:[#allocation42_spill] sm:$0xff]  ;;  %v12459_v61 = vld [vmem:[#allocation79_spill] sm:$0xff] }
  0xc5   :  { %1177 = vmatpush1.msra.mxu0 %v12313_v59  ;;  %1410 = vmatpush1.msra.mxu1 %v5931_v9  ;;  %v12318_v9 = vand.u32 4294901760, %v6164_v55  ;;  %v12333_v55 = vand.u32 4294901760, %v12332_v6  ;;  %v12345_v59 = vand.u32 4294901760, %v12344_v45  ;;  %v12364_v6 = vld [vmem:[#allocation23_spill] sm:$0xff]  ;;  %v12376_v45 = vld [vmem:[#allocation29_spill] sm:$0xff] }
  0xc6   :  { %1124 = vmatmul.mubr.f32.gmra.mxu1 %v6930_v29  ;;  %1181 = vmatprep.subr.mxu0 %v12314_v3  ;;  %v12346_v3 = vld [vmem:[#allocation17_spill] sm:$0xff] }
  0xc7   :  { %1412 = vmatprep.subr.mxu1 %v5933_v10  ;;  %1185 = vmatpush1.msra.mxu0 %v12315_v4  ;;  %v12319_v10 = vand.u32 4294901760, %v6177_v58  ;;  %v12334_v58 = vld [vmem:[#allocation13_spill] sm:$0xff]  ;;  %v12347_v4 = vld [vmem:[#allocation44_spill] sm:$0xff] }
  0xc8   :  { %1414 = vmatpush1.msra.mxu1 %v5935_v11  ;;  %1189 = vmatprep.subr.mxu0 %v12316_v5  ;;  %v12320_v11 = vand.u32 4294901760, %v6189_v60  ;;  %v12348_v5 = vand.u32 4294901760, %v12347_v4  ;;  %v12379_v4 = vld [vmem:[#allocation31_spill] sm:$0xff] }
  0xc9   :  { %1416 = vmatprep.subr.mxu1 %v5938_v15  ;;  %1193 = vmatpush1.msra.mxu0 %v12317_v0  ;;  %v12321_v15 = vand.u32 4294901760, %v12211_v34  ;;  %v12349_v0 = vld [vmem:[#allocation18_spill] sm:$0xff] }
  0xca   :  { %1418 = vmatpush1.msra.mxu1 %v5940_v16  ;;  %1197 = vmatprep.subr.mxu0 %v12318_v9  ;;  %v12323_v16 = vld [vmem:[#allocation28_spill] sm:$0xff]  ;;  %v12350_v9 = vld [vmem:[#allocation46_spill] sm:$0xff] }
  0xcb   :  { %1420 = vmatprep.subr.mxu1 %v5942_v17  ;;  %1201 = vmatpush1.msra.mxu0 %v12319_v10  ;;  %v12324_v42 = vand.u32 4294901760, %v12323_v16  ;;  %v12326_v17 = vld [vmem:[#allocation30_spill] sm:$0xff]  ;;  %v12351_v10 = vand.u32 4294901760, %v12350_v9  ;;  %v12355_v16 = vld [vmem:[#allocation20_spill] sm:$0xff]  ;;  %v12382_v9 = vld [vmem:[#allocation33_spill] sm:$0xff] }
  0xcc   :  { %1422 = vmatpush1.msra.mxu1 %v5955_v22  ;;  %1205 = vmatprep.subr.mxu0 %v12320_v11  ;;  %v12327_v54 = vand.u32 4294901760, %v12326_v17  ;;  %v12329_v22 = vld [vmem:[#allocation32_spill] sm:$0xff]  ;;  %v12352_v11 = vld [vmem:[#allocation19_spill] sm:$0xff]  ;;  %v12358_v17 = vld [vmem:[#allocation21_spill] sm:$0xff] }
  0xcd   :  { %1424 = vmatprep.subr.mxu1 %v12210_v50  ;;  %1209 = vmatpush1.msra.mxu0 %v12321_v15  ;;  %v12330_v60 = vand.u32 4294901760, %v12329_v22  ;;  %v12335_v50 = vld [vmem:[#allocation36_spill] sm:$0xff]  ;;  %v12361_v22 = vld [vmem:[#allocation22_spill] sm:$0xff] }
  0xce   :  { %1426 = vmatpush1.msra.mxu1 %v12322_v8  ;;  %1213 = vmatprep.subr.mxu0 %v12324_v42  ;;  %v12336_v34 = vand.u32 4294901760, %v12335_v50  ;;  %v12353_v15 = vld [vmem:[#allocation48_spill] sm:$0xff]  ;;  %v12356_v42 = vld [vmem:[#allocation50_spill] sm:$0xff] }
  0xcf   :  { %1428 = vmatprep.subr.mxu1 %v12325_v48  ;;  %1217 = vmatpush1.msra.mxu0 %v12327_v54  ;;  %v12354_v8 = vand.u32 4294901760, %v12353_v15  ;;  %v12357_v48 = vand.u32 4294901760, %v12356_v42  ;;  %v12359_v54 = vld [vmem:[#allocation52_spill] sm:$0xff]  ;;  %v115_v15 = vld [vmem:[#allocation2 + $0x1f8] sm:$0xff] }
  0xd0   :  { %1430 = vmatpush1.msra.mxu1 %v12328_v57  ;;  %1221 = vmatprep.subr.mxu0 %v12330_v60  ;;  %v12360_v57 = vand.u32 4294901760, %v12359_v54  ;;  %v12362_v60 = vld [vmem:[#allocation54_spill] sm:$0xff]  ;;  %v12367_v50 = vld [vmem:[#allocation24_spill] sm:$0xff] }
  0xd1   :  { %1432 = vmatprep.subr.mxu1 %v12331_v63  ;;  %1225 = vmatpush1.msra.mxu0 %v12333_v55  ;;  %v12363_v63 = vand.u32 4294901760, %v12362_v60  ;;  %v12365_v55 = vld [vmem:[#allocation56_spill] sm:$0xff]  ;;  %v12392_v60 = vld [vmem:[#allocation74_spill] sm:$0xff] }
  0xd2   :  { %1434 = vmatpush1.msra.mxu1 %v12334_v58  ;;  %1229 = vmatprep.subr.mxu0 %v12336_v34  ;;  %v12366_v58 = vand.u32 4294901760, %v12365_v55  ;;  %v12368_v34 = vld [vmem:[#allocation58_spill] sm:$0xff]  ;;  %v12389_v54 = vld [vmem:[#allocation72_spill] sm:$0xff]  ;;  %v111_v55 = vld [vmem:[#allocation2 + $0x1d8] sm:$0xff] }
  0xd3   :  { %1436 = vmatprep.subr.mxu1 %v12337_v24  ;;  %1233 = vmatpush1.msra.mxu0 %v12339_v25  ;;  %v12369_v24 = vand.u32 4294901760, %v12368_v34  ;;  %v12371_v25 = vld [vmem:[#allocation60_spill] sm:$0xff] }
  0xd4   :  { %1438 = vmatpush1.msra.mxu1 %v12340_v31  ;;  %1237 = vmatprep.subr.mxu0 %v12342_v19  ;;  %v12372_v31 = vand.u32 4294901760, %v12371_v25  ;;  %v12374_v19 = vld [vmem:[#allocation62_spill] sm:$0xff]  ;;  %v12399_v25 = vld [vmem:[#allocation43_spill] sm:$0xff] }
  0xd5   :  { %1440 = vmatprep.subr.mxu1 %v12343_v40  ;;  %1241 = vmatpush1.msra.mxu0 %v12345_v59  ;;  %v12375_v40 = vand.u32 4294901760, %v12374_v19  ;;  %v12377_v59 = vld [vmem:[#allocation64_spill] sm:$0xff]  ;;  %v12402_v19 = vld [vmem:[#allocation45_spill] sm:$0xff] }
  0xd6   :  { %1442 = vmatpush1.msra.mxu1 %v12346_v3  ;;  %1245 = vmatprep.subr.mxu0 %v12348_v5  ;;  %v12378_v3 = vand.u32 4294901760, %v12377_v59  ;;  %v12380_v5 = vld [vmem:[#allocation66_spill] sm:$0xff]  ;;  %v7125_v59 = vand.u32 4294901760, %v111_v55 }
  0xd7   :  { %1444 = vmatprep.subr.mxu1 %v12349_v0  ;;  %1249 = vmatpush1.msra.mxu0 %v12351_v10  ;;  %v12381_v0 = vand.u32 4294901760, %v12380_v5  ;;  %v12383_v10 = vld [vmem:[#allocation68_spill] sm:$0xff]  ;;  %v12406_v5 = vld [vmem:[#allocation47_spill] sm:$0xff] }
  0xd8   :  { %1446 = vmatpush1.msra.mxu1 %v12352_v11  ;;  %1253 = vmatprep.subr.mxu0 %v12354_v8  ;;  %v12384_v11 = vand.u32 4294901760, %v12383_v10  ;;  %v12385_v8 = vld [vmem:[#allocation35_spill] sm:$0xff]  ;;  %12405 = vst [vmem:[#allocation69_spill] sm:$0xff] %v7125_v59 }
  0xd9   :  { %1448 = vmatprep.subr.mxu1 %v12355_v16  ;;  %1257 = vmatpush1.msra.mxu0 %v12357_v48  ;;  %v12386_v16 = vld [vmem:[#allocation70_spill] sm:$0xff] }
  0xda   :  { %1450 = vmatpush1.msra.mxu1 %v12358_v17  ;;  %1261 = vmatprep.subr.mxu0 %v12360_v57  ;;  %v12387_v42 = vand.u32 4294901760, %v12386_v16  ;;  %v114_v48 = vld [vmem:[#allocation2 + $0x1f0] sm:$0xff]  ;;  %v12388_v17 = vld [vmem:[#allocation37_spill] sm:$0xff]  ;;  %v12390_v57 = vand.u32 4294901760, %v12389_v54  ;;  %v12411_v16 = vld [vmem:[#allocation84_spill] sm:$0xff] }
  0xdb   :  { %1452 = vmatprep.subr.mxu1 %v12361_v22  ;;  %1265 = vmatpush2.msra.mxu0 %v12363_v63  ;;  %v12391_v22 = vld [vmem:[#allocation39_spill] sm:$0xff]  ;;  %v12393_v63 = vand.u32 4294901760, %v12392_v60 }
  0xdc   :  { %1454 = vmatpush1.msra.mxu1 %v12364_v6  ;;  %1269 = vmatprep.subr.mxu0 %v12366_v58  ;;  %v7112_v6 = vand.u32 4294901760, %v115_v15  ;;  %v12395_v58 = vld [vmem:[#allocation41_spill] sm:$0xff]  ;;  %v103_v54 = vld [vmem:[#allocation2 + $0x198] sm:$0xff] }
  0xdd   :  { %1456 = vmatprep.subr.mxu1 %v12367_v50  ;;  %1273 = vmatpush2.msra.mxu0 %v12369_v24  ;;  %v12396_v50 = vld [vmem:[#allocation76_spill] sm:$0xff]  ;;  %v7117_v24 = vand.u32 4294901760, %v114_v48 }
  0xde   :  { %1458 = vmatpush1.msra.mxu1 %v12370_v23  ;;  %1277 = vmatprep.subr.mxu0 %v12372_v31  ;;  %12394 = vst [vmem:[#allocation63_spill] sm:$0xff] %v7112_v6  ;;  %v12397_v34 = vand.u32 4294901760, %v12396_v50  ;;  %v110_v23 = vld [vmem:[#allocation2 + $0x1d0] sm:$0xff]  ;;  %v12418_v50 = vld [vmem:[#allocation53_spill] sm:$0xff] }
  0xdf   :  { %1460 = vmatprep.subr.mxu1 %v12373_v36  ;;  %1281 = vmatpush2.msra.mxu0 %v12375_v40  ;;  %12398 = vst [vmem:[#allocation65_spill] sm:$0xff] %v7117_v24  ;;  %v12400_v31 = vld [vmem:[#allocation78_spill] sm:$0xff]  ;;  %v12403_v40 = vld [vmem:[#allocation80_spill] sm:$0xff]  ;;  %v7130_v10 = vand.u32 4294901760, %v110_v23 }
  0xe0   :  { %1462 = vmatpush1.msra.mxu1 %v12376_v45  ;;  %1285 = vmatprep.subr.mxu0 %v12378_v3  ;;  %v12401_v36 = vand.u32 4294901760, %v12400_v31  ;;  %v12404_v45 = vand.u32 4294901760, %v12403_v40  ;;  %v107_v3 = vld [vmem:[#allocation2 + $0x1b8] sm:$0xff]  ;;  %v12421_v31 = vld [vmem:[#allocation89_spill] sm:$0xff]  ;;  %v7160_v40 = vand.u32 4294901760, %v103_v54 }
  0xe1   :  { %1464 = vmatprep.subr.mxu1 %v12379_v4  ;;  %1289 = vmatpush2.msra.mxu0 %v12381_v0  ;;  %v106_v4 = vld [vmem:[#allocation2 + $0x1b0] sm:$0xff]  ;;  %12409 = vst [vmem:[#allocation71_spill] sm:$0xff] %v7130_v10 }
  0xe2   :  { %1466 = vmatpush1.msra.mxu1 %v12382_v9  ;;  %1293 = vmatprep.subr.mxu0 %v12384_v11  ;;  %v12407_v0 = vld [vmem:[#allocation82_spill] sm:$0xff]  ;;  %v7133_v11 = vsub.f32 %v115_v15, %v7112_v6  ;;  %12423 = vst [vmem:[#allocation81_spill] sm:$0xff] %v7160_v40 }
  0xe3   :  { %1468 = vmatprep.subr.mxu1 %v12385_v8  ;;  %1297 = vmatpush2.msra.mxu0 %v12387_v42  ;;  %v12408_v9 = vand.u32 4294901760, %v12407_v0  ;;  %v12410_v8 = vld [vmem:[#allocation49_spill] sm:$0xff]  ;;  %v12412_v42 = vand.u32 4294901760, %v12411_v16  ;;  %v102_v15 = vld [vmem:[#allocation2 + $0x190] sm:$0xff] }
  0xe4   :  { %1470 = vmatpush2.msra.mxu1 %v12388_v17  ;;  %1301 = vmatprep.subr.mxu0 %v12390_v57  ;;  %v7139_v17 = vsub.f32 %v114_v48, %v7117_v24  ;;  %v12413_v57 = vld [vmem:[#allocation51_spill] sm:$0xff]  ;;  %v98_v0 = vld [vmem:[#allocation2 + $0x170] sm:$0xff] }
  0xe5   :  { %1472 = vmatprep.subr.mxu1 %v12391_v22  ;;  %1305 = vmatpush2.msra.mxu0 %v12393_v63  ;;  %v12414_v22 = vld [vmem:[#allocation85_spill] sm:$0xff]  ;;  %v7144_v63 = vand.u32 4294901760, %v107_v3  ;;  %v12420_v48 = vld [vmem:[#allocation55_spill] sm:$0xff] }
  0xe6   :  { %1474 = vmatpush2.msra.mxu1 %v12395_v58  ;;  %1309 = vmatprep.subr.mxu0 %v12397_v34  ;;  %v12415_v60 = vand.u32 4294901760, %v12414_v22  ;;  %v7146_v58 = vand.u32 4294901760, %v106_v4  ;;  %v12419_v34 = vand.u32 4294901760, %v12278_v44  ;;  %v12425_v44 = vld [vmem:[#allocation91_spill] sm:$0xff]  ;;  %v11430_v16 = vand.u32 4294901760, %v7139_v17 }
  0xe7   :  { %1476 = vmatprep.subr.mxu1 %v12399_v25  ;;  %1313 = vmatpush2.msra.mxu0 %v12401_v36  ;;  %12416 = vst [vmem:[#allocation73_spill] sm:$0xff] %v7144_v63  ;;  %v7152_v25 = vsub.f32 %v111_v55, %v7125_v59  ;;  %v12422_v36 = vand.u32 4294901760, %v12421_v31  ;;  %v7166_v55 = vand.u32 4294901760, %v102_v15 }
  0xe8   :  { %1478 = vmatpush2.msra.mxu1 %v12402_v19  ;;  %1317 = vmatprep.subr.mxu0 %v12404_v45  ;;  %12417 = vst [vmem:[#allocation75_spill] sm:$0xff] %v7146_v58  ;;  %v7158_v19 = vsub.f32 %v110_v23, %v7130_v10  ;;  %v99_v45 = vld [vmem:[#allocation2 + $0x178] sm:$0xff]  ;;  %v7173_v22 = vsub.f32 %v106_v4, %v7146_v58  ;;  %v12435_v4 = vand.u32 4294901760, %v6713_v32 }
  0xe9   :  { %1480 = vmatprep.subr.mxu1 %v12406_v5  ;;  %1321 = vmatpush2.msra.mxu0 %v12408_v9  ;;  %v11431_v5 = vand.u32 4294901760, %v7133_v11  ;;  %v12424_v9 = vld [vmem:[#allocation57_spill] sm:$0xff]  ;;  %12427 = vst [vmem:[#allocation86_spill] sm:$0xff] %v7166_v55  ;;  %v7181_v31 = vand.u32 4294901760, %v99_v45  ;;  %v7207_v32 = vsub.f32 %v7139_v17, %v11430_v16 }
  0xea   :  { %1482 = vmatpush2.msra.mxu1 %v12410_v8  ;;  %1325 = vmatprep.subr.mxu0 %v12412_v42  ;;  %v12426_v8 = vand.u32 4294901760, %v12425_v44  ;;  %v12428_v42 = vld [vmem:[#allocation59_spill] sm:$0xff]  ;;  %v94_v44 = vld [vmem:[#allocation2 + $0x150] sm:$0xff] }
  0xeb   :  { %1484 = vmatprep.subr.mxu1 %v12413_v57  ;;  %1329 = vmatpush2.msra.mxu0 %v12415_v60  ;;  %v12429_v57 = vld [vmem:[#allocation92_spill] sm:$0xff]  ;;  %v95_v60 = vld [vmem:[#allocation2 + $0x158] sm:$0xff]  ;;  %12433 = vst [vmem:[#allocation88_spill] sm:$0xff] %v7181_v31 }
  0xec   :  { %1486 = vmatpush2.msra.mxu1 %v12418_v50  ;;  %1333 = vmatprep.subr.mxu0 %v12419_v34  ;;  %v12430_v23 = vand.u32 4294901760, %v12429_v57  ;;  %v7176_v50 = vsub.f32 %v107_v3, %v7144_v63  ;;  %v12431_v34 = vld [vmem:[#allocation93_spill] sm:$0xff]  ;;  %v7192_v3 = vsub.f32 %v7133_v11, %v11431_v5  ;;  %v12436_v57 = vand.u32 4294901760, %v6725_v20 }
  0xed   :  { %1488 = vmatprep.subr.mxu1 %v12420_v48  ;;  %1337 = vmatpush2.msra.mxu0 %v12422_v36  ;;  %v12432_v48 = vand.u32 4294901760, %v12431_v34  ;;  %v7183_v36 = vand.u32 4294901760, %v98_v0  ;;  %v90_v34 = vld [vmem:[#allocation2 + $0x130] sm:$0xff]  ;;  %v7232_v20 = vsub.f32 %v99_v45, %v7181_v31  ;;  %v12449_v45 = vand.u32 4294901760, %v6775_v1 }
  0xee   :  { %1490 = vmatpush2.msra.mxu1 %v12424_v9  ;;  %1341 = vmatprep.subr.mxu0 %v12426_v8  ;;  %v11432_v9 = vand.u32 4294901760, %v7152_v25  ;;  %v91_v8 = vld [vmem:[#allocation2 + $0x138] sm:$0xff]  ;;  %v12453_v1 = vand.u32 4294901760, %v7176_v50 }
  0xef   :  { %1492 = vmatprep.subr.mxu1 %v12428_v42  ;;  %1345 = vmatpush2.msra.mxu0 %v12430_v23  ;;  %12434 = vst [vmem:[#allocation90_spill] sm:$0xff] %v7183_v36  ;;  %v7196_v42 = vsub.f32 %v103_v54, %v7160_v40  ;;  %v7209_v23 = vand.u32 4294901760, %v95_v60  ;;  %v12440_v54 = vand.u32 4294901760, %v6738_v27  ;;  %v7222_v5 = vsub.f32 %v98_v0, %v7183_v36 }
  0xf0   :  { %1494 = vmatpush2.msra.mxu1 %v12284_v47  ;;  %1349 = vmatprep.subr.mxu0 %v12432_v48  ;;  %v11433_v47 = vand.u32 4294901760, %v7158_v19  ;;  %v12439_v48 = vld [vmem:[#allocation67_spill] sm:$0xff]  ;;  %v7227_v27 = vsub.f32 %v7152_v25, %v11432_v9  ;;  %12446 = vst [vmem:[#allocation32_spill] sm:$0xff] %v7232_v20  ;;  %v82_v9 = vld [vmem:[#allocation2 + $0xf0] sm:$0xff] }
  0xf1   :  { %1496 = vmatprep.subr.mxu1 %v12285_v51  ;;  %1353 = vmatpush2.msra.mxu0 %v12435_v4  ;;  %v7202_v51 = vsub.f32 %v102_v15, %v7166_v55  ;;  %12438 = vst [vmem:[#allocation28_spill] sm:$0xff] %v7209_v23  ;;  %v87_v4 = vld [vmem:[#allocation2 + $0x118] sm:$0xff]  ;;  %12444 = vst [vmem:[#allocation30_spill] sm:$0xff] %v7222_v5  ;;  %v7254_v15 = vsub.f32 %v95_v60, %v7209_v23 }
  0xf2   :  { %1498 = vmatpush2.msra.mxu1 %v12287_v56  ;;  %1357 = vmatprep.subr.mxu0 %v12436_v57  ;;  %v7214_v56 = vand.u32 4294901760, %v94_v44  ;;  %v12442_v57 = vld [vmem:[#allocation98_spill] sm:$0xff]  ;;  %v7241_v0 = vsub.f32 %v7158_v19, %v11433_v47  ;;  %v12451_v47 = vand.u32 4294901760, %v6784_v53  ;;  %v12457_v53 = vand.u32 4294901760, %v6797_v41 }
  0xf3   :  { %12437 = vst [vmem:[#allocation9_spill] sm:$0xff] %v7202_v51  ;;  %1500 = vmatprep.subr.mxu1 %v12439_v48  ;;  %1361 = vmatpush2.msra.mxu0 %v12440_v54  ;;  %v12443_v16 = vand.u32 4294901760, %v12442_v57  ;;  %v7229_v48 = vand.u32 4294901760, %v91_v8  ;;  %v86_v54 = vld [vmem:[#allocation2 + $0x110] sm:$0xff]  ;;  %v7243_v57 = vand.u32 4294901760, %v90_v34  ;;  %12450 = vst [vmem:[#allocation34_spill] sm:$0xff] %v7254_v15 }
  0xf4   :  { %12441 = vst [vmem:[#allocation10_spill] sm:$0xff] %v7214_v56  ;;  %1502 = vmatpush2.msra.mxu1 %v12290_v38  ;;  %v12447_v38 = vand.u32 4294901760, %v6758_v13  ;;  %v7250_v13 = vand.u32 4294901760, %v87_v4  ;;  %v7272_v60 = vand.u32 4294901760, %v86_v54  ;;  %v12462_v41 = vand.u32 4294901760, %v7196_v42 }
  0xf5   :  { %1365 = vmatprep.subr.mxu0 %v12443_v16  ;;  %12445 = vst [vmem:[#allocation11_spill] sm:$0xff] %v7229_v48  ;;  %1504 = vmatprep.subr.mxu1 %v12291_v46  ;;  %12448 = vst [vmem:[#allocation12_spill] sm:$0xff] %v7243_v57  ;;  %v83_v16 = vld [vmem:[#allocation2 + $0xf8] sm:$0xff]  ;;  %v12454_v46 = vand.u32 4294901760, %v7173_v22  ;;  %v7281_v29 = vsub.f32 %v91_v8, %v7229_v48  ;;  %v12464_v8 = vld [vmem:[#allocation94_spill] sm:$0xff] }
  0xf6   :  { %1369 = vmatpush2.msra.mxu0 %v12447_v38  ;;  %1506 = vmatpush2.msra.mxu1 %v12292_v26  ;;  %v7260_v26 = vsub.f32 %v94_v44, %v7214_v56  ;;  %12455 = vst [vmem:[#allocation36_spill] sm:$0xff] %v7272_v60  ;;  %v7295_v44 = vand.u32 4294901760, %v83_v16  ;;  %v7315_v39 = vsub.f32 %v86_v54, %v7272_v60  ;;  %v75_v54 = vld [vmem:[#allocation2 + $0xb8] sm:$0xff] }
  0xf7   :  { %1373 = vmatprep.subr.mxu0 %v12449_v45  ;;  %1508 = vmatprep.subr.mxu1 %v12293_v28  ;;  %v7265_v45 = vsub.f32 %v7176_v50, %v12453_v1  ;;  %v7270_v38 = vsub.f32 %v7173_v22, %v12454_v46  ;;  %v12456_v28 = vld [vmem:[#allocation77_spill] sm:$0xff]  ;;  %12458 = vst [vmem:[#allocation14_spill] sm:$0xff] %v7281_v29  ;;  %v12460_v46 = vand.u32 4294901760, %v6805_v62  ;;  %v79_v1 = vld [vmem:[#allocation2 + $0xd8] sm:$0xff]  ;;  %v12465_v62 = vand.u32 4294901760, %v7202_v51 }
  0xf8   :  { %1377 = vmatpush2.msra.mxu0 %v12451_v47  ;;  %12452 = vst [vmem:[#allocation13_spill] sm:$0xff] %v7260_v26  ;;  %1510 = vmatpush2.msra.mxu1 %v12456_v28  ;;  %v7288_v28 = vsub.f32 %v90_v34, %v7243_v57  ;;  %12463 = vst [vmem:[#allocation15_spill] sm:$0xff] %v7295_v44  ;;  %v12468_v47 = vld [vmem:[#allocation95_spill] sm:$0xff] }
  0xf9   :  { %1381 = vmatprep.subr.mxu0 %v12457_v53  ;;  %1512 = vmatprep.subr.mxu1 %v12459_v61  ;;  %v7293_v53 = vsub.f32 %v7196_v42, %v12462_v41  ;;  %v7302_v61 = vsub.f32 %v7202_v51, %v12465_v62  ;;  %v7308_v41 = vsub.f32 %v87_v4, %v7250_v13  ;;  %v12471_v4 = vand.u32 4294901760, %v7232_v20  ;;  %v74_v62 = vld [vmem:[#allocation2 + $0xb0] sm:$0xff] }
  0xfa   :  { %1385 = vmatpush2.msra.mxu0 %v12460_v46  ;;  %12461 = vst [vmem:[#allocation38_spill] sm:$0xff] %v7288_v28  ;;  %1387 = vmatprep.mubr.f32.mxu0 %v12464_v8  ;;  %v7304_v46 = vand.u32 4294901760, %v82_v9  ;;  %12470 = vst [vmem:[#allocation42_spill] sm:$0xff] %v7315_v39 }
  0xfb   :  { %1514 = vmatpush2.msra.mxu1 %v12296_v12  ;;  %12467 = vst [vmem:[#allocation16_spill] sm:$0xff] %v7308_v41  ;;  %1389 = vmatmul.mubr.f32.vlgmr.msra.gmra.mxu0 %v12468_v47  ;;  %v7323_v34 = vsub.f32 %v7232_v20, %v12471_v4  ;;  %v7330_v12 = vand.u32 4294901760, %v79_v1  ;;  %v7340_v20 = vsub.f32 %v83_v16, %v7295_v44  ;;  %v70_v4 = vld [vmem:[#allocation2 + $0x90] sm:$0xff]  ;;  %v12478_v16 = vand.u32 4294901760, %v7260_v26 }
  0xfc   :  { %12466 = vst [vmem:[#allocation40_spill] sm:$0xff] %v7304_v46  ;;  %1516 = vmatprep.subr.mxu1 %v12469_v21  ;;  %1549 = vmatprep.subr.mxu0 %v7112_v6  ;;  %v12472_v21 = vand.u32 4294901760, %v7222_v5  ;;  %v7336_v6 = vand.u32 4294901760, %v78_v35  ;;  %v7346_v51 = vsub.f32 %v82_v9, %v7304_v46  ;;  %v7363_v9 = vand.u32 4294901760, %v74_v62 }
  0xfd   :  { %1518 = vmatpush2.msra.mxu1 %v6619_v37  ;;  %12473 = vst [vmem:[#allocation17_spill] sm:$0xff] %v7330_v12  ;;  %1551 = vmatpush1.msra.mxu0 %v7117_v24  ;;  %12475 = vst [vmem:[#allocation18_spill] sm:$0xff] %v7340_v20  ;;  %v7388_v24 = vand.u32 4294901760, %v70_v4 }
  0xfe   :  { %v7328_v7 = vsub.f32 %v7222_v5, %v12472_v21  ;;  %1520 = vmatprep.subr.mxu1 %v12299_v30  ;;  %12474 = vst [vmem:[#allocation44_spill] sm:$0xff] %v7336_v6  ;;  %1553 = vmatprep.subr.mxu0 %v7125_v59  ;;  %12476 = vst [vmem:[#allocation46_spill] sm:$0xff] %v7346_v51  ;;  %v12477_v30 = vand.u32 4294901760, %v7254_v15  ;;  %v7359_v59 = vsub.f32 %v7260_v26, %v12478_v16  ;;  %v71_v5 = vld [vmem:[#allocation2 + $0x98] sm:$0xff] }
  0xff   :  { %1395 = vmatprep.mubr.f32.mxu0 %v6896_v49  ;;  %1522 = vmatpush2.msra.mxu1 %v12302_v43  ;;  %v7361_v21 = vand.u32 4294901760, %v75_v54  ;;  %12480 = vst [vmem:[#allocation48_spill] sm:$0xff] %v7363_v9  ;;  %v7376_v26 = vsub.f32 %v79_v1, %v7330_v12  ;;  %12485 = vst [vmem:[#allocation21_spill] sm:$0xff] %v7388_v24  ;;  %v7394_v1 = vand.u32 4294901760, %v71_v5 }
 0x100   :  { %v7351_v37 = vsub.f32 %v7254_v15, %v12477_v30  ;;  %1555 = vmatpush1.msra.mxu0 %v7130_v10  ;;  %1524 = vmatprep.subr.mxu1 %v12303_v18  ;;  %v12481_v10 = vand.u32 4294901760, %v7281_v29  ;;  %v7381_v30 = vsub.f32 %v78_v35, %v7336_v6  ;;  %v12484_v18 = vand.u32 4294901760, %v7288_v28  ;;  %v67_v15 = vld [vmem:[#allocation2 + $0x78] sm:$0xff] }
 0x101   :  { %12479 = vst [vmem:[#allocation19_spill] sm:$0xff] %v7361_v21  ;;  %1397 = vmatmul.mubr.f32.gmra.mxu0 %v6902_v52  ;;  %12482 = vst [vmem:[#allocation20_spill] sm:$0xff] %v7376_v26  ;;  %1557 = vmatprep.subr.mxu0 %v7144_v63  ;;  %v12487_v35 = vand.u32 4294901760, %v7308_v41 }
 0x102   :  { %v7373_v16 = vsub.f32 %v7281_v29, %v12481_v10  ;;  %1526 = vmatpush2.msra.mxu1 %v6674_v14  ;;  %12483 = vst [vmem:[#allocation50_spill] sm:$0xff] %v7381_v30  ;;  %v7386_v43 = vsub.f32 %v7288_v28, %v12484_v18  ;;  %v66_v29 = vld [vmem:[#allocation2 + $0x70] sm:$0xff]  ;;  %1559 = vmatpush1.msra.mxu0 %v7146_v58  ;;  %12486 = vst [vmem:[#allocation52_spill] sm:$0xff] %v7394_v1  ;;  %v7419_v18 = vand.u32 4294901760, %v67_v15 }
 0x103   :  { %1528 = vmatprep.subr.mxu1 %v6687_v2  ;;  %v7399_v63 = vsub.f32 %v7308_v41, %v12487_v35  ;;  %1561 = vmatprep.subr.mxu0 %v7160_v40  ;;  %v7406_v58 = vsub.f32 %v74_v62, %v7363_v9  ;;  %v12489_v2 = vand.u32 4294901760, %v7315_v39  ;;  %v62_v28 = vld [vmem:[#allocation2 + $0x50] sm:$0xff]  ;;  %v7414_v35 = vsub.f32 %v75_v54, %v7361_v21  ;;  %v63_v62 = vld [vmem:[#allocation2 + $0x58] sm:$0xff] }
 0x104   :  { %1530 = vmatpush2.msra.mxu1 %v6709_v33  ;;  %1532 = vmatprep.mubr.f32.mxu1 %v12464_v8  ;;  %12491 = vst [vmem:[#allocation23_spill] sm:$0xff] %v7419_v18  ;;  %v7421_v10 = vand.u32 4294901760, %v66_v29  ;;  %v59_v41 = vld [vmem:[#allocation2 + $0x38] sm:$0xff]  ;;  %v12495_v8 = vand.u32 4294901760, %v7192_v3  ;;  %v12496_v54 = vand.u32 4294901760, %v7346_v51  ;;  %v7472_v40 = vsub.f32 %v67_v15, %v7419_v18 }
 0x105   :  { %12488 = vst [vmem:[#allocation22_spill] sm:$0xff] %v7406_v58  ;;  %v7411_v14 = vsub.f32 %v7315_v39, %v12489_v2  ;;  %12490 = vst [vmem:[#allocation54_spill] sm:$0xff] %v7414_v35  ;;  %1563 = vmatpush1.msra.mxu0 %v7166_v55  ;;  %1534 = vmatmul.mubr.f32.vlgmr.msra.gmra.mxu1 %v12468_v47  ;;  %v7428_v2 = vsub.f32 %v70_v4, %v7388_v24  ;;  %v12494_v55 = vand.u32 4294901760, %v7340_v20  ;;  %v58_v47 = vld [vmem:[#allocation2 + $0x30] sm:$0xff] }
 0x106   :  { %12492 = vst [vmem:[#allocation56_spill] sm:$0xff] %v7421_v10  ;;  %1565 = vmatprep.subr.mxu0 %v7181_v31  ;;  %1714 = vmatprep.subr.mxu1 %v12495_v8  ;;  %v7443_v4 = vsub.f32 %v7346_v51, %v12496_v54  ;;  %v7445_v31 = vand.u32 4294901760, %v62_v28  ;;  %v12499_v39 = vand.u32 4294901760, %v7207_v32  ;;  %v7454_v8 = vand.u32 4294901760, %v63_v62  ;;  %12505 = vst [vmem:[#allocation29_spill] sm:$0xff] %v7472_v40 }
 0x107   :  { %12493 = vst [vmem:[#allocation24_spill] sm:$0xff] %v7428_v2  ;;  %v7433_v33 = vsub.f32 %v7340_v20, %v12494_v55  ;;  %1567 = vmatpush1.msra.mxu0 %v7183_v36  ;;  %v7448_v55 = vsub.f32 %v71_v5, %v7394_v1  ;;  %v54_v36 = vld [vmem:[#allocation2 + $0x10] sm:$0xff]  ;;  %v12501_v51 = vand.u32 4294901760, %v7227_v27  ;;  %1540 = vmatprep.mubr.f32.mxu1 %v6896_v49  ;;  %v7469_v3 = vand.u32 4294901760, %v59_v41 }
 0x108   :  { %12497 = vst [vmem:[#allocation58_spill] sm:$0xff] %v7445_v31  ;;  %1720 = vmatpush1.msra.mxu1 %v12499_v39  ;;  %1569 = vmatprep.subr.mxu0 %v7209_v23  ;;  %12500 = vst [vmem:[#allocation60_spill] sm:$0xff] %v7454_v8  ;;  %v7462_v5 = vsub.f32 %v66_v29, %v7421_v10  ;;  %v12503_v39 = vand.u32 4294901760, %v7376_v26  ;;  %v55_v23 = vld [vmem:[#allocation2 + $0x18] sm:$0xff]  ;;  %v12507_v29 = vand.u32 4294901760, %v7381_v30  ;;  %v7493_v27 = vand.u32 4294901760, %v54_v36 }
 0x109   :  { %12498 = vst [vmem:[#allocation25_spill] sm:$0xff] %v7448_v55  ;;  %1726 = vmatprep.subr.mxu1 %v12501_v51  ;;  %12504 = vst [vmem:[#allocation62_spill] sm:$0xff] %v7469_v3  ;;  %1571 = vmatpush1.msra.mxu0 %v7214_v56  ;;  %v12506_v51 = vand.u32 4294901760, %v7241_v0  ;;  %v7490_v0 = vsub.f32 %v62_v28, %v7445_v31  ;;  %v178_v56 = vld [vmem:[#allocation2 + $0x3f0] sm:$0xff]  ;;  %v12512_v49 = vand.u32 4294901760, %v7414_v35  ;;  %v12513_v15 = vand.u32 4294901760, %v7406_v58 }
 0x10a   :  { %12502 = vst [vmem:[#allocation27_spill] sm:$0xff] %v7462_v5  ;;  %v7467_v32 = vsub.f32 %v7376_v26, %v12503_v39  ;;  %v7481_v54 = vsub.f32 %v7381_v30, %v12507_v29  ;;  %v7483_v39 = vand.u32 4294901760, %v58_v47  ;;  %1542 = vmatmul.mubr.f32.gmra.mxu1 %v6902_v52  ;;  %1573 = vmatprep.subr.mxu0 %v7229_v48  ;;  %12510 = vst [vmem:[#allocation66_spill] sm:$0xff] %v7493_v27 }
 0x10b   :  { %1732 = vmatpush1.msra.mxu1 %v12506_v51  ;;  %12509 = vst [vmem:[#allocation31_spill] sm:$0xff] %v7490_v0  ;;  %v12511_v29 = vand.u32 4294901760, %v7265_v45  ;;  %1575 = vmatpush1.msra.mxu0 %v7243_v57  ;;  %v7501_v52 = vsub.f32 %v7414_v35, %v12512_v49  ;;  %v7506_v28 = vsub.f32 %v7406_v58, %v12513_v15  ;;  %v7508_v48 = vand.u32 4294901760, %v55_v23  ;;  %v179_v51 = vld [vmem:[#allocation2 + $0x3f8] sm:$0xff]  ;;  %v174_v35 = vld [vmem:[#allocation2 + $0x3d0] sm:$0xff] }
 0x10c   :  { %12508 = vst [vmem:[#allocation64_spill] sm:$0xff] %v7483_v39  ;;  %v7511_v30 = vsub.f32 %v63_v62, %v7454_v8  ;;  %v12516_v45 = vand.u32 4294901760, %v7270_v38  ;;  %1577 = vmatprep.subr.mxu0 %v7250_v13  ;;  %v7520_v15 = vsub.f32 %v59_v41, %v7469_v3  ;;  %v12518_v58 = vand.u32 4294901760, %v7293_v53  ;;  %v175_v49 = vld [vmem:[#allocation2 + $0x3d8] sm:$0xff] }
 0x10d   :  { %1738 = vmatprep.subr.mxu1 %v12511_v29  ;;  %12514 = vst [vmem:[#allocation33_spill] sm:$0xff] %v7508_v48  ;;  %1579 = vmatpush1.msra.mxu0 %v7272_v60  ;;  %v7527_v62 = vsub.f32 %v58_v47, %v7483_v39  ;;  %v7534_v57 = vand.u32 4294901760, %v178_v56  ;;  %v12522_v41 = vand.u32 4294901760, %v7302_v61  ;;  %v7545_v47 = vsub.f32 %v54_v36, %v7493_v27 }
 0x10e   :  { %12515 = vst [vmem:[#allocation68_spill] sm:$0xff] %v7511_v30  ;;  %1744 = vmatpush1.msra.mxu1 %v12516_v45  ;;  %12517 = vst [vmem:[#allocation35_spill] sm:$0xff] %v7520_v15  ;;  %v12520_v45 = vand.u32 4294901760, %v7428_v2  ;;  %1581 = vmatprep.subr.mxu0 %v7295_v44  ;;  %v7547_v38 = vand.u32 4294901760, %v179_v51  ;;  %v12526_v60 = vand.u32 4294901760, %v7323_v34  ;;  %v12528_v36 = vand.u32 4294901760, %v7328_v7 }
 0x10f   :  { %1750 = vmatprep.subr.mxu1 %v12518_v58  ;;  %12519 = vst [vmem:[#allocation70_spill] sm:$0xff] %v7527_v62  ;;  %12521 = vst [vmem:[#allocation37_spill] sm:$0xff] %v7534_v57  ;;  %v12523_v58 = vand.u32 4294901760, %v7448_v55  ;;  %1583 = vmatpush1.msra.mxu0 %v7304_v46  ;;  %v12530_v34 = vand.u32 4294901760, %v7462_v5  ;;  %v171_v44 = vld [vmem:[#allocation2 + $0x3b8] sm:$0xff]  ;;  %v12532_v7 = vand.u32 4294901760, %v7351_v37 }
 0x110   :  { %v7532_v29 = vsub.f32 %v7428_v2, %v12520_v45  ;;  %1756 = vmatpush1.msra.mxu1 %v12522_v41  ;;  %12524 = vst [vmem:[#allocation72_spill] sm:$0xff] %v7545_v47  ;;  %12525 = vst [vmem:[#allocation39_spill] sm:$0xff] %v7547_v38  ;;  %v170_v2 = vld [vmem:[#allocation2 + $0x3b0] sm:$0xff]  ;;  %1585 = vmatprep.subr.mxu0 %v7330_v12  ;;  %v12529_v45 = vand.u32 4294901760, %v7472_v40  ;;  %v7571_v41 = vand.u32 4294901760, %v175_v49  ;;  %v167_v46 = vld [vmem:[#allocation2 + $0x398] sm:$0xff] }
 0x111   :  { %v7542_v53 = vsub.f32 %v7448_v55, %v12523_v58  ;;  %1762 = vmatprep.subr.mxu1 %v12526_v60  ;;  %v7556_v58 = vand.u32 4294901760, %v174_v35  ;;  %v7569_v61 = vsub.f32 %v7462_v5, %v12530_v34  ;;  %1587 = vmatpush1.msra.mxu0 %v7336_v6  ;;  %v7583_v34 = vsub.f32 %v55_v23, %v7508_v48  ;;  %v166_v5 = vld [vmem:[#allocation2 + $0x390] sm:$0xff] }
 0x112   :  { %1768 = vmatpush1.msra.mxu1 %v12528_v36  ;;  %v7564_v60 = vsub.f32 %v7472_v40, %v12529_v45  ;;  %12531 = vst [vmem:[#allocation41_spill] sm:$0xff] %v7571_v41  ;;  %v7579_v45 = vsub.f32 %v178_v56, %v7534_v57  ;;  %v12535_v40 = vand.u32 4294901760, %v7359_v59  ;;  %1589 = vmatprep.subr.mxu0 %v7361_v21  ;;  %v7594_v56 = vand.u32 4294901760, %v170_v2  ;;  %v162_v6 = vld [vmem:[#allocation2 + $0x370] sm:$0xff]  ;;  %v163_v21 = vld [vmem:[#allocation2 + $0x378] sm:$0xff] }
 0x113   :  { %12527 = vst [vmem:[#allocation74_spill] sm:$0xff] %v7556_v58  ;;  %1774 = vmatprep.subr.mxu1 %v12532_v7  ;;  %12534 = vst [vmem:[#allocation43_spill] sm:$0xff] %v7583_v34  ;;  %v12536_v7 = vand.u32 4294901760, %v7490_v0  ;;  %v7597_v12 = vsub.f32 %v179_v51, %v7547_v38  ;;  %v12539_v23 = vand.u32 4294901760, %v7373_v16  ;;  %1591 = vmatpush1.msra.mxu0 %v7363_v9  ;;  %v12540_v59 = vand.u32 4294901760, %v7511_v30 }
 0x114   :  { %12533 = vst [vmem:[#allocation76_spill] sm:$0xff] %v7579_v45  ;;  %1780 = vmatpush1.msra.mxu1 %v12535_v40  ;;  %12537 = vst [vmem:[#allocation78_spill] sm:$0xff] %v7594_v56  ;;  %v7608_v37 = vsub.f32 %v174_v35, %v7556_v58  ;;  %v12543_v51 = vand.u32 4294901760, %v7386_v43  ;;  %1593 = vmatprep.subr.mxu0 %v7394_v1  ;;  %v12544_v9 = vand.u32 4294901760, %v7520_v15  ;;  %v7623_v35 = vand.u32 4294901760, %v166_v5 }
 0x115   :  { %v7592_v36 = vsub.f32 %v7490_v0, %v12536_v7  ;;  %12538 = vst [vmem:[#allocation45_spill] sm:$0xff] %v7597_v12  ;;  %1786 = vmatprep.subr.mxu1 %v12539_v23  ;;  %v7605_v40 = vsub.f32 %v7511_v30, %v12540_v59  ;;  %v7610_v7 = vand.u32 4294901760, %v171_v44  ;;  %v12546_v0 = vand.u32 4294901760, %v7399_v63  ;;  %1595 = vmatpush1.msra.mxu0 %v7388_v24 }
 0x116   :  { %12541 = vst [vmem:[#allocation80_spill] sm:$0xff] %v7608_v37  ;;  %1792 = vmatpush1.msra.mxu1 %v12543_v51  ;;  %v7621_v59 = vsub.f32 %v7520_v15, %v12544_v9  ;;  %12545 = vst [vmem:[#allocation82_spill] sm:$0xff] %v7623_v35  ;;  %v12547_v43 = vand.u32 4294901760, %v7527_v62  ;;  %v7633_v16 = vand.u32 4294901760, %v167_v46  ;;  %v7637_v9 = vsub.f32 %v175_v49, %v7571_v41 }
 0x117   :  { %12542 = vst [vmem:[#allocation47_spill] sm:$0xff] %v7610_v7  ;;  %1798 = vmatprep.subr.mxu1 %v12546_v0  ;;  %v12550_v1 = vand.u32 4294901760, %v7411_v14  ;;  %1597 = vmatprep.subr.mxu0 %v7419_v18  ;;  %v7644_v0 = vsub.f32 %v170_v2, %v7594_v56  ;;  %v12552_v23 = vand.u32 4294901760, %v7433_v33  ;;  %v7657_v63 = vand.u32 4294901760, %v162_v6  ;;  %v159_v2 = vld [vmem:[#allocation2 + $0x358] sm:$0xff]  ;;  %v154_v18 = vld [vmem:[#allocation2 + $0x330] sm:$0xff] }
 0x118   :  { %v7631_v51 = vsub.f32 %v7527_v62, %v12547_v43  ;;  %12548 = vst [vmem:[#allocation49_spill] sm:$0xff] %v7633_v16  ;;  %12549 = vst [vmem:[#allocation84_spill] sm:$0xff] %v7637_v9  ;;  %v158_v62 = vld [vmem:[#allocation2 + $0x350] sm:$0xff]  ;;  %1599 = vmatpush1.msra.mxu0 %v7421_v10  ;;  %v7660_v43 = vsub.f32 %v171_v44, %v7610_v7  ;;  %v12556_v24 = vand.u32 4294901760, %v7443_v4  ;;  %v7669_v14 = vand.u32 4294901760, %v163_v21 }
 0x119   :  { %1804 = vmatpush1.msra.mxu1 %v12550_v1  ;;  %12551 = vst [vmem:[#allocation51_spill] sm:$0xff] %v7644_v0  ;;  %v12553_v1 = vand.u32 4294901760, %v7545_v47  ;;  %12554 = vst [vmem:[#allocation85_spill] sm:$0xff] %v7657_v63  ;;  %1601 = vmatprep.subr.mxu0 %v7454_v8  ;;  %v12559_v10 = vand.u32 4294901760, %v7467_v32  ;;  %v155_v8 = vld [vmem:[#allocation2 + $0x338] sm:$0xff]  ;;  %v12564_v44 = vand.u32 4294901760, %v7579_v45 }
 0x11a   :  { %1810 = vmatprep.subr.mxu1 %v12552_v23  ;;  %12555 = vst [vmem:[#allocation53_spill] sm:$0xff] %v7660_v43  ;;  %v7667_v23 = vsub.f32 %v166_v5, %v7623_v35  ;;  %12558 = vst [vmem:[#allocation89_spill] sm:$0xff] %v7669_v14  ;;  %1603 = vmatpush1.msra.mxu0 %v7445_v31  ;;  %v7682_v5 = vand.u32 4294901760, %v158_v62  ;;  %v7697_v33 = vand.u32 4294901760, %v159_v2 }
 0x11b   :  { %v7655_v49 = vsub.f32 %v7545_v47, %v12553_v1  ;;  %1816 = vmatpush1.msra.mxu1 %v12556_v24  ;;  %v12560_v24 = vand.u32 4294901760, %v7583_v34  ;;  %v12562_v1 = vand.u32 4294901760, %v7481_v54  ;;  %1605 = vmatprep.subr.mxu0 %v7469_v3  ;;  %v7700_v31 = vsub.f32 %v167_v46, %v7633_v16 }
 0x11c   :  { %12557 = vst [vmem:[#allocation55_spill] sm:$0xff] %v7667_v23  ;;  %1822 = vmatprep.subr.mxu1 %v12559_v10  ;;  %12561 = vst [vmem:[#allocation57_spill] sm:$0xff] %v7682_v5  ;;  %v12563_v10 = vand.u32 4294901760, %v7597_v12  ;;  %v12567_v54 = vand.u32 4294901760, %v7501_v52  ;;  %1607 = vmatpush1.msra.mxu0 %v7483_v39  ;;  %v12570_v52 = vand.u32 4294901760, %v7608_v37  ;;  %v7724_v3 = vsub.f32 %v163_v21, %v7669_v14 }
 0x11d   :  { %v7679_v4 = vsub.f32 %v7583_v34, %v12560_v24  ;;  %1828 = vmatpush1.msra.mxu1 %v12562_v1  ;;  %v7695_v24 = vsub.f32 %v7579_v45, %v12564_v44  ;;  %12565 = vst [vmem:[#allocation91_spill] sm:$0xff] %v7697_v33  ;;  %12566 = vst [vmem:[#allocation59_spill] sm:$0xff] %v7700_v31  ;;  %v150_v45 = vld [vmem:[#allocation2 + $0x310] sm:$0xff]  ;;  %1609 = vmatprep.subr.mxu0 %v7508_v48  ;;  %v7721_v1 = vand.u32 4294901760, %v154_v18 }
 0x11e   :  { %v7690_v32 = vsub.f32 %v7597_v12, %v12563_v10  ;;  %1834 = vmatprep.subr.mxu1 %v12567_v54  ;;  %v7707_v10 = vsub.f32 %v162_v6, %v7657_v63  ;;  %v12569_v12 = vand.u32 4294901760, %v7506_v28  ;;  %v7717_v46 = vsub.f32 %v7608_v37, %v12570_v52  ;;  %v151_v6 = vld [vmem:[#allocation2 + $0x318] sm:$0xff]  ;;  %12573 = vst [vmem:[#allocation98_spill] sm:$0xff] %v7724_v3 }
 0x11f   :  { %v7719_v54 = vand.u32 4294901760, %v155_v8  ;;  %12572 = vst [vmem:[#allocation67_spill] sm:$0xff] %v7721_v1  ;;  %v12574_v44 = vand.u32 4294901760, %v7542_v53  ;;  %1611 = vmatpush1.msra.mxu0 %v7493_v27  ;;  %v12575_v28 = vand.u32 4294901760, %v7637_v9  ;;  %v7736_v48 = vsub.f32 %v158_v62, %v7682_v5 }
 0x120   :  { %12568 = vst [vmem:[#allocation92_spill] sm:$0xff] %v7707_v10  ;;  %1840 = vmatpush1.msra.mxu1 %v12569_v12  ;;  %v1893_v12 = vand.u32 4294901760, %v7679_v4  ;;  %v12577_v21 = vand.u32 4294901760, %v7532_v29  ;;  %1613 = vmatprep.subr.mxu0 %v7547_v38  ;;  %v1905_v53 = vand.u32 4294901760, %v7690_v32  ;;  %v7745_v27 = vand.u32 4294901760, %v150_v45  ;;  %v147_v4 = vld [vmem:[#allocation2 + $0x2f8] sm:$0xff] }
 0x121   :  { %12571 = vst [vmem:[#allocation93_spill] sm:$0xff] %v7719_v54  ;;  %1846 = vmatprep.subr.mxu1 %v12574_v44  ;;  %v7733_v52 = vsub.f32 %v7637_v9, %v12575_v28  ;;  %12576 = vst [vmem:[#allocation77_spill] sm:$0xff] %v7736_v48  ;;  %v146_v28 = vld [vmem:[#allocation2 + $0x2f0] sm:$0xff]  ;;  %v12579_v37 = vand.u32 4294901760, %v7564_v60  ;;  %1615 = vmatpush2.msra.mxu0 %v7534_v57  ;;  %v12580_v62 = vand.u32 4294901760, %v7660_v43  ;;  %v7760_v44 = vand.u32 4294901760, %v151_v6 }
 0x122   :  { %1852 = vmatpush1.msra.mxu1 %v12577_v21  ;;  %12578 = vst [vmem:[#allocation79_spill] sm:$0xff] %v7745_v27  ;;  %v12581_v21 = vand.u32 4294901760, %v7644_v0  ;;  %v7763_v39 = vsub.f32 %v159_v2, %v7697_v33  ;;  %v12584_v60 = vand.u32 4294901760, %v7569_v61  ;;  %1617 = vmatprep.subr.mxu0 %v7571_v41  ;;  %v7774_v38 = vsub.f32 %v155_v8, %v7719_v54  ;;  %v143_v57 = vld [vmem:[#allocation2 + $0x2d8] sm:$0xff]  ;;  %v138_v41 = vld [vmem:[#allocation2 + $0x2b0] sm:$0xff] }
 0x123   :  { %1858 = vmatprep.subr.mxu1 %v12579_v37  ;;  %v7753_v29 = vsub.f32 %v7660_v43, %v12580_v62  ;;  %12582 = vst [vmem:[#allocation83_spill] sm:$0xff] %v7760_v44  ;;  %v7770_v62 = vsub.f32 %v154_v18, %v7721_v1  ;;  %1619 = vmatpush2.msra.mxu0 %v7556_v58  ;;  %v1917_v61 = vand.u32 4294901760, %v7733_v52  ;;  %v12588_v2 = vand.u32 4294901760, %v7667_v23 }
 0x124   :  { %v7758_v32 = vsub.f32 %v7644_v0, %v12581_v21  ;;  %12583 = vst [vmem:[#allocation107_spill] sm:$0xff] %v7763_v39  ;;  %1864 = vmatpush1.msra.mxu1 %v12584_v60  ;;  %v142_v21 = vld [vmem:[#allocation2 + $0x2d0] sm:$0xff]  ;;  %12586 = vst [vmem:[#allocation109_spill] sm:$0xff] %v7774_v38  ;;  %v12587_v0 = vand.u32 4294901760, %v7605_v40  ;;  %v7785_v18 = vand.u32 4294901760, %v146_v28  ;;  %v12590_v8 = vand.u32 4294901760, %v7592_v36  ;;  %1621 = vmatprep.subr.mxu0 %v7610_v7 }
 0x125   :  { %12585 = vst [vmem:[#allocation108_spill] sm:$0xff] %v7770_v62  ;;  %v7783_v60 = vsub.f32 %v7667_v23, %v12588_v2  ;;  %v12591_v40 = vand.u32 4294901760, %v7700_v31  ;;  %v7797_v52 = vsub.f32 %v150_v45, %v7745_v27  ;;  %v7799_v2 = vand.u32 4294901760, %v147_v4  ;;  %1623 = vmatpush2.msra.mxu0 %v7594_v56 }
 0x126   :  { %1870 = vmatprep.subr.mxu1 %v12587_v0  ;;  %12589 = vst [vmem:[#allocation110_spill] sm:$0xff] %v7785_v18  ;;  %v12594_v37 = vand.u32 4294901760, %v7621_v59  ;;  %v1929_v36 = vand.u32 4294901760, %v7753_v29  ;;  %v12596_v45 = vand.u32 4294901760, %v7631_v51  ;;  %1625 = vmatprep.subr.mxu0 %v7633_v16  ;;  %v12597_v58 = vand.u32 4294901760, %v7724_v3  ;;  %v139_v29 = vld [vmem:[#allocation2 + $0x2b8] sm:$0xff] }
 0x127   :  { %1876 = vmatpush1.msra.mxu1 %v12590_v8  ;;  %v7794_v0 = vsub.f32 %v7700_v31, %v12591_v40  ;;  %12592 = vst [vmem:[#allocation111_spill] sm:$0xff] %v7797_v52  ;;  %12593 = vst [vmem:[#allocation112_spill] sm:$0xff] %v7799_v2  ;;  %v1935_v8 = vand.u32 4294901760, %v7758_v32  ;;  %v7808_v40 = vand.u32 4294901760, %v142_v21  ;;  %v7822_v7 = vsub.f32 %v151_v6, %v7760_v44 }
 0x128   :  { %1882 = vmatprep.subr.mxu1 %v12594_v37  ;;  %v7816_v59 = vsub.f32 %v7724_v3, %v12597_v58  ;;  %v7818_v37 = vand.u32 4294901760, %v143_v57  ;;  %1627 = vmatpush2.msra.mxu0 %v7623_v35  ;;  %v1947_v51 = vand.u32 4294901760, %v7783_v60  ;;  %v12601_v16 = vand.u32 4294901760, %v7707_v10  ;;  %v134_v3 = vld [vmem:[#allocation2 + $0x290] sm:$0xff]  ;;  %v135_v35 = vld [vmem:[#allocation2 + $0x298] sm:$0xff] }
 0x129   :  { %12595 = vst [vmem:[#allocation113_spill] sm:$0xff] %v7808_v40  ;;  %1888 = vmatpush1.msra.mxu1 %v12596_v45  ;;  %12599 = vst [vmem:[#allocation115_spill] sm:$0xff] %v7822_v7  ;;  %v7827_v45 = vsub.f32 %v146_v28, %v7785_v18  ;;  %v12602_v32 = vand.u32 4294901760, %v7655_v49  ;;  %1629 = vmatprep.subr.mxu0 %v7669_v14  ;;  %v1941_v6 = vand.u32 4294901760, %v7794_v0  ;;  %v7844_v60 = vand.u32 4294901760, %v138_v41  ;;  %v130_v14 = vld [vmem:[#allocation2 + $0x270] sm:$0xff] }
 0x12a   :  { %12598 = vst [vmem:[#allocation114_spill] sm:$0xff] %v7818_v37  ;;  %1894 = vmatprep.subr.mxu1 %v1893_v12  ;;  %v7832_v58 = vsub.f32 %v7707_v10, %v12601_v16  ;;  %v12603_v12 = vand.u32 4294901760, %v7736_v48  ;;  %1631 = vmatpush2.msra.mxu0 %v7657_v63  ;;  %v12605_v49 = vand.u32 4294901760, %v7763_v39  ;;  %v7854_v0 = vsub.f32 %v142_v21, %v7808_v40 }
 0x12b   :  { %12600 = vst [vmem:[#allocation116_spill] sm:$0xff] %v7827_v45  ;;  %1900 = vmatpush1.msra.mxu1 %v12602_v32  ;;  %12604 = vst [vmem:[#allocation117_spill] sm:$0xff] %v7844_v60  ;;  %v7856_v56 = vand.u32 4294901760, %v139_v29  ;;  %1633 = vmatprep.subr.mxu0 %v7697_v33  ;;  %v12610_v16 = vand.u32 4294901760, %v7774_v38  ;;  %v7871_v63 = vand.u32 4294901760, %v134_v3  ;;  %v12614_v21 = vand.u32 4294901760, %v7717_v46 }
 0x12c   :  { %v7842_v28 = vsub.f32 %v7736_v48, %v12603_v12  ;;  %1906 = vmatprep.subr.mxu1 %v1905_v53  ;;  %v7851_v32 = vsub.f32 %v7763_v39, %v12605_v49  ;;  %12606 = vst [vmem:[#allocation118_spill] sm:$0xff] %v7854_v0  ;;  %v7859_v12 = vsub.f32 %v147_v4, %v7799_v2  ;;  %v12609_v48 = vand.u32 4294901760, %v7695_v24  ;;  %v131_v39 = vld [vmem:[#allocation2 + $0x278] sm:$0xff] }
 0x12d   :  { %12607 = vst [vmem:[#allocation119_spill] sm:$0xff] %v7856_v56  ;;  %v1953_v53 = vand.u32 4294901760, %v7816_v59  ;;  %v7868_v49 = vsub.f32 %v7774_v38, %v12610_v16  ;;  %12611 = vst [vmem:[#allocation121_spill] sm:$0xff] %v7871_v63  ;;  %1635 = vmatpush2.msra.mxu0 %v7682_v5  ;;  %v1959_v24 = vand.u32 4294901760, %v7832_v58  ;;  %v7880_v59 = vand.u32 4294901760, %v135_v35 }
 0x12e   :  { %12608 = vst [vmem:[#allocation120_spill] sm:$0xff] %v7859_v12  ;;  %1912 = vmatpush2.msra.mxu1 %v12609_v48  ;;  %v12612_v48 = vand.u32 4294901760, %v7770_v62  ;;  %v7883_v16 = vsub.f32 %v143_v57, %v7818_v37  ;;  %1637 = vmatprep.subr.mxu0 %v7719_v54  ;;  %v7890_v5 = vsub.f32 %v138_v41, %v7844_v60  ;;  %v12616_v58 = vand.u32 4294901760, %v7797_v52 }
 0x12f   :  { %1918 = vmatprep.subr.mxu1 %v1917_v61  ;;  %v1971_v61 = vand.u32 4294901760, %v7842_v28  ;;  %v7897_v33 = vand.u32 4294901760, %v130_v14  ;;  %1639 = vmatpush2.msra.mxu0 %v7721_v1  ;;  %v1965_v57 = vand.u32 4294901760, %v7851_v32  ;;  %v7901_v46 = vand.u32 4294901760, %v131_v39  ;;  %v119_v32 = vld [vmem:[#allocation2 + $0x218] sm:$0xff] }
 0x130   :  { %v7878_v4 = vsub.f32 %v7770_v62, %v12612_v48  ;;  %12613 = vst [vmem:[#allocation122_spill] sm:$0xff] %v7883_v16  ;;  %1924 = vmatpush2.msra.mxu1 %v12614_v21  ;;  %12615 = vst [vmem:[#allocation123_spill] sm:$0xff] %v7890_v5  ;;  %v7895_v48 = vsub.f32 %v7797_v52, %v12616_v58  ;;  %v127_v62 = vld [vmem:[#allocation2 + $0x258] sm:$0xff]  ;;  %v126_v21 = vld [vmem:[#allocation2 + $0x250] sm:$0xff]  ;;  %v7905_v41 = vsub.f32 %v139_v29, %v7856_v56 }
 0x131   :  { %12617 = vst [vmem:[#allocation124_spill] sm:$0xff] %v7897_v33  ;;  %1930 = vmatprep.subr.mxu1 %v1929_v36  ;;  %1641 = vmatprep.subr.mxu0 %v7760_v44  ;;  %v1977_v58 = vand.u32 4294901760, %v7868_v49  ;;  %v12619_v54 = vand.u32 4294901760, %v7822_v7  ;;  %v7913_v1 = vsub.f32 %v134_v3, %v7871_v63  ;;  %v123_v52 = vld [vmem:[#allocation2 + $0x238] sm:$0xff]  ;;  %v122_v49 = vld [vmem:[#allocation2 + $0x230] sm:$0xff]  ;;  %v7922_v44 = vsub.f32 %v135_v35, %v7880_v59 }
 0x132   :  { %12618 = vst [vmem:[#allocation125_spill] sm:$0xff] %v7905_v41  ;;  %1936 = vmatpush2.msra.mxu1 %v1935_v8  ;;  %1643 = vmatpush2.msra.mxu0 %v7745_v27  ;;  %v1983_v29 = vand.u32 4294901760, %v7878_v4  ;;  %v7918_v8 = vand.u32 4294901760, %v127_v62  ;;  %v1995_v3 = vand.u32 4294901760, %v7895_v48  ;;  %v12623_v28 = vand.u32 4294901760, %v7859_v12  ;;  %v118_v48 = vld [vmem:[#allocation2 + $0x210] sm:$0xff] }
 0x133   :  { %v1988_v36 = vsub.f32 %v7822_v7, %v12619_v54  ;;  %12620 = vst [vmem:[#allocation126_spill] sm:$0xff] %v7913_v1  ;;  %1942 = vmatprep.subr.mxu1 %v1941_v6  ;;  %1645 = vmatprep.subr.mxu0 %v7799_v2  ;;  %v7927_v54 = vsub.f32 %v130_v14, %v7897_v33  ;;  %v7929_v6 = vand.u32 4294901760, %v126_v21  ;;  %v7946_v27 = vand.u32 4294901760, %v122_v49 }
 0x134   :  { %12621 = vst [vmem:[#allocation127_spill] sm:$0xff] %v7918_v8  ;;  %1948 = vmatpush2.msra.mxu1 %v1947_v51  ;;  %1647 = vmatpush2.msra.mxu0 %v7785_v18  ;;  %v2000_v35 = vsub.f32 %v7859_v12, %v12623_v28  ;;  %v7936_v51 = vand.u32 4294901760, %v123_v52  ;;  %v7940_v14 = vsub.f32 %v131_v39, %v7901_v46  ;;  %v12628_v2 = vand.u32 4294901760, %v7883_v16 }
 0x135   :  { %12622 = vst [vmem:[#allocation128_spill] sm:$0xff] %v7929_v6  ;;  %1954 = vmatprep.subr.mxu1 %v1953_v53  ;;  %1649 = vmatprep.subr.mxu0 %v7818_v37  ;;  %v1989_v4 = vand.u32 4294901760, %v1988_v36  ;;  %v12626_v53 = vand.u32 4294901760, %v7827_v45  ;;  %12627 = vst [vmem:[#allocation131_spill] sm:$0xff] %v7946_v27  ;;  %v7953_v12 = vand.u32 4294901760, %v119_v32  ;;  %v7957_v36 = vsub.f32 %v127_v62, %v7918_v8 }
 0x136   :  { %12624 = vst [vmem:[#allocation129_spill] sm:$0xff] %v7936_v51  ;;  %12625 = vst [vmem:[#allocation130_spill] sm:$0xff] %v7940_v14  ;;  %1960 = vmatpush2.msra.mxu1 %v1959_v24  ;;  %1651 = vmatpush2.msra.mxu0 %v7808_v40  ;;  %v2012_v39 = vsub.f32 %v7883_v16, %v12628_v2  ;;  %v7966_v40 = vand.u32 4294901760, %v118_v48  ;;  %v2001_v24 = vand.u32 4294901760, %v2000_v35  ;;  %v12632_v62 = vand.u32 4294901760, %v7905_v41  ;;  %v12644_v2 = vld [vmem:[#allocation101_spill] sm:$0xff] }
 0x137   :  { %v2006_v18 = vsub.f32 %v7827_v45, %v12626_v53  ;;  %1966 = vmatprep.subr.mxu1 %v1965_v57  ;;  %12629 = vst [vmem:[#allocation132_spill] sm:$0xff] %v7953_v12  ;;  %1653 = vmatprep.subr.mxu0 %v7856_v56  ;;  %v7961_v53 = vsub.f32 %v126_v21, %v7929_v6  ;;  %v12630_v57 = vand.u32 4294901760, %v7854_v0 }
 0x138   :  { %1972 = vmatpush2.msra.mxu1 %v1971_v61  ;;  %12631 = vst [vmem:[#allocation133_spill] sm:$0xff] %v7966_v40  ;;  %1655 = vmatpush2.msra.mxu0 %v7844_v60  ;;  %v2024_v61 = vsub.f32 %v7905_v41, %v12632_v62  ;;  %v7975_v21 = vsub.f32 %v123_v52, %v7936_v51  ;;  %v2013_v62 = vand.u32 4294901760, %v2012_v39  ;;  %v12634_v52 = vand.u32 4294901760, %v7922_v44 }
 0x139   :  { %v2018_v28 = vsub.f32 %v7854_v0, %v12630_v57  ;;  %1978 = vmatprep.subr.mxu1 %v1977_v58  ;;  %1657 = vmatprep.subr.mxu0 %v7880_v59  ;;  %v2007_v57 = vand.u32 4294901760, %v2006_v18  ;;  %v7979_v37 = vsub.f32 %v122_v49, %v7946_v27  ;;  %v12633_v58 = vand.u32 4294901760, %v7890_v5 }
 0x13a   :  { %1984 = vmatpush2.msra.mxu1 %v1983_v29  ;;  %1659 = vmatpush2.msra.mxu0 %v7871_v63  ;;  %v2036_v29 = vsub.f32 %v7922_v44, %v12634_v52  ;;  %v7991_v18 = vsub.f32 %v119_v32, %v7953_v12  ;;  %v2025_v52 = vand.u32 4294901760, %v2024_v61  ;;  %v12637_v32 = vand.u32 4294901760, %v7940_v14 }
 0x13b   :  { %v2030_v35 = vsub.f32 %v7890_v5, %v12633_v58  ;;  %1990 = vmatprep.subr.mxu1 %v1989_v4  ;;  %1661 = vmatprep.subr.mxu0 %v7901_v46  ;;  %v2019_v49 = vand.u32 4294901760, %v2018_v28  ;;  %v7995_v58 = vsub.f32 %v118_v48, %v7966_v40  ;;  %v12636_v4 = vand.u32 4294901760, %v7913_v1 }
 0x13c   :  { %12635 = vst [vmem:[#allocation134_spill] sm:$0xff] %v7991_v18  ;;  %1996 = vmatpush2.msra.mxu1 %v1995_v3  ;;  %1663 = vmatpush2.msra.mxu0 %v7897_v33  ;;  %v2048_v3 = vsub.f32 %v7940_v14, %v12637_v32  ;;  %v12638_v28 = vand.u32 4294901760, %v7927_v54  ;;  %v12639_v61 = vand.u32 4294901760, %v7957_v36 }
 0x13d   :  { %v2042_v39 = vsub.f32 %v7913_v1, %v12636_v4  ;;  %2002 = vmatprep.subr.mxu1 %v2001_v24  ;;  %1665 = vmatprep.subr.mxu0 %v7918_v8  ;;  %v2031_v48 = vand.u32 4294901760, %v2030_v35  ;;  %v2037_v24 = vand.u32 4294901760, %v2036_v29  ;;  %v12640_v35 = vand.u32 4294901760, %v7961_v53 }
 0x13e   :  { %2008 = vmatpush2.msra.mxu1 %v2007_v57  ;;  %v2054_v4 = vsub.f32 %v7927_v54, %v12638_v28  ;;  %1667 = vmatpush2.msra.mxu0 %v7929_v6  ;;  %v2060_v32 = vsub.f32 %v7957_v36, %v12639_v61  ;;  %v12641_v29 = vand.u32 4294901760, %v7975_v21 }
 0x13f   :  { %2014 = vmatprep.subr.mxu1 %v2013_v62  ;;  %1669 = vmatprep.subr.mxu0 %v7936_v51  ;;  %v2043_v57 = vand.u32 4294901760, %v2042_v39  ;;  %v2066_v28 = vsub.f32 %v7961_v53, %v12640_v35  ;;  %v2049_v62 = vand.u32 4294901760, %v2048_v3  ;;  %v12642_v39 = vand.u32 4294901760, %v7979_v37 }
 0x140   :  { %2020 = vmatpush2.msra.mxu1 %v2019_v49  ;;  %1671 = vmatpush2.msra.mxu0 %v7946_v27  ;;  %v2072_v61 = vsub.f32 %v7975_v21, %v12641_v29  ;;  %v2055_v49 = vand.u32 4294901760, %v2054_v4  ;;  %v2061_v35 = vand.u32 4294901760, %v2060_v32 }
 0x141   :  { %2026 = vmatprep.subr.mxu1 %v2025_v52  ;;  %1673 = vmatprep.subr.mxu0 %v7953_v12  ;;  %v2078_v56 = vsub.f32 %v7979_v37, %v12642_v39  ;;  %v12643_v52 = vand.u32 4294901760, %v7991_v18  ;;  %v2067_v29 = vand.u32 4294901760, %v2066_v28  ;;  %v12649_v28 = vld [vmem:[#allocation95_spill] sm:$0xff] }
 0x142   :  { %2032 = vmatpush2.msra.mxu1 %v2031_v48  ;;  %1675 = vmatpush2.msra.mxu0 %v7966_v40  ;;  %v12645_v48 = vand.u32 4294901760, %v7995_v58  ;;  %v2073_v39 = vand.u32 4294901760, %v2072_v61  ;;  %v12651_v61 = vld [vmem:[#allocation63_spill] sm:$0xff] }
 0x143   :  { %2038 = vmatprep.subr.mxu1 %v2037_v24  ;;  %v2084_v3 = vsub.f32 %v7991_v18, %v12643_v52  ;;  %1681 = vmatprep.mubr.f32.mxu0 %v12644_v2  ;;  %v12646_v24 = vld [vmem:[#allocation102_spill] sm:$0xff]  ;;  %v2079_v32 = vand.u32 4294901760, %v2078_v56 }
 0x144   :  { %2044 = vmatpush2.msra.mxu1 %v2043_v57  ;;  %v2090_v4 = vsub.f32 %v7995_v58, %v12645_v48  ;;  %2112 = vmatprep.subr.mxu0 %v7133_v11  ;;  %v12647_v56 = vld [vmem:[#allocation94_spill] sm:$0xff]  ;;  %v12648_v57 = vld [vmem:[#allocation9_spill] sm:$0xff] }
 0x145   :  { %2050 = vmatprep.subr.mxu1 %v2049_v62  ;;  %1687 = vmatmul.mubr.f32.vlgmr.msra.gmra.mxu0 %v12646_v24  ;;  %v2085_v52 = vand.u32 4294901760, %v2084_v3  ;;  %v12650_v62 = vld [vmem:[#allocation32_spill] sm:$0xff]  ;;  %v12654_v3 = vld [vmem:[#allocation34_spill] sm:$0xff]  ;;  %v12656_v48 = vld [vmem:[#allocation13_spill] sm:$0xff] }
 0x146   :  { %2056 = vmatpush2.msra.mxu1 %v2055_v49  ;;  %2115 = vmatpush1.msra.mxu0 %v7139_v17  ;;  %v2091_v2 = vand.u32 4294901760, %v2090_v4  ;;  %v12652_v49 = vld [vmem:[#allocation30_spill] sm:$0xff]  ;;  %v12657_v4 = vld [vmem:[#allocation71_spill] sm:$0xff]  ;;  %v12659_v24 = vld [vmem:[#allocation73_spill] sm:$0xff] }
 0x147   :  { %2062 = vmatprep.subr.mxu1 %v2061_v35  ;;  %2118 = vmatprep.subr.mxu0 %v7152_v25  ;;  %v12653_v35 = vld [vmem:[#allocation65_spill] sm:$0xff] }
 0x148   :  { %2068 = vmatpush2.msra.mxu1 %v2067_v29  ;;  %2121 = vmatpush1.msra.mxu0 %v7158_v19  ;;  %v12655_v29 = vld [vmem:[#allocation69_spill] sm:$0xff] }
 0x149   :  { %2074 = vmatprep.subr.mxu1 %v2073_v39  ;;  %2124 = vmatprep.subr.mxu0 %v7176_v50  ;;  %v12658_v39 = vld [vmem:[#allocation14_spill] sm:$0xff] }
 0x14a   :  { %2080 = vmatpush2.msra.mxu1 %v2079_v32  ;;  %2127 = vmatpush1.msra.mxu0 %v7173_v22  ;;  %v12660_v32 = vld [vmem:[#allocation38_spill] sm:$0xff] }
 0x14b   :  { %2086 = vmatprep.subr.mxu1 %v2085_v52  ;;  %2130 = vmatprep.subr.mxu0 %v7196_v42  ;;  %v12661_v52 = vld [vmem:[#allocation75_spill] sm:$0xff] }
 0x14c   :  { %2092 = vmatpush2.msra.mxu1 %v2091_v2  ;;  %2094 = vmatprep.mubr.f32.mxu1 %v12647_v56  ;;  %v12662_v2 = vld [vmem:[#allocation16_spill] sm:$0xff]  ;;  %v12664_v56 = vld [vmem:[#allocation42_spill] sm:$0xff] }
 0x14d   :  { %2133 = vmatpush1.msra.mxu0 %v12648_v57  ;;  %2096 = vmatmul.mubr.f32.vlgmr.msra.gmra.mxu1 %v12649_v28  ;;  %v12663_v28 = vld [vmem:[#allocation81_spill] sm:$0xff] }
 0x14e   :  { %2136 = vmatprep.subr.mxu0 %v12650_v62  ;;  %2324 = vmatprep.subr.mxu1 %v12651_v61 }
 0x14f   :  { %2139 = vmatpush1.msra.mxu0 %v12652_v49  ;;  %2326 = vmatpush1.msra.mxu1 %v12653_v35 }
 0x150   :  { %2142 = vmatprep.subr.mxu0 %v12654_v3  ;;  %2328 = vmatprep.subr.mxu1 %v12655_v29  ;;  %v12665_v3 = vld [vmem:[#allocation86_spill] sm:$0xff] }
 0x151   :  { %2145 = vmatpush1.msra.mxu0 %v12656_v48  ;;  %2330 = vmatpush1.msra.mxu1 %v12657_v4  ;;  %v12666_v48 = vld [vmem:[#allocation88_spill] sm:$0xff]  ;;  %v12667_v4 = vld [vmem:[#allocation46_spill] sm:$0xff] }
 0x152   :  { %2148 = vmatprep.subr.mxu0 %v12658_v39  ;;  %2332 = vmatprep.subr.mxu1 %v12659_v24  ;;  %v12668_v39 = vld [vmem:[#allocation90_spill] sm:$0xff] }
 0x153   :  { %2151 = vmatpush1.msra.mxu0 %v12660_v32  ;;  %2334 = vmatpush1.msra.mxu1 %v12661_v52  ;;  %v12669_v32 = vld [vmem:[#allocation28_spill] sm:$0xff]  ;;  %v12670_v52 = vld [vmem:[#allocation50_spill] sm:$0xff] }
 0x154   :  { %2154 = vmatprep.subr.mxu0 %v12662_v2  ;;  %2336 = vmatprep.subr.mxu1 %v12663_v28  ;;  %v12671_v2 = vld [vmem:[#allocation10_spill] sm:$0xff] }
 0x155   :  { %2157 = vmatpush1.msra.mxu0 %v12664_v56  ;;  %2338 = vmatpush1.msra.mxu1 %v12665_v3  ;;  %v12672_v28 = vld [vmem:[#allocation54_spill] sm:$0xff]  ;;  %v12673_v56 = vld [vmem:[#allocation11_spill] sm:$0xff] }
 0x156   :  { %2160 = vmatprep.subr.mxu0 %v7340_v20  ;;  %2340 = vmatprep.subr.mxu1 %v12666_v48  ;;  %v12674_v3 = vld [vmem:[#allocation22_spill] sm:$0xff]  ;;  %v12675_v20 = vld [vmem:[#allocation12_spill] sm:$0xff] }
 0x157   :  { %2163 = vmatpush1.msra.mxu0 %v12667_v4  ;;  %2342 = vmatpush1.msra.mxu1 %v12668_v39  ;;  %v12676_v39 = vld [vmem:[#allocation24_spill] sm:$0xff] }
 0x158   :  { %2166 = vmatprep.subr.mxu0 %v7376_v26  ;;  %2344 = vmatprep.subr.mxu1 %v12669_v32  ;;  %v12677_v26 = vld [vmem:[#allocation36_spill] sm:$0xff]  ;;  %v12678_v32 = vld [vmem:[#allocation29_spill] sm:$0xff] }
 0x159   :  { %2169 = vmatpush1.msra.mxu0 %v12670_v52  ;;  %2346 = vmatpush1.msra.mxu1 %v12671_v2  ;;  %v12679_v52 = vld [vmem:[#allocation15_spill] sm:$0xff] }
 0x15a   :  { %2172 = vmatprep.subr.mxu0 %v12672_v28  ;;  %2348 = vmatprep.subr.mxu1 %v12673_v56  ;;  %v12680_v2 = vld [vmem:[#allocation27_spill] sm:$0xff]  ;;  %v12681_v28 = vld [vmem:[#allocation40_spill] sm:$0xff] }
 0x15b   :  { %2175 = vmatpush1.msra.mxu0 %v12674_v3  ;;  %2350 = vmatpush1.msra.mxu1 %v12675_v20  ;;  %v12682_v3 = vld [vmem:[#allocation17_spill] sm:$0xff]  ;;  %v12683_v20 = vld [vmem:[#allocation31_spill] sm:$0xff] }
 0x15c   :  { %2178 = vmatprep.subr.mxu0 %v7448_v55  ;;  %2352 = vmatprep.subr.mxu1 %v7250_v13  ;;  %v12684_v55 = vld [vmem:[#allocation44_spill] sm:$0xff] }
 0x15d   :  { %2181 = vmatpush1.msra.mxu0 %v12676_v39  ;;  %2354 = vmatpush1.msra.mxu1 %v12677_v26  ;;  %v12685_v39 = vld [vmem:[#allocation19_spill] sm:$0xff]  ;;  %v12686_v26 = vld [vmem:[#allocation70_spill] sm:$0xff] }
 0x15e   :  { %2184 = vmatprep.subr.mxu0 %v12678_v32  ;;  %2356 = vmatprep.subr.mxu1 %v12679_v52  ;;  %v12687_v32 = vld [vmem:[#allocation48_spill] sm:$0xff] }
 0x15f   :  { %2187 = vmatpush1.msra.mxu0 %v12680_v2  ;;  %2358 = vmatpush1.msra.mxu1 %v12681_v28  ;;  %v12688_v2 = vld [vmem:[#allocation52_spill] sm:$0xff] }
 0x160   :  { %2190 = vmatprep.subr.mxu0 %v7511_v30  ;;  %2360 = vmatprep.subr.mxu1 %v12682_v3  ;;  %v12689_v30 = vld [vmem:[#allocation21_spill] sm:$0xff] }
 0x161   :  { %2193 = vmatpush1.msra.mxu0 %v12683_v20  ;;  %2362 = vmatpush1.msra.mxu1 %v12684_v55  ;;  %v12690_v3 = vld [vmem:[#allocation45_spill] sm:$0xff]  ;;  %v12691_v20 = vld [vmem:[#allocation23_spill] sm:$0xff]  ;;  %v12692_v55 = vld [vmem:[#allocation76_spill] sm:$0xff] }
 0x162   :  { %2196 = vmatprep.subr.mxu0 %v7520_v15  ;;  %2364 = vmatprep.subr.mxu1 %v12685_v39  ;;  %v12693_v15 = vld [vmem:[#allocation56_spill] sm:$0xff] }
 0x163   :  { %2199 = vmatpush1.msra.mxu0 %v12686_v26  ;;  %2366 = vmatpush1.msra.mxu1 %v12687_v32  ;;  %v12694_v26 = vld [vmem:[#allocation60_spill] sm:$0xff] }
 0x164   :  { %2202 = vmatprep.subr.mxu0 %v7583_v34  ;;  %2368 = vmatprep.subr.mxu1 %v12688_v2  ;;  %v12695_v32 = vld [vmem:[#allocation80_spill] sm:$0xff]  ;;  %v12696_v34 = vld [vmem:[#allocation58_spill] sm:$0xff] }
 0x165   :  { %2205 = vmatpush1.msra.mxu0 %v7545_v47  ;;  %2370 = vmatpush1.msra.mxu1 %v12689_v30  ;;  %v12697_v47 = vld [vmem:[#allocation62_spill] sm:$0xff]  ;;  %v12698_v30 = vld [vmem:[#allocation51_spill] sm:$0xff] }
 0x166   :  { %2208 = vmatprep.subr.mxu0 %v12690_v3  ;;  %2372 = vmatprep.subr.mxu1 %v12691_v20  ;;  %v12699_v3 = vld [vmem:[#allocation64_spill] sm:$0xff] }
 0x167   :  { %2211 = vmatpush2.msra.mxu0 %v12692_v55  ;;  %2374 = vmatpush1.msra.mxu1 %v12693_v15  ;;  %v12700_v55 = vld [vmem:[#allocation33_spill] sm:$0xff] }
 0x168   :  { %2214 = vmatprep.subr.mxu0 %v7637_v9  ;;  %2376 = vmatprep.subr.mxu1 %v12694_v26  ;;  %v12701_v9 = vld [vmem:[#allocation66_spill] sm:$0xff] }
 0x169   :  { %2217 = vmatpush2.msra.mxu0 %v12695_v32  ;;  %2378 = vmatpush1.msra.mxu1 %v12696_v34  ;;  %v12702_v26 = vld [vmem:[#allocation98_spill] sm:$0xff]  ;;  %v12703_v32 = vld [vmem:[#allocation39_spill] sm:$0xff] }
 0x16a   :  { %2220 = vmatprep.subr.mxu0 %v7660_v43  ;;  %2380 = vmatprep.subr.mxu1 %v12697_v47  ;;  %v12704_v43 = vld [vmem:[#allocation37_spill] sm:$0xff]  ;;  %v12705_v47 = vld [vmem:[#allocation107_spill] sm:$0xff] }
 0x16b   :  { %2223 = vmatpush2.msra.mxu0 %v12698_v30  ;;  %2382 = vmatpush1.msra.mxu1 %v12699_v3  ;;  %v12706_v30 = vld [vmem:[#allocation41_spill] sm:$0xff] }
 0x16c   :  { %2226 = vmatprep.subr.mxu0 %v7700_v31  ;;  %2384 = vmatprep.subr.mxu1 %v12700_v55  ;;  %v12707_v3 = vld [vmem:[#allocation77_spill] sm:$0xff]  ;;  %v12708_v31 = vld [vmem:[#allocation74_spill] sm:$0xff] }
 0x16d   :  { %2229 = vmatpush2.msra.mxu0 %v7667_v23  ;;  %2386 = vmatpush1.msra.mxu1 %v12701_v9  ;;  %v12709_v23 = vld [vmem:[#allocation47_spill] sm:$0xff]  ;;  %v12710_v9 = vld [vmem:[#allocation108_spill] sm:$0xff] }
 0x16e   :  { %2232 = vmatprep.subr.mxu0 %v12702_v26  ;;  %2388 = vmatprep.subr.mxu1 %v12703_v32  ;;  %v12711_v26 = vld [vmem:[#allocation78_spill] sm:$0xff] }
 0x16f   :  { %2235 = vmatpush2.msra.mxu0 %v7707_v10  ;;  %2390 = vmatpush2.msra.mxu1 %v12704_v43  ;;  %v12712_v10 = vld [vmem:[#allocation49_spill] sm:$0xff]  ;;  %v12713_v43 = vld [vmem:[#allocation111_spill] sm:$0xff] }
 0x170   :  { %2238 = vmatprep.subr.mxu0 %v12705_v47  ;;  %2392 = vmatprep.subr.mxu1 %v12706_v30  ;;  %v12714_v47 = vld [vmem:[#allocation82_spill] sm:$0xff]  ;;  %v12715_v30 = vld [vmem:[#allocation120_spill] sm:$0xff] }
 0x171   :  { %2241 = vmatpush2.msra.mxu0 %v12707_v3  ;;  %2394 = vmatpush2.msra.mxu1 %v12708_v31  ;;  %v12716_v3 = vld [vmem:[#allocation89_spill] sm:$0xff] }
 0x172   :  { %2244 = vmatprep.subr.mxu0 %v7774_v38  ;;  %2396 = vmatprep.subr.mxu1 %v12709_v23  ;;  %v12717_v38 = vld [vmem:[#allocation85_spill] sm:$0xff] }
 0x173   :  { %2247 = vmatpush2.msra.mxu0 %v12710_v9  ;;  %2398 = vmatpush2.msra.mxu1 %v12711_v26  ;;  %v12718_v9 = vld [vmem:[#allocation91_spill] sm:$0xff] }
 0x174   :  { %2250 = vmatprep.subr.mxu0 %v7822_v7  ;;  %2400 = vmatprep.subr.mxu1 %v12712_v10  ;;  %v12719_v7 = vld [vmem:[#allocation57_spill] sm:$0xff] }
 0x175   :  { %2253 = vmatpush2.msra.mxu0 %v12713_v43  ;;  %2402 = vmatpush2.msra.mxu1 %v12714_v47  ;;  %v12720_v43 = vld [vmem:[#allocation93_spill] sm:$0xff] }
 0x176   :  { %2256 = vmatprep.subr.mxu0 %v12715_v30  ;;  %2404 = vmatprep.subr.mxu1 %v12716_v3  ;;  %v12721_v30 = vld [vmem:[#allocation67_spill] sm:$0xff] }
 0x177   :  { %2259 = vmatpush2.msra.mxu0 %v7827_v45  ;;  %2406 = vmatpush2.msra.mxu1 %v12717_v38  ;;  %v12722_v45 = vld [vmem:[#allocation83_spill] sm:$0xff] }
 0x178   :  { %2262 = vmatprep.subr.mxu0 %v7883_v16  ;;  %2408 = vmatprep.subr.mxu1 %v12718_v9  ;;  %v12723_v16 = vld [vmem:[#allocation79_spill] sm:$0xff] }
 0x179   :  { %2265 = vmatpush2.msra.mxu0 %v7854_v0  ;;  %2410 = vmatpush2.msra.mxu1 %v12719_v7  ;;  %v12724_v0 = vld [vmem:[#allocation112_spill] sm:$0xff] }
 0x17a   :  { %2268 = vmatprep.subr.mxu0 %v7905_v41  ;;  %2412 = vmatprep.subr.mxu1 %v12720_v43  ;;  %v12725_v41 = vld [vmem:[#allocation110_spill] sm:$0xff] }
 0x17b   :  { %2271 = vmatpush2.msra.mxu0 %v7890_v5  ;;  %2414 = vmatpush2.msra.mxu1 %v12721_v30  ;;  %v12726_v5 = vld [vmem:[#allocation114_spill] sm:$0xff]  ;;  %v12727_v30 = vld [vmem:[#allocation87_spill] sm:$0xff] }
 0x17c   :  { %2274 = vmatprep.subr.mxu0 %v7922_v44  ;;  %2416 = vmatprep.subr.mxu1 %v12722_v45  ;;  %v12728_v45 = vld [vmem:[#allocation113_spill] sm:$0xff] }
 0x17d   :  { %2277 = vmatpush2.msra.mxu0 %v7913_v1  ;;  %2418 = vmatpush2.msra.mxu1 %v12723_v16  ;;  %v12729_v1 = vld [vmem:[#allocation61_spill] sm:$0xff] }
 0x17e   :  { %2280 = vmatprep.subr.mxu0 %v7940_v14  ;;  %2420 = vmatprep.subr.mxu1 %v12724_v0  ;;  %v12730_v14 = vld [vmem:[#allocation119_spill] sm:$0xff] }
 0x17f   :  { %2283 = vmatpush2.msra.mxu0 %v7927_v54  ;;  %2422 = vmatpush2.msra.mxu1 %v12725_v41 }
 0x180   :  { %2286 = vmatprep.subr.mxu0 %v7957_v36  ;;  %2424 = vmatprep.subr.mxu1 %v12726_v5 }
 0x181   :  { %1697 = vmatprep.mubr.f32.mxu0 %v12727_v30  ;;  %2289 = vmatpush2.msra.mxu0 %v7961_v53  ;;  %v12731_v30 = vld [vmem:[#allocation96_spill] sm:$0xff] }
 0x182   :  { %2426 = vmatpush2.msra.mxu1 %v12728_v45  ;;  %1703 = vmatmul.mubr.f32.gmra.mxu0 %v12729_v1  ;;  %v12732_v45 = vld [vmem:[#allocation97_spill] sm:$0xff]  ;;  %v12733_v1 = vand.u32 4294901760, %v7133_v11  ;;  %v12739_v11 = vld [vmem:[#allocation103_spill] sm:$0xff] }
 0x183   :  { %2292 = vmatprep.subr.mxu0 %v7975_v21  ;;  %2428 = vmatprep.subr.mxu1 %v12730_v14 }
 0x184   :  { %2295 = vmatpush2.msra.mxu0 %v7979_v37  ;;  %2430 = vmatpush2.msra.mxu1 %v7844_v60  ;;  %v12734_v60 = vand.u32 4294901760, %v7139_v17  ;;  %v12740_v17 = vand.u32 4294901760, %v7176_v50  ;;  %v12746_v50 = vld [vmem:[#allocation100_spill] sm:$0xff] }
 0x185   :  { %2298 = vmatprep.subr.mxu0 %v7991_v18  ;;  %2432 = vmatprep.subr.mxu1 %v7880_v59  ;;  %v12735_v18 = vld [vmem:[#allocation8_spill] sm:$0xff] }
 0x186   :  { %2301 = vmatpush2.msra.mxu0 %v7995_v58  ;;  %2304 = vmatprep.mubr.f32.mxu0 %v12731_v30  ;;  %v12736_v30 = vand.u32 4294901760, %v7152_v25  ;;  %v12742_v25 = vand.u32 4294901760, %v7173_v22  ;;  %v12748_v22 = vand.u32 4294901760, %v12652_v49  ;;  %v12758_v49 = vld [vmem:[#allocation38_spill] sm:$0xff] }
 0x187   :  { %2434 = vmatpush2.msra.mxu1 %v7871_v63  ;;  %2307 = vmatmul.mubr.f32.vlgmr.msra.gmra.mxu0 %v12732_v45  ;;  %v12737_v63 = vld [vmem:[#allocation26_spill] sm:$0xff]  ;;  %v12738_v45 = vand.u32 4294901760, %v7158_v19  ;;  %v12743_v19 = vand.u32 4294901760, %v7196_v42 }
 0x188   :  { %2436 = vmatprep.subr.mxu1 %v7901_v46  ;;  %2479 = vmatprep.subr.mxu0 %v12733_v1  ;;  %v12744_v1 = vld [vmem:[#allocation99_spill] sm:$0xff]  ;;  %v12749_v42 = vld [vmem:[#allocation34_spill] sm:$0xff] }
 0x189   :  { %2438 = vmatpush2.msra.mxu1 %v7897_v33  ;;  %2483 = vmatpush1.msra.mxu0 %v12734_v60  ;;  %v12741_v60 = vld [vmem:[#allocation104_spill] sm:$0xff] }
 0x18a   :  { %2102 = vmatprep.mubr.f32.mxu1 %v12735_v18  ;;  %2440 = vmatprep.subr.mxu1 %v7918_v8 }
 0x18b   :  { %2487 = vmatprep.subr.mxu0 %v12736_v30  ;;  %2104 = vmatmul.mubr.f32.gmra.mxu1 %v12737_v63  ;;  %v12745_v30 = vand.u32 4294901760, %v12648_v57  ;;  %v12752_v57 = vld [vmem:[#allocation13_spill] sm:$0xff]  ;;  %v2986_v63 = vld [vmem:[#allocation4 + $0xa0] sm:$0xff] }
 0x18c   :  { %2491 = vmatpush1.msra.mxu0 %v12738_v45  ;;  %2442 = vmatpush2.msra.mxu1 %v7929_v6  ;;  %v12747_v45 = vand.u32 4294901760, %v12650_v62  ;;  %v12755_v62 = vld [vmem:[#allocation106_spill] sm:$0xff] }
 0x18d   :  { %2314 = vmatprep.mubr.f32.mxu0 %v12739_v11  ;;  %2444 = vmatprep.subr.mxu1 %v7936_v51  ;;  %v12750_v11 = vand.u32 4294901760, %v12749_v42  ;;  %v12766_v42 = vld [vmem:[#allocation86_spill] sm:$0xff] }
 0x18e   :  { %2495 = vmatprep.subr.mxu0 %v12740_v17  ;;  %2317 = vmatmul.mubr.f32.gmra.mxu0 %v12741_v60  ;;  %v12751_v17 = vld [vmem:[#allocation105_spill] sm:$0xff]  ;;  %v12753_v60 = vand.u32 4294901760, %v12752_v57  ;;  %v12770_v57 = vld [vmem:[#allocation90_spill] sm:$0xff] }
 0x18f   :  { %2446 = vmatpush2.msra.mxu1 %v7946_v27  ;;  %2499 = vmatpush1.msra.mxu0 %v12742_v25  ;;  %v12754_v25 = vld [vmem:[#allocation71_spill] sm:$0xff]  ;;  %v12826_v27 = vld [vmem:[#allocation53_spill] sm:$0xff]  ;;  %v12831_v6 = vld [vmem:[#allocation62_spill] sm:$0xff] }
 0x190   :  { %2448 = vmatprep.subr.mxu1 %v7953_v12  ;;  %2503 = vmatprep.subr.mxu0 %v12743_v19  ;;  %v12827_v51 = vand.u32 4294901760, %v12826_v27 }
 0x191   :  { %2450 = vmatpush2.msra.mxu1 %v7966_v40  ;;  %2454 = vmatprep.mubr.f32.mxu1 %v12744_v1  ;;  %v12760_v1 = vld [vmem:[#allocation75_spill] sm:$0xff] }
 0x192   :  { %2507 = vmatpush1.msra.mxu0 %v12745_v30  ;;  %2458 = vmatmul.mubr.f32.vlgmr.msra.gmra.mxu1 %v12746_v50  ;;  %v12763_v50 = vld [vmem:[#allocation81_spill] sm:$0xff] }
 0x193   :  { %2511 = vmatprep.subr.mxu0 %v12747_v45  ;;  %2750 = vmatprep.subr.mxu1 %v12651_v61  ;;  %v12756_v61 = vld [vmem:[#allocation14_spill] sm:$0xff] }
 0x194   :  { %2515 = vmatpush1.msra.mxu0 %v12748_v22  ;;  %2752 = vmatpush1.msra.mxu1 %v12653_v35  ;;  %v12757_v19 = vand.u32 4294901760, %v12756_v61  ;;  %v12759_v35 = vand.u32 4294901760, %v12758_v49  ;;  %v12764_v45 = vld [vmem:[#allocation42_spill] sm:$0xff]  ;;  %v182_v49 = vlaneseq }
 0x195   :  { %2519 = vmatprep.subr.mxu0 %v12750_v11  ;;  %2754 = vmatprep.subr.mxu1 %v12655_v29  ;;  %v12761_v29 = vld [vmem:[#allocation16_spill] sm:$0xff]  ;;  %v12765_v22 = vand.u32 4294901760, %v12764_v45  ;;  %v12767_v11 = vld [vmem:[#allocation18_spill] sm:$0xff] }
 0x196   :  { %2466 = vmatprep.mubr.f32.mxu1 %v12751_v17  ;;  %2523 = vmatpush1.msra.mxu0 %v12753_v60  ;;  %v12762_v30 = vand.u32 4294901760, %v12761_v29  ;;  %v12768_v17 = vand.u32 4294901760, %v12767_v11  ;;  %v12771_v60 = vld [vmem:[#allocation20_spill] sm:$0xff]  ;;  %v12774_v61 = vld [vmem:[#allocation50_spill] sm:$0xff]  ;;  %v8243_v11 = vshrl.u32 %v182_v49, 7  ;;  %v12794_v49 = vld [vmem:[#allocation17_spill] sm:$0xff] }
 0x197   :  { %2756 = vmatpush1.msra.mxu1 %v12754_v25  ;;  %2527 = vmatprep.subr.mxu0 %v12757_v19  ;;  %v12772_v25 = vand.u32 4294901760, %v12771_v60  ;;  %v12775_v19 = vand.u32 4294901760, %v12774_v61  ;;  %v12790_v60 = vld [vmem:[#allocation27_spill] sm:$0xff] }
 0x198   :  { %2470 = vmatmul.mubr.f32.gmra.mxu1 %v12755_v62  ;;  %2758 = vmatprep.subr.mxu1 %v12659_v24  ;;  %v12769_v24 = vand.u32 4294901760, %v12667_v4  ;;  %v12773_v62 = vld [vmem:[#allocation28_spill] sm:$0xff]  ;;  %12786 = vst [vmem:[#allocation101_spill] sm:$0xff] %v8243_v11 }
 0x199   :  { %2531 = vmatpush1.msra.mxu0 %v12759_v35  ;;  %2760 = vmatpush1.msra.mxu1 %v12760_v1  ;;  %v12776_v35 = vld [vmem:[#allocation10_spill] sm:$0xff] }
 0x19a   :  { %2535 = vmatprep.subr.mxu0 %v12762_v30  ;;  %2762 = vmatprep.subr.mxu1 %v12763_v50  ;;  %v12777_v1 = vld [vmem:[#allocation54_spill] sm:$0xff]  ;;  %v12781_v30 = vld [vmem:[#allocation12_spill] sm:$0xff]  ;;  %v12782_v50 = vld [vmem:[#allocation25_spill] sm:$0xff] }
 0x19b   :  { %2539 = vmatpush1.msra.mxu0 %v12765_v22  ;;  %2764 = vmatpush1.msra.mxu1 %v12766_v42  ;;  %v12778_v29 = vand.u32 4294901760, %v12777_v1  ;;  %v12783_v45 = vand.u32 4294901760, %v12782_v50  ;;  %v12784_v22 = vld [vmem:[#allocation24_spill] sm:$0xff]  ;;  %v11630_v50 = vsub.s32 1, %v8243_v11 }
 0x19c   :  { %2543 = vmatprep.subr.mxu0 %v12768_v17  ;;  %2766 = vmatprep.subr.mxu1 %v12666_v48  ;;  %v12779_v48 = vld [vmem:[#allocation22_spill] sm:$0xff]  ;;  %v12785_v42 = vand.u32 4294901760, %v12784_v22  ;;  %v12787_v17 = vld [vmem:[#allocation36_spill] sm:$0xff] }
 0x19d   :  { %2547 = vmatpush1.msra.mxu0 %v12769_v24  ;;  %2768 = vmatpush1.msra.mxu1 %v12770_v57  ;;  %v12780_v4 = vand.u32 4294901760, %v12779_v48  ;;  %v12788_v24 = vld [vmem:[#allocation29_spill] sm:$0xff]  ;;  %v11628_v48 = vsub.s32 0, %v8243_v11 }
 0x19e   :  { %2551 = vmatprep.subr.mxu0 %v12772_v25  ;;  %2770 = vmatprep.subr.mxu1 %v12773_v62  ;;  %v12789_v57 = vand.u32 4294901760, %v12788_v24  ;;  %v12791_v25 = vand.u32 4294901760, %v12790_v60  ;;  %v342_v62 = vpop.f32.mrf.mxu0  ;;  %v12805_v60 = vld [vmem:[#allocation43_spill] sm:$0xff] }
 0x19f   :  { %2555 = vmatpush1.msra.mxu0 %v12775_v19  ;;  %2772 = vmatpush1.msra.mxu1 %v12776_v35  ;;  %v2996_v19 = vld [vmem:[#allocation4 + $0xf0] sm:$0xff]  ;;  %v12795_v35 = vld [vmem:[#allocation31_spill] sm:$0xff] }
 0x1a0   :  { %2559 = vmatprep.subr.mxu0 %v12778_v29  ;;  %2774 = vmatprep.subr.mxu1 %v12673_v56  ;;  %v2997_v56 = vld [vmem:[#allocation4 + $0xf8] sm:$0xff]  ;;  %v12796_v1 = vand.u32 4294901760, %v12795_v35  ;;  %v344_v24 = vpop.f32.mrf.mxu0 }
 0x1a1   :  { %2563 = vmatpush1.msra.mxu0 %v12780_v4  ;;  %2776 = vmatpush1.msra.mxu1 %v12781_v30  ;;  %v8257_v29 = vand.u32 4294901760, %v2997_v56  ;;  %v12799_v4 = vld [vmem:[#allocation35_spill] sm:$0xff] }
 0x1a2   :  { %2567 = vmatprep.subr.mxu0 %v12783_v45  ;;  %2778 = vmatprep.subr.mxu1 %v7250_v13  ;;  %v12792_v13 = vld [vmem:[#allocation68_spill] sm:$0xff]  ;;  %v12800_v30 = vand.u32 4294901760, %v12799_v4  ;;  %v12801_v45 = vld [vmem:[#allocation70_spill] sm:$0xff]  ;;  %v2993_v35 = vld [vmem:[#allocation4 + $0xd8] sm:$0xff] }
 0x1a3   :  { %2571 = vmatpush1.msra.mxu0 %v12785_v42  ;;  %2780 = vmatpush1.msra.mxu1 %v12787_v17  ;;  %v12793_v61 = vand.u32 4294901760, %v12792_v13  ;;  %12797 = vst [vmem:[#allocation102_spill] sm:$0xff] %v8257_v29  ;;  %v12802_v22 = vand.u32 4294901760, %v12801_v45  ;;  %v8270_v42 = vand.u32 4294901760, %v2996_v19  ;;  %v2995_v17 = vld [vmem:[#allocation4 + $0xe8] sm:$0xff]  ;;  %v12807_v13 = vld [vmem:[#allocation72_spill] sm:$0xff] }
 0x1a4   :  { %2575 = vmatprep.subr.mxu0 %v12789_v57  ;;  %2782 = vmatprep.subr.mxu1 %v12679_v52  ;;  %v12798_v52 = vld [vmem:[#allocation44_spill] sm:$0xff]  ;;  %v12810_v4 = vld [vmem:[#allocation21_spill] sm:$0xff] }
 0x1a5   :  { %2579 = vmatpush1.msra.mxu0 %v12791_v25  ;;  %2784 = vmatpush1.msra.mxu1 %v12681_v28  ;;  %v180_v28 = vld [vmem:[%s11211_s2] sm:$0xf]  ;;  %12803 = vst [vmem:[#allocation9_spill] sm:$0xff] %v8270_v42  ;;  %v12806_v25 = vand.u32 4294901760, %v12805_v60 }
 0x1a6   :  { %2583 = vmatprep.subr.mxu0 %v12793_v61  ;;  %2786 = vmatprep.subr.mxu1 %v12794_v49  ;;  %v12804_v57 = vld [vmem:[#allocation48_spill] sm:$0xff]  ;;  %v12808_v61 = vand.u32 4294901760, %v12807_v13  ;;  %v8294_v60 = vrot.slane %v180_v28, %v11630_v50  ;;  %v8300_v13 = vsub.f32 %v2996_v19, %v8270_v42  ;;  %v2989_v50 = vld [vmem:[#allocation4 + $0xb8] sm:$0xff] }
 0x1a7   :  { %2587 = vmatpush1.msra.mxu0 %v12796_v1  ;;  %2788 = vmatpush1.msra.mxu1 %v12798_v52  ;;  %v2994_v49 = vld [vmem:[#allocation4 + $0xe0] sm:$0xff]  ;;  %v8283_v1 = vrot.slane %v180_v28, %v11628_v48  ;;  %v8285_v52 = vpop.f32.mrf.mxu0  ;;  %v8307_v28 = vand.u32 4294901760, %v2993_v35  ;;  %v8334_v8 = vand.u32 4294901760, %v2989_v50  ;;  %v12836_v42 = vld [vmem:[#allocation59_spill] sm:$0xff] }
 0x1a8   :  { %2591 = vmatprep.subr.mxu0 %v12800_v30  ;;  %2790 = vmatprep.subr.mxu1 %v12685_v39  ;;  %v8279_v39 = vsub.f32 %v2997_v56, %v8257_v29  ;;  %v12811_v30 = vld [vmem:[#allocation45_spill] sm:$0xff]  ;;  %v12814_v56 = vld [vmem:[#allocation76_spill] sm:$0xff]  ;;  %12816 = vst [vmem:[#allocation30_spill] sm:$0xff] %v8300_v13  ;;  %v8305_v40 = vand.u32 4294901760, %v2994_v49  ;;  %v345_v12 = vadd.f32 %v344_v24, %v8294_v60  ;;  %v12837_v33 = vand.u32 4294901760, %v12836_v42  ;;  %v2985_v24 = vld [vmem:[#allocation4 + $0x98] sm:$0xff] }
 0x1a9   :  { %2595 = vmatpush1.msra.mxu0 %v12802_v22  ;;  %2792 = vmatpush1.msra.mxu1 %v12804_v57  ;;  %v12812_v45 = vand.u32 4294901760, %v12811_v30  ;;  %v2992_v22 = vld [vmem:[#allocation4 + $0xd0] sm:$0xff]  ;;  %v2991_v57 = vld [vmem:[#allocation4 + $0xc8] sm:$0xff]  ;;  %v751_v30 = vpop.f32.mrf.mxu1  ;;  %12820 = vst [vmem:[#allocation69_spill] sm:$0xff] %v8307_v28  ;;  %12834 = vst [vmem:[#allocation40_spill] sm:$0xff] %v8334_v8 }
 0x1aa   :  { %2599 = vmatprep.subr.mxu0 %v12806_v25  ;;  %2794 = vmatprep.subr.mxu1 %v12688_v2  ;;  %12809 = vst [vmem:[#allocation32_spill] sm:$0xff] %v8279_v39  ;;  %v8290_v2 = vand.u32 4294901760, %v2995_v17  ;;  %v12815_v25 = vand.u32 4294901760, %v12814_v56  ;;  %12819 = vst [vmem:[#allocation65_spill] sm:$0xff] %v8305_v40  ;;  %v12822_v56 = vld [vmem:[#allocation80_spill] sm:$0xff]  ;;  %v8312_v19 = vand.u32 4294901760, %v2992_v22 }
 0x1ab   :  { %2603 = vmatpush1.msra.mxu0 %v12808_v61  ;;  %2796 = vmatpush1.msra.mxu1 %v12810_v4  ;;  %v2990_v61 = vld [vmem:[#allocation4 + $0xc0] sm:$0xff]  ;;  %v2988_v4 = vld [vmem:[#allocation4 + $0xb0] sm:$0xff]  ;;  %v8314_v11 = vand.u32 4294901760, %v2991_v57  ;;  %v12844_v42 = vand.u32 4294901760, %v8279_v39 }
 0x1ac   :  { %2607 = vmatprep.subr.mxu0 %v12812_v45  ;;  %12813 = vst [vmem:[#allocation63_spill] sm:$0xff] %v8290_v2  ;;  %2798 = vmatprep.subr.mxu1 %v12691_v20  ;;  %v12817_v45 = vld [vmem:[#allocation84_spill] sm:$0xff]  ;;  %12824 = vst [vmem:[#allocation73_spill] sm:$0xff] %v8312_v19  ;;  %v8352_v27 = vsub.f32 %v2992_v22, %v8312_v19 }
 0x1ad   :  { %2611 = vmatpush2.msra.mxu0 %v12815_v25  ;;  %2800 = vmatpush1.msra.mxu1 %v12693_v15  ;;  %v12818_v48 = vand.u32 4294901760, %v12817_v45  ;;  %v12821_v20 = vld [vmem:[#allocation60_spill] sm:$0xff]  ;;  %v12823_v25 = vand.u32 4294901760, %v12822_v56  ;;  %12825 = vst [vmem:[#allocation88_spill] sm:$0xff] %v8314_v11  ;;  %v2987_v15 = vld [vmem:[#allocation4 + $0xa8] sm:$0xff]  ;;  %v343_v45 = vadd.f32 %v342_v62, %v8283_v1  ;;  %v8325_v56 = vand.u32 4294901760, %v2988_v4 }
 0x1ae   :  { %2802 = vmatprep.subr.mxu1 %v12821_v20  ;;  %v8323_v20 = vand.u32 4294901760, %v2990_v61  ;;  %v12832_v62 = vld [vmem:[#allocation51_spill] sm:$0xff]  ;;  %12843 = vst [vmem:[#allocation56_spill] sm:$0xff] %v8352_v27 }
 0x1af   :  { %2615 = vmatprep.subr.mxu0 %v12818_v48  ;;  %v8318_v48 = vpop.f32.mrf.mxu0  ;;  %2804 = vmatpush1.msra.mxu1 %v12696_v34  ;;  %12829 = vst [vmem:[#allocation11_spill] sm:$0xff] %v8325_v56  ;;  %v12833_v18 = vand.u32 4294901760, %v12832_v62  ;;  %v753_v34 = vpop.f32.mrf.mxu1 }
 0x1b0   :  { %2619 = vmatpush2.msra.mxu0 %v12823_v25  ;;  %12828 = vst [vmem:[#allocation46_spill] sm:$0xff] %v8323_v20  ;;  %v8328_v25 = vsub.f32 %v2995_v17, %v8290_v2  ;;  %2806 = vmatprep.subr.mxu1 %v12831_v6  ;;  %v8341_v17 = vsub.f32 %v2994_v49, %v8305_v40  ;;  %v8343_v2 = vand.u32 4294901760, %v2987_v15  ;;  %v8359_v49 = vand.u32 4294901760, %v2986_v63 }
 0x1b1   :  { %2623 = vmatprep.subr.mxu0 %v12827_v51  ;;  %v12835_v51 = vld [vmem:[#allocation64_spill] sm:$0xff]  ;;  %v8346_v6 = vsub.f32 %v2993_v35, %v8307_v28  ;;  %v8362_v40 = vsub.f32 %v2991_v57, %v8314_v11  ;;  %v8364_v35 = vadd.f32 %v751_v30, %v343_v45  ;;  %v8372_v19 = vsub.f32 %v2990_v61, %v8323_v20  ;;  %v8380_v57 = vpop.f32.mrf.mxu1  ;;  %v12864_v20 = vld [vmem:[#allocation77_spill] sm:$0xff] }
 0x1b2   :  { %12830 = vst [vmem:[#allocation15_spill] sm:$0xff] %v8328_v25  ;;  %2627 = vmatpush2.msra.mxu0 %v12833_v18  ;;  %2808 = vmatpush1.msra.mxu1 %v12835_v51  ;;  %12838 = vst [vmem:[#allocation19_spill] sm:$0xff] %v8341_v17  ;;  %v12841_v18 = vld [vmem:[#allocation55_spill] sm:$0xff]  ;;  %v2984_v51 = vld [vmem:[#allocation4 + $0x90] sm:$0xff]  ;;  %v8378_v28 = vadd.f32 %v753_v34, %v345_v12  ;;  %v8390_v61 = vand.u32 4294901760, %v2985_v24 }
 0x1b3   :  { %2631 = vmatprep.subr.mxu0 %v12837_v33  ;;  %12839 = vst [vmem:[#allocation52_spill] sm:$0xff] %v8343_v2  ;;  %12840 = vst [vmem:[#allocation23_spill] sm:$0xff] %v8346_v6  ;;  %2810 = vmatprep.subr.mxu1 %v12700_v55  ;;  %v12842_v62 = vand.u32 4294901760, %v12841_v18  ;;  %v8357_v33 = vsub.f32 %v8279_v39, %v12844_v42  ;;  %v8366_v55 = vpop.f32.mrf.mxu0  ;;  %v12848_v18 = vld [vmem:[#allocation66_spill] sm:$0xff]  ;;  %v8375_v42 = vsub.f32 %v2988_v4, %v8325_v56  ;;  %v12853_v30 = vld [vmem:[#allocation92_spill] sm:$0xff] }
 0x1b4   :  { %12846 = vst [vmem:[#allocation33_spill] sm:$0xff] %v8359_v49  ;;  %12847 = vst [vmem:[#allocation39_spill] sm:$0xff] %v8362_v40  ;;  %2812 = vmatpush1.msra.mxu1 %v12848_v18  ;;  %v12854_v45 = vand.u32 4294901760, %v12853_v30  ;;  %v12855_v18 = vand.u32 4294901760, %v8300_v13  ;;  %v2983_v4 = vld [vmem:[#allocation4 + $0x88] sm:$0xff]  ;;  %v12859_v34 = vld [vmem:[#allocation107_spill] sm:$0xff]  ;;  %v8428_v30 = vpop.f32.mrf.mxu1 }
 0x1b5   :  { %2635 = vmatpush2.msra.mxu0 %v12842_v62  ;;  %12845 = vst [vmem:[#allocation58_spill] sm:$0xff] %v8357_v33  ;;  %v12849_v62 = vld [vmem:[#allocation98_spill] sm:$0xff]  ;;  %12851 = vst [vmem:[#allocation74_spill] sm:$0xff] %v8372_v19  ;;  %2814 = vmatprep.subr.mxu1 %v12703_v32  ;;  %v12858_v12 = vld [vmem:[#allocation37_spill] sm:$0xff]  ;;  %v12860_v39 = vand.u32 4294901760, %v12859_v34  ;;  %v8410_v34 = vsub.f32 %v2986_v63, %v8359_v49  ;;  %v8414_v32 = vpop.f32.mrf.mxu0  ;;  %v12877_v33 = vand.u32 4294901760, %v8341_v17 }
 0x1b6   :  { %v12850_v22 = vand.u32 4294901760, %v12849_v62  ;;  %12852 = vst [vmem:[#allocation47_spill] sm:$0xff] %v8375_v42  ;;  %v8388_v62 = vsub.f32 %v8300_v13, %v12855_v18  ;;  %12856 = vst [vmem:[#allocation78_spill] sm:$0xff] %v8390_v61  ;;  %2816 = vmatpush2.msra.mxu1 %v12858_v12  ;;  %v2982_v56 = vld [vmem:[#allocation4 + $0x80] sm:$0xff]  ;;  %v8403_v18 = vsub.f32 %v2987_v15, %v8343_v2  ;;  %v12863_v13 = vld [vmem:[#allocation41_spill] sm:$0xff] }
 0x1b7   :  { %2818 = vmatprep.subr.mxu1 %v12863_v13  ;;  %12866 = vst [vmem:[#allocation85_spill] sm:$0xff] %v8410_v34  ;;  %v12867_v15 = vld [vmem:[#allocation109_spill] sm:$0xff]  ;;  %v12869_v13 = vand.u32 4294901760, %v8328_v25  ;;  %v2981_v12 = vld [vmem:[#allocation4 + $0x78] sm:$0xff] }
 0x1b8   :  { %2639 = vmatprep.subr.mxu0 %v12850_v22  ;;  %v8393_v22 = vsub.f32 %v2989_v50, %v8334_v8  ;;  %12862 = vst [vmem:[#allocation89_spill] sm:$0xff] %v8403_v18  ;;  %v12865_v50 = vand.u32 4294901760, %v12864_v20  ;;  %2820 = vmatpush2.msra.mxu1 %v12708_v31  ;;  %v12868_v2 = vand.u32 4294901760, %v12867_v15  ;;  %v12871_v31 = vld [vmem:[#allocation108_spill] sm:$0xff]  ;;  %v8434_v15 = vand.u32 4294901760, %v2982_v56  ;;  %v12875_v63 = vld [vmem:[#allocation115_spill] sm:$0xff] }
 0x1b9   :  { %2643 = vmatpush2.msra.mxu0 %v12854_v45  ;;  %v8400_v45 = vand.u32 4294901760, %v2984_v51  ;;  %v8422_v20 = vsub.f32 %v8328_v25, %v12869_v13  ;;  %2822 = vmatprep.subr.mxu1 %v12709_v23  ;;  %v12872_v49 = vand.u32 4294901760, %v12871_v31  ;;  %v8438_v25 = vsub.f32 %v2985_v24, %v8390_v61  ;;  %v2980_v24 = vld [vmem:[#allocation4 + $0x70] sm:$0xff]  ;;  %v8473_v13 = vpop.f32.mrf.mxu0 }
 0x1ba   :  { %12857 = vst [vmem:[#allocation49_spill] sm:$0xff] %v8393_v22  ;;  %2647 = vmatprep.subr.mxu0 %v12860_v39  ;;  %12873 = vst [vmem:[#allocation57_spill] sm:$0xff] %v8434_v15  ;;  %2824 = vmatpush2.msra.mxu1 %v12711_v26  ;;  %v12876_v39 = vand.u32 4294901760, %v12875_v63  ;;  %v8446_v23 = vsub.f32 %v8341_v17, %v12877_v33  ;;  %v12880_v26 = vld [vmem:[#allocation111_spill] sm:$0xff]  ;;  %v12882_v63 = vand.u32 4294901760, %v8352_v27  ;;  %v12883_v17 = vand.u32 4294901760, %v8362_v40 }
 0x1bb   :  { %12861 = vst [vmem:[#allocation82_spill] sm:$0xff] %v8400_v45  ;;  %2651 = vmatpush2.msra.mxu0 %v12865_v50  ;;  %v8424_v50 = vand.u32 4294901760, %v2983_v4  ;;  %12874 = vst [vmem:[#allocation93_spill] sm:$0xff] %v8438_v25  ;;  %2826 = vmatprep.subr.mxu1 %v12712_v10  ;;  %v12885_v10 = vld [vmem:[#allocation120_spill] sm:$0xff] }
 0x1bc   :  { %2655 = vmatprep.subr.mxu0 %v12868_v2  ;;  %v8454_v2 = vsub.f32 %v2984_v51, %v8400_v45  ;;  %v8463_v33 = vsub.f32 %v8352_v27, %v12882_v63  ;;  %v8470_v51 = vand.u32 4294901760, %v2981_v12  ;;  %2828 = vmatpush2.msra.mxu1 %v12714_v47  ;;  %v12887_v63 = vand.u32 4294901760, %v8372_v19  ;;  %v8492_v45 = vpop.f32.mrf.mxu1  ;;  %v12892_v47 = vld [vmem:[#allocation116_spill] sm:$0xff] }
 0x1bd   :  { %12870 = vst [vmem:[#allocation91_spill] sm:$0xff] %v8424_v50  ;;  %2659 = vmatpush2.msra.mxu0 %v12872_v49  ;;  %v12878_v49 = vand.u32 4294901760, %v8346_v6  ;;  %2830 = vmatprep.subr.mxu1 %v12716_v3 }
 0x1be   :  { %2663 = vmatprep.subr.mxu0 %v12876_v39  ;;  %12879 = vst [vmem:[#allocation79_spill] sm:$0xff] %v8454_v2  ;;  %v12881_v39 = vand.u32 4294901760, %v12880_v26  ;;  %12884 = vst [vmem:[#allocation112_spill] sm:$0xff] %v8470_v51  ;;  %v12886_v26 = vand.u32 4294901760, %v12885_v10  ;;  %v8482_v27 = vsub.f32 %v8372_v19, %v12887_v63  ;;  %v12893_v10 = vand.u32 4294901760, %v12892_v47  ;;  %2832 = vmatpush2.msra.mxu1 %v12717_v38  ;;  %v12898_v19 = vld [vmem:[#allocation122_spill] sm:$0xff] }
 0x1bf   :  { %v8451_v31 = vsub.f32 %v8346_v6, %v12878_v49  ;;  %v8468_v49 = vsub.f32 %v8362_v40, %v12883_v17  ;;  %v12889_v17 = vand.u32 4294901760, %v8375_v42  ;;  %v8490_v6 = vsub.f32 %v2983_v4, %v8424_v50  ;;  %2834 = vmatprep.subr.mxu1 %v12718_v9  ;;  %v2976_v50 = vld [vmem:[#allocation4 + $0x50] sm:$0xff]  ;;  %v12907_v9 = vld [vmem:[#allocation125_spill] sm:$0xff] }
 0x1c0   :  { %2667 = vmatpush2.msra.mxu0 %v12881_v39  ;;  %12888 = vst [vmem:[#allocation110_spill] sm:$0xff] %v8482_v27  ;;  %v12895_v63 = vand.u32 4294901760, %v8393_v22  ;;  %v12899_v3 = vand.u32 4294901760, %v12898_v19  ;;  %v12904_v47 = vand.u32 4294901760, %v8410_v34  ;;  %2836 = vmatpush2.msra.mxu1 %v12719_v7  ;;  %v12914_v27 = vld [vmem:[#allocation67_spill] sm:$0xff]  ;;  %v8567_v7 = vand.u32 4294901760, %v2976_v50 }
 0x1c1   :  { %2671 = vmatprep.subr.mxu0 %v12886_v26  ;;  %v8487_v40 = vsub.f32 %v8375_v42, %v12889_v17  ;;  %12891 = vst [vmem:[#allocation87_spill] sm:$0xff] %v8490_v6  ;;  %v8498_v26 = vsub.f32 %v2982_v56, %v8434_v15  ;;  %v8505_v17 = vand.u32 4294901760, %v2980_v24  ;;  %v2978_v42 = vld [vmem:[#allocation4 + $0x60] sm:$0xff]  ;;  %2838 = vmatprep.subr.mxu1 %v12720_v43  ;;  %v12915_v43 = vand.u32 4294901760, %v7922_v44 }
 0x1c2   :  { %2675 = vmatpush2.msra.mxu0 %v12893_v10  ;;  %v8503_v39 = vsub.f32 %v8393_v22, %v12895_v63  ;;  %v12900_v10 = vand.u32 4294901760, %v8403_v18  ;;  %v12902_v22 = vld [vmem:[#allocation118_spill] sm:$0xff]  ;;  %v8527_v56 = vsub.f32 %v8410_v34, %v12904_v47  ;;  %v8532_v63 = vpop.f32.mrf.mxu0  ;;  %v8539_v38 = vand.u32 4294901760, %v2978_v42  ;;  %v8544_v34 = vpop.f32.mrf.mxu1  ;;  %v2974_v47 = vld [vmem:[#allocation4 + $0x40] sm:$0xff]  ;;  %2840 = vmatpush2.msra.mxu1 %v12914_v27  ;;  %12917 = vst [vmem:[#allocation105_spill] sm:$0xff] %v8567_v7 }
 0x1c3   :  { %12890 = vst [vmem:[#allocation114_spill] sm:$0xff] %v8487_v40  ;;  %12894 = vst [vmem:[#allocation61_spill] sm:$0xff] %v8498_v26  ;;  %2679 = vmatprep.subr.mxu0 %v12899_v3  ;;  %v12903_v4 = vand.u32 4294901760, %v12902_v22  ;;  %v2979_v3 = vld [vmem:[#allocation4 + $0x68] sm:$0xff]  ;;  %v12908_v22 = vand.u32 4294901760, %v12907_v9  ;;  %v8551_v9 = vsub.f32 %v2980_v24, %v8505_v17  ;;  %v359_v40 = vadd.f32 %v8285_v52, %v8283_v1  ;;  %v12920_v27 = vld [vmem:[#allocation126_spill] sm:$0xff] }
 0x1c4   :  { %12896 = vst [vmem:[#allocation119_spill] sm:$0xff] %v8503_v39  ;;  %12897 = vst [vmem:[#allocation96_spill] sm:$0xff] %v8505_v17  ;;  %v8516_v15 = vsub.f32 %v8403_v18, %v12900_v10  ;;  %v8530_v10 = vsub.f32 %v2981_v12, %v8470_v51  ;;  %v8541_v18 = vld [vmem:[#allocation4 + $0x58] sm:$0xff]  ;;  %v12921_v44 = vand.u32 4294901760, %v12920_v27  ;;  %v12927_v52 = vand.u32 4294901760, %v8490_v6 }
 0x1c5   :  { %2683 = vmatpush2.msra.mxu0 %v12903_v4  ;;  %12905 = vst [vmem:[#allocation103_spill] sm:$0xff] %v8527_v56  ;;  %12909 = vst [vmem:[#allocation99_spill] sm:$0xff] %v8539_v38  ;;  %v12910_v12 = vld [vmem:[#allocation123_spill] sm:$0xff]  ;;  %v8558_v4 = vld [vmem:[#allocation4 + $0x48] sm:$0xff]  ;;  %v8581_v39 = vand.u32 4294901760, %v8541_v18  ;;  %v8598_v27 = vand.u32 4294901760, %v2974_v47  ;;  %v963_v56 = vadd.f32 %v8366_v55, %v8364_v35 }
 0x1c6   :  { %12901 = vst [vmem:[#allocation97_spill] sm:$0xff] %v8516_v15  ;;  %12906 = vst [vmem:[#allocation104_spill] sm:$0xff] %v8530_v10  ;;  %2687 = vmatprep.subr.mxu0 %v12908_v22  ;;  %v12911_v51 = vand.u32 4294901760, %v12910_v12  ;;  %v12913_v22 = vand.u32 4294901760, %v8438_v25  ;;  %v8564_v12 = vand.u32 4294901760, %v2979_v3  ;;  %v12919_v17 = vld [vmem:[#allocation83_spill] sm:$0xff] }
 0x1c7   :  { %12912 = vst [vmem:[#allocation100_spill] sm:$0xff] %v8551_v9  ;;  %2842 = vmatprep.subr.mxu1 %v12919_v17  ;;  %12922 = vst [vmem:[#allocation13_spill] sm:$0xff] %v8581_v39  ;;  %v12923_v15 = vld [vmem:[#allocation130_spill] sm:$0xff]  ;;  %v8591_v1 = vand.u32 4294901760, %v8558_v4  ;;  %v8596_v17 = vsub.f32 %v8490_v6, %v12927_v52  ;;  %v12930_v24 = vand.u32 4294901760, %v8498_v26  ;;  %v11703_v6 = vand.u32 4294901760, %v8551_v9 }
 0x1c8   :  { %2691 = vmatpush2.msra.mxu0 %v12911_v51  ;;  %v8556_v19 = vsub.f32 %v8438_v25, %v12913_v22  ;;  %v1390_v51 = vpop.f32.mrf.mxu0  ;;  %12916 = vst [vmem:[#allocation34_spill] sm:$0xff] %v8564_v12  ;;  %v12918_v22 = vand.u32 4294901760, %v8454_v2  ;;  %2844 = vmatpush2.msra.mxu1 %v12723_v16  ;;  %12928 = vst [vmem:[#allocation14_spill] sm:$0xff] %v8598_v27  ;;  %v361_v16 = vadd.f32 %v8318_v48, %v8294_v60 }
 0x1c9   :  { %2695 = vmatprep.subr.mxu0 %v12915_v43  ;;  %12926 = vst [vmem:[#allocation106_spill] sm:$0xff] %v8591_v1  ;;  %v2972_v43 = vld [vmem:[#allocation4 + $0x30] sm:$0xff]  ;;  %2846 = vmatprep.subr.mxu1 %v12724_v0  ;;  %v8611_v52 = vsub.f32 %v8498_v26, %v12930_v24  ;;  %v12931_v60 = vand.u32 4294901760, %v7957_v36  ;;  %v760_v24 = vadd.f32 %v8380_v57, %v359_v40  ;;  %v12934_v35 = vand.u32 4294901760, %v7961_v53  ;;  %v12956_v57 = vld [vmem:[#allocation9_spill] sm:$0xff] }
 0x1ca   :  { %v8572_v25 = vsub.f32 %v8454_v2, %v12918_v22  ;;  %2699 = vmatpush2.msra.mxu0 %v12921_v44  ;;  %v12924_v22 = vand.u32 4294901760, %v12923_v15  ;;  %v8588_v2 = vsub.f32 %v2978_v42, %v8539_v38  ;;  %v8600_v44 = vld [vmem:[#allocation4 + $0x38] sm:$0xff]  ;;  %v1125_v15 = vpop.f32.mrf.mxu1  ;;  %v12929_v42 = vand.u32 4294901760, %v7927_v54  ;;  %2848 = vmatpush2.msra.mxu1 %v12725_v41  ;;  %v1392_v0 = vpop.f32.mrf.mxu0 }
 0x1cb   :  { %v8620_v54 = vsub.f32 %v2976_v50, %v8567_v7  ;;  %2850 = vmatprep.subr.mxu1 %v12726_v5  ;;  %v8631_v41 = vand.u32 4294901760, %v8600_v44  ;;  %v12936_v36 = vand.u32 4294901760, %v8530_v10  ;;  %v8638_v50 = vand.u32 4294901760, %v2972_v43  ;;  %v12938_v5 = vld [vmem:[#allocation113_spill] sm:$0xff] }
 0x1cc   :  { %2703 = vmatprep.subr.mxu0 %v12924_v22  ;;  %12925 = vst [vmem:[#allocation71_spill] sm:$0xff] %v8588_v2  ;;  %v1114_v40 = vadd.f32 %v8492_v45, %v963_v56  ;;  %2852 = vmatpush2.msra.mxu1 %v12938_v5  ;;  %v12939_v53 = vand.u32 4294901760, %v7975_v21  ;;  %v762_v48 = vadd.f32 %v8428_v30, %v361_v16  ;;  %v1127_v22 = vpop.f32.mrf.mxu1  ;;  %v8662_v45 = vld [vmem:[#allocation4 + $0x18] sm:$0xff]  ;;  %v1398_v5 = vpop.f32.mrf.mxu0 }
 0x1cd   :  { %2707 = vmatpush2.msra.mxu0 %v12929_v42  ;;  %12932 = vst [vmem:[#allocation38_spill] sm:$0xff] %v8620_v54  ;;  %v8624_v42 = vsub.f32 %v2979_v3, %v8564_v12  ;;  %12935 = vst [vmem:[#allocation16_spill] sm:$0xff] %v8631_v41  ;;  %v8636_v55 = vsub.f32 %v8530_v10, %v12936_v36  ;;  %v965_v3 = vadd.f32 %v8414_v32, %v8378_v28  ;;  %v8650_v36 = vld [vmem:[#allocation4 + $0x28] sm:$0xff] }
 0x1ce   :  { %2711 = vmatprep.subr.mxu0 %v12931_v60  ;;  %12937 = vst [vmem:[#allocation81_spill] sm:$0xff] %v8638_v50  ;;  %v2970_v60 = vld [vmem:[#allocation4 + $0x20] sm:$0xff]  ;;  %2854 = vmatprep.subr.mxu1 %v12730_v14  ;;  %v12941_v28 = vand.u32 4294901760, %v7979_v37  ;;  %v8660_v21 = vsub.f32 %v8551_v9, %v11703_v6  ;;  %v8666_v56 = vsub.f32 %v8541_v18, %v8581_v39  ;;  %v12944_v14 = vld [vmem:[#allocation134_spill] sm:$0xff]  ;;  %v12947_v18 = vand.u32 4294901760, %v7995_v58  ;;  %v1535_v32 = vpop.f32.mrf.mxu1 }
 0x1cf   :  { %12933 = vst [vmem:[#allocation75_spill] sm:$0xff] %v8624_v42  ;;  %2715 = vmatpush2.msra.mxu0 %v12934_v35  ;;  %v8648_v35 = vsub.f32 %v2974_v47, %v8598_v27  ;;  %v1116_v30 = vadd.f32 %v8544_v34, %v965_v3  ;;  %v12943_v47 = vld [vmem:[#allocation117_spill] sm:$0xff]  ;;  %v12945_v37 = vand.u32 4294901760, %v12944_v14  ;;  %v1391_v16 = vadd.f32 %v1390_v51, %v1114_v40  ;;  %v12950_v40 = vld [vmem:[#allocation94_spill] sm:$0xff] }
 0x1d0   :  { %2719 = vmatprep.subr.mxu0 %v12939_v53  ;;  %12942 = vst [vmem:[#allocation86_spill] sm:$0xff] %v8666_v56  ;;  %2856 = vmatpush2.msra.mxu1 %v12943_v47  ;;  %v11704_v53 = vand.u32 4294901760, %v8624_v42  ;;  %v973_v6 = vadd.f32 %v8473_v13, %v760_v24  ;;  %v8681_v3 = vsub.f32 %v2972_v43, %v8638_v50  ;;  %v8684_v51 = vand.u32 4294901760, %v8650_v36  ;;  %v12951_v47 = vld [vmem:[#allocation121_spill] sm:$0xff]  ;;  %v2968_v24 = vld [vmem:[#allocation4 + $0x10] sm:$0xff]  ;;  %v1537_v34 = vpop.f32.mrf.mxu1 }
 0x1d1   :  { %12940 = vst [vmem:[#allocation42_spill] sm:$0xff] %v8648_v35  ;;  %2723 = vmatpush2.msra.mxu0 %v12941_v28  ;;  %v8673_v28 = vand.u32 4294901760, %v2970_v60  ;;  %2858 = vmatprep.subr.mxu1 %v7880_v59  ;;  %v1393_v14 = vadd.f32 %v1392_v0, %v1116_v30  ;;  %v8688_v13 = vadd.f32 %v1535_v32, %v1391_v16  ;;  %v8692_v58 = vand.u32 4294901760, %v8662_v45  ;;  %v2966_v32 = vld [vmem:[#allocation4] sm:$0xff]  ;;  %v1400_v16 = vpop.f32.mrf.mxu0  ;;  %v12957_v0 = vld [vmem:[#allocation127_spill] sm:$0xff] }
 0x1d2   :  { %2727 = vmatprep.subr.mxu0 %v12945_v37  ;;  %12948 = vst [vmem:[#allocation90_spill] sm:$0xff] %v8681_v3  ;;  %12949 = vst [vmem:[#allocation20_spill] sm:$0xff] %v8684_v51  ;;  %2733 = vmatprep.mubr.f32.mxu0 %v12950_v40  ;;  %v975_v37 = vadd.f32 %v8532_v63, %v762_v48  ;;  %v1126_v43 = vadd.f32 %v1125_v15, %v973_v6  ;;  %v12954_v30 = vld [vmem:[#allocation124_spill] sm:$0xff]  ;;  %v8712_v15 = vld [vmem:[#allocation4 + $0x8] sm:$0xff]  ;;  %v1543_v63 = vpop.f32.mrf.mxu1  ;;  %v12966_v26 = vand.u32 4294901760, %v8666_v56 }
 0x1d3   :  { %12946 = vst [vmem:[#allocation18_spill] sm:$0xff] %v8673_v28  ;;  %2731 = vmatpush2.msra.mxu0 %v12947_v18  ;;  %2860 = vmatpush2.msra.mxu1 %v12951_v47  ;;  %12952 = vst [vmem:[#allocation28_spill] sm:$0xff] %v8692_v58  ;;  %v12953_v18 = vld [vmem:[#allocation95_spill] sm:$0xff]  ;;  %v8701_v47 = vadd.f32 %v1537_v34, %v1393_v14  ;;  %v8706_v6 = vsub.f32 %v8624_v42, %v11704_v53  ;;  %v8718_v14 = vand.u32 4294901760, %v2968_v24  ;;  %v12960_v59 = vld [vmem:[#allocation8_spill] sm:$0xff] }
 0x1d4   :  { %2735 = vmatmul.mubr.f32.vlgmr.msra.gmra.mxu0 %v12953_v18  ;;  %2862 = vmatprep.subr.mxu1 %v7901_v46  ;;  %v8709_v46 = vsub.f32 %v2970_v60, %v8673_v28  ;;  %v1128_v48 = vadd.f32 %v1127_v22, %v975_v37  ;;  %v2894_v34 = vmul.f32 %v8688_v13, %v8688_v13  ;;  %v12959_v53 = vld [vmem:[#allocation63_spill] sm:$0xff]  ;;  %v12961_v22 = vand.u32 4294901760, %v8588_v2  ;;  %v12965_v42 = vld [vmem:[#allocation65_spill] sm:$0xff] }
 0x1d5   :  { %3107 = vmatprep.subr.mxu0 %v8257_v29  ;;  %2864 = vmatpush2.msra.mxu1 %v12954_v30  ;;  %v1399_v30 = vadd.f32 %v1398_v5, %v1126_v43  ;;  %12958 = vst [vmem:[#allocation10_spill] sm:$0xff] %v8718_v14  ;;  %v2895_v60 = vmul.f32 %v8701_v47, %v8701_v47  ;;  %v8733_v43 = vand.u32 4294901760, %v2966_v32  ;;  %v12977_v29 = vld [vmem:[#allocation132_spill] sm:$0xff] }
 0x1d6   :  { %12955 = vst [vmem:[#allocation50_spill] sm:$0xff] %v8709_v46  ;;  %3109 = vmatpush1.msra.mxu0 %v12956_v57  ;;  %2866 = vmatprep.subr.mxu1 %v12957_v0  ;;  %v8727_v37 = vsub.f32 %v8588_v2, %v12961_v22  ;;  %v8731_v5 = vsub.f32 %v8558_v4, %v8591_v1  ;;  %v12964_v0 = vld [vmem:[#allocation128_spill] sm:$0xff]  ;;  %v8745_v22 = vand.u32 4294901760, %v8712_v15  ;;  %v12968_v2 = vld [vmem:[#allocation26_spill] sm:$0xff]  ;;  %v12969_v4 = vld [vmem:[#allocation129_spill] sm:$0xff] }
 0x1d7   :  { %3111 = vmatprep.subr.mxu0 %v12959_v53  ;;  %2741 = vmatprep.mubr.f32.mxu0 %v12960_v59  ;;  %12963 = vst [vmem:[#allocation22_spill] sm:$0xff] %v8733_v43  ;;  %v1401_v9 = vadd.f32 %v1400_v16, %v1128_v48  ;;  %v8737_v10 = vadd.f32 %v1543_v63, %v1399_v30  ;;  %v12970_v16 = vand.u32 4294901760, %v8620_v54  ;;  %v8756_v48 = vld [vmem:[#allocation4 + $0x1f8] sm:$0xff]  ;;  %v12972_v30 = vld [vmem:[#allocation69_spill] sm:$0xff] }
 0x1d8   :  { %12962 = vst [vmem:[#allocation54_spill] sm:$0xff] %v8731_v5  ;;  %2868 = vmatpush2.msra.mxu1 %v12964_v0  ;;  %3113 = vmatpush1.msra.mxu0 %v12965_v42  ;;  %v8742_v53 = vsub.f32 %v8666_v56, %v12966_v26  ;;  %12967 = vst [vmem:[#allocation12_spill] sm:$0xff] %v8745_v22  ;;  %v2903_v57 = vmul.f32 %v2895_v60, %v8701_v47  ;;  %v1545_v0 = vpop.f32.mrf.mxu1  ;;  %v12973_v56 = vld [vmem:[#allocation131_spill] sm:$0xff] }
 0x1d9   :  { %2743 = vmatmul.mubr.f32.gmra.mxu0 %v12968_v2  ;;  %2870 = vmatprep.subr.mxu1 %v12969_v4  ;;  %v8754_v63 = vsub.f32 %v8620_v54, %v12970_v16  ;;  %v8760_v26 = vsub.f32 %v8600_v44, %v8631_v41  ;;  %v2902_v60 = vmul.f32 %v2894_v34, %v8688_v13  ;;  %v12976_v54 = vld [vmem:[#allocation73_spill] sm:$0xff] }
 0x1da   :  { %3115 = vmatprep.subr.mxu0 %v12972_v30  ;;  %2872 = vmatpush2.msra.mxu1 %v12973_v56  ;;  %v8765_v4 = vadd.f32 %v1545_v0, %v1401_v9  ;;  %v8768_v42 = vsub.f32 %v2968_v24, %v8718_v14  ;;  %v2911_v28 = vmul.f32 0.044715, %v2903_v57  ;;  %v8776_v56 = vsub.f32 %v2966_v32, %v8733_v43  ;;  %v12979_v9 = vld [vmem:[#allocation133_spill] sm:$0xff]  ;;  %v3028_v0 = vld [vmem:[#allocation4 + $0x1f0] sm:$0xff]  ;;  %v12986_v43 = vld [vmem:[#allocation11_spill] sm:$0xff] }
 0x1db   :  { %12971 = vst [vmem:[#allocation25_spill] sm:$0xff] %v8760_v26  ;;  %3117 = vmatpush1.msra.mxu0 %v12976_v54  ;;  %2874 = vmatprep.subr.mxu1 %v12977_v29  ;;  %v2898_v24 = vmul.f32 %v8737_v10, %v8737_v10  ;;  %v8786_v57 = vand.u32 4294901760, %v8756_v48  ;;  %v12981_v32 = vld [vmem:[#allocation46_spill] sm:$0xff]  ;;  %v8795_v16 = vsub.f32 %v8650_v36, %v8684_v51  ;;  %v2910_v29 = vmul.f32 0.044715, %v2902_v60  ;;  %v8806_v30 = vld [vmem:[#allocation4 + $0x1e8] sm:$0xff] }
 0x1dc   :  { %12974 = vst [vmem:[#allocation24_spill] sm:$0xff] %v8765_v4  ;;  %12975 = vst [vmem:[#allocation36_spill] sm:$0xff] %v8768_v42  ;;  %3119 = vmatprep.subr.mxu0 %v8314_v11  ;;  %2876 = vmatpush2.msra.mxu1 %v12979_v9  ;;  %v2899_v34 = vmul.f32 %v8765_v4, %v8765_v4  ;;  %v2919_v44 = vadd.f32 %v2911_v28, %v8701_v47  ;;  %v3026_v11 = vld [vmem:[#allocation4 + $0x1e0] sm:$0xff]  ;;  %v12984_v54 = vld [vmem:[#allocation58_spill] sm:$0xff]  ;;  %v12990_v9 = vand.u32 4294901760, %v8388_v62 }
 0x1dd   :  { %12978 = vst [vmem:[#allocation29_spill] sm:$0xff] %v8776_v56  ;;  %12980 = vst [vmem:[#allocation27_spill] sm:$0xff] %v8786_v57  ;;  %2878 = vmatprep.mubr.f32.mxu1 %v12950_v40  ;;  %3121 = vmatpush1.msra.mxu0 %v12981_v32  ;;  %v12983_v32 = vand.u32 4294901760, %v8648_v35  ;;  %v12985_v36 = vand.u32 4294901760, %v12984_v54  ;;  %v2906_v54 = vmul.f32 %v2898_v24, %v8737_v10  ;;  %v13001_v24 = vand.u32 4294901760, %v8451_v31  ;;  %v3022_v31 = vld [vmem:[#allocation4 + $0x1c0] sm:$0xff] }
 0x1de   :  { %12982 = vst [vmem:[#allocation68_spill] sm:$0xff] %v8795_v16  ;;  %2880 = vmatmul.mubr.f32.vlgmr.msra.gmra.mxu1 %v12953_v18  ;;  %3123 = vmatprep.subr.mxu0 %v8334_v8  ;;  %v2907_v40 = vmul.f32 %v2899_v34, %v8765_v4  ;;  %v2927_v60 = vmul.f32 0.7978846, %v2919_v44  ;;  %v12987_v18 = vand.u32 4294901760, %v8731_v5  ;;  %v8816_v34 = vand.u32 4294901760, %v3028_v0 }
 0x1df   :  { %v8803_v28 = vsub.f32 %v8648_v35, %v12983_v32  ;;  %3272 = vmatprep.subr.mxu1 %v12985_v36  ;;  %3125 = vmatpush1.msra.mxu0 %v12986_v43  ;;  %v8820_v32 = vsub.f32 %v8662_v45, %v8692_v58  ;;  %v12991_v35 = vld [vmem:[#allocation52_spill] sm:$0xff]  ;;  %v8826_v44 = vand.u32 4294901760, %v3026_v11  ;;  %v12994_v45 = vand.u32 4294901760, %v8760_v26  ;;  %v3024_v43 = vld [vmem:[#allocation4 + $0x1d0] sm:$0xff] }
 0x1e0   :  { %v8814_v8 = vsub.f32 %v8731_v5, %v12987_v18  ;;  %12988 = vst [vmem:[#allocation17_spill] sm:$0xff] %v8816_v34  ;;  %3278 = vmatpush1.msra.mxu1 %v12990_v9  ;;  %3127 = vmatprep.subr.mxu0 %v12991_v35  ;;  %v2915_v36 = vmul.f32 0.044715, %v2907_v40  ;;  %5818 = vtanh.f32 %v2927_v60  ;;  %v12993_v18 = vand.u32 4294901760, %v8422_v20  ;;  %v12996_v5 = vld [vmem:[#allocation33_spill] sm:$0xff] }
 0x1e1   :  { %12989 = vst [vmem:[#allocation31_spill] sm:$0xff] %v8820_v32  ;;  %12992 = vst [vmem:[#allocation44_spill] sm:$0xff] %v8826_v44  ;;  %2886 = vmatprep.mubr.f32.mxu1 %v12960_v59  ;;  %v8835_v62 = vsub.f32 %v8760_v26, %v12994_v45  ;;  %v8838_v9 = vand.u32 4294901760, %v8806_v30  ;;  %v2918_v40 = vadd.f32 %v2910_v29, %v8688_v13  ;;  %3129 = vmatpush1.msra.mxu0 %v12996_v5  ;;  %v3025_v45 = vld [vmem:[#allocation4 + $0x1d8] sm:$0xff]  ;;  %v13012_v5 = vld [vmem:[#allocation110_spill] sm:$0xff] }
 0x1e2   :  { %3284 = vmatprep.subr.mxu1 %v12993_v18  ;;  %v12997_v60 = vand.u32 4294901760, %v8446_v23  ;;  %v12998_v59 = vand.u32 4294901760, %v8681_v3  ;;  %v8853_v26 = vsub.f32 %v8712_v15, %v8745_v22  ;;  %2888 = vmatmul.mubr.f32.gmra.mxu1 %v12968_v2  ;;  %v8859_v29 = vsub.f32 %v3028_v0, %v8816_v34 }
 0x1e3   :  { %12995 = vst [vmem:[#allocation35_spill] sm:$0xff] %v8838_v9  ;;  %3131 = vmatprep.subr.mxu0 %v8390_v61  ;;  %v2914_v20 = vmul.f32 0.044715, %v2906_v54  ;;  %v2923_v15 = vadd.f32 %v2915_v36, %v8765_v4  ;;  %v8868_v2 = vsub.f32 %v3026_v11, %v8826_v44  ;;  %v13004_v23 = vand.u32 4294901760, %v8709_v46  ;;  %v3023_v61 = vld [vmem:[#allocation4 + $0x1c8] sm:$0xff]  ;;  %v13006_v54 = vld [vmem:[#allocation91_spill] sm:$0xff] }
 0x1e4   :  { %3290 = vmatpush1.msra.mxu1 %v12997_v60  ;;  %v8849_v18 = vsub.f32 %v8681_v3, %v12998_v59  ;;  %12999 = vst [vmem:[#allocation70_spill] sm:$0xff] %v8853_v26  ;;  %13000 = vst [vmem:[#allocation48_spill] sm:$0xff] %v8859_v29  ;;  %v13002_v3 = vld [vmem:[#allocation82_spill] sm:$0xff]  ;;  %v13005_v60 = vand.u32 4294901760, %v8463_v33  ;;  %v8884_v11 = vand.u32 4294901760, %v3025_v45  ;;  %v8886_v59 = vand.u32 4294901760, %v3024_v43 }
 0x1e5   :  { %3296 = vmatprep.subr.mxu1 %v13001_v24  ;;  %3133 = vmatpush1.msra.mxu0 %v13002_v3  ;;  %13003 = vst [vmem:[#allocation43_spill] sm:$0xff] %v8868_v2  ;;  %v8873_v0 = vsub.f32 %v8709_v46, %v13004_v23  ;;  %v13007_v24 = vand.u32 4294901760, %v8795_v16  ;;  %v2926_v3 = vmul.f32 0.7978846, %v2918_v40  ;;  %v13010_v23 = vand.u32 4294901760, %v8468_v49  ;;  %v13011_v46 = vld [vmem:[#allocation57_spill] sm:$0xff] }
 0x1e6   :  { %3302 = vmatpush1.msra.mxu1 %v13005_v60  ;;  %3135 = vmatprep.subr.mxu0 %v13006_v54  ;;  %13008 = vst [vmem:[#allocation72_spill] sm:$0xff] %v8884_v11  ;;  %13009 = vst [vmem:[#allocation21_spill] sm:$0xff] %v8886_v59  ;;  %v13015_v35 = vand.u32 4294901760, %v8820_v32  ;;  %v13016_v49 = vand.u32 4294901760, %v8768_v42  ;;  %v8907_v33 = vand.u32 4294901760, %v3023_v61  ;;  %v8911_v54 = vsub.f32 %v8756_v48, %v8786_v57  ;;  %v13018_v60 = vld [vmem:[#allocation119_spill] sm:$0xff] }
 0x1e7   :  { %v8882_v36 = vsub.f32 %v8795_v16, %v13007_v24  ;;  %3308 = vmatprep.subr.mxu1 %v13010_v23  ;;  %3137 = vmatpush1.msra.mxu0 %v13011_v46  ;;  %v13013_v24 = vand.u32 4294901760, %v13012_v5  ;;  %v13014_v16 = vld [vmem:[#allocation112_spill] sm:$0xff]  ;;  %v2922_v5 = vadd.f32 %v2914_v20, %v8737_v10  ;;  %v8927_v20 = vsub.f32 %v3024_v43, %v8886_v59  ;;  %v3019_v48 = vld [vmem:[#allocation4 + $0x1a8] sm:$0xff] }
 0x1e8   :  { %3139 = vmatprep.subr.mxu0 %v13014_v16  ;;  %v8900_v40 = vsub.f32 %v8820_v32, %v13015_v35  ;;  %v8905_v23 = vsub.f32 %v8768_v42, %v13016_v49  ;;  %13017 = vst [vmem:[#allocation45_spill] sm:$0xff] %v8911_v54  ;;  %v13019_v16 = vand.u32 4294901760, %v13018_v60  ;;  %v13020_v46 = vld [vmem:[#allocation96_spill] sm:$0xff]  ;;  %v3021_v32 = vld [vmem:[#allocation4 + $0x1b8] sm:$0xff]  ;;  %v8920_v49 = vsub.f32 %v8806_v30, %v8838_v9  ;;  %v13022_v42 = vld [vmem:[#allocation114_spill] sm:$0xff] }
 0x1e9   :  { %3314 = vmatpush1.msra.mxu1 %v13013_v24  ;;  %v2931_v24 = vmul.f32 0.7978846, %v2923_v15  ;;  %3141 = vmatpush1.msra.mxu0 %v13020_v46  ;;  %v13023_v4 = vand.u32 4294901760, %v13022_v42  ;;  %13024 = vst [vmem:[#allocation84_spill] sm:$0xff] %v8927_v20  ;;  %v3020_v15 = vld [vmem:[#allocation4 + $0x1b0] sm:$0xff]  ;;  %5820 = vtanh.f32 %v2926_v3  ;;  %v13026_v35 = vld [vmem:[#allocation97_spill] sm:$0xff] }
 0x1ea   :  { %3320 = vmatprep.subr.mxu1 %v13019_v16  ;;  %13021 = vst [vmem:[#allocation76_spill] sm:$0xff] %v8920_v49  ;;  %3143 = vmatprep.subr.mxu0 %v8564_v12  ;;  %v8929_v16 = vand.u32 4294901760, %v3022_v31  ;;  %v13027_v46 = vand.u32 4294901760, %v13026_v35  ;;  %v13028_v42 = vand.u32 4294901760, %v8853_v26  ;;  %v8946_v12 = vsub.f32 %v3025_v45, %v8884_v11  ;;  %v13031_v3 = vld [vmem:[#allocation103_spill] sm:$0xff] }
 0x1eb   :  { %3326 = vmatpush1.msra.mxu1 %v13023_v4  ;;  %3145 = vmatpush1.msra.mxu0 %v8539_v38  ;;  %v13029_v4 = vand.u32 4294901760, %v8776_v56  ;;  %v13032_v60 = vand.u32 4294901760, %v13031_v3  ;;  %v2930_v38 = vmul.f32 0.7978846, %v2922_v5  ;;  %5822 = vtanh.f32 %v2931_v24  ;;  %v3018_v3 = vld [vmem:[#allocation4 + $0x1a0] sm:$0xff] }
 0x1ec   :  { %13025 = vst [vmem:[#allocation60_spill] sm:$0xff] %v8929_v16  ;;  %3332 = vmatprep.subr.mxu1 %v13027_v46  ;;  %v8938_v30 = vsub.f32 %v8853_v26, %v13028_v42  ;;  %13030 = vst [vmem:[#allocation80_spill] sm:$0xff] %v8946_v12  ;;  %3147 = vmatprep.subr.mxu0 %v8581_v39  ;;  %v8953_v42 = vand.u32 4294901760, %v3021_v32  ;;  %v8959_v45 = vand.u32 4294901760, %v3020_v15  ;;  %v13036_v46 = vand.u32 4294901760, %v8572_v25  ;;  %v3017_v25 = vld [vmem:[#allocation4 + $0x198] sm:$0xff] }
 0x1ed   :  { %v8943_v43 = vsub.f32 %v8776_v56, %v13029_v4  ;;  %3338 = vmatpush1.msra.mxu1 %v13032_v60  ;;  %v13034_v4 = vand.u32 4294901760, %v8556_v19  ;;  %3149 = vmatpush1.msra.mxu0 %v8567_v7  ;;  %v8966_v35 = vsub.f32 %v3022_v31, %v8929_v16  ;;  %v13038_v5 = vand.u32 4294901760, %v8859_v29  ;;  %v5819_v60 = vpop.eup %5818 }
 0x1ee   :  { %13033 = vst [vmem:[#allocation53_spill] sm:$0xff] %v8953_v42  ;;  %13035 = vst [vmem:[#allocation62_spill] sm:$0xff] %v8959_v45  ;;  %3151 = vmatprep.subr.mxu0 %v8591_v1  ;;  %v8973_v24 = vand.u32 4294901760, %v3019_v48  ;;  %v13041_v26 = vand.u32 4294901760, %v8596_v17  ;;  %v13042_v56 = vand.u32 4294901760, %v8611_v52  ;;  %5824 = vtanh.f32 %v2930_v38 }
 0x1ef   :  { %3344 = vmatprep.subr.mxu1 %v13034_v4  ;;  %13037 = vst [vmem:[#allocation51_spill] sm:$0xff] %v8966_v35  ;;  %v8971_v19 = vsub.f32 %v8859_v29, %v13038_v5  ;;  %v8976_v4 = vsub.f32 %v3023_v61, %v8907_v33  ;;  %3153 = vmatpush1.msra.mxu0 %v8598_v27  ;;  %v2943_v29 = vadd.f32 1.0, %v5819_v60  ;;  %v13043_v61 = vand.u32 4294901760, %v8911_v54  ;;  %v3016_v27 = vld [vmem:[#allocation4 + $0x190] sm:$0xff] }
 0x1f0   :  { %3350 = vmatpush1.msra.mxu1 %v13036_v46  ;;  %13039 = vst [vmem:[#allocation64_spill] sm:$0xff] %v8973_v24  ;;  %3155 = vmatprep.subr.mxu0 %v8631_v41  ;;  %v13044_v5 = vand.u32 4294901760, %v8636_v55  ;;  %v9000_v52 = vsub.f32 %v3020_v15, %v8959_v45  ;;  %v13047_v31 = vand.u32 4294901760, %v8660_v21  ;;  %v9014_v55 = vld [vmem:[#allocation4 + $0x188] sm:$0xff]  ;;  %v13052_v38 = vand.u32 4294901760, %v8946_v12 }
 0x1f1   :  { %13040 = vst [vmem:[#allocation59_spill] sm:$0xff] %v8976_v4  ;;  %3356 = vmatprep.subr.mxu1 %v13041_v26  ;;  %v8991_v17 = vsub.f32 %v8911_v54, %v13043_v61  ;;  %v8993_v26 = vand.u32 4294901760, %v3018_v3  ;;  %3157 = vmatpush1.msra.mxu0 %v8638_v50  ;;  %v9008_v61 = vsub.f32 %v3021_v32, %v8953_v42  ;;  %v2951_v46 = vmul.f32 0.5, %v2943_v29  ;;  %v13049_v32 = vld [vmem:[#allocation18_spill] sm:$0xff] }
 0x1f2   :  { %3362 = vmatpush1.msra.mxu1 %v13042_v56  ;;  %v13045_v56 = vand.u32 4294901760, %v8920_v49  ;;  %3159 = vmatprep.subr.mxu0 %v8684_v51  ;;  %v13050_v29 = vand.u32 4294901760, %v8868_v2  ;;  %v9031_v51 = vsub.f32 %v8946_v12, %v13052_v38  ;;  %v9033_v15 = vand.u32 4294901760, %v3016_v27 }
 0x1f3   :  { %3368 = vmatprep.subr.mxu1 %v13044_v5  ;;  %13046 = vst [vmem:[#allocation55_spill] sm:$0xff] %v9008_v61  ;;  %v3014_v5 = vld [vmem:[#allocation4 + $0x180] sm:$0xff]  ;;  %3161 = vmatpush1.msra.mxu0 %v13049_v32  ;;  %v13054_v50 = vand.u32 4294901760, %v8727_v37  ;;  %v9048_v38 = vsub.f32 %v3019_v48, %v8973_v24  ;;  %v13058_v12 = vand.u32 4294901760, %v8742_v53  ;;  %v9055_v37 = vand.u32 4294901760, %v9014_v55 }
 0x1f4   :  { %v9005_v60 = vsub.f32 %v8920_v49, %v13045_v56  ;;  %3374 = vmatpush1.msra.mxu1 %v13047_v31  ;;  %v13048_v56 = vand.u32 4294901760, %v8706_v6  ;;  %v9024_v21 = vsub.f32 %v8868_v2, %v13050_v29  ;;  %v9026_v31 = vand.u32 4294901760, %v3017_v25  ;;  %13053 = vst [vmem:[#allocation98_spill] sm:$0xff] %v9033_v15  ;;  %3163 = vmatprep.subr.mxu0 %v8692_v58  ;;  %v9059_v6 = vld [vmem:[#allocation4 + $0x178] sm:$0xff]  ;;  %v3010_v2 = vld [vmem:[#allocation4 + $0x160] sm:$0xff] }
 0x1f5   :  { %v13056_v29 = vand.u32 4294901760, %v8927_v20  ;;  %13057 = vst [vmem:[#allocation37_spill] sm:$0xff] %v9048_v38  ;;  %3165 = vmatpush1.msra.mxu0 %v8718_v14  ;;  %13059 = vst [vmem:[#allocation107_spill] sm:$0xff] %v9055_v37  ;;  %v2959_v48 = vmul.f32 %v2951_v46, %v8701_v47  ;;  %v13060_v58 = vand.u32 4294901760, %v8754_v63  ;;  %v13063_v47 = vand.u32 4294901760, %v8814_v8  ;;  %v13064_v63 = vld [vmem:[#allocation22_spill] sm:$0xff] }
 0x1f6   :  { %3380 = vmatprep.subr.mxu1 %v13048_v56  ;;  %13051 = vst [vmem:[#allocation66_spill] sm:$0xff] %v9026_v31  ;;  %v9040_v56 = vsub.f32 %v3018_v3, %v8993_v26  ;;  %v9057_v3 = vand.u32 4294901760, %v3014_v5  ;;  %3167 = vmatprep.subr.mxu0 %v8745_v22  ;;  %v9086_v22 = vsub.f32 %v3017_v25, %v9026_v31  ;;  %v9097_v46 = vld [vmem:[#allocation4 + $0x168] sm:$0xff]  ;;  %v13069_v25 = vand.u32 4294901760, %v8835_v62 }
 0x1f7   :  { %3386 = vmatpush1.msra.mxu1 %v13054_v50  ;;  %v9045_v32 = vsub.f32 %v8927_v20, %v13056_v29  ;;  %v3012_v20 = vld [vmem:[#allocation4 + $0x170] sm:$0xff]  ;;  %v13062_v50 = vand.u32 4294901760, %v8966_v35  ;;  %3169 = vmatpush1.msra.mxu0 %v13064_v63  ;;  %v13073_v62 = vand.u32 4294901760, %v8849_v18  ;;  %v13076_v49 = vand.u32 4294901760, %v8882_v36 }
 0x1f8   :  { %13055 = vst [vmem:[#allocation92_spill] sm:$0xff] %v9040_v56  ;;  %3392 = vmatprep.subr.mxu1 %v13058_v12  ;;  %v13061_v12 = vand.u32 4294901760, %v8976_v4  ;;  %13066 = vst [vmem:[#allocation77_spill] sm:$0xff] %v9086_v22  ;;  %3171 = vmatprep.subr.mxu0 %v8786_v57  ;;  %v3008_v29 = vld [vmem:[#allocation4 + $0x150] sm:$0xff]  ;;  %v9111_v57 = vand.u32 4294901760, %v3010_v2  ;;  %v9132_v18 = vand.u32 4294901760, %v9097_v46 }
 0x1f9   :  { %3398 = vmatpush1.msra.mxu1 %v13060_v58  ;;  %v9074_v14 = vsub.f32 %v8966_v35, %v13062_v50  ;;  %v5821_v50 = vpop.eup %5820  ;;  %v13067_v35 = vand.u32 4294901760, %v8803_v28  ;;  %v9095_v58 = vand.u32 4294901760, %v3012_v20  ;;  %3173 = vmatpush2.msra.mxu0 %v8816_v34  ;;  %v9104_v28 = vsub.f32 %v3014_v5, %v9057_v3 }
 0x1fa   :  { %v9069_v53 = vsub.f32 %v8976_v4, %v13061_v12  ;;  %3404 = vmatprep.subr.mxu1 %v13063_v47  ;;  %v9083_v12 = vsub.f32 %v3016_v27, %v9033_v15  ;;  %v9093_v47 = vand.u32 4294901760, %v9059_v6  ;;  %13072 = vst [vmem:[#allocation115_spill] sm:$0xff] %v9111_v57  ;;  %v9114_v4 = vld [vmem:[#allocation4 + $0x158] sm:$0xff]  ;;  %v5823_v27 = vpop.eup %5822  ;;  %3175 = vmatprep.subr.mxu0 %v8838_v9  ;;  %v2942_v63 = vadd.f32 1.0, %v5821_v50 }
 0x1fb   :  { %3410 = vmatpush1.msra.mxu1 %v13067_v35  ;;  %13070 = vst [vmem:[#allocation108_spill] sm:$0xff] %v9104_v28  ;;  %v13071_v35 = vand.u32 4294901760, %v9008_v61  ;;  %3177 = vmatpush2.msra.mxu0 %v8826_v44  ;;  %13077 = vst [vmem:[#allocation120_spill] sm:$0xff] %v9132_v18  ;;  %v9135_v9 = vand.u32 4294901760, %v3008_v29  ;;  %v13079_v34 = vand.u32 4294901760, %v8873_v0  ;;  %v13081_v36 = vand.u32 4294901760, %v9048_v38 }
 0x1fc   :  { %13065 = vst [vmem:[#allocation41_spill] sm:$0xff] %v9083_v12  ;;  %13068 = vst [vmem:[#allocation109_spill] sm:$0xff] %v9093_v47  ;;  %3416 = vmatprep.subr.mxu1 %v13069_v25  ;;  %v9119_v25 = vand.u32 4294901760, %v2959_v48  ;;  %3179 = vmatprep.subr.mxu0 %v8884_v11  ;;  %v9149_v50 = vand.u32 4294901760, %v9114_v4  ;;  %v9153_v5 = vsub.f32 %v9014_v55, %v9055_v37  ;;  %v9167_v44 = vld [vmem:[#allocation4 + $0x148] sm:$0xff]  ;;  %v3006_v55 = vld [vmem:[#allocation4 + $0x140] sm:$0xff] }
 0x1fd   :  { %v9109_v8 = vsub.f32 %v9008_v61, %v13071_v35  ;;  %3422 = vmatpush1.msra.mxu1 %v13073_v62  ;;  %v13075_v35 = vand.u32 4294901760, %v9000_v52  ;;  %13078 = vst [vmem:[#allocation116_spill] sm:$0xff] %v9135_v9  ;;  %v2947_v62 = vadd.f32 1.0, %v5823_v27  ;;  %3181 = vmatpush2.msra.mxu0 %v8886_v59  ;;  %v13086_v27 = vand.u32 4294901760, %v8905_v23  ;;  %v3004_v0 = vld [vmem:[#allocation4 + $0x130] sm:$0xff] }
 0x1fe   :  { %13074 = vst [vmem:[#allocation111_spill] sm:$0xff] %v9119_v25  ;;  %3428 = vmatprep.subr.mxu1 %v13076_v49  ;;  %v9146_v49 = vsub.f32 %v9048_v38, %v13081_v36  ;;  %13082 = vst [vmem:[#allocation118_spill] sm:$0xff] %v9149_v50  ;;  %v13085_v36 = vand.u32 4294901760, %v9040_v56  ;;  %v5825_v38 = vpop.eup %5824  ;;  %3183 = vmatprep.subr.mxu0 %v8907_v33  ;;  %v2950_v59 = vmul.f32 0.5, %v2942_v63  ;;  %v13089_v23 = vand.u32 4294901760, %v9086_v22 }
 0x1ff   :  { %v9126_v61 = vsub.f32 %v9000_v52, %v13075_v35  ;;  %3434 = vmatpush1.msra.mxu1 %v13079_v34  ;;  %v9141_v35 = vsub.f32 %v3012_v20, %v9095_v58  ;;  %v13083_v34 = vand.u32 4294901760, %v8900_v40  ;;  %v9160_v20 = vsub.f32 %v3010_v2, %v9111_v57  ;;  %3185 = vmatpush2.msra.mxu0 %v8929_v16  ;;  %v9193_v2 = vld [vmem:[#allocation4 + $0x138] sm:$0xff] }
 0x200   :  { %v9165_v11 = vsub.f32 %v9040_v56, %v13085_v36  ;;  %v9179_v36 = vsub.f32 %v9059_v6, %v9093_v47  ;;  %v13088_v56 = vand.u32 4294901760, %v8938_v30  ;;  %v13091_v6 = vand.u32 4294901760, %v8943_v43  ;;  %3187 = vmatprep.subr.mxu0 %v8953_v42  ;;  %v3002_v42 = vld [vmem:[#allocation4 + $0x120] sm:$0xff]  ;;  %3652 = vmatprep.mubr.f32.mxu1 %v9119_v25 }
 0x201   :  { %13080 = vst [vmem:[#allocation122_spill] sm:$0xff] %v9141_v35  ;;  %3440 = vmatprep.subr.mxu1 %v13083_v34  ;;  %13084 = vst [vmem:[#allocation125_spill] sm:$0xff] %v9160_v20  ;;  %v9174_v34 = vsub.f32 %v2959_v48, %v9119_v25  ;;  %v9190_v48 = vsub.f32 %v3008_v29, %v9135_v9  ;;  %v2946_v29 = vadd.f32 1.0, %v5825_v38  ;;  %v2955_v16 = vmul.f32 0.5, %v2947_v62 }
 0x202   :  { %3446 = vmatpush1.msra.mxu1 %v13086_v27  ;;  %13087 = vst [vmem:[#allocation123_spill] sm:$0xff] %v9179_v36  ;;  %v9187_v27 = vsub.f32 %v9086_v22, %v13089_v23  ;;  %v9203_v23 = vand.u32 4294901760, %v3006_v55  ;;  %v13094_v40 = vand.u32 4294901760, %v8991_v17  ;;  %3189 = vmatpush2.msra.mxu0 %v8959_v45  ;;  %v13096_v30 = vand.u32 4294901760, %v8971_v19 }
 0x203   :  { %3452 = vmatprep.subr.mxu1 %v13088_v56  ;;  %13090 = vst [vmem:[#allocation67_spill] sm:$0xff] %v9190_v48  ;;  %v9200_v56 = vand.u32 4294901760, %v9167_v44  ;;  %3191 = vmatprep.subr.mxu0 %v8973_v24  ;;  %v13097_v38 = vand.u32 4294901760, %v9083_v12  ;;  %v9221_v17 = vand.u32 4294901760, %v9193_v2  ;;  %v2958_v43 = vmul.f32 %v2950_v59, %v8688_v13 }
 0x204   :  { %3458 = vmatpush1.msra.mxu1 %v13091_v6  ;;  %13093 = vst [vmem:[#allocation126_spill] sm:$0xff] %v9203_v23  ;;  %v9209_v6 = vand.u32 4294901760, %v3004_v0  ;;  %v13099_v45 = vand.u32 4294901760, %v9005_v60  ;;  %3193 = vmatpush2.msra.mxu0 %v8993_v26  ;;  %v13101_v24 = vand.u32 4294901760, %v9024_v21  ;;  %v13102_v13 = vand.u32 4294901760, %v9153_v5  ;;  %v3003_v60 = vld [vmem:[#allocation4 + $0x128] sm:$0xff] }
 0x205   :  { %13092 = vst [vmem:[#allocation83_spill] sm:$0xff] %v9200_v56  ;;  %3464 = vmatprep.subr.mxu1 %v13094_v40  ;;  %v9218_v62 = vsub.f32 %v9083_v12, %v13097_v38  ;;  %13098 = vst [vmem:[#allocation113_spill] sm:$0xff] %v9221_v17  ;;  %3195 = vmatprep.subr.mxu0 %v9026_v31  ;;  %v9250_v19 = vand.u32 4294901760, %v3002_v42  ;;  %v2954_v38 = vmul.f32 0.5, %v2946_v29  ;;  %v13105_v21 = vld [vmem:[#allocation24_spill] sm:$0xff]  ;;  %v13106_v40 = vand.u32 4294901760, %v9031_v51 }
 0x206   :  { %13095 = vst [vmem:[#allocation130_spill] sm:$0xff] %v9209_v6  ;;  %3470 = vmatpush2.msra.mxu1 %v13096_v30  ;;  %v13100_v30 = vand.u32 4294901760, %v9104_v28  ;;  %v9241_v59 = vsub.f32 %v9153_v5, %v13102_v13  ;;  %3197 = vmatpush2.msra.mxu0 %v9033_v15  ;;  %v9257_v13 = vsub.f32 %v3004_v0, %v9209_v6  ;;  %v13108_v31 = vand.u32 4294901760, %v9045_v32  ;;  %v3001_v0 = vld [vmem:[#allocation4 + $0x118] sm:$0xff] }
 0x207   :  { %3476 = vmatprep.subr.mxu1 %v13099_v45  ;;  %v9244_v45 = vsub.f32 %v3006_v55, %v9203_v23  ;;  %13104 = vst [vmem:[#allocation134_spill] sm:$0xff] %v9250_v19  ;;  %v13110_v51 = vand.u32 4294901760, %v9179_v36  ;;  %v9276_v32 = vand.u32 4294901760, %v2958_v43  ;;  %3199 = vmatprep.subr.mxu0 %v9055_v37 }
 0x208   :  { %v9232_v63 = vsub.f32 %v9104_v28, %v13100_v30  ;;  %3482 = vmatpush2.msra.mxu1 %v13101_v24  ;;  %v9248_v30 = vsub.f32 %v9097_v46, %v9132_v18  ;;  %v2963_v24 = vmul.f32 %v2955_v16, %v13105_v21  ;;  %13107 = vst [vmem:[#allocation94_spill] sm:$0xff] %v9257_v13  ;;  %v13109_v46 = vand.u32 4294901760, %v9174_v34 }
 0x209   :  { %13103 = vst [vmem:[#allocation117_spill] sm:$0xff] %v9244_v45  ;;  %3488 = vmatprep.subr.mxu1 %v13106_v40  ;;  %v3541_v16 = vand.u32 4294901760, %v9218_v62  ;;  %v9270_v40 = vsub.f32 %v9179_v36, %v13110_v51  ;;  %v9274_v21 = vsub.f32 %v9114_v4, %v9149_v50  ;;  %13111 = vst [vmem:[#allocation121_spill] sm:$0xff] %v9276_v32  ;;  %v13113_v62 = vand.u32 4294901760, %v9141_v35 }
 0x20a   :  { %3494 = vmatpush2.msra.mxu1 %v13108_v31  ;;  %v3237_v29 = vsub.f32 %v9174_v34, %v13109_v46  ;;  %v13112_v31 = vand.u32 4294901760, %v9069_v53  ;;  %v3553_v46 = vand.u32 4294901760, %v9232_v63  ;;  %v9287_v51 = vand.u32 4294901760, %v3003_v60  ;;  %3201 = vmatpush2.msra.mxu0 %v9057_v3  ;;  %v3000_v63 = vld [vmem:[#allocation4 + $0x110] sm:$0xff] }
 0x20b   :  { %v9285_v55 = vsub.f32 %v9141_v35, %v13113_v62  ;;  %v13115_v4 = vand.u32 4294901760, %v9074_v14  ;;  %v3547_v25 = vand.u32 4294901760, %v9241_v59  ;;  %v9295_v53 = vsub.f32 %v3002_v42, %v9250_v19  ;;  %3203 = vmatprep.subr.mxu0 %v9093_v47  ;;  %v2999_v47 = vld [vmem:[#allocation4 + $0x108] sm:$0xff] }
 0x20c   :  { %3500 = vmatprep.subr.mxu1 %v13112_v31  ;;  %13114 = vst [vmem:[#allocation95_spill] sm:$0xff] %v9287_v51  ;;  %v9299_v31 = vsub.f32 %v9167_v44, %v9200_v56  ;;  %v2962_v62 = vmul.f32 %v2954_v38, %v8737_v10  ;;  %v9302_v15 = vand.u32 4294901760, %v2963_v24  ;;  %v13118_v14 = vand.u32 4294901760, %v9109_v8  ;;  %3205 = vmatpush2.msra.mxu0 %v9095_v58 }
 0x20d   :  { %3506 = vmatpush2.msra.mxu1 %v13115_v4  ;;  %13116 = vst [vmem:[#allocation124_spill] sm:$0xff] %v9295_v53  ;;  %v13119_v59 = vand.u32 4294901760, %v9160_v20  ;;  %v9312_v42 = vand.u32 4294901760, %v3001_v0  ;;  %v13121_v44 = vand.u32 4294901760, %v9126_v61  ;;  %v3238_v10 = vand.u32 4294901760, %v3237_v29  ;;  %3207 = vmatprep.subr.mxu0 %v9132_v18 }
 0x20e   :  { %13117 = vst [vmem:[#allocation127_spill] sm:$0xff] %v9302_v15  ;;  %3512 = vmatprep.subr.mxu1 %v13118_v14  ;;  %v3559_v38 = vand.u32 4294901760, %v9270_v40  ;;  %v9321_v8 = vsub.f32 %v9193_v2, %v9221_v17  ;;  %v9324_v14 = vsub.f32 %v2958_v43, %v9276_v32  ;;  %v3565_v61 = vand.u32 4294901760, %v9285_v55  ;;  %3209 = vmatpush2.msra.mxu0 %v9111_v57 }
 0x20f   :  { %v9310_v4 = vsub.f32 %v9160_v20, %v13119_v59  ;;  %13120 = vst [vmem:[#allocation8_spill] sm:$0xff] %v9312_v42  ;;  %3518 = vmatpush2.msra.mxu1 %v13121_v44  ;;  %v13123_v59 = vand.u32 4294901760, %v9146_v49  ;;  %v9330_v29 = vand.u32 4294901760, %v3000_v63  ;;  %v2998_v44 = vld [vmem:[#allocation4 + $0x100] sm:$0xff]  ;;  %v13125_v2 = vand.u32 4294901760, %v9165_v11  ;;  %3211 = vmatprep.subr.mxu0 %v9149_v50 }
 0x210   :  { %13122 = vst [vmem:[#allocation128_spill] sm:$0xff] %v9321_v8  ;;  %v13126_v43 = vand.u32 4294901760, %v9248_v30  ;;  %v9342_v55 = vsub.f32 %v3003_v60, %v9287_v51  ;;  %v13128_v40 = vand.u32 4294901760, %v9187_v27  ;;  %3213 = vmatpush2.msra.mxu0 %v9135_v9  ;;  %3239 = vmatprep.mubr.f32.mxu0 %v3238_v10  ;;  %v13130_v60 = vand.u32 4294901760, %v9274_v21 }
 0x211   :  { %3524 = vmatprep.subr.mxu1 %v13123_v59  ;;  %13124 = vst [vmem:[#allocation26_spill] sm:$0xff] %v9330_v29  ;;  %v9344_v59 = vand.u32 4294901760, %v2962_v62  ;;  %v3577_v11 = vand.u32 4294901760, %v9310_v4  ;;  %v9359_v18 = vand.u32 4294901760, %v2998_v44  ;;  %v9363_v27 = vsub.f32 %v3001_v0, %v9312_v42  ;;  %3215 = vmatprep.subr.mxu0 %v9200_v56 }
 0x212   :  { %3530 = vmatpush2.msra.mxu1 %v13125_v2  ;;  %v3570_v37 = vsub.f32 %v9248_v30, %v13126_v43  ;;  %v9350_v2 = vand.u32 4294901760, %v2999_v47  ;;  %v9353_v43 = vsub.f32 %v2963_v24, %v9302_v15  ;;  %v3582_v49 = vsub.f32 %v9274_v21, %v13130_v60  ;;  %3217 = vmatpush2.msra.mxu0 %v9203_v23 }
 0x213   :  { %13127 = vst [vmem:[#allocation129_spill] sm:$0xff] %v9344_v59  ;;  %3536 = vmatprep.subr.mxu1 %v13128_v40  ;;  %13131 = vst [vmem:[#allocation132_spill] sm:$0xff] %v9359_v18  ;;  %v9367_v24 = vsub.f32 %v3000_v63, %v9330_v29  ;;  %v13134_v4 = vand.u32 4294901760, %v9190_v48  ;;  %v11826_v40 = vand.u32 4294901760, %v9324_v14  ;;  %v13135_v0 = vand.u32 4294901760, %v9299_v31  ;;  %3219 = vmatprep.subr.mxu0 %v9221_v17 }
 0x214   :  { %13129 = vst [vmem:[#allocation131_spill] sm:$0xff] %v9350_v2  ;;  %13132 = vst [vmem:[#allocation133_spill] sm:$0xff] %v9363_v27  ;;  %3542 = vmatpush2.msra.mxu1 %v3541_v16  ;;  %v3571_v50 = vand.u32 4294901760, %v3570_v37  ;;  %v13136_v56 = vand.u32 4294901760, %v9244_v45  ;;  %v9386_v60 = vsub.f32 %v2962_v62, %v9344_v59  ;;  %v9389_v37 = vsub.f32 %v2999_v47, %v9350_v2 }
 0x215   :  { %13133 = vst [vmem:[#allocation58_spill] sm:$0xff] %v9367_v24  ;;  %v3588_v10 = vsub.f32 %v9190_v48, %v13134_v4  ;;  %3548 = vmatprep.subr.mxu1 %v3547_v25  ;;  %v3594_v16 = vsub.f32 %v9299_v31, %v13135_v0  ;;  %3221 = vmatpush2.msra.mxu0 %v9209_v6  ;;  %v3583_v0 = vand.u32 4294901760, %v3582_v49 }
 0x216   :  { %v3600_v63 = vsub.f32 %v9244_v45, %v13136_v56  ;;  %3554 = vmatpush2.msra.mxu1 %v3553_v46  ;;  %13137 = vst [vmem:[#allocation110_spill] sm:$0xff] %v9389_v37  ;;  %v9393_v56 = vsub.f32 %v2998_v44, %v9359_v18  ;;  %v13139_v46 = vand.u32 4294901760, %v9321_v8  ;;  %3223 = vmatprep.subr.mxu0 %v9287_v51 }
 0x217   :  { %3560 = vmatprep.subr.mxu1 %v3559_v38  ;;  %v3589_v62 = vand.u32 4294901760, %v3588_v10  ;;  %v3243_v47 = vsub.f32 %v9324_v14, %v11826_v40  ;;  %v13140_v38 = vand.u32 4294901760, %v9257_v13  ;;  %3225 = vmatpush2.msra.mxu0 %v9250_v19  ;;  %v3595_v44 = vand.u32 4294901760, %v3594_v16 }
 0x218   :  { %13138 = vst [vmem:[#allocation119_spill] sm:$0xff] %v9393_v56  ;;  %v3606_v9 = vsub.f32 %v9321_v8, %v13139_v46  ;;  %3566 = vmatpush2.msra.mxu1 %v3565_v61  ;;  %v3601_v25 = vand.u32 4294901760, %v3600_v63  ;;  %v13141_v46 = vand.u32 4294901760, %v9342_v55  ;;  %3227 = vmatprep.subr.mxu0 %v9312_v42  ;;  %v13142_v10 = vand.u32 4294901760, %v9353_v43 }
 0x219   :  { %v3612_v49 = vsub.f32 %v9257_v13, %v13140_v38  ;;  %3572 = vmatprep.subr.mxu1 %v3571_v50  ;;  %v13143_v38 = vand.u32 4294901760, %v9295_v53  ;;  %3229 = vmatpush2.msra.mxu0 %v9330_v29  ;;  %v13147_v42 = vand.u32 4294901760, %v9389_v37 }
 0x21a   :  { %v3618_v61 = vsub.f32 %v9342_v55, %v13141_v46  ;;  %3578 = vmatpush2.msra.mxu1 %v3577_v11  ;;  %v3253_v40 = vsub.f32 %v9353_v43, %v13142_v10  ;;  %v3607_v46 = vand.u32 4294901760, %v3606_v9  ;;  %v13144_v11 = vand.u32 4294901760, %v9363_v27  ;;  %3231 = vmatprep.subr.mxu0 %v9350_v2 }
 0x21b   :  { %v3624_v50 = vsub.f32 %v9295_v53, %v13143_v38  ;;  %3584 = vmatprep.subr.mxu1 %v3583_v0  ;;  %v3244_v10 = vand.u32 4294901760, %v3243_v47  ;;  %v3613_v19 = vand.u32 4294901760, %v3612_v49  ;;  %3233 = vmatpush2.msra.mxu0 %v9359_v18  ;;  %v13145_v0 = vand.u32 4294901760, %v9367_v24  ;;  %v13148_v49 = vld [vmem:[#allocation32_spill] sm:$0xff] }
 0x21c   :  { %v3630_v4 = vsub.f32 %v9363_v27, %v13144_v11  ;;  %3590 = vmatpush2.msra.mxu1 %v3589_v62  ;;  %v3619_v38 = vand.u32 4294901760, %v3618_v61  ;;  %v3254_v9 = vand.u32 4294901760, %v3253_v40  ;;  %v13146_v11 = vand.u32 4294901760, %v9386_v60  ;;  %3670 = vmatprep.subr.mxu0 %v13148_v49  ;;  %v13150_v40 = vld [vmem:[#allocation30_spill] sm:$0xff] }
 0x21d   :  { %3596 = vmatprep.subr.mxu1 %v3595_v44  ;;  %v3636_v63 = vsub.f32 %v9367_v24, %v13145_v0  ;;  %3245 = vmatmul.mubr.f32.vlgmr.msra.gmra.mxu0 %v3244_v10  ;;  %v3625_v16 = vand.u32 4294901760, %v3624_v50  ;;  %v3642_v47 = vsub.f32 %v9389_v37, %v13147_v42  ;;  %v13149_v61 = vand.u32 4294901760, %v9393_v56  ;;  %v13151_v50 = vld [vmem:[#allocation15_spill] sm:$0xff] }
 0x21e   :  { %3602 = vmatpush2.msra.mxu1 %v3601_v25  ;;  %v3259_v62 = vsub.f32 %v9386_v60, %v13146_v11  ;;  %v3631_v44 = vand.u32 4294901760, %v3630_v4  ;;  %3255 = vmatprep.mubr.f32.mxu0 %v3254_v9  ;;  %v13152_v42 = vld [vmem:[#allocation19_spill] sm:$0xff] }
 0x21f   :  { %3608 = vmatprep.subr.mxu1 %v3607_v46  ;;  %v3648_v0 = vsub.f32 %v9393_v56, %v13149_v61  ;;  %3673 = vmatpush1.msra.mxu0 %v13150_v40  ;;  %v3637_v25 = vand.u32 4294901760, %v3636_v63  ;;  %v3643_v11 = vand.u32 4294901760, %v3642_v47  ;;  %v13153_v4 = vld [vmem:[#allocation23_spill] sm:$0xff]  ;;  %v13154_v61 = vld [vmem:[#allocation56_spill] sm:$0xff]  ;;  %v13156_v63 = vld [vmem:[#allocation74_spill] sm:$0xff] }
 0x220   :  { %3614 = vmatpush2.msra.mxu1 %v3613_v19  ;;  %3676 = vmatprep.subr.mxu0 %v13151_v50  ;;  %v3260_v10 = vand.u32 4294901760, %v3259_v62  ;;  %v13155_v19 = vld [vmem:[#allocation39_spill] sm:$0xff]  ;;  %v13160_v62 = vld [vmem:[#allocation9_spill] sm:$0xff] }
 0x221   :  { %3620 = vmatprep.subr.mxu1 %v3619_v38  ;;  %3679 = vmatpush1.msra.mxu0 %v13152_v42  ;;  %v3649_v46 = vand.u32 4294901760, %v3648_v0  ;;  %v13158_v38 = vld [vmem:[#allocation102_spill] sm:$0xff]  ;;  %v13159_v9 = vld [vmem:[#allocation47_spill] sm:$0xff]  ;;  %v13161_v47 = vld [vmem:[#allocation89_spill] sm:$0xff] }
 0x222   :  { %3626 = vmatpush2.msra.mxu1 %v3625_v16  ;;  %3261 = vmatmul.mubr.f32.gmra.mxu0 %v3260_v10  ;;  %v13157_v16 = vld [vmem:[#allocation49_spill] sm:$0xff] }
 0x223   :  { %3632 = vmatprep.subr.mxu1 %v3631_v44  ;;  %3682 = vmatprep.subr.mxu0 %v13153_v4  ;;  %v13162_v44 = vld [vmem:[#allocation63_spill] sm:$0xff]  ;;  %v13163_v0 = vld [vmem:[#allocation85_spill] sm:$0xff] }
 0x224   :  { %3638 = vmatpush2.msra.mxu1 %v3637_v25  ;;  %3685 = vmatpush1.msra.mxu0 %v13154_v61  ;;  %v13164_v25 = vld [vmem:[#allocation65_spill] sm:$0xff] }
 0x225   :  { %3862 = vmatprep.mubr.f32.mxu0 %v9174_v34  ;;  %3644 = vmatprep.subr.mxu1 %v3643_v11  ;;  %v13165_v10 = vld [vmem:[#allocation93_spill] sm:$0xff] }
 0x226   :  { %3688 = vmatprep.subr.mxu0 %v13155_v19  ;;  %3650 = vmatpush2.msra.mxu1 %v3649_v46  ;;  %v13166_v11 = vld [vmem:[#allocation69_spill] sm:$0xff]  ;;  %v13167_v46 = vld [vmem:[#allocation79_spill] sm:$0xff] }
 0x227   :  { %3691 = vmatpush1.msra.mxu0 %v13156_v63  ;;  %3654 = vmatmul.mubr.f32.vlgmr.msra.gmra.mxu1 %v9276_v32  ;;  %v13169_v32 = vand.u32 4294901760, %v9174_v34  ;;  %v13179_v34 = vld [vmem:[#allocation52_spill] sm:$0xff] }
 0x228   :  { %3694 = vmatprep.subr.mxu0 %v13157_v16  ;;  %3882 = vmatprep.subr.mxu1 %v13158_v38 }
 0x229   :  { %3660 = vmatprep.mubr.f32.mxu1 %v9302_v15  ;;  %3697 = vmatpush1.msra.mxu0 %v13159_v9  ;;  %v13168_v15 = vld [vmem:[#allocation73_spill] sm:$0xff] }
 0x22a   :  { %3884 = vmatpush1.msra.mxu1 %v13160_v62  ;;  %3700 = vmatprep.subr.mxu0 %v13161_v47  ;;  %v13170_v47 = vld [vmem:[#allocation87_spill] sm:$0xff] }
 0x22b   :  { %3886 = vmatprep.subr.mxu1 %v13162_v44  ;;  %3703 = vmatpush1.msra.mxu0 %v13163_v0  ;;  %v13171_v44 = vld [vmem:[#allocation88_spill] sm:$0xff]  ;;  %v13172_v0 = vld [vmem:[#allocation61_spill] sm:$0xff] }
 0x22c   :  { %3888 = vmatpush1.msra.mxu1 %v13164_v25  ;;  %3706 = vmatprep.subr.mxu0 %v13165_v10  ;;  %v13173_v25 = vld [vmem:[#allocation46_spill] sm:$0xff]  ;;  %v13174_v10 = vld [vmem:[#allocation104_spill] sm:$0xff] }
 0x22d   :  { %3662 = vmatmul.mubr.f32.gmra.mxu1 %v9344_v59  ;;  %3890 = vmatprep.subr.mxu1 %v13166_v11  ;;  %v13175_v59 = vld [vmem:[#allocation40_spill] sm:$0xff] }
 0x22e   :  { %3709 = vmatpush1.msra.mxu0 %v13167_v46  ;;  %3892 = vmatpush1.msra.mxu1 %v13168_v15  ;;  %v13176_v11 = vld [vmem:[#allocation100_spill] sm:$0xff]  ;;  %v13177_v46 = vld [vmem:[#allocation11_spill] sm:$0xff] }
 0x22f   :  { %4012 = vmatprep.mubr.f32.mxu1 %v13169_v32  ;;  %3712 = vmatprep.subr.mxu0 %v13170_v47  ;;  %v13178_v15 = vld [vmem:[#allocation75_spill] sm:$0xff]  ;;  %v13181_v47 = vld [vmem:[#allocation33_spill] sm:$0xff] }
 0x230   :  { %3894 = vmatprep.subr.mxu1 %v13171_v44  ;;  %3715 = vmatpush1.msra.mxu0 %v13172_v0  ;;  %v13180_v32 = vld [vmem:[#allocation71_spill] sm:$0xff]  ;;  %v13182_v44 = vld [vmem:[#allocation86_spill] sm:$0xff] }
 0x231   :  { %3896 = vmatpush1.msra.mxu1 %v13173_v25  ;;  %3718 = vmatprep.subr.mxu0 %v13174_v10  ;;  %v13183_v0 = vld [vmem:[#allocation78_spill] sm:$0xff] }
 0x232   :  { %3898 = vmatprep.subr.mxu1 %v13175_v59  ;;  %3721 = vmatpush1.msra.mxu0 %v13176_v11  ;;  %v13184_v25 = vld [vmem:[#allocation38_spill] sm:$0xff]  ;;  %v13187_v11 = vld [vmem:[#allocation91_spill] sm:$0xff] }
 0x233   :  { %3900 = vmatpush1.msra.mxu1 %v13177_v46  ;;  %3724 = vmatprep.subr.mxu0 %v13178_v15  ;;  %v13185_v10 = vld [vmem:[#allocation82_spill] sm:$0xff]  ;;  %v13189_v15 = vld [vmem:[#allocation57_spill] sm:$0xff] }
 0x234   :  { %3902 = vmatprep.subr.mxu1 %v13179_v34  ;;  %3727 = vmatpush1.msra.mxu0 %v13180_v32  ;;  %v13186_v59 = vld [vmem:[#allocation54_spill] sm:$0xff]  ;;  %v13190_v34 = vld [vmem:[#allocation25_spill] sm:$0xff]  ;;  %v13191_v32 = vld [vmem:[#allocation112_spill] sm:$0xff] }
 0x235   :  { %3904 = vmatpush1.msra.mxu1 %v13181_v47  ;;  %3730 = vmatprep.subr.mxu0 %v13182_v44  ;;  %v13188_v46 = vld [vmem:[#allocation42_spill] sm:$0xff]  ;;  %v13193_v44 = vld [vmem:[#allocation96_spill] sm:$0xff] }
 0x236   :  { %3906 = vmatprep.subr.mxu1 %v13183_v0  ;;  %3733 = vmatpush1.msra.mxu0 %v13184_v25  ;;  %v13192_v47 = vld [vmem:[#allocation90_spill] sm:$0xff]  ;;  %v13194_v0 = vld [vmem:[#allocation68_spill] sm:$0xff] }
 0x237   :  { %3908 = vmatpush1.msra.mxu1 %v13185_v10  ;;  %3736 = vmatprep.subr.mxu0 %v13186_v59  ;;  %v13195_v25 = vld [vmem:[#allocation34_spill] sm:$0xff]  ;;  %v13197_v59 = vld [vmem:[#allocation99_spill] sm:$0xff] }
 0x238   :  { %3910 = vmatprep.subr.mxu1 %v13187_v11  ;;  %3739 = vmatpush1.msra.mxu0 %v13188_v46  ;;  %v13196_v10 = vld [vmem:[#allocation50_spill] sm:$0xff]  ;;  %v13198_v11 = vld [vmem:[#allocation31_spill] sm:$0xff] }
 0x239   :  { %3912 = vmatpush1.msra.mxu1 %v13189_v15  ;;  %3742 = vmatprep.subr.mxu0 %v13190_v34  ;;  %v13199_v15 = vld [vmem:[#allocation36_spill] sm:$0xff] }
 0x23a   :  { %3914 = vmatprep.subr.mxu1 %v13191_v32  ;;  %3745 = vmatpush1.msra.mxu0 %v13192_v47  ;;  %v13200_v32 = vld [vmem:[#allocation70_spill] sm:$0xff] }
 0x23b   :  { %3916 = vmatpush1.msra.mxu1 %v13193_v44  ;;  %3748 = vmatprep.subr.mxu0 %v13194_v0  ;;  %v13201_v44 = vld [vmem:[#allocation29_spill] sm:$0xff]  ;;  %v13202_v0 = vld [vmem:[#allocation14_spill] sm:$0xff] }
 0x23c   :  { %3918 = vmatprep.subr.mxu1 %v13195_v25  ;;  %3751 = vmatpush1.msra.mxu0 %v13196_v10 }
 0x23d   :  { %3920 = vmatpush1.msra.mxu1 %v13197_v59  ;;  %3754 = vmatprep.subr.mxu0 %v13198_v11  ;;  %v13203_v59 = vld [vmem:[#allocation48_spill] sm:$0xff]  ;;  %v13204_v11 = vld [vmem:[#allocation81_spill] sm:$0xff] }
 0x23e   :  { %3922 = vmatprep.subr.mxu1 %v8581_v39  ;;  %3757 = vmatpush1.msra.mxu0 %v13199_v15  ;;  %v13205_v39 = vld [vmem:[#allocation76_spill] sm:$0xff] }
 0x23f   :  { %3924 = vmatpush1.msra.mxu1 %v8567_v7  ;;  %3760 = vmatprep.subr.mxu0 %v13200_v32  ;;  %v13206_v15 = vld [vmem:[#allocation20_spill] sm:$0xff]  ;;  %v13207_v7 = vld [vmem:[#allocation43_spill] sm:$0xff]  ;;  %v13208_v32 = vld [vmem:[#allocation18_spill] sm:$0xff] }
 0x240   :  { %3926 = vmatprep.subr.mxu1 %v8591_v1  ;;  %3763 = vmatpush1.msra.mxu0 %v13201_v44  ;;  %v13209_v1 = vld [vmem:[#allocation80_spill] sm:$0xff] }
 0x241   :  { %3928 = vmatpush1.msra.mxu1 %v13202_v0  ;;  %3766 = vmatprep.subr.mxu0 %v8911_v54  ;;  %v13210_v44 = vld [vmem:[#allocation28_spill] sm:$0xff]  ;;  %v13212_v54 = vld [vmem:[#allocation10_spill] sm:$0xff] }
 0x242   :  { %3930 = vmatprep.subr.mxu1 %v8631_v41  ;;  %3769 = vmatpush2.msra.mxu0 %v13203_v59  ;;  %v13211_v0 = vld [vmem:[#allocation84_spill] sm:$0xff]  ;;  %v13213_v41 = vld [vmem:[#allocation59_spill] sm:$0xff] }
 0x243   :  { %3932 = vmatpush1.msra.mxu1 %v13204_v11  ;;  %3772 = vmatprep.subr.mxu0 %v13205_v39  ;;  %v13214_v59 = vld [vmem:[#allocation12_spill] sm:$0xff]  ;;  %v13215_v11 = vld [vmem:[#allocation51_spill] sm:$0xff]  ;;  %v13216_v39 = vld [vmem:[#allocation22_spill] sm:$0xff] }
 0x244   :  { %3934 = vmatprep.subr.mxu1 %v13206_v15  ;;  %3775 = vmatpush2.msra.mxu0 %v13207_v7  ;;  %v13217_v15 = vld [vmem:[#allocation55_spill] sm:$0xff] }
 0x245   :  { %3936 = vmatpush1.msra.mxu1 %v13208_v32  ;;  %3778 = vmatprep.subr.mxu0 %v13209_v1  ;;  %v13218_v7 = vld [vmem:[#allocation27_spill] sm:$0xff]  ;;  %v13219_v1 = vld [vmem:[#allocation17_spill] sm:$0xff] }
 0x246   :  { %3938 = vmatprep.subr.mxu1 %v13210_v44  ;;  %3781 = vmatpush2.msra.mxu0 %v13211_v0  ;;  %v13220_v44 = vld [vmem:[#allocation37_spill] sm:$0xff]  ;;  %v13221_v0 = vld [vmem:[#allocation35_spill] sm:$0xff] }
 0x247   :  { %3940 = vmatpush1.msra.mxu1 %v13212_v54  ;;  %3784 = vmatprep.subr.mxu0 %v13213_v41  ;;  %v13222_v54 = vld [vmem:[#allocation92_spill] sm:$0xff] }
 0x248   :  { %3942 = vmatprep.subr.mxu1 %v13214_v59  ;;  %3787 = vmatpush2.msra.mxu0 %v13215_v11  ;;  %v13223_v41 = vld [vmem:[#allocation44_spill] sm:$0xff] }
 0x249   :  { %3944 = vmatpush1.msra.mxu1 %v13216_v39  ;;  %3790 = vmatprep.subr.mxu0 %v13217_v15  ;;  %v13224_v11 = vld [vmem:[#allocation72_spill] sm:$0xff]  ;;  %v13225_v15 = vld [vmem:[#allocation21_spill] sm:$0xff] }
 0x24a   :  { %3946 = vmatprep.subr.mxu1 %v13218_v7  ;;  %3793 = vmatpush2.msra.mxu0 %v9000_v52 }
 0x24b   :  { %3948 = vmatpush2.msra.mxu1 %v13219_v1  ;;  %3796 = vmatprep.subr.mxu0 %v13220_v44  ;;  %v13226_v44 = vld [vmem:[#allocation60_spill] sm:$0xff] }
 0x24c   :  { %3950 = vmatprep.subr.mxu1 %v13221_v0  ;;  %3799 = vmatpush2.msra.mxu0 %v13222_v54  ;;  %v13227_v54 = vld [vmem:[#allocation53_spill] sm:$0xff] }
 0x24d   :  { %3952 = vmatpush2.msra.mxu1 %v13223_v41  ;;  %3802 = vmatprep.subr.mxu0 %v9086_v22  ;;  %v13228_v22 = vld [vmem:[#allocation62_spill] sm:$0xff] }
 0x24e   :  { %3954 = vmatprep.subr.mxu1 %v13224_v11  ;;  %3805 = vmatpush2.msra.mxu0 %v9083_v12  ;;  %v13229_v12 = vld [vmem:[#allocation64_spill] sm:$0xff] }
 0x24f   :  { %3956 = vmatpush2.msra.mxu1 %v13225_v15  ;;  %3808 = vmatprep.subr.mxu0 %v9153_v5 }
 0x250   :  { %3958 = vmatprep.subr.mxu1 %v8907_v33  ;;  %3811 = vmatpush2.msra.mxu0 %v9104_v28  ;;  %v13230_v28 = vld [vmem:[#allocation66_spill] sm:$0xff] }
 0x251   :  { %3960 = vmatpush2.msra.mxu1 %v13226_v44  ;;  %3814 = vmatprep.subr.mxu0 %v9179_v36  ;;  %v13231_v36 = vld [vmem:[#allocation98_spill] sm:$0xff] }
 0x252   :  { %3962 = vmatprep.subr.mxu1 %v13227_v54  ;;  %3817 = vmatpush2.msra.mxu0 %v9141_v35  ;;  %v13232_v35 = vld [vmem:[#allocation107_spill] sm:$0xff] }
 0x253   :  { %3964 = vmatpush2.msra.mxu1 %v13228_v22  ;;  %3820 = vmatprep.subr.mxu0 %v9248_v30 }
 0x254   :  { %3966 = vmatprep.subr.mxu1 %v13229_v12  ;;  %3823 = vmatpush2.msra.mxu0 %v9160_v20  ;;  %v13233_v20 = vld [vmem:[#allocation109_spill] sm:$0xff] }
 0x255   :  { %3968 = vmatpush2.msra.mxu1 %v8993_v26  ;;  %3826 = vmatprep.subr.mxu0 %v9274_v21 }
 0x256   :  { %3970 = vmatprep.subr.mxu1 %v13230_v28  ;;  %3829 = vmatpush2.msra.mxu0 %v9190_v48  ;;  %v13234_v48 = vld [vmem:[#allocation120_spill] sm:$0xff] }
 0x257   :  { %3972 = vmatpush2.msra.mxu1 %v13231_v36  ;;  %3832 = vmatprep.subr.mxu0 %v9299_v31 }
 0x258   :  { %3974 = vmatprep.subr.mxu1 %v13232_v35  ;;  %3835 = vmatpush2.msra.mxu0 %v9244_v45  ;;  %v13235_v45 = vld [vmem:[#allocation118_spill] sm:$0xff] }
 0x259   :  { %3976 = vmatpush2.msra.mxu1 %v9057_v3  ;;  %3838 = vmatprep.subr.mxu0 %v9321_v8  ;;  %v13236_v8 = vld [vmem:[#allocation116_spill] sm:$0xff] }
 0x25a   :  { %3978 = vmatprep.subr.mxu1 %v13233_v20  ;;  %3841 = vmatpush2.msra.mxu0 %v9257_v13  ;;  %v13237_v13 = vld [vmem:[#allocation83_spill] sm:$0xff] }
 0x25b   :  { %3980 = vmatpush2.msra.mxu1 %v9095_v58  ;;  %3844 = vmatprep.subr.mxu0 %v9342_v55 }
 0x25c   :  { %3982 = vmatprep.subr.mxu1 %v13234_v48  ;;  %3847 = vmatpush2.msra.mxu0 %v9295_v53 }
 0x25d   :  { %3984 = vmatpush2.msra.mxu1 %v9111_v57  ;;  %3850 = vmatprep.subr.mxu0 %v9363_v27  ;;  %v13238_v27 = vand.u32 4294901760, %v13148_v49  ;;  %v13246_v49 = vld [vmem:[#allocation111_spill] sm:$0xff]  ;;  %v13343_v57 = vld [vmem:[#allocation84_spill] sm:$0xff] }
 0x25e   :  { %3986 = vmatprep.subr.mxu1 %v13235_v45  ;;  %3853 = vmatpush2.msra.mxu0 %v9367_v24  ;;  %v13344_v53 = vand.u32 4294901760, %v13343_v57 }
 0x25f   :  { %3988 = vmatpush2.msra.mxu1 %v13236_v8  ;;  %3856 = vmatprep.subr.mxu0 %v9389_v37  ;;  %v13239_v8 = vand.u32 4294901760, %v13150_v40  ;;  %v13249_v40 = vand.u32 4294901760, %v9324_v14  ;;  %v3050_v37 = vld [vmem:[#allocation4 + $0x2a0] sm:$0xff] }
 0x260   :  { %3990 = vmatprep.subr.mxu1 %v13237_v13  ;;  %3859 = vmatpush2.msra.mxu0 %v9393_v56  ;;  %v13240_v56 = vand.u32 4294901760, %v13151_v50  ;;  %v13242_v13 = vand.u32 4294901760, %v13152_v42  ;;  %v13250_v50 = vand.u32 4294901760, %v13157_v16  ;;  %v13251_v42 = vand.u32 4294901760, %v9353_v43  ;;  %v13258_v16 = vld [vmem:[#allocation65_spill] sm:$0xff] }
 0x261   :  { %3992 = vmatpush2.msra.mxu1 %v9203_v23  ;;  %3865 = vmatmul.mubr.f32.vlgmr.msra.gmra.mxu0 %v9324_v14  ;;  %v13241_v23 = vld [vmem:[#allocation134_spill] sm:$0xff]  ;;  %v13256_v14 = vld [vmem:[#allocation85_spill] sm:$0xff] }
 0x262   :  { %3994 = vmatprep.subr.mxu1 %v9221_v17  ;;  %4037 = vmatprep.subr.mxu0 %v13238_v27  ;;  %v13243_v17 = vld [vmem:[#allocation8_spill] sm:$0xff]  ;;  %v13244_v27 = vand.u32 4294901760, %v13153_v4  ;;  %v13252_v4 = vand.u32 4294901760, %v13159_v9  ;;  %v13262_v9 = vld [vmem:[#allocation69_spill] sm:$0xff] }
 0x263   :  { %3872 = vmatprep.mubr.f32.mxu0 %v9353_v43  ;;  %3996 = vmatpush2.msra.mxu1 %v9209_v6  ;;  %v13261_v43 = vand.u32 4294901760, %v9386_v60  ;;  %v13334_v6 = vld [vmem:[#allocation43_spill] sm:$0xff] }
 0x264   :  { %4041 = vmatpush1.msra.mxu0 %v13239_v8  ;;  %3998 = vmatprep.subr.mxu1 %v9287_v51  ;;  %v13245_v8 = vand.u32 4294901760, %v13154_v61  ;;  %v13253_v61 = vld [vmem:[#allocation89_spill] sm:$0xff] }
 0x265   :  { %4045 = vmatprep.subr.mxu0 %v13240_v56  ;;  %4000 = vmatpush2.msra.mxu1 %v13241_v23  ;;  %v13247_v56 = vand.u32 4294901760, %v13155_v19  ;;  %v13254_v19 = vand.u32 4294901760, %v13253_v61 }
 0x266   :  { %4049 = vmatpush1.msra.mxu0 %v13242_v13  ;;  %4002 = vmatprep.subr.mxu1 %v13243_v17  ;;  %v13248_v13 = vand.u32 4294901760, %v13156_v63  ;;  %v13255_v63 = vld [vmem:[#allocation63_spill] sm:$0xff] }
 0x267   :  { %3875 = vmatmul.mubr.f32.gmra.mxu0 %v9386_v60  ;;  %4053 = vmatprep.subr.mxu0 %v13244_v27  ;;  %v13257_v27 = vand.u32 4294901760, %v13256_v14  ;;  %v13272_v60 = vld [vmem:[#allocation104_spill] sm:$0xff] }
 0x268   :  { %4004 = vmatpush2.msra.mxu1 %v9330_v29  ;;  %4057 = vmatpush1.msra.mxu0 %v13245_v8  ;;  %v13259_v8 = vld [vmem:[#allocation93_spill] sm:$0xff]  ;;  %v13274_v14 = vld [vmem:[#allocation40_spill] sm:$0xff] }
 0x269   :  { %4291 = vmatprep.mubr.f32.mxu0 %v13246_v49  ;;  %4006 = vmatprep.subr.mxu1 %v9350_v2  ;;  %v3052_v2 = vld [vmem:[#allocation4 + $0x2b0] sm:$0xff]  ;;  %v13323_v29 = vld [vmem:[#allocation16_spill] sm:$0xff] }
 0x26a   :  { %4061 = vmatprep.subr.mxu0 %v13247_v56  ;;  %4008 = vmatpush2.msra.mxu1 %v9359_v18  ;;  %v13263_v56 = vld [vmem:[#allocation79_spill] sm:$0xff]  ;;  %v3054_v18 = vld [vmem:[#allocation4 + $0x2c0] sm:$0xff] }
 0x26b   :  { %4065 = vmatpush1.msra.mxu0 %v13248_v13  ;;  %4016 = vmatmul.mubr.f32.vlgmr.msra.gmra.mxu1 %v13249_v40  ;;  %v13265_v13 = vld [vmem:[#allocation73_spill] sm:$0xff]  ;;  %v13266_v40 = vld [vmem:[#allocation87_spill] sm:$0xff] }
 0x26c   :  { %4069 = vmatprep.subr.mxu0 %v13250_v50  ;;  %4308 = vmatprep.subr.mxu1 %v13158_v38  ;;  %v13260_v38 = vand.u32 4294901760, %v13259_v8  ;;  %v13267_v50 = vand.u32 4294901760, %v13266_v40  ;;  %v13277_v8 = vld [vmem:[#allocation11_spill] sm:$0xff] }
 0x26d   :  { %4024 = vmatprep.mubr.f32.mxu1 %v13251_v42  ;;  %4073 = vmatpush1.msra.mxu0 %v13252_v4  ;;  %v13268_v42 = vld [vmem:[#allocation88_spill] sm:$0xff]  ;;  %v13269_v4 = vld [vmem:[#allocation61_spill] sm:$0xff] }
 0x26e   :  { %4310 = vmatpush1.msra.mxu1 %v13160_v62  ;;  %4077 = vmatprep.subr.mxu0 %v13254_v19  ;;  %v13264_v62 = vand.u32 4294901760, %v13263_v56  ;;  %v13270_v61 = vand.u32 4294901760, %v13269_v4  ;;  %v13271_v19 = vld [vmem:[#allocation46_spill] sm:$0xff] }
 0x26f   :  { %4312 = vmatprep.subr.mxu1 %v13255_v63  ;;  %4081 = vmatpush1.msra.mxu0 %v13257_v27  ;;  %v13273_v63 = vand.u32 4294901760, %v13272_v60  ;;  %v13275_v27 = vld [vmem:[#allocation100_spill] sm:$0xff] }
 0x270   :  { %4314 = vmatpush1.msra.mxu1 %v13258_v16  ;;  %4085 = vmatprep.subr.mxu0 %v13260_v38  ;;  %v13276_v16 = vand.u32 4294901760, %v13275_v27  ;;  %v3061_v27 = vld [vmem:[#allocation4 + $0x2f8] sm:$0xff] }
 0x271   :  { %4028 = vmatmul.mubr.f32.gmra.mxu1 %v13261_v43  ;;  %4316 = vmatprep.subr.mxu1 %v13262_v9  ;;  %v13280_v43 = vld [vmem:[#allocation52_spill] sm:$0xff]  ;;  %v13281_v9 = vld [vmem:[#allocation71_spill] sm:$0xff] }
 0x272   :  { %4089 = vmatpush1.msra.mxu0 %v13264_v62  ;;  %4318 = vmatpush1.msra.mxu1 %v13265_v13  ;;  %v13282_v56 = vand.u32 4294901760, %v13281_v9  ;;  %v13283_v62 = vld [vmem:[#allocation33_spill] sm:$0xff]  ;;  %v13284_v13 = vld [vmem:[#allocation86_spill] sm:$0xff] }
 0x273   :  { %4436 = vmatprep.mubr.f32.mxu1 %v13246_v49  ;;  %4093 = vmatprep.subr.mxu0 %v13267_v50  ;;  %v13278_v49 = vld [vmem:[#allocation75_spill] sm:$0xff]  ;;  %v13285_v40 = vand.u32 4294901760, %v13284_v13  ;;  %v13286_v50 = vld [vmem:[#allocation78_spill] sm:$0xff] }
 0x274   :  { %4320 = vmatprep.subr.mxu1 %v13268_v42  ;;  %4097 = vmatpush1.msra.mxu0 %v13270_v61  ;;  %v13279_v38 = vand.u32 4294901760, %v13278_v49  ;;  %v13287_v42 = vld [vmem:[#allocation38_spill] sm:$0xff]  ;;  %v1688_v49 = vpop.f32.mrf.mxu0 }
 0x275   :  { %4322 = vmatpush1.msra.mxu1 %v13271_v19  ;;  %4101 = vmatprep.subr.mxu0 %v13273_v63  ;;  %v13288_v4 = vand.u32 4294901760, %v13287_v42  ;;  %v13289_v61 = vld [vmem:[#allocation82_spill] sm:$0xff]  ;;  %v13292_v63 = vld [vmem:[#allocation91_spill] sm:$0xff] }
 0x276   :  { %4324 = vmatprep.subr.mxu1 %v13274_v14  ;;  %4105 = vmatpush1.msra.mxu0 %v13276_v16  ;;  %v13290_v19 = vld [vmem:[#allocation54_spill] sm:$0xff]  ;;  %v13293_v14 = vand.u32 4294901760, %v13188_v46  ;;  %v13294_v16 = vld [vmem:[#allocation57_spill] sm:$0xff]  ;;  %v9656_v46 = vand.u32 4294901760, %v3061_v27 }
 0x277   :  { %4326 = vmatpush1.msra.mxu1 %v13277_v8  ;;  %4109 = vmatprep.subr.mxu0 %v13279_v38  ;;  %v13291_v60 = vand.u32 4294901760, %v13290_v19  ;;  %v13295_v8 = vand.u32 4294901760, %v13190_v34  ;;  %v13296_v38 = vld [vmem:[#allocation112_spill] sm:$0xff]  ;;  %v3060_v9 = vld [vmem:[#allocation4 + $0x2f0] sm:$0xff]  ;;  %v13303_v34 = vand.u32 4294901760, %v13196_v10 }
 0x278   :  { %4328 = vmatprep.subr.mxu1 %v13280_v43  ;;  %4113 = vmatpush1.msra.mxu0 %v13282_v56  ;;  %v13297_v43 = vand.u32 4294901760, %v13192_v47  ;;  %v13298_v56 = vld [vmem:[#allocation96_spill] sm:$0xff]  ;;  %13301 = vst [vmem:[#allocation114_spill] sm:$0xff] %v9656_v46  ;;  %v13305_v47 = vld [vmem:[#allocation31_spill] sm:$0xff]  ;;  %v9666_v19 = vand.u32 4294901760, %v3060_v9  ;;  %v13312_v10 = vld [vmem:[#allocation70_spill] sm:$0xff] }
 0x279   :  { %4330 = vmatpush1.msra.mxu1 %v13283_v62  ;;  %4117 = vmatprep.subr.mxu0 %v13285_v40  ;;  %v13299_v62 = vld [vmem:[#allocation68_spill] sm:$0xff]  ;;  %v13302_v40 = vld [vmem:[#allocation101_spill] sm:$0xff] }
 0x27a   :  { %4332 = vmatprep.subr.mxu1 %v13286_v50  ;;  %4121 = vmatpush1.msra.mxu0 %v13288_v4  ;;  %v13300_v13 = vand.u32 4294901760, %v13299_v62  ;;  %v192_v50 = vsub.s32 2, %v13302_v40  ;;  %v196_v42 = vsub.s32 3, %v13302_v40  ;;  %v13304_v4 = vld [vmem:[#allocation99_spill] sm:$0xff]  ;;  %13307 = vst [vmem:[#allocation97_spill] sm:$0xff] %v9666_v19  ;;  %v9675_v62 = vsub.f32 %v3061_v27, %v9656_v46  ;;  %v13319_v27 = vld [vmem:[#allocation14_spill] sm:$0xff] }
 0x27b   :  { %4334 = vmatpush1.msra.mxu1 %v13289_v61  ;;  %4125 = vmatprep.subr.mxu0 %v13291_v60  ;;  %v13306_v61 = vand.u32 4294901760, %v13305_v47  ;;  %v3059_v60 = vld [vmem:[#allocation4 + $0x2e8] sm:$0xff]  ;;  %v13315_v47 = vld [vmem:[#allocation106_spill] sm:$0xff]  ;;  %v13335_v46 = vand.u32 4294901760, %v13334_v6 }
 0x27c   :  { %4336 = vmatprep.subr.mxu1 %v13292_v63  ;;  %4129 = vmatpush1.msra.mxu0 %v13293_v14  ;;  %v1690_v63 = vpop.f32.mrf.mxu0  ;;  %v13308_v14 = vld [vmem:[#allocation13_spill] sm:$0xff]  ;;  %13314 = vst [vmem:[#allocation103_spill] sm:$0xff] %v9675_v62  ;;  %v13352_v57 = vand.u32 4294901760, %v9675_v62 }
 0x27d   :  { %4338 = vmatpush1.msra.mxu1 %v13294_v16  ;;  %4133 = vmatprep.subr.mxu0 %v13295_v8  ;;  %v13309_v16 = vld [vmem:[#allocation36_spill] sm:$0xff] }
 0x27e   :  { %4340 = vmatprep.subr.mxu1 %v13296_v38  ;;  %4137 = vmatpush1.msra.mxu0 %v13297_v43  ;;  %v13310_v8 = vand.u32 4294901760, %v13309_v16  ;;  %v13313_v38 = vand.u32 4294901760, %v13312_v10  ;;  %v3058_v43 = vld [vmem:[#allocation4 + $0x2e0] sm:$0xff]  ;;  %v9687_v16 = vand.u32 4294901760, %v3059_v60 }
 0x27f   :  { %4342 = vmatpush1.msra.mxu1 %v13298_v56  ;;  %4141 = vmatprep.subr.mxu0 %v13300_v13  ;;  %v3057_v56 = vld [vmem:[#allocation4 + $0x2d8] sm:$0xff]  ;;  %v5834_v13 = vld [vmem:[%s11211_s2] sm:$0xf]  ;;  %v9700_v17 = vand.u32 4294901760, %v3058_v43 }
 0x280   :  { %4344 = vmatprep.subr.mxu1 %v13195_v25  ;;  %4145 = vmatpush1.msra.mxu0 %v13303_v34  ;;  %v13311_v25 = vld [vmem:[#allocation105_spill] sm:$0xff]  ;;  %v9680_v34 = vrot.slane %v5834_v13, %v192_v50  ;;  %13318 = vst [vmem:[#allocation24_spill] sm:$0xff] %v9687_v16  ;;  %v9689_v10 = vrot.slane %v5834_v13, %v196_v42  ;;  %v9702_v42 = vand.u32 4294901760, %v3057_v56  ;;  %v3053_v13 = vld [vmem:[#allocation4 + $0x2b8] sm:$0xff] }
 0x281   :  { %4346 = vmatpush1.msra.mxu1 %v13304_v4  ;;  %4149 = vmatprep.subr.mxu0 %v13306_v61  ;;  %v9682_v4 = vpop.f32.mrf.mxu0  ;;  %v13316_v61 = vld [vmem:[#allocation29_spill] sm:$0xff]  ;;  %v9695_v50 = vsub.f32 %v3060_v9, %v9666_v19  ;;  %13326 = vst [vmem:[#allocation30_spill] sm:$0xff] %v9700_v17  ;;  %v13333_v19 = vld [vmem:[#allocation20_spill] sm:$0xff]  ;;  %v9729_v45 = vand.u32 4294901760, %v3053_v13 }
 0x282   :  { %4348 = vmatprep.subr.mxu1 %v13308_v14  ;;  %4153 = vmatpush1.msra.mxu0 %v13310_v8  ;;  %v13317_v14 = vand.u32 4294901760, %v13316_v61  ;;  %v3056_v8 = vld [vmem:[#allocation4 + $0x2d0] sm:$0xff]  ;;  %v13324_v61 = vld [vmem:[#allocation48_spill] sm:$0xff]  ;;  %13327 = vst [vmem:[#allocation15_spill] sm:$0xff] %v9702_v42  ;;  %v1691_v51 = vadd.f32 %v1690_v63, %v9689_v10  ;;  %v3049_v63 = vld [vmem:[#allocation4 + $0x298] sm:$0xff] }
 0x283   :  { %4350 = vmatpush1.msra.mxu1 %v13311_v25  ;;  %4157 = vmatprep.subr.mxu0 %v13313_v38  ;;  %v3055_v25 = vld [vmem:[#allocation4 + $0x2c8] sm:$0xff]  ;;  %13322 = vst [vmem:[#allocation32_spill] sm:$0xff] %v9695_v50  ;;  %v9707_v9 = vand.u32 4294901760, %v3056_v8  ;;  %13341 = vst [vmem:[#allocation49_spill] sm:$0xff] %v9729_v45 }
 0x284   :  { %4352 = vmatprep.subr.mxu1 %v13315_v47  ;;  %4161 = vmatpush1.msra.mxu0 %v13317_v14  ;;  %v13320_v38 = vld [vmem:[#allocation45_spill] sm:$0xff]  ;;  %v2097_v47 = vpop.f32.mrf.mxu1  ;;  %v13325_v14 = vand.u32 4294901760, %v13324_v61  ;;  %v9709_v23 = vand.u32 4294901760, %v3055_v25  ;;  %v1689_v61 = vadd.f32 %v1688_v49, %v9680_v34  ;;  %v13339_v49 = vld [vmem:[#allocation80_spill] sm:$0xff] }
 0x285   :  { %4354 = vmatpush1.msra.mxu1 %v13319_v27  ;;  %v13321_v40 = vand.u32 4294901760, %v13320_v38  ;;  %v13328_v27 = vld [vmem:[#allocation81_spill] sm:$0xff]  ;;  %v13329_v38 = vld [vmem:[#allocation76_spill] sm:$0xff]  ;;  %13331 = vst [vmem:[#allocation19_spill] sm:$0xff] %v9707_v9  ;;  %v13340_v24 = vand.u32 4294901760, %v13339_v49  ;;  %v13349_v49 = vld [vmem:[#allocation59_spill] sm:$0xff]  ;;  %v9747_v6 = vsub.f32 %v3056_v8, %v9707_v9 }
 0x286   :  { %4356 = vmatprep.subr.mxu1 %v13323_v29  ;;  %13332 = vst [vmem:[#allocation23_spill] sm:$0xff] %v9709_v23  ;;  %v3051_v29 = vld [vmem:[#allocation4 + $0x2a8] sm:$0xff]  ;;  %v13350_v48 = vand.u32 4294901760, %v13349_v49 }
 0x287   :  { %4165 = vmatprep.subr.mxu0 %v13321_v40  ;;  %4358 = vmatpush1.msra.mxu1 %v13328_v27  ;;  %v13330_v40 = vand.u32 4294901760, %v13329_v38  ;;  %v9718_v27 = vand.u32 4294901760, %v3054_v18  ;;  %v9720_v38 = vand.u32 4294901760, %v3052_v2  ;;  %13351 = vst [vmem:[#allocation42_spill] sm:$0xff] %v9747_v6 }
 0x288   :  { %4169 = vmatpush2.msra.mxu0 %v13325_v14  ;;  %v9713_v14 = vpop.f32.mrf.mxu0  ;;  %4360 = vmatprep.subr.mxu1 %v13333_v19  ;;  %v13342_v19 = vld [vmem:[#allocation28_spill] sm:$0xff] }
 0x289   :  { %4173 = vmatprep.subr.mxu0 %v13330_v40  ;;  %13336 = vst [vmem:[#allocation56_spill] sm:$0xff] %v9718_v27  ;;  %13337 = vst [vmem:[#allocation39_spill] sm:$0xff] %v9720_v38  ;;  %v9723_v40 = vsub.f32 %v3059_v60, %v9687_v16  ;;  %4362 = vmatpush1.msra.mxu1 %v13208_v32  ;;  %v9736_v60 = vsub.f32 %v3058_v43, %v9700_v17  ;;  %v9738_v16 = vand.u32 4294901760, %v3051_v29 }
 0x28a   :  { %4177 = vmatpush2.msra.mxu0 %v13335_v46  ;;  %v2099_v46 = vpop.f32.mrf.mxu1  ;;  %4364 = vmatprep.subr.mxu1 %v13342_v19  ;;  %v9741_v32 = vsub.f32 %v3057_v56, %v9702_v42  ;;  %v9754_v43 = vand.u32 4294901760, %v3050_v37  ;;  %v3048_v19 = vld [vmem:[#allocation4 + $0x290] sm:$0xff]  ;;  %v9757_v17 = vsub.f32 %v3055_v25, %v9709_v23  ;;  %v9759_v56 = vadd.f32 %v2097_v47, %v1689_v61  ;;  %v13359_v47 = vld [vmem:[#allocation55_spill] sm:$0xff] }
 0x28b   :  { %13338 = vst [vmem:[#allocation74_spill] sm:$0xff] %v9723_v40  ;;  %4181 = vmatprep.subr.mxu0 %v13340_v24  ;;  %13345 = vst [vmem:[#allocation102_spill] sm:$0xff] %v9736_v60  ;;  %v13348_v24 = vld [vmem:[#allocation10_spill] sm:$0xff]  ;;  %v9767_v49 = vsub.f32 %v3054_v18, %v9718_v27  ;;  %v9773_v9 = vadd.f32 %v2099_v46, %v1691_v51  ;;  %v13360_v61 = vand.u32 4294901760, %v13359_v47  ;;  %v9785_v18 = vand.u32 4294901760, %v3049_v63 }
 0x28c   :  { %4185 = vmatpush2.msra.mxu0 %v13344_v53  ;;  %13346 = vst [vmem:[#allocation47_spill] sm:$0xff] %v9738_v16  ;;  %13347 = vst [vmem:[#allocation9_spill] sm:$0xff] %v9741_v32  ;;  %4366 = vmatpush1.msra.mxu1 %v13348_v24  ;;  %v9752_v53 = vsub.f32 %v9675_v62, %v13352_v57  ;;  %v9761_v24 = vpop.f32.mrf.mxu0  ;;  %v9770_v57 = vsub.f32 %v3052_v2, %v9720_v38  ;;  %v9775_v25 = vpop.f32.mrf.mxu1  ;;  %v3047_v2 = vld [vmem:[#allocation4 + $0x288] sm:$0xff]  ;;  %v13364_v51 = vand.u32 4294901760, %v9000_v52 }
 0x28d   :  { %4189 = vmatprep.subr.mxu0 %v13350_v48  ;;  %13353 = vst [vmem:[#allocation25_spill] sm:$0xff] %v9754_v43  ;;  %13354 = vst [vmem:[#allocation90_spill] sm:$0xff] %v9757_v17  ;;  %4368 = vmatprep.subr.mxu1 %v13214_v59  ;;  %v13355_v48 = vld [vmem:[#allocation51_spill] sm:$0xff]  ;;  %v13361_v59 = vand.u32 4294901760, %v9695_v50  ;;  %v9795_v47 = vand.u32 4294901760, %v3048_v19  ;;  %v13367_v62 = vld [vmem:[#allocation37_spill] sm:$0xff]  ;;  %v9805_v52 = vsub.f32 %v3050_v37, %v9754_v43 }
 0x28e   :  { %v13356_v8 = vand.u32 4294901760, %v13355_v48  ;;  %13357 = vst [vmem:[#allocation34_spill] sm:$0xff] %v9767_v49  ;;  %13358 = vst [vmem:[#allocation50_spill] sm:$0xff] %v9770_v57  ;;  %4370 = vmatpush1.msra.mxu1 %v13216_v39  ;;  %v9809_v39 = vpop.f32.mrf.mxu0  ;;  %v9823_v46 = vpop.f32.mrf.mxu1  ;;  %v13378_v37 = vld [vmem:[#allocation41_spill] sm:$0xff] }
 0x28f   :  { %v9783_v48 = vsub.f32 %v9695_v50, %v13361_v59  ;;  %13362 = vst [vmem:[#allocation18_spill] sm:$0xff] %v9785_v18  ;;  %4372 = vmatprep.subr.mxu1 %v13218_v7  ;;  %13365 = vst [vmem:[#allocation22_spill] sm:$0xff] %v9795_v47  ;;  %v9798_v59 = vsub.f32 %v3051_v29, %v9738_v16  ;;  %v13370_v29 = vld [vmem:[#allocation92_spill] sm:$0xff]  ;;  %v3045_v7 = vld [vmem:[#allocation4 + $0x278] sm:$0xff]  ;;  %v13380_v16 = vand.u32 4294901760, %v9736_v60 }
 0x290   :  { %4193 = vmatpush2.msra.mxu0 %v13356_v8  ;;  %v9788_v8 = vsub.f32 %v3053_v13, %v9729_v45  ;;  %4374 = vmatpush2.msra.mxu1 %v13219_v1  ;;  %v13368_v13 = vand.u32 4294901760, %v13367_v62  ;;  %13369 = vst [vmem:[#allocation17_spill] sm:$0xff] %v9805_v52  ;;  %v13371_v50 = vand.u32 4294901760, %v13370_v29  ;;  %v13372_v1 = vand.u32 4294901760, %v9723_v40 }
 0x291   :  { %4197 = vmatprep.subr.mxu0 %v13360_v61  ;;  %v3046_v61 = vld [vmem:[#allocation4 + $0x280] sm:$0xff]  ;;  %13366 = vst [vmem:[#allocation27_spill] sm:$0xff] %v9798_v59  ;;  %4376 = vmatprep.subr.mxu1 %v13221_v0  ;;  %v13374_v0 = vld [vmem:[#allocation77_spill] sm:$0xff] }
 0x292   :  { %13363 = vst [vmem:[#allocation12_spill] sm:$0xff] %v9788_v8  ;;  %4201 = vmatpush2.msra.mxu0 %v13364_v51  ;;  %v9817_v62 = vsub.f32 %v9723_v40, %v13372_v1  ;;  %4378 = vmatpush2.msra.mxu1 %v13223_v41  ;;  %v13375_v43 = vand.u32 4294901760, %v13374_v0  ;;  %v9829_v29 = vand.u32 4294901760, %v3046_v61  ;;  %v9833_v40 = vsub.f32 %v3049_v63, %v9785_v18  ;;  %v3044_v63 = vld [vmem:[#allocation4 + $0x270] sm:$0xff]  ;;  %v9868_v1 = vpop.f32.mrf.mxu0 }
 0x293   :  { %4205 = vmatprep.subr.mxu0 %v13368_v13  ;;  %v9819_v13 = vand.u32 4294901760, %v3047_v2  ;;  %4380 = vmatprep.subr.mxu1 %v13224_v11  ;;  %v13379_v51 = vand.u32 4294901760, %v13378_v37  ;;  %v9841_v41 = vsub.f32 %v9736_v60, %v13380_v16  ;;  %v13383_v11 = vand.u32 4294901760, %v9153_v5  ;;  %v9887_v60 = vpop.f32.mrf.mxu1 }
 0x294   :  { %4209 = vmatpush2.msra.mxu0 %v13371_v50  ;;  %13376 = vst [vmem:[#allocation44_spill] sm:$0xff] %v9829_v29  ;;  %13377 = vst [vmem:[#allocation72_spill] sm:$0xff] %v9833_v40  ;;  %v9849_v50 = vsub.f32 %v3048_v19, %v9795_v47  ;;  %4382 = vmatpush2.msra.mxu1 %v13225_v15  ;;  %v13385_v37 = vand.u32 4294901760, %v9757_v17  ;;  %v9865_v19 = vand.u32 4294901760, %v3045_v7  ;;  %v13387_v15 = vld [vmem:[#allocation108_spill] sm:$0xff] }
 0x295   :  { %13373 = vst [vmem:[#allocation35_spill] sm:$0xff] %v9819_v13  ;;  %4213 = vmatprep.subr.mxu0 %v13375_v43  ;;  %v13381_v43 = vand.u32 4294901760, %v9741_v32  ;;  %4384 = vmatprep.subr.mxu1 %v8907_v33  ;;  %v13388_v5 = vand.u32 4294901760, %v13387_v15  ;;  %v13393_v33 = vld [vmem:[#allocation123_spill] sm:$0xff] }
 0x296   :  { %4217 = vmatpush2.msra.mxu0 %v13379_v51  ;;  %13382 = vst [vmem:[#allocation21_spill] sm:$0xff] %v9849_v50  ;;  %v13384_v51 = vand.u32 4294901760, %v9747_v6  ;;  %13386 = vst [vmem:[#allocation60_spill] sm:$0xff] %v9865_v19  ;;  %4386 = vmatpush2.msra.mxu1 %v13226_v44  ;;  %v13394_v15 = vand.u32 4294901760, %v13393_v33  ;;  %v13403_v33 = vand.u32 4294901760, %v9805_v52 }
 0x297   :  { %v9846_v0 = vsub.f32 %v9741_v32, %v13381_v43  ;;  %4221 = vmatprep.subr.mxu0 %v13383_v11  ;;  %v9863_v43 = vsub.f32 %v9757_v17, %v13385_v37  ;;  %v13390_v37 = vand.u32 4294901760, %v9770_v57  ;;  %v9885_v32 = vsub.f32 %v3047_v2, %v9819_v13  ;;  %4388 = vmatprep.subr.mxu1 %v13227_v54 }
 0x298   :  { %v9858_v16 = vsub.f32 %v9747_v6, %v13384_v51  ;;  %4225 = vmatpush2.msra.mxu0 %v13388_v5  ;;  %v13389_v51 = vand.u32 4294901760, %v9767_v49  ;;  %v9893_v5 = vsub.f32 %v3046_v61, %v9829_v29  ;;  %4390 = vmatpush2.msra.mxu1 %v13228_v22  ;;  %v13402_v2 = vand.u32 4294901760, %v9248_v30  ;;  %v13406_v22 = vld [vmem:[#allocation125_spill] sm:$0xff] }
 0x299   :  { %v9882_v17 = vsub.f32 %v9770_v57, %v13390_v37  ;;  %13392 = vst [vmem:[#allocation62_spill] sm:$0xff] %v9885_v32  ;;  %4229 = vmatprep.subr.mxu0 %v13394_v15  ;;  %v9900_v37 = vand.u32 4294901760, %v3044_v63  ;;  %v3042_v57 = vld [vmem:[#allocation4 + $0x260] sm:$0xff]  ;;  %v13400_v15 = vand.u32 4294901760, %v9798_v59  ;;  %v9922_v61 = vsub.f32 %v9805_v52, %v13403_v33  ;;  %4392 = vmatprep.subr.mxu1 %v13229_v12  ;;  %v9939_v52 = vpop.f32.mrf.mxu1 }
 0x29a   :  { %v9877_v6 = vsub.f32 %v9767_v49, %v13389_v51  ;;  %13395 = vst [vmem:[#allocation64_spill] sm:$0xff] %v9893_v5  ;;  %v13396_v51 = vand.u32 4294901760, %v9788_v8  ;;  %v13398_v49 = vld [vmem:[#allocation122_spill] sm:$0xff]  ;;  %v13407_v30 = vand.u32 4294901760, %v13406_v22  ;;  %v9934_v54 = vand.u32 4294901760, %v3042_v57  ;;  %4394 = vmatpush2.msra.mxu1 %v8993_v26  ;;  %v3038_v33 = vld [vmem:[#allocation4 + $0x240] sm:$0xff] }
 0x29b   :  { %13391 = vst [vmem:[#allocation53_spill] sm:$0xff] %v9882_v17  ;;  %13397 = vst [vmem:[#allocation66_spill] sm:$0xff] %v9900_v37  ;;  %v13399_v44 = vand.u32 4294901760, %v13398_v49  ;;  %v9911_v29 = vsub.f32 %v9798_v59, %v13400_v15  ;;  %v9925_v15 = vsub.f32 %v3045_v7, %v9865_v19  ;;  %v9936_v59 = vld [vmem:[#allocation4 + $0x258] sm:$0xff]  ;;  %v13409_v7 = vand.u32 4294901760, %v9274_v21  ;;  %4396 = vmatprep.subr.mxu1 %v13230_v28 }
 0x29c   :  { %v9898_v11 = vsub.f32 %v9788_v8, %v13396_v51  ;;  %13404 = vst [vmem:[#allocation107_spill] sm:$0xff] %v9922_v61  ;;  %v3040_v8 = vld [vmem:[#allocation4 + $0x250] sm:$0xff]  ;;  %v9927_v51 = vpop.f32.mrf.mxu0  ;;  %13408 = vst [vmem:[#allocation111_spill] sm:$0xff] %v9934_v54  ;;  %v9946_v22 = vsub.f32 %v3044_v63, %v9900_v37  ;;  %v13412_v26 = vld [vmem:[#allocation67_spill] sm:$0xff]  ;;  %v1705_v17 = vadd.f32 %v9682_v4, %v9680_v34  ;;  %4398 = vmatpush2.msra.mxu1 %v13231_v36 }
 0x29d   :  { %4233 = vmatpush2.msra.mxu0 %v13399_v44  ;;  %13401 = vst [vmem:[#allocation98_spill] sm:$0xff] %v9911_v29  ;;  %v3043_v44 = vld [vmem:[#allocation4 + $0x268] sm:$0xff]  ;;  %13405 = vst [vmem:[#allocation109_spill] sm:$0xff] %v9925_v15  ;;  %v13413_v21 = vand.u32 4294901760, %v13412_v26  ;;  %v9962_v37 = vand.u32 4294901760, %v3040_v8  ;;  %v13417_v28 = vand.u32 4294901760, %v9299_v31  ;;  %4400 = vmatprep.subr.mxu1 %v13232_v35  ;;  %v1707_v35 = vadd.f32 %v9713_v14, %v9689_v10 }
 0x29e   :  { %4237 = vmatprep.subr.mxu0 %v13402_v2  ;;  %13410 = vst [vmem:[#allocation89_spill] sm:$0xff] %v9946_v22  ;;  %v9953_v2 = vld [vmem:[#allocation4 + $0x248] sm:$0xff]  ;;  %v9959_v12 = vand.u32 4294901760, %v3043_v44  ;;  %v13423_v31 = vand.u32 4294901760, %v9885_v32  ;;  %v9993_v4 = vand.u32 4294901760, %v3038_v33  ;;  %v3036_v26 = vld [vmem:[#allocation4 + $0x230] sm:$0xff]  ;;  %4402 = vmatpush2.msra.mxu1 %v9057_v3 }
 0x29f   :  { %4241 = vmatpush2.msra.mxu0 %v13407_v30  ;;  %v13411_v30 = vand.u32 4294901760, %v9833_v40  ;;  %13415 = vst [vmem:[#allocation85_spill] sm:$0xff] %v9962_v37  ;;  %v13419_v29 = vld [vmem:[#allocation117_spill] sm:$0xff]  ;;  %v9986_v36 = vand.u32 4294901760, %v9953_v2  ;;  %v13427_v61 = vand.u32 4294901760, %v9893_v5  ;;  %4404 = vmatprep.subr.mxu1 %v13233_v20  ;;  %v13429_v10 = vld [vmem:[#allocation94_spill] sm:$0xff] }
 0x2a0   :  { %4245 = vmatprep.subr.mxu0 %v13409_v7  ;;  %v2736_v7 = vpop.f32.mrf.mxu0  ;;  %13414 = vst [vmem:[#allocation63_spill] sm:$0xff] %v9959_v12  ;;  %v9991_v34 = vsub.f32 %v9885_v32, %v13423_v31  ;;  %13424 = vst [vmem:[#allocation79_spill] sm:$0xff] %v9993_v4  ;;  %v13430_v14 = vand.u32 4294901760, %v13429_v10  ;;  %v10019_v63 = vsub.f32 %v3043_v44, %v9959_v12  ;;  %4406 = vmatpush2.msra.mxu1 %v9095_v58  ;;  %v13438_v58 = vld [vmem:[#allocation120_spill] sm:$0xff] }
 0x2a1   :  { %v9951_v49 = vsub.f32 %v9833_v40, %v13411_v30  ;;  %4249 = vmatpush2.msra.mxu0 %v13413_v21  ;;  %v13416_v30 = vand.u32 4294901760, %v9849_v50  ;;  %v9976_v21 = vand.u32 4294901760, %v9936_v59  ;;  %13422 = vst [vmem:[#allocation69_spill] sm:$0xff] %v9986_v36  ;;  %v10006_v31 = vsub.f32 %v9893_v5, %v13427_v61  ;;  %4408 = vmatprep.subr.mxu1 %v13438_v58  ;;  %v13442_v5 = vld [vmem:[#allocation115_spill] sm:$0xff] }
 0x2a2   :  { %4253 = vmatprep.subr.mxu0 %v13417_v28  ;;  %v9995_v28 = vld [vmem:[#allocation4 + $0x238] sm:$0xff]  ;;  %v2738_v3 = vpop.f32.mrf.mxu0  ;;  %13432 = vst [vmem:[#allocation88_spill] sm:$0xff] %v10019_v63  ;;  %v2106_v61 = vadd.f32 %v9775_v25, %v1705_v17  ;;  %v10033_v10 = vand.u32 4294901760, %v3036_v26  ;;  %v2311_v44 = vadd.f32 %v9809_v39, %v9773_v9  ;;  %v2108_v32 = vadd.f32 %v9823_v46, %v1707_v35  ;;  %v13443_v9 = vld [vmem:[#allocation133_spill] sm:$0xff]  ;;  %v13448_v35 = vld [vmem:[#allocation118_spill] sm:$0xff] }
 0x2a3   :  { %v9967_v40 = vsub.f32 %v9849_v50, %v13416_v30  ;;  %13418 = vst [vmem:[#allocation65_spill] sm:$0xff] %v9976_v21  ;;  %v13420_v30 = vand.u32 4294901760, %v13419_v29  ;;  %v9983_v50 = vsub.f32 %v3042_v57, %v9934_v54  ;;  %v2471_v29 = vpop.f32.mrf.mxu1  ;;  %v13425_v57 = vld [vmem:[#allocation128_spill] sm:$0xff]  ;;  %13428 = vst [vmem:[#allocation73_spill] sm:$0xff] %v10006_v31  ;;  %v2309_v54 = vadd.f32 %v9761_v24, %v9759_v56  ;;  %v13453_v31 = vld [vmem:[#allocation110_spill] sm:$0xff] }
 0x2a4   :  { %v13433_v56 = vand.u32 4294901760, %v9342_v55  ;;  %v10026_v20 = vand.u32 4294901760, %v9995_v28  ;;  %v13435_v24 = vand.u32 4294901760, %v9925_v15  ;;  %13437 = vst [vmem:[#allocation104_spill] sm:$0xff] %v10033_v10  ;;  %v13439_v55 = vld [vmem:[#allocation124_spill] sm:$0xff]  ;;  %4410 = vmatpush2.msra.mxu1 %v13442_v5  ;;  %v13444_v39 = vand.u32 4294901760, %v13443_v9 }
 0x2a5   :  { %4257 = vmatpush2.msra.mxu0 %v13420_v30  ;;  %13421 = vst [vmem:[#allocation93_spill] sm:$0xff] %v9983_v50  ;;  %v13426_v30 = vand.u32 4294901760, %v13425_v57  ;;  %v10015_v57 = vsub.f32 %v3040_v8, %v9962_v37  ;;  %v2460_v17 = vadd.f32 %v9887_v60, %v2309_v54  ;;  %v13440_v25 = vand.u32 4294901760, %v13439_v55  ;;  %v10057_v55 = vld [vmem:[#allocation4 + $0x218] sm:$0xff]  ;;  %4412 = vmatprep.subr.mxu1 %v13448_v35  ;;  %v13449_v5 = vld [vmem:[#allocation58_spill] sm:$0xff]  ;;  %v13462_v60 = vld [vmem:[#allocation121_spill] sm:$0xff] }
 0x2a6   :  { %13434 = vst [vmem:[#allocation61_spill] sm:$0xff] %v10026_v20  ;;  %v10031_v8 = vsub.f32 %v9925_v15, %v13435_v24  ;;  %v10045_v24 = vld [vmem:[#allocation4 + $0x228] sm:$0xff]  ;;  %v2473_v15 = vpop.f32.mrf.mxu1  ;;  %v13445_v54 = vand.u32 4294901760, %v9946_v22  ;;  %v2462_v46 = vadd.f32 %v9939_v52, %v2311_v44  ;;  %v10076_v44 = vsub.f32 %v3036_v26, %v10033_v10  ;;  %v13458_v35 = vld [vmem:[#allocation119_spill] sm:$0xff]  ;;  %v13461_v52 = vld [vmem:[#allocation126_spill] sm:$0xff] }
 0x2a7   :  { %4261 = vmatprep.subr.mxu0 %v13426_v30  ;;  %13431 = vst [vmem:[#allocation87_spill] sm:$0xff] %v10015_v57  ;;  %v10043_v30 = vsub.f32 %v3038_v33, %v9993_v4  ;;  %v10061_v33 = vsub.f32 %v9936_v59, %v9976_v21  ;;  %v2737_v9 = vadd.f32 %v2736_v7, %v2460_v17  ;;  %v13454_v59 = vand.u32 4294901760, %v13453_v31  ;;  %v13457_v17 = vld [vmem:[#allocation83_spill] sm:$0xff] }
 0x2a8   :  { %4265 = vmatpush2.msra.mxu0 %v13430_v14  ;;  %13436 = vst [vmem:[#allocation46_spill] sm:$0xff] %v10031_v8  ;;  %v3034_v14 = vld [vmem:[#allocation4 + $0x220] sm:$0xff]  ;;  %v10055_v58 = vsub.f32 %v9946_v22, %v13445_v54  ;;  %v2319_v54 = vadd.f32 %v9868_v1, %v2106_v61  ;;  %v2881_v4 = vpop.f32.mrf.mxu1  ;;  %13455 = vst [vmem:[#allocation52_spill] sm:$0xff] %v10076_v44  ;;  %v10079_v7 = vand.u32 4294901760, %v10045_v24  ;;  %v10088_v31 = vand.u32 4294901760, %v10057_v55 }
 0x2a9   :  { %4269 = vmatprep.subr.mxu0 %v13433_v56  ;;  %13441 = vst [vmem:[#allocation40_spill] sm:$0xff] %v10043_v30  ;;  %13447 = vst [vmem:[#allocation11_spill] sm:$0xff] %v10061_v33  ;;  %v10068_v56 = vand.u32 4294901760, %v3034_v14  ;;  %v13452_v22 = vld [vmem:[#allocation116_spill] sm:$0xff]  ;;  %v2739_v1 = vadd.f32 %v2738_v3, %v2462_v46  ;;  %v10084_v61 = vadd.f32 %v2881_v4, %v2737_v9  ;;  %v13463_v46 = vld [vmem:[#allocation113_spill] sm:$0xff] }
 0x2aa   :  { %4273 = vmatpush2.msra.mxu0 %v13440_v25  ;;  %13446 = vst [vmem:[#allocation100_spill] sm:$0xff] %v10055_v58  ;;  %v13450_v25 = vand.u32 4294901760, %v13449_v5  ;;  %4414 = vmatpush2.msra.mxu1 %v13452_v22  ;;  %13456 = vst [vmem:[#allocation71_spill] sm:$0xff] %v10079_v7  ;;  %v13459_v5 = vand.u32 4294901760, %v13458_v35  ;;  %v2321_v26 = vadd.f32 %v9927_v51, %v2108_v32  ;;  %v3030_v4 = vld [vmem:[#allocation4 + $0x200] sm:$0xff]  ;;  %v13464_v9 = vld [vmem:[#allocation114_spill] sm:$0xff] }
 0x2ab   :  { %4277 = vmatprep.subr.mxu0 %v13444_v39  ;;  %v2744_v39 = vpop.f32.mrf.mxu0  ;;  %13451 = vst [vmem:[#allocation75_spill] sm:$0xff] %v10068_v56  ;;  %4416 = vmatprep.subr.mxu1 %v13457_v17  ;;  %13460 = vst [vmem:[#allocation33_spill] sm:$0xff] %v10088_v31  ;;  %v2883_v17 = vpop.f32.mrf.mxu1  ;;  %v13465_v32 = vand.u32 4294901760, %v10019_v63  ;;  %v13468_v3 = vld [vmem:[#allocation127_spill] sm:$0xff]  ;;  %v13478_v58 = vand.u32 4294901760, %v10061_v33 }
 0x2ac   :  { %4281 = vmatpush2.msra.mxu0 %v13450_v25  ;;  %v3032_v25 = vld [vmem:[#allocation4 + $0x210] sm:$0xff]  ;;  %4418 = vmatpush2.msra.mxu1 %v13461_v52  ;;  %v10097_v22 = vadd.f32 %v2883_v17, %v2739_v1  ;;  %v10108_v52 = vld [vmem:[#allocation4 + $0x208] sm:$0xff]  ;;  %v2474_v35 = vadd.f32 %v2473_v15, %v2321_v26  ;;  %v2896_v1 = vmul.f32 %v10084_v61, %v10084_v61  ;;  %v13473_v15 = vand.u32 4294901760, %v9983_v50 }
 0x2ad   :  { %4285 = vmatprep.subr.mxu0 %v13454_v59  ;;  %v2472_v59 = vadd.f32 %v2471_v29, %v2319_v54  ;;  %4420 = vmatprep.subr.mxu1 %v13463_v46  ;;  %v10102_v51 = vsub.f32 %v10019_v63, %v13465_v32  ;;  %v10105_v29 = vsub.f32 %v3034_v14, %v10068_v56  ;;  %v13469_v46 = vld [vmem:[#allocation130_spill] sm:$0xff]  ;;  %v10114_v17 = vand.u32 4294901760, %v3032_v25  ;;  %v13471_v32 = vld [vmem:[#allocation97_spill] sm:$0xff]  ;;  %v13472_v63 = vld [vmem:[#allocation95_spill] sm:$0xff]  ;;  %v2889_v54 = vpop.f32.mrf.mxu1 }
 0x2ae   :  { %4289 = vmatpush2.msra.mxu0 %v13459_v5  ;;  %v2746_v5 = vpop.f32.mrf.mxu0  ;;  %4422 = vmatpush2.msra.mxu1 %v13469_v46  ;;  %v2897_v14 = vmul.f32 %v10097_v22, %v10097_v22  ;;  %v10123_v26 = vsub.f32 %v9983_v50, %v13473_v15  ;;  %v13476_v46 = vld [vmem:[#allocation24_spill] sm:$0xff]  ;;  %v10138_v10 = vsub.f32 %v10061_v33, %v13478_v58  ;;  %v10141_v15 = vand.u32 4294901760, %v10108_v52  ;;  %v13480_v50 = vld [vmem:[#allocation30_spill] sm:$0xff]  ;;  %v13487_v33 = vld [vmem:[#allocation19_spill] sm:$0xff] }
 0x2af   :  { %4293 = vmatmul.mubr.f32.vlgmr.msra.gmra.mxu0 %v13462_v60  ;;  %4453 = vmatprep.subr.mxu0 %v13464_v9  ;;  %13466 = vst [vmem:[#allocation86_spill] sm:$0xff] %v10102_v51  ;;  %13467 = vst [vmem:[#allocation78_spill] sm:$0xff] %v10105_v29  ;;  %v2745_v9 = vadd.f32 %v2744_v39, %v2472_v59  ;;  %v10127_v39 = vsub.f32 %v9953_v2, %v9986_v36  ;;  %v10129_v59 = vand.u32 4294901760, %v3030_v4  ;;  %v13481_v2 = vld [vmem:[#allocation8_spill] sm:$0xff]  ;;  %v10202_v51 = vld [vmem:[#allocation4 + $0x3e8] sm:$0xff] }
 0x2b0   :  { %4299 = vmatprep.mubr.f32.mxu0 %v13468_v3  ;;  %13470 = vst [vmem:[#allocation38_spill] sm:$0xff] %v10114_v17  ;;  %4455 = vmatpush1.msra.mxu0 %v13471_v32  ;;  %v13477_v32 = vld [vmem:[#allocation134_spill] sm:$0xff]  ;;  %13479 = vst [vmem:[#allocation91_spill] sm:$0xff] %v10141_v15  ;;  %v2905_v8 = vmul.f32 %v2897_v14, %v10097_v22  ;;  %v10156_v58 = vsub.f32 %v9995_v28, %v10026_v20  ;;  %v13491_v28 = vld [vmem:[#allocation132_spill] sm:$0xff] }
 0x2b1   :  { %4424 = vmatprep.subr.mxu1 %v13472_v63  ;;  %13474 = vst [vmem:[#allocation82_spill] sm:$0xff] %v10127_v39  ;;  %13475 = vst [vmem:[#allocation54_spill] sm:$0xff] %v10129_v59  ;;  %4457 = vmatprep.subr.mxu0 %v13476_v46  ;;  %v2747_v63 = vadd.f32 %v2746_v5, %v2474_v35  ;;  %v10133_v56 = vadd.f32 %v2889_v54, %v2745_v9  ;;  %v2891_v46 = vpop.f32.mrf.mxu1  ;;  %v13482_v35 = vand.u32 4294901760, %v10015_v57  ;;  %v10152_v5 = vld [vmem:[#allocation4 + $0x3f8] sm:$0xff]  ;;  %v13484_v54 = vld [vmem:[#allocation129_spill] sm:$0xff] }
 0x2b2   :  { %4426 = vmatpush2.msra.mxu1 %v13477_v32  ;;  %4459 = vmatpush1.msra.mxu0 %v13480_v50  ;;  %13483 = vst [vmem:[#allocation57_spill] sm:$0xff] %v10156_v58  ;;  %v2904_v14 = vmul.f32 %v2896_v1, %v10084_v61  ;;  %v10164_v32 = vsub.f32 %v3032_v25, %v10114_v17  ;;  %v2913_v50 = vmul.f32 0.044715, %v2905_v8  ;;  %v13489_v1 = vld [vmem:[#allocation131_spill] sm:$0xff]  ;;  %v10182_v8 = vand.u32 4294901760, %v10152_v5 }
 0x2b3   :  { %4428 = vmatprep.subr.mxu1 %v13481_v2  ;;  %v10150_v9 = vsub.f32 %v10015_v57, %v13482_v35  ;;  %4301 = vmatmul.mubr.f32.gmra.mxu0 %v13484_v54  ;;  %v10161_v2 = vadd.f32 %v2891_v46, %v2747_v63  ;;  %v13486_v57 = vld [vmem:[#allocation26_spill] sm:$0xff]  ;;  %v2900_v25 = vmul.f32 %v10133_v56, %v10133_v56 }
 0x2b4   :  { %4461 = vmatprep.subr.mxu0 %v9702_v42  ;;  %13485 = vst [vmem:[#allocation112_spill] sm:$0xff] %v10164_v32  ;;  %4430 = vmatpush2.msra.mxu1 %v13486_v57  ;;  %v10172_v42 = vsub.f32 %v3030_v4, %v10129_v59  ;;  %13490 = vst [vmem:[#allocation68_spill] sm:$0xff] %v10182_v8  ;;  %v3092_v63 = vld [vmem:[#allocation4 + $0x3f0] sm:$0xff]  ;;  %v2921_v4 = vadd.f32 %v2913_v50, %v10097_v22  ;;  %v2912_v46 = vmul.f32 0.044715, %v2904_v14 }
 0x2b5   :  { %4463 = vmatpush1.msra.mxu0 %v13487_v33  ;;  %4432 = vmatprep.subr.mxu1 %v13489_v1  ;;  %v2901_v57 = vmul.f32 %v10161_v2, %v10161_v2  ;;  %v10191_v35 = vsub.f32 %v10045_v24, %v10079_v7  ;;  %v13494_v24 = vand.u32 4294901760, %v9752_v53  ;;  %v13498_v1 = vand.u32 4294901760, %v9783_v48 }
 0x2b6   :  { %13488 = vst [vmem:[#allocation96_spill] sm:$0xff] %v10172_v42  ;;  %4465 = vmatprep.subr.mxu0 %v9709_v23  ;;  %4434 = vmatpush2.msra.mxu1 %v13491_v28  ;;  %v3090_v23 = vld [vmem:[#allocation4 + $0x3e0] sm:$0xff]  ;;  %v2929_v14 = vmul.f32 0.7978846, %v2921_v4  ;;  %v2908_v53 = vmul.f32 %v2900_v25, %v10133_v56  ;;  %v10234_v48 = vand.u32 4294901760, %v10202_v51  ;;  %v13509_v25 = vand.u32 4294901760, %v9846_v0 }
 0x2b7   :  { %4467 = vmatpush1.msra.mxu0 %v9718_v27  ;;  %13492 = vst [vmem:[#allocation99_spill] sm:$0xff] %v10191_v35  ;;  %4438 = vmatmul.mubr.f32.vlgmr.msra.gmra.mxu1 %v13462_v60  ;;  %v2909_v28 = vmul.f32 %v2901_v57, %v10161_v2  ;;  %v13493_v27 = vand.u32 4294901760, %v10043_v30  ;;  %v13495_v60 = vand.u32 4294901760, %v10127_v39  ;;  %v10212_v57 = vand.u32 4294901760, %v3092_v63  ;;  %v3086_v0 = vld [vmem:[#allocation4 + $0x3c0] sm:$0xff] }
 0x2b8   :  { %4469 = vmatprep.subr.mxu0 %v9729_v45  ;;  %4618 = vmatprep.subr.mxu1 %v13494_v24  ;;  %v10222_v4 = vand.u32 4294901760, %v3090_v23  ;;  %5826 = vtanh.f32 %v2929_v14  ;;  %13503 = vst [vmem:[#allocation105_spill] sm:$0xff] %v10234_v48  ;;  %v13505_v14 = vand.u32 4294901760, %v9841_v41  ;;  %v13511_v41 = vand.u32 4294901760, %v10105_v29 }
 0x2b9   :  { %v10199_v50 = vsub.f32 %v10043_v30, %v13493_v27  ;;  %4444 = vmatprep.mubr.f32.mxu1 %v13468_v3  ;;  %v10210_v45 = vsub.f32 %v10127_v39, %v13495_v60  ;;  %13496 = vst [vmem:[#allocation31_spill] sm:$0xff] %v10212_v57  ;;  %v10216_v27 = vsub.f32 %v10057_v55, %v10088_v31  ;;  %v2917_v3 = vmul.f32 0.044715, %v2909_v28  ;;  %v13500_v60 = vld [vmem:[#allocation47_spill] sm:$0xff]  ;;  %v13504_v28 = vld [vmem:[#allocation25_spill] sm:$0xff] }
 0x2ba   :  { %4471 = vmatpush1.msra.mxu0 %v9720_v38  ;;  %4624 = vmatpush1.msra.mxu1 %v13498_v1  ;;  %13499 = vst [vmem:[#allocation36_spill] sm:$0xff] %v10222_v4  ;;  %v13501_v30 = vand.u32 4294901760, %v9817_v62  ;;  %v13502_v55 = vand.u32 4294901760, %v10156_v58  ;;  %v2920_v1 = vadd.f32 %v2912_v46, %v10084_v61  ;;  %v10255_v46 = vsub.f32 %v3092_v63, %v10212_v57 }
 0x2bb   :  { %13497 = vst [vmem:[#allocation13_spill] sm:$0xff] %v10216_v27  ;;  %4473 = vmatprep.subr.mxu0 %v13500_v60  ;;  %v10249_v60 = vsub.f32 %v10108_v52, %v10141_v15  ;;  %4446 = vmatmul.mubr.f32.gmra.mxu1 %v13484_v54  ;;  %v2916_v62 = vmul.f32 0.044715, %v2908_v53  ;;  %v2925_v52 = vadd.f32 %v2917_v3, %v10161_v2  ;;  %v13513_v53 = vand.u32 4294901760, %v10191_v35 }
 0x2bc   :  { %4630 = vmatprep.subr.mxu1 %v13501_v30  ;;  %v10231_v39 = vsub.f32 %v10156_v58, %v13502_v55  ;;  %4475 = vmatpush1.msra.mxu0 %v13504_v28  ;;  %v13506_v30 = vand.u32 4294901760, %v10076_v44  ;;  %v3089_v55 = vld [vmem:[#allocation4 + $0x3d8] sm:$0xff]  ;;  %v3088_v58 = vld [vmem:[#allocation4 + $0x3d0] sm:$0xff]  ;;  %13508 = vst [vmem:[#allocation106_spill] sm:$0xff] %v10255_v46  ;;  %v10264_v54 = vsub.f32 %v3090_v23, %v10222_v4 }
 0x2bd   :  { %4636 = vmatpush1.msra.mxu1 %v13505_v14  ;;  %13507 = vst [vmem:[#allocation70_spill] sm:$0xff] %v10249_v60  ;;  %4477 = vmatprep.subr.mxu0 %v9785_v18  ;;  %v10269_v63 = vsub.f32 %v10105_v29, %v13511_v41  ;;  %v13512_v14 = vand.u32 4294901760, %v9858_v16  ;;  %v10278_v3 = vsub.f32 %v10191_v35, %v13513_v53  ;;  %v10280_v23 = vand.u32 4294901760, %v3089_v55  ;;  %v13517_v29 = vld [vmem:[#allocation44_spill] sm:$0xff] }
 0x2be   :  { %v10245_v24 = vsub.f32 %v10076_v44, %v13506_v30  ;;  %4642 = vmatprep.subr.mxu1 %v13509_v25  ;;  %4479 = vmatpush1.msra.mxu0 %v9795_v47  ;;  %13510 = vst [vmem:[#allocation29_spill] sm:$0xff] %v10264_v54  ;;  %v3087_v44 = vld [vmem:[#allocation4 + $0x3c8] sm:$0xff]  ;;  %v10282_v25 = vand.u32 4294901760, %v3088_v58  ;;  %v2928_v30 = vmul.f32 0.7978846, %v2920_v1  ;;  %v13516_v41 = vand.u32 4294901760, %v9863_v43 }
 0x2bf   :  { %4648 = vmatpush1.msra.mxu1 %v13512_v14  ;;  %4481 = vmatprep.subr.mxu0 %v9819_v13  ;;  %13514 = vst [vmem:[#allocation14_spill] sm:$0xff] %v10280_v23  ;;  %v13518_v53 = vand.u32 4294901760, %v9877_v6  ;;  %v13519_v35 = vand.u32 4294901760, %v10216_v27  ;;  %v13520_v43 = vand.u32 4294901760, %v10164_v32  ;;  %v10303_v16 = vand.u32 4294901760, %v3087_v44 }
 0x2c0   :  { %13515 = vst [vmem:[#allocation45_spill] sm:$0xff] %v10282_v25  ;;  %4654 = vmatprep.subr.mxu1 %v13516_v41  ;;  %4483 = vmatpush1.msra.mxu0 %v13517_v29  ;;  %v10307_v13 = vsub.f32 %v10152_v5, %v10182_v8  ;;  %v2924_v6 = vadd.f32 %v2916_v62, %v10133_v56  ;;  %v13522_v14 = vand.u32 4294901760, %v9898_v11  ;;  %v10325_v11 = vand.u32 4294901760, %v3086_v0 }
 0x2c1   :  { %4660 = vmatpush1.msra.mxu1 %v13518_v53  ;;  %4485 = vmatprep.subr.mxu0 %v9865_v19  ;;  %v10296_v1 = vsub.f32 %v10216_v27, %v13519_v35  ;;  %v10301_v41 = vsub.f32 %v10164_v32, %v13520_v43  ;;  %v2933_v53 = vmul.f32 0.7978846, %v2925_v52  ;;  %v13523_v19 = vld [vmem:[#allocation66_spill] sm:$0xff]  ;;  %v3085_v27 = vld [vmem:[#allocation4 + $0x3b8] sm:$0xff]  ;;  %v10316_v43 = vsub.f32 %v10202_v51, %v10234_v48  ;;  %v13525_v32 = vld [vmem:[#allocation53_spill] sm:$0xff] }
 0x2c2   :  { %13521 = vst [vmem:[#allocation16_spill] sm:$0xff] %v10307_v13  ;;  %4666 = vmatprep.subr.mxu1 %v13522_v14  ;;  %4487 = vmatpush1.msra.mxu0 %v13523_v19  ;;  %v13526_v29 = vand.u32 4294901760, %v13525_v32  ;;  %v10323_v62 = vsub.f32 %v3088_v58, %v10282_v25  ;;  %13528 = vst [vmem:[#allocation76_spill] sm:$0xff] %v10325_v11  ;;  %v3084_v52 = vld [vmem:[#allocation4 + $0x3b0] sm:$0xff]  ;;  %5828 = vtanh.f32 %v2928_v30  ;;  %v13531_v51 = vld [vmem:[#allocation111_spill] sm:$0xff]  ;;  %v13533_v5 = vand.u32 4294901760, %v10172_v42 }
 0x2c3   :  { %13524 = vst [vmem:[#allocation48_spill] sm:$0xff] %v10316_v43  ;;  %4489 = vmatprep.subr.mxu0 %v9959_v12  ;;  %v13529_v35 = vld [vmem:[#allocation98_spill] sm:$0xff]  ;;  %v3083_v12 = vld [vmem:[#allocation4 + $0x3a8] sm:$0xff]  ;;  %v10342_v47 = vsub.f32 %v3089_v55, %v10280_v23  ;;  %v13535_v30 = vld [vmem:[#allocation107_spill] sm:$0xff]  ;;  %5830 = vtanh.f32 %v2933_v53  ;;  %v10355_v55 = vand.u32 4294901760, %v3084_v52 }
 0x2c4   :  { %4672 = vmatpush1.msra.mxu1 %v13526_v29  ;;  %13527 = vst [vmem:[#allocation81_spill] sm:$0xff] %v10323_v62  ;;  %v13530_v19 = vand.u32 4294901760, %v13529_v35  ;;  %4491 = vmatpush1.msra.mxu0 %v13531_v51  ;;  %v13532_v29 = vand.u32 4294901760, %v10249_v60  ;;  %v10339_v58 = vsub.f32 %v10172_v42, %v13533_v5  ;;  %v13536_v14 = vand.u32 4294901760, %v13535_v30  ;;  %v3082_v30 = vld [vmem:[#allocation4 + $0x3a0] sm:$0xff]  ;;  %v13550_v42 = vld [vmem:[#allocation46_spill] sm:$0xff] }
 0x2c5   :  { %13534 = vst [vmem:[#allocation20_spill] sm:$0xff] %v10342_v47  ;;  %4493 = vmatprep.subr.mxu0 %v9976_v21  ;;  %v2932_v51 = vmul.f32 0.7978846, %v2924_v6  ;;  %v13538_v5 = vand.u32 4294901760, %v9951_v49  ;;  %13539 = vst [vmem:[#allocation80_spill] sm:$0xff] %v10355_v55  ;;  %v10362_v35 = vsub.f32 %v3086_v0, %v10325_v11  ;;  %v13542_v6 = vand.u32 4294901760, %v10255_v46 }
 0x2c6   :  { %4678 = vmatprep.subr.mxu1 %v13530_v19  ;;  %v10334_v32 = vsub.f32 %v10249_v60, %v13532_v29  ;;  %v10349_v29 = vand.u32 4294901760, %v3085_v27  ;;  %4495 = vmatpush1.msra.mxu0 %v9962_v37  ;;  %v13540_v19 = vand.u32 4294901760, %v9967_v40  ;;  %v10369_v53 = vand.u32 4294901760, %v3083_v12  ;;  %v13546_v40 = vld [vmem:[#allocation79_spill] sm:$0xff]  ;;  %v13555_v21 = vld [vmem:[#allocation100_spill] sm:$0xff] }
 0x2c7   :  { %4684 = vmatpush1.msra.mxu1 %v13536_v14  ;;  %4497 = vmatprep.subr.mxu0 %v9986_v36  ;;  %13541 = vst [vmem:[#allocation28_spill] sm:$0xff] %v10362_v35  ;;  %v10367_v49 = vsub.f32 %v10255_v46, %v13542_v6  ;;  %v5827_v14 = vpop.eup %5826  ;;  %v13545_v60 = vand.u32 4294901760, %v9991_v34  ;;  %v13547_v36 = vld [vmem:[#allocation73_spill] sm:$0xff]  ;;  %5832 = vtanh.f32 %v2932_v51  ;;  %v13551_v6 = vand.u32 4294901760, %v13550_v42 }
 0x2c8   :  { %13537 = vst [vmem:[#allocation43_spill] sm:$0xff] %v10349_v29  ;;  %4690 = vmatprep.subr.mxu1 %v13538_v5  ;;  %13543 = vst [vmem:[#allocation84_spill] sm:$0xff] %v10369_v53  ;;  %v10372_v5 = vsub.f32 %v3087_v44, %v10303_v16  ;;  %4499 = vmatpush1.msra.mxu0 %v13546_v40  ;;  %v2945_v46 = vadd.f32 1.0, %v5827_v14  ;;  %v13548_v37 = vand.u32 4294901760, %v13547_v36  ;;  %v13549_v44 = vand.u32 4294901760, %v10307_v13  ;;  %v3080_v40 = vld [vmem:[#allocation4 + $0x390] sm:$0xff] }
 0x2c9   :  { %4696 = vmatpush1.msra.mxu1 %v13540_v19  ;;  %4501 = vmatprep.subr.mxu0 %v10026_v20  ;;  %v3081_v19 = vld [vmem:[#allocation4 + $0x398] sm:$0xff]  ;;  %v13552_v14 = vld [vmem:[#allocation104_spill] sm:$0xff]  ;;  %v13553_v36 = vand.u32 4294901760, %v10316_v43  ;;  %v10404_v20 = vsub.f32 %v3085_v27, %v10349_v29  ;;  %v13556_v0 = vand.u32 4294901760, %v13555_v21  ;;  %v10410_v51 = vld [vmem:[#allocation4 + $0x388] sm:$0xff]  ;;  %v13561_v42 = vand.u32 4294901760, %v10342_v47 }
 0x2ca   :  { %13544 = vst [vmem:[#allocation10_spill] sm:$0xff] %v10372_v5  ;;  %4702 = vmatprep.subr.mxu1 %v13545_v60  ;;  %v10387_v34 = vsub.f32 %v10307_v13, %v13549_v44  ;;  %v10389_v60 = vand.u32 4294901760, %v3082_v30  ;;  %4503 = vmatpush1.msra.mxu0 %v13552_v14  ;;  %v2953_v13 = vmul.f32 0.5, %v2945_v46  ;;  %v13559_v27 = vld [vmem:[#allocation75_spill] sm:$0xff]  ;;  %v13560_v46 = vand.u32 4294901760, %v10264_v54 }
 0x2cb   :  { %4708 = vmatpush1.msra.mxu1 %v13548_v37  ;;  %v10396_v37 = vsub.f32 %v3084_v52, %v10355_v55  ;;  %v10401_v44 = vsub.f32 %v10316_v43, %v13553_v36  ;;  %13554 = vst [vmem:[#allocation59_spill] sm:$0xff] %v10404_v20  ;;  %4505 = vmatprep.subr.mxu0 %v10079_v7  ;;  %v13557_v36 = vld [vmem:[#allocation86_spill] sm:$0xff]  ;;  %v10429_v52 = vand.u32 4294901760, %v3080_v40  ;;  %v13563_v14 = vand.u32 4294901760, %v10123_v26 }
 0x2cc   :  { %4714 = vmatprep.subr.mxu1 %v13551_v6  ;;  %v3078_v6 = vld [vmem:[#allocation4 + $0x380] sm:$0xff]  ;;  %v13558_v43 = vand.u32 4294901760, %v13557_v36  ;;  %4507 = vmatpush1.msra.mxu0 %v13559_v27  ;;  %v10420_v21 = vsub.f32 %v10264_v54, %v13560_v46  ;;  %v10427_v7 = vsub.f32 %v10342_v47, %v13561_v42  ;;  %v10436_v36 = vsub.f32 %v3082_v30, %v10389_v60 }
 0x2cd   :  { %4720 = vmatpush1.msra.mxu1 %v13556_v0  ;;  %v10422_v0 = vand.u32 4294901760, %v3081_v19  ;;  %13562 = vst [vmem:[#allocation51_spill] sm:$0xff] %v10429_v52  ;;  %4509 = vmatprep.subr.mxu0 %v10088_v31  ;;  %v13565_v46 = vand.u32 4294901760, %v10323_v62  ;;  %v10444_v42 = vsub.f32 %v3083_v12, %v10369_v53  ;;  %v13567_v47 = vand.u32 4294901760, %v10138_v10  ;;  %v3074_v54 = vld [vmem:[#allocation4 + $0x360] sm:$0xff] }
 0x2ce   :  { %4726 = vmatprep.subr.mxu1 %v13558_v43  ;;  %13564 = vst [vmem:[#allocation55_spill] sm:$0xff] %v10436_v36  ;;  %4511 = vmatpush1.msra.mxu0 %v10114_v17  ;;  %v10453_v30 = vand.u32 4294901760, %v3078_v6  ;;  %v10455_v43 = vld [vmem:[#allocation4 + $0x378] sm:$0xff]  ;;  %v2961_v12 = vmul.f32 %v2953_v13, %v10097_v22  ;;  %v13569_v31 = vand.u32 4294901760, %v10150_v9  ;;  %v13571_v26 = vand.u32 4294901760, %v10362_v35 }
 0x2cf   :  { %4732 = vmatpush1.msra.mxu1 %v13563_v14  ;;  %v10441_v27 = vsub.f32 %v10323_v62, %v13565_v46  ;;  %13566 = vst [vmem:[#allocation37_spill] sm:$0xff] %v10444_v42  ;;  %v10451_v14 = vand.u32 4294901760, %v10410_v51  ;;  %v3076_v62 = vld [vmem:[#allocation4 + $0x370] sm:$0xff]  ;;  %4513 = vmatprep.subr.mxu0 %v10141_v15  ;;  %v13572_v13 = vand.u32 4294901760, %v10210_v45  ;;  %v10479_v9 = vsub.f32 %v3080_v40, %v10429_v52  ;;  %v10510_v15 = vld [vmem:[#allocation4 + $0x358] sm:$0xff] }
 0x2d0   :  { %4738 = vmatprep.subr.mxu1 %v13567_v47  ;;  %v13570_v47 = vand.u32 4294901760, %v10372_v5  ;;  %v10470_v17 = vsub.f32 %v10362_v35, %v13571_v26  ;;  %4515 = vmatpush1.msra.mxu0 %v10129_v59  ;;  %v5829_v26 = vpop.eup %5828  ;;  %v13575_v35 = vand.u32 4294901760, %v10199_v50  ;;  %v10491_v22 = vand.u32 4294901760, %v3076_v62  ;;  %v3072_v46 = vld [vmem:[#allocation4 + $0x350] sm:$0xff] }
 0x2d1   :  { %13568 = vst [vmem:[#allocation92_spill] sm:$0xff] %v10451_v14  ;;  %4744 = vmatpush1.msra.mxu1 %v13569_v31  ;;  %13573 = vst [vmem:[#allocation77_spill] sm:$0xff] %v10479_v9  ;;  %4517 = vmatprep.subr.mxu0 %v10182_v8  ;;  %v10493_v31 = vld [vmem:[#allocation4 + $0x368] sm:$0xff]  ;;  %v10500_v50 = vsub.f32 %v3078_v6, %v10453_v30  ;;  %v10507_v8 = vand.u32 4294901760, %v3074_v54  ;;  %v5831_v40 = vpop.eup %5830  ;;  %v2944_v59 = vadd.f32 1.0, %v5829_v26  ;;  %v10545_v26 = vand.u32 4294901760, %v10510_v15 }
 0x2d2   :  { %v10465_v10 = vsub.f32 %v10372_v5, %v13570_v47  ;;  %4750 = vmatprep.subr.mxu1 %v13572_v13  ;;  %v10482_v47 = vsub.f32 %v3081_v19, %v10422_v0  ;;  %v10489_v13 = vand.u32 4294901760, %v10455_v43  ;;  %v13577_v19 = vand.u32 4294901760, %v10231_v39  ;;  %4519 = vmatpush2.msra.mxu0 %v10212_v57 }
 0x2d3   :  { %4756 = vmatpush1.msra.mxu1 %v13575_v35  ;;  %v13578_v35 = vand.u32 4294901760, %v10404_v20  ;;  %v13579_v39 = vand.u32 4294901760, %v10245_v24  ;;  %4521 = vmatprep.subr.mxu0 %v10234_v48  ;;  %v13582_v5 = vand.u32 4294901760, %v10278_v3  ;;  %v10528_v24 = vand.u32 4294901760, %v10493_v31  ;;  %13588 = vst [vmem:[#allocation117_spill] sm:$0xff] %v10545_v26 }
 0x2d4   :  { %13574 = vst [vmem:[#allocation41_spill] sm:$0xff] %v10482_v47  ;;  %13576 = vst [vmem:[#allocation108_spill] sm:$0xff] %v10489_v13  ;;  %4762 = vmatprep.subr.mxu1 %v13577_v19  ;;  %v10515_v19 = vand.u32 4294901760, %v2961_v12  ;;  %4523 = vmatpush2.msra.mxu0 %v10222_v4  ;;  %v10531_v48 = vand.u32 4294901760, %v3072_v46  ;;  %v13585_v57 = vand.u32 4294901760, %v10269_v63  ;;  %v13587_v3 = vand.u32 4294901760, %v10444_v42 }
 0x2d5   :  { %v10505_v45 = vsub.f32 %v10404_v20, %v13578_v35  ;;  %4768 = vmatpush1.msra.mxu1 %v13579_v39  ;;  %v13581_v35 = vand.u32 4294901760, %v10396_v37  ;;  %13583 = vst [vmem:[#allocation122_spill] sm:$0xff] %v10528_v24  ;;  %4525 = vmatprep.subr.mxu0 %v10280_v23  ;;  %v10549_v6 = vsub.f32 %v10410_v51, %v10451_v14  ;;  %v2949_v39 = vadd.f32 1.0, %v5831_v40  ;;  %v10563_v4 = vld [vmem:[#allocation4 + $0x348] sm:$0xff]  ;;  %v3070_v51 = vld [vmem:[#allocation4 + $0x340] sm:$0xff]  ;;  %v3068_v63 = vld [vmem:[#allocation4 + $0x330] sm:$0xff] }
 0x2d6   :  { %13580 = vst [vmem:[#allocation123_spill] sm:$0xff] %v10515_v19  ;;  %4774 = vmatprep.subr.mxu1 %v13582_v5  ;;  %13584 = vst [vmem:[#allocation125_spill] sm:$0xff] %v10531_v48  ;;  %v10542_v5 = vsub.f32 %v10444_v42, %v13587_v3  ;;  %4527 = vmatpush2.msra.mxu0 %v10282_v25  ;;  %v13591_v3 = vand.u32 4294901760, %v10436_v36  ;;  %v5833_v42 = vpop.eup %5832  ;;  %v13592_v40 = vand.u32 4294901760, %v10301_v41  ;;  %v2952_v25 = vmul.f32 0.5, %v2944_v59 }
 0x2d7   :  { %v10522_v20 = vsub.f32 %v10396_v37, %v13581_v35  ;;  %4780 = vmatpush1.msra.mxu1 %v13585_v57  ;;  %v10537_v35 = vsub.f32 %v3076_v62, %v10491_v22  ;;  %v13589_v57 = vand.u32 4294901760, %v10296_v1  ;;  %v10556_v62 = vsub.f32 %v3074_v54, %v10507_v8  ;;  %4529 = vmatprep.subr.mxu0 %v10303_v16  ;;  %v10589_v54 = vld [vmem:[#allocation4 + $0x338] sm:$0xff] }
 0x2d8   :  { %v10561_v23 = vsub.f32 %v10436_v36, %v13591_v3  ;;  %v10575_v3 = vsub.f32 %v10455_v43, %v10489_v13  ;;  %v13594_v36 = vand.u32 4294901760, %v10334_v32  ;;  %4531 = vmatpush2.msra.mxu0 %v10325_v11  ;;  %v13595_v41 = vand.u32 4294901760, %v10482_v47  ;;  %4998 = vmatprep.mubr.f32.mxu1 %v10515_v19 }
 0x2d9   :  { %13586 = vst [vmem:[#allocation67_spill] sm:$0xff] %v10537_v35  ;;  %4786 = vmatprep.subr.mxu1 %v13589_v57  ;;  %13590 = vst [vmem:[#allocation128_spill] sm:$0xff] %v10556_v62  ;;  %v10570_v57 = vsub.f32 %v2961_v12, %v10515_v19  ;;  %v10586_v12 = vsub.f32 %v3072_v46, %v10531_v48  ;;  %v13597_v43 = vand.u32 4294901760, %v10339_v58  ;;  %4533 = vmatprep.subr.mxu0 %v10349_v29  ;;  %v3066_v29 = vld [vmem:[#allocation4 + $0x320] sm:$0xff] }
 0x2da   :  { %4792 = vmatpush1.msra.mxu1 %v13592_v40  ;;  %13593 = vst [vmem:[#allocation94_spill] sm:$0xff] %v10575_v3  ;;  %v10583_v40 = vsub.f32 %v10482_v47, %v13595_v41  ;;  %v10596_v32 = vand.u32 4294901760, %v10563_v4  ;;  %v10599_v41 = vand.u32 4294901760, %v3070_v51  ;;  %v2948_v46 = vadd.f32 1.0, %v5833_v42  ;;  %4535 = vmatpush2.msra.mxu0 %v10355_v55 }
 0x2db   :  { %4798 = vmatprep.subr.mxu1 %v13594_v36  ;;  %13596 = vst [vmem:[#allocation120_spill] sm:$0xff] %v10586_v12  ;;  %v2957_v11 = vmul.f32 0.5, %v2949_v39  ;;  %v13600_v1 = vand.u32 4294901760, %v10387_v34  ;;  %v13601_v59 = vand.u32 4294901760, %v10367_v49  ;;  %4537 = vmatprep.subr.mxu0 %v10369_v53  ;;  %v13602_v42 = vand.u32 4294901760, %v10479_v9 }
 0x2dc   :  { %4804 = vmatpush1.msra.mxu1 %v13597_v43  ;;  %13598 = vst [vmem:[#allocation124_spill] sm:$0xff] %v10596_v32  ;;  %13599 = vst [vmem:[#allocation115_spill] sm:$0xff] %v10599_v41  ;;  %v10605_v43 = vand.u32 4294901760, %v3068_v63  ;;  %v10617_v34 = vand.u32 4294901760, %v10589_v54  ;;  %v2960_v58 = vmul.f32 %v2952_v25, %v10084_v61  ;;  %v13604_v55 = vand.u32 4294901760, %v10401_v44  ;;  %4539 = vmatpush2.msra.mxu0 %v10389_v60  ;;  %v3067_v44 = vld [vmem:[#allocation4 + $0x328] sm:$0xff] }
 0x2dd   :  { %4810 = vmatprep.subr.mxu1 %v13600_v1  ;;  %v10614_v39 = vsub.f32 %v10479_v9, %v13602_v42  ;;  %v13606_v53 = vand.u32 4294901760, %v10420_v21  ;;  %4541 = vmatprep.subr.mxu0 %v10422_v0  ;;  %v13607_v61 = vand.u32 4294901760, %v10549_v6  ;;  %v10646_v49 = vand.u32 4294901760, %v3066_v29 }
 0x2de   :  { %4816 = vmatpush2.msra.mxu1 %v13601_v59  ;;  %13603 = vst [vmem:[#allocation133_spill] sm:$0xff] %v10617_v34  ;;  %v13605_v59 = vand.u32 4294901760, %v10500_v50  ;;  %v2956_v42 = vmul.f32 0.5, %v2948_v46  ;;  %v13610_v21 = vand.u32 4294901760, %v10427_v7  ;;  %4543 = vmatpush2.msra.mxu0 %v10429_v52  ;;  %v13612_v1 = vand.u32 4294901760, %v10441_v27 }
 0x2df   :  { %4822 = vmatprep.subr.mxu1 %v13604_v55  ;;  %v10637_v25 = vsub.f32 %v10549_v6, %v13607_v61  ;;  %v10640_v55 = vsub.f32 %v3070_v51, %v10599_v41  ;;  %13609 = vst [vmem:[#allocation58_spill] sm:$0xff] %v10646_v49  ;;  %v10653_v61 = vsub.f32 %v3068_v63, %v10605_v43  ;;  %v13614_v7 = vand.u32 4294901760, %v10575_v3  ;;  %v3065_v63 = vld [vmem:[#allocation4 + $0x318] sm:$0xff] }
 0x2e0   :  { %v10628_v36 = vsub.f32 %v10500_v50, %v13605_v59  ;;  %4828 = vmatpush2.msra.mxu1 %v13606_v53  ;;  %v10644_v59 = vsub.f32 %v10493_v31, %v10528_v24  ;;  %v2965_v53 = vmul.f32 %v2957_v11, %v10161_v2  ;;  %v13613_v31 = vand.u32 4294901760, %v10570_v57  ;;  %4545 = vmatprep.subr.mxu0 %v10451_v14 }
 0x2e1   :  { %13608 = vst [vmem:[#allocation118_spill] sm:$0xff] %v10640_v55  ;;  %4834 = vmatprep.subr.mxu1 %v13610_v21  ;;  %13611 = vst [vmem:[#allocation116_spill] sm:$0xff] %v10653_v61  ;;  %v4887_v2 = vand.u32 4294901760, %v10614_v39  ;;  %v10666_v11 = vsub.f32 %v10575_v3, %v13614_v7  ;;  %v10670_v21 = vsub.f32 %v10510_v15, %v10545_v26  ;;  %v10672_v27 = vand.u32 4294901760, %v2960_v58 }
 0x2e2   :  { %4840 = vmatpush2.msra.mxu1 %v13612_v1  ;;  %v4583_v46 = vsub.f32 %v10570_v57, %v13613_v31  ;;  %v13616_v1 = vand.u32 4294901760, %v10465_v10  ;;  %v4899_v31 = vand.u32 4294901760, %v10628_v36  ;;  %v13617_v39 = vand.u32 4294901760, %v10537_v35  ;;  %4547 = vmatpush2.msra.mxu0 %v10453_v30  ;;  %v3064_v36 = vld [vmem:[#allocation4 + $0x310] sm:$0xff] }
 0x2e3   :  { %13615 = vst [vmem:[#allocation110_spill] sm:$0xff] %v10672_v27  ;;  %v10683_v7 = vand.u32 4294901760, %v3067_v44  ;;  %v13618_v15 = vand.u32 4294901760, %v10470_v17  ;;  %v4893_v19 = vand.u32 4294901760, %v10637_v25  ;;  %v10691_v10 = vsub.f32 %v3066_v29, %v10646_v49  ;;  %4549 = vmatprep.subr.mxu0 %v10489_v13  ;;  %v3063_v13 = vld [vmem:[#allocation4 + $0x308] sm:$0xff] }
 0x2e4   :  { %4846 = vmatprep.subr.mxu1 %v13616_v1  ;;  %v10681_v51 = vsub.f32 %v10537_v35, %v13617_v39  ;;  %v10695_v1 = vsub.f32 %v10563_v4, %v10596_v32  ;;  %v2964_v39 = vmul.f32 %v2956_v42, %v10133_v56  ;;  %v10698_v52 = vand.u32 4294901760, %v2965_v53  ;;  %4551 = vmatpush2.msra.mxu0 %v10491_v22 }
 0x2e5   :  { %4852 = vmatpush2.msra.mxu1 %v13618_v15  ;;  %v13620_v17 = vand.u32 4294901760, %v10505_v45  ;;  %v13621_v25 = vand.u32 4294901760, %v10556_v62  ;;  %v10708_v29 = vand.u32 4294901760, %v3065_v63  ;;  %v13623_v4 = vand.u32 4294901760, %v10522_v20  ;;  %4553 = vmatprep.subr.mxu0 %v10528_v24 }
 0x2e6   :  { %13619 = vst [vmem:[#allocation83_spill] sm:$0xff] %v10698_v52  ;;  %v4584_v56 = vand.u32 4294901760, %v4583_v46  ;;  %v4905_v42 = vand.u32 4294901760, %v10666_v11  ;;  %v10717_v45 = vsub.f32 %v10589_v54, %v10617_v34  ;;  %v4911_v20 = vand.u32 4294901760, %v10681_v51  ;;  %4555 = vmatpush2.msra.mxu0 %v10507_v8 }
 0x2e7   :  { %4858 = vmatprep.subr.mxu1 %v13620_v17  ;;  %v10706_v15 = vsub.f32 %v10556_v62, %v13621_v25  ;;  %13622 = vst [vmem:[#allocation119_spill] sm:$0xff] %v10708_v29  ;;  %v10720_v17 = vsub.f32 %v2960_v58, %v10672_v27  ;;  %v13625_v25 = vand.u32 4294901760, %v10542_v5  ;;  %v10726_v46 = vand.u32 4294901760, %v3064_v36  ;;  %4557 = vmatprep.subr.mxu0 %v10545_v26 }
 0x2e8   :  { %4864 = vmatpush2.msra.mxu1 %v13623_v4  ;;  %13624 = vst [vmem:[#allocation126_spill] sm:$0xff] %v10717_v45  ;;  %v3062_v4 = vld [vmem:[#allocation4 + $0x300] sm:$0xff]  ;;  %v13626_v54 = vand.u32 4294901760, %v10561_v23  ;;  %v13627_v58 = vand.u32 4294901760, %v10644_v59  ;;  %v10738_v51 = vsub.f32 %v3067_v44, %v10683_v7  ;;  %v13629_v11 = vand.u32 4294901760, %v10583_v40  ;;  %4559 = vmatpush2.msra.mxu0 %v10531_v48 }
 0x2e9   :  { %4870 = vmatprep.subr.mxu1 %v13625_v25  ;;  %v10740_v25 = vand.u32 4294901760, %v2964_v39  ;;  %v4923_v23 = vand.u32 4294901760, %v10706_v15  ;;  %4585 = vmatprep.mubr.f32.mxu0 %v4584_v56  ;;  %v13630_v44 = vand.u32 4294901760, %v10670_v21  ;;  %v10755_v24 = vand.u32 4294901760, %v3062_v4 }
 0x2ea   :  { %4876 = vmatpush2.msra.mxu1 %v13626_v54  ;;  %v4916_v14 = vsub.f32 %v10644_v59, %v13627_v58  ;;  %v10746_v54 = vand.u32 4294901760, %v3063_v13  ;;  %v10749_v58 = vsub.f32 %v2965_v53, %v10698_v52  ;;  %v10759_v40 = vsub.f32 %v3065_v63, %v10708_v29  ;;  %4561 = vmatprep.subr.mxu0 %v10596_v32 }
 0x2eb   :  { %13628 = vst [vmem:[#allocation121_spill] sm:$0xff] %v10740_v25  ;;  %4882 = vmatprep.subr.mxu1 %v13629_v11  ;;  %v4928_v5 = vsub.f32 %v10670_v21, %v13630_v44  ;;  %v10763_v53 = vsub.f32 %v3064_v36, %v10726_v46  ;;  %v13632_v15 = vand.u32 4294901760, %v10586_v12  ;;  %v12055_v11 = vand.u32 4294901760, %v10720_v17  ;;  %4563 = vmatpush2.msra.mxu0 %v10599_v41 }
 0x2ec   :  { %13631 = vst [vmem:[#allocation113_spill] sm:$0xff] %v10759_v40  ;;  %4888 = vmatpush2.msra.mxu1 %v4887_v2  ;;  %v4917_v26 = vand.u32 4294901760, %v4916_v14  ;;  %v13633_v63 = vand.u32 4294901760, %v10695_v1  ;;  %v13634_v32 = vand.u32 4294901760, %v10640_v55  ;;  %4565 = vmatprep.subr.mxu0 %v10617_v34  ;;  %v10782_v44 = vsub.f32 %v2964_v39, %v10740_v25 }
 0x2ed   :  { %v4934_v56 = vsub.f32 %v10586_v12, %v13632_v15  ;;  %4894 = vmatprep.subr.mxu1 %v4893_v19  ;;  %v10785_v14 = vsub.f32 %v3063_v13, %v10746_v54  ;;  %4567 = vmatpush2.msra.mxu0 %v10605_v43  ;;  %v4589_v13 = vsub.f32 %v10720_v17, %v12055_v11 }
 0x2ee   :  { %v4940_v2 = vsub.f32 %v10695_v1, %v13633_v63  ;;  %v4946_v36 = vsub.f32 %v10640_v55, %v13634_v32  ;;  %4900 = vmatpush2.msra.mxu1 %v4899_v31  ;;  %v4929_v63 = vand.u32 4294901760, %v4928_v5  ;;  %v10789_v32 = vsub.f32 %v3062_v4, %v10755_v24  ;;  %4569 = vmatprep.subr.mxu0 %v10683_v7 }
 0x2ef   :  { %4906 = vmatprep.subr.mxu1 %v4905_v42  ;;  %v13636_v31 = vand.u32 4294901760, %v10717_v45  ;;  %v4935_v39 = vand.u32 4294901760, %v4934_v56  ;;  %v13637_v42 = vand.u32 4294901760, %v10653_v61  ;;  %4571 = vmatpush2.msra.mxu0 %v10646_v49  ;;  %v13639_v56 = vand.u32 4294901760, %v10749_v58 }
 0x2f0   :  { %13635 = vst [vmem:[#allocation127_spill] sm:$0xff] %v10789_v32  ;;  %4912 = vmatpush2.msra.mxu1 %v4911_v20  ;;  %v4941_v4 = vand.u32 4294901760, %v4940_v2  ;;  %v4947_v19 = vand.u32 4294901760, %v4946_v36  ;;  %4573 = vmatprep.subr.mxu0 %v10708_v29  ;;  %v13644_v29 = vand.u32 4294901760, %v10785_v14 }
 0x2f1   :  { %v4952_v48 = vsub.f32 %v10717_v45, %v13636_v31  ;;  %v4958_v5 = vsub.f32 %v10653_v61, %v13637_v42  ;;  %4918 = vmatprep.subr.mxu1 %v4917_v26  ;;  %v13638_v31 = vand.u32 4294901760, %v10738_v51  ;;  %v4599_v11 = vsub.f32 %v10749_v58, %v13639_v56  ;;  %4575 = vmatpush2.msra.mxu0 %v10726_v46 }
 0x2f2   :  { %4924 = vmatpush2.msra.mxu1 %v4923_v23  ;;  %v13640_v42 = vand.u32 4294901760, %v10691_v10  ;;  %v13641_v23 = vand.u32 4294901760, %v10759_v40  ;;  %4577 = vmatprep.subr.mxu0 %v10746_v54  ;;  %v4590_v56 = vand.u32 4294901760, %v4589_v13  ;;  %v4988_v13 = vsub.f32 %v10785_v14, %v13644_v29  ;;  %v13649_v29 = vld [vmem:[#allocation102_spill] sm:$0xff] }
 0x2f3   :  { %v4964_v20 = vsub.f32 %v10738_v51, %v13638_v31  ;;  %4930 = vmatprep.subr.mxu1 %v4929_v63  ;;  %v4953_v31 = vand.u32 4294901760, %v4952_v48  ;;  %v4959_v49 = vand.u32 4294901760, %v4958_v5  ;;  %4579 = vmatpush2.msra.mxu0 %v10755_v24  ;;  %v13642_v63 = vand.u32 4294901760, %v10763_v53  ;;  %v13645_v5 = vld [vmem:[#allocation103_spill] sm:$0xff] }
 0x2f4   :  { %v4970_v26 = vsub.f32 %v10691_v10, %v13640_v42  ;;  %v4976_v15 = vsub.f32 %v10759_v40, %v13641_v23  ;;  %4936 = vmatpush2.msra.mxu1 %v4935_v39  ;;  %4591 = vmatmul.mubr.f32.vlgmr.msra.gmra.mxu0 %v4590_v56  ;;  %v4600_v48 = vand.u32 4294901760, %v4599_v11  ;;  %v13643_v23 = vand.u32 4294901760, %v10782_v44  ;;  %v13647_v11 = vld [vmem:[#allocation32_spill] sm:$0xff] }
 0x2f5   :  { %4942 = vmatprep.subr.mxu1 %v4941_v4  ;;  %v4965_v42 = vand.u32 4294901760, %v4964_v20  ;;  %v4982_v36 = vsub.f32 %v10763_v53, %v13642_v63  ;;  %5016 = vmatprep.subr.mxu0 %v13645_v5  ;;  %v13646_v20 = vand.u32 4294901760, %v10789_v32 }
 0x2f6   :  { %4948 = vmatpush2.msra.mxu1 %v4947_v19  ;;  %v4971_v2 = vand.u32 4294901760, %v4970_v26  ;;  %v4605_v39 = vsub.f32 %v10782_v44, %v13643_v23  ;;  %v4977_v4 = vand.u32 4294901760, %v4976_v15  ;;  %4601 = vmatprep.mubr.f32.mxu0 %v4600_v48  ;;  %v13648_v26 = vld [vmem:[#allocation74_spill] sm:$0xff]  ;;  %v4989_v23 = vand.u32 4294901760, %v4988_v13  ;;  %v13650_v15 = vld [vmem:[#allocation9_spill] sm:$0xff]  ;;  %v13658_v13 = vld [vmem:[#allocation27_spill] sm:$0xff] }
 0x2f7   :  { %4954 = vmatprep.subr.mxu1 %v4953_v31  ;;  %v4994_v63 = vsub.f32 %v10789_v32, %v13646_v20  ;;  %5019 = vmatpush1.msra.mxu0 %v13647_v11  ;;  %v4983_v19 = vand.u32 4294901760, %v4982_v36  ;;  %v13651_v20 = vld [vmem:[#allocation42_spill] sm:$0xff] }
 0x2f8   :  { %4960 = vmatpush2.msra.mxu1 %v4959_v49  ;;  %5022 = vmatprep.subr.mxu0 %v13648_v26  ;;  %v4606_v56 = vand.u32 4294901760, %v4605_v39  ;;  %v13652_v49 = vld [vmem:[#allocation90_spill] sm:$0xff]  ;;  %v13657_v39 = vld [vmem:[#allocation97_spill] sm:$0xff] }
 0x2f9   :  { %4966 = vmatprep.subr.mxu1 %v4965_v42  ;;  %5025 = vmatpush1.msra.mxu0 %v13649_v29  ;;  %v4995_v31 = vand.u32 4294901760, %v4994_v63  ;;  %v13653_v36 = vld [vmem:[#allocation34_spill] sm:$0xff]  ;;  %v13660_v63 = vld [vmem:[#allocation17_spill] sm:$0xff] }
 0x2fa   :  { %4972 = vmatpush2.msra.mxu1 %v4971_v2  ;;  %4607 = vmatmul.mubr.f32.gmra.mxu0 %v4606_v56  ;;  %v13654_v2 = vld [vmem:[#allocation12_spill] sm:$0xff]  ;;  %v13655_v42 = vld [vmem:[#allocation114_spill] sm:$0xff] }
 0x2fb   :  { %4978 = vmatprep.subr.mxu1 %v4977_v4  ;;  %5028 = vmatprep.subr.mxu0 %v13650_v15  ;;  %v13656_v48 = vld [vmem:[#allocation50_spill] sm:$0xff]  ;;  %v13659_v4 = vld [vmem:[#allocation24_spill] sm:$0xff] }
 0x2fc   :  { %4984 = vmatpush2.msra.mxu1 %v4983_v19  ;;  %5031 = vmatpush1.msra.mxu0 %v13651_v20  ;;  %v13661_v19 = vld [vmem:[#allocation30_spill] sm:$0xff]  ;;  %v13662_v56 = vld [vmem:[#allocation72_spill] sm:$0xff] }
 0x2fd   :  { %5208 = vmatprep.mubr.f32.mxu0 %v10570_v57  ;;  %4990 = vmatprep.subr.mxu1 %v4989_v23  ;;  %v13663_v23 = vld [vmem:[#allocation15_spill] sm:$0xff] }
 0x2fe   :  { %5034 = vmatprep.subr.mxu0 %v13652_v49  ;;  %4996 = vmatpush2.msra.mxu1 %v4995_v31  ;;  %v13664_v31 = vld [vmem:[#allocation21_spill] sm:$0xff] }
 0x2ff   :  { %5037 = vmatpush1.msra.mxu0 %v13653_v36  ;;  %5000 = vmatmul.mubr.f32.vlgmr.msra.gmra.mxu1 %v10672_v27  ;;  %v13666_v27 = vld [vmem:[#allocation62_spill] sm:$0xff] }
 0x300   :  { %5040 = vmatprep.subr.mxu0 %v13654_v2  ;;  %5228 = vmatprep.subr.mxu1 %v13655_v42 }
 0x301   :  { %5006 = vmatprep.mubr.f32.mxu1 %v10698_v52  ;;  %5043 = vmatpush1.msra.mxu0 %v13656_v48  ;;  %v13665_v52 = vand.u32 4294901760, %v10570_v57  ;;  %v13674_v57 = vld [vmem:[#allocation47_spill] sm:$0xff] }
 0x302   :  { %5230 = vmatpush1.msra.mxu1 %v13657_v39  ;;  %5046 = vmatprep.subr.mxu0 %v13658_v13 }
 0x303   :  { %5232 = vmatprep.subr.mxu1 %v13659_v4  ;;  %5049 = vmatpush1.msra.mxu0 %v13660_v63  ;;  %v13667_v4 = vld [vmem:[#allocation23_spill] sm:$0xff]  ;;  %v13668_v63 = vld [vmem:[#allocation64_spill] sm:$0xff] }
 0x304   :  { %5234 = vmatpush1.msra.mxu1 %v13661_v19  ;;  %5052 = vmatprep.subr.mxu0 %v13662_v56  ;;  %v13669_v19 = vld [vmem:[#allocation56_spill] sm:$0xff]  ;;  %v13670_v56 = vld [vmem:[#allocation109_spill] sm:$0xff] }
 0x305   :  { %5008 = vmatmul.mubr.f32.gmra.mxu1 %v10740_v25  ;;  %5236 = vmatprep.subr.mxu1 %v13663_v23  ;;  %v13671_v25 = vld [vmem:[#allocation49_spill] sm:$0xff] }
 0x306   :  { %5055 = vmatpush1.msra.mxu0 %v13664_v31  ;;  %5238 = vmatpush1.msra.mxu1 %v13487_v33  ;;  %v13672_v23 = vld [vmem:[#allocation89_spill] sm:$0xff]  ;;  %v13673_v33 = vld [vmem:[#allocation88_spill] sm:$0xff] }
 0x307   :  { %5358 = vmatprep.mubr.f32.mxu1 %v13665_v52  ;;  %5058 = vmatprep.subr.mxu0 %v13666_v27  ;;  %v13675_v52 = vld [vmem:[#allocation93_spill] sm:$0xff] }
 0x308   :  { %5240 = vmatprep.subr.mxu1 %v13667_v4  ;;  %5061 = vmatpush1.msra.mxu0 %v13668_v63  ;;  %v13676_v4 = vld [vmem:[#allocation11_spill] sm:$0xff] }
 0x309   :  { %5242 = vmatpush1.msra.mxu1 %v13669_v19  ;;  %5064 = vmatprep.subr.mxu0 %v13670_v56  ;;  %v13677_v19 = vld [vmem:[#allocation87_spill] sm:$0xff]  ;;  %v13678_v56 = vld [vmem:[#allocation22_spill] sm:$0xff] }
 0x30a   :  { %5244 = vmatprep.subr.mxu1 %v13671_v25  ;;  %5067 = vmatpush1.msra.mxu0 %v13672_v23  ;;  %v13679_v25 = vld [vmem:[#allocation82_spill] sm:$0xff]  ;;  %v13680_v23 = vld [vmem:[#allocation35_spill] sm:$0xff] }
 0x30b   :  { %5246 = vmatpush1.msra.mxu1 %v9720_v38  ;;  %5070 = vmatprep.subr.mxu0 %v13673_v33  ;;  %v13681_v38 = vld [vmem:[#allocation40_spill] sm:$0xff] }
 0x30c   :  { %5248 = vmatprep.subr.mxu1 %v13674_v57  ;;  %5073 = vmatpush1.msra.mxu0 %v13675_v52  ;;  %v13682_v33 = vld [vmem:[#allocation44_spill] sm:$0xff]  ;;  %v13683_v57 = vld [vmem:[#allocation57_spill] sm:$0xff] }
 0x30d   :  { %5250 = vmatpush1.msra.mxu1 %v13504_v28  ;;  %5076 = vmatprep.subr.mxu0 %v13676_v4  ;;  %v13684_v52 = vld [vmem:[#allocation60_spill] sm:$0xff]  ;;  %v13686_v4 = vld [vmem:[#allocation66_spill] sm:$0xff] }
 0x30e   :  { %5252 = vmatprep.subr.mxu1 %v9785_v18  ;;  %5079 = vmatpush1.msra.mxu0 %v13677_v19  ;;  %v13685_v28 = vld [vmem:[#allocation52_spill] sm:$0xff]  ;;  %v13687_v18 = vld [vmem:[#allocation99_spill] sm:$0xff] }
 0x30f   :  { %5254 = vmatpush1.msra.mxu1 %v13678_v56  ;;  %5082 = vmatprep.subr.mxu0 %v13679_v25  ;;  %v13688_v19 = vld [vmem:[#allocation63_spill] sm:$0xff]  ;;  %v13689_v56 = vld [vmem:[#allocation78_spill] sm:$0xff] }
 0x310   :  { %5256 = vmatprep.subr.mxu1 %v13680_v23  ;;  %5085 = vmatpush1.msra.mxu0 %v13681_v38  ;;  %v13690_v25 = vld [vmem:[#allocation111_spill] sm:$0xff]  ;;  %v13691_v23 = vld [vmem:[#allocation13_spill] sm:$0xff] }
 0x311   :  { %5258 = vmatpush1.msra.mxu1 %v13682_v33  ;;  %5088 = vmatprep.subr.mxu0 %v13683_v57  ;;  %v13692_v38 = vld [vmem:[#allocation65_spill] sm:$0xff]  ;;  %v13693_v33 = vld [vmem:[#allocation112_spill] sm:$0xff] }
 0x312   :  { %5260 = vmatprep.subr.mxu1 %v13684_v52  ;;  %5091 = vmatpush1.msra.mxu0 %v13685_v28  ;;  %v13694_v57 = vld [vmem:[#allocation85_spill] sm:$0xff]  ;;  %v13695_v52 = vld [vmem:[#allocation70_spill] sm:$0xff] }
 0x313   :  { %5262 = vmatpush1.msra.mxu1 %v13686_v4  ;;  %5094 = vmatprep.subr.mxu0 %v13687_v18  ;;  %v13696_v28 = vld [vmem:[#allocation69_spill] sm:$0xff]  ;;  %v13697_v4 = vld [vmem:[#allocation96_spill] sm:$0xff]  ;;  %v13698_v18 = vld [vmem:[#allocation79_spill] sm:$0xff] }
 0x314   :  { %5264 = vmatprep.subr.mxu1 %v13688_v19  ;;  %5097 = vmatpush1.msra.mxu0 %v13689_v56  ;;  %v13699_v19 = vld [vmem:[#allocation16_spill] sm:$0xff]  ;;  %v13700_v56 = vld [vmem:[#allocation61_spill] sm:$0xff] }
 0x315   :  { %5266 = vmatpush1.msra.mxu1 %v13690_v25  ;;  %5100 = vmatprep.subr.mxu0 %v13691_v23  ;;  %v13701_v25 = vld [vmem:[#allocation106_spill] sm:$0xff]  ;;  %v13702_v23 = vld [vmem:[#allocation104_spill] sm:$0xff] }
 0x316   :  { %5268 = vmatprep.subr.mxu1 %v13692_v38  ;;  %5103 = vmatpush1.msra.mxu0 %v13693_v33  ;;  %v13703_v38 = vld [vmem:[#allocation48_spill] sm:$0xff]  ;;  %v13704_v33 = vld [vmem:[#allocation71_spill] sm:$0xff] }
 0x317   :  { %5270 = vmatpush1.msra.mxu1 %v13694_v57  ;;  %5106 = vmatprep.subr.mxu0 %v13695_v52  ;;  %v13705_v57 = vld [vmem:[#allocation29_spill] sm:$0xff]  ;;  %v13706_v52 = vld [vmem:[#allocation75_spill] sm:$0xff] }
 0x318   :  { %5272 = vmatprep.subr.mxu1 %v13696_v28  ;;  %5109 = vmatpush1.msra.mxu0 %v13697_v4  ;;  %v13707_v28 = vld [vmem:[#allocation20_spill] sm:$0xff]  ;;  %v13708_v4 = vld [vmem:[#allocation33_spill] sm:$0xff] }
 0x319   :  { %5274 = vmatpush1.msra.mxu1 %v13698_v18  ;;  %5112 = vmatprep.subr.mxu0 %v13699_v19  ;;  %v13709_v18 = vld [vmem:[#allocation81_spill] sm:$0xff]  ;;  %v13710_v19 = vld [vmem:[#allocation38_spill] sm:$0xff] }
 0x31a   :  { %5276 = vmatprep.subr.mxu1 %v13700_v56  ;;  %5115 = vmatpush2.msra.mxu0 %v13701_v25  ;;  %v13711_v56 = vld [vmem:[#allocation10_spill] sm:$0xff]  ;;  %v13712_v25 = vld [vmem:[#allocation91_spill] sm:$0xff] }
 0x31b   :  { %5278 = vmatpush1.msra.mxu1 %v13702_v23  ;;  %5118 = vmatprep.subr.mxu0 %v13703_v38  ;;  %v13713_v23 = vld [vmem:[#allocation28_spill] sm:$0xff]  ;;  %v13714_v38 = vld [vmem:[#allocation54_spill] sm:$0xff] }
 0x31c   :  { %5280 = vmatprep.subr.mxu1 %v13704_v33  ;;  %5121 = vmatpush2.msra.mxu0 %v13705_v57  ;;  %v13715_v33 = vld [vmem:[#allocation59_spill] sm:$0xff]  ;;  %v13716_v57 = vld [vmem:[#allocation68_spill] sm:$0xff] }
 0x31d   :  { %5282 = vmatpush1.msra.mxu1 %v13706_v52  ;;  %5124 = vmatprep.subr.mxu0 %v13707_v28  ;;  %v13717_v28 = vld [vmem:[#allocation31_spill] sm:$0xff] }
 0x31e   :  { %5284 = vmatprep.subr.mxu1 %v13708_v4  ;;  %5127 = vmatpush2.msra.mxu0 %v13709_v18  ;;  %v13718_v4 = vld [vmem:[#allocation37_spill] sm:$0xff] }
 0x31f   :  { %5286 = vmatpush1.msra.mxu1 %v13710_v19  ;;  %5130 = vmatprep.subr.mxu0 %v13711_v56  ;;  %v13719_v18 = vld [vmem:[#allocation105_spill] sm:$0xff]  ;;  %v13720_v19 = vld [vmem:[#allocation55_spill] sm:$0xff]  ;;  %v13721_v56 = vld [vmem:[#allocation36_spill] sm:$0xff] }
 0x320   :  { %5288 = vmatprep.subr.mxu1 %v13712_v25  ;;  %5133 = vmatpush2.msra.mxu0 %v13713_v23  ;;  %v13722_v23 = vld [vmem:[#allocation14_spill] sm:$0xff] }
 0x321   :  { %5290 = vmatpush1.msra.mxu1 %v13714_v38  ;;  %5136 = vmatprep.subr.mxu0 %v13715_v33  ;;  %v13723_v33 = vld [vmem:[#allocation45_spill] sm:$0xff] }
 0x322   :  { %5292 = vmatprep.subr.mxu1 %v13716_v57  ;;  %5139 = vmatpush2.msra.mxu0 %v10396_v37 }
 0x323   :  { %5294 = vmatpush2.msra.mxu1 %v13717_v28  ;;  %5142 = vmatprep.subr.mxu0 %v13718_v4  ;;  %v13724_v4 = vld [vmem:[#allocation76_spill] sm:$0xff] }
 0x324   :  { %5296 = vmatprep.subr.mxu1 %v13719_v18  ;;  %5145 = vmatpush2.msra.mxu0 %v13720_v19  ;;  %v13725_v19 = vld [vmem:[#allocation43_spill] sm:$0xff] }
 0x325   :  { %5298 = vmatpush2.msra.mxu1 %v13721_v56  ;;  %5148 = vmatprep.subr.mxu0 %v10482_v47  ;;  %v13726_v47 = vld [vmem:[#allocation80_spill] sm:$0xff] }
 0x326   :  { %5300 = vmatprep.subr.mxu1 %v13722_v23  ;;  %5151 = vmatpush2.msra.mxu0 %v10479_v9  ;;  %v13727_v9 = vld [vmem:[#allocation84_spill] sm:$0xff] }
 0x327   :  { %5302 = vmatpush2.msra.mxu1 %v13723_v33  ;;  %5154 = vmatprep.subr.mxu0 %v10549_v6 }
 0x328   :  { %5304 = vmatprep.subr.mxu1 %v10303_v16  ;;  %5157 = vmatpush2.msra.mxu0 %v10500_v50 }
 0x329   :  { %5306 = vmatpush2.msra.mxu1 %v13724_v4  ;;  %5160 = vmatprep.subr.mxu0 %v10575_v3  ;;  %v13728_v3 = vld [vmem:[#allocation51_spill] sm:$0xff] }
 0x32a   :  { %5308 = vmatprep.subr.mxu1 %v13725_v19  ;;  %5163 = vmatpush2.msra.mxu0 %v10537_v35  ;;  %v13729_v35 = vld [vmem:[#allocation92_spill] sm:$0xff] }
 0x32b   :  { %5310 = vmatpush2.msra.mxu1 %v13726_v47  ;;  %5166 = vmatprep.subr.mxu0 %v10644_v59 }
 0x32c   :  { %5312 = vmatprep.subr.mxu1 %v13727_v9  ;;  %5169 = vmatpush2.msra.mxu0 %v10556_v62  ;;  %v13730_v62 = vld [vmem:[#allocation108_spill] sm:$0xff] }
 0x32d   :  { %5314 = vmatpush2.msra.mxu1 %v10389_v60  ;;  %5172 = vmatprep.subr.mxu0 %v10670_v21 }
 0x32e   :  { %5316 = vmatprep.subr.mxu1 %v10422_v0  ;;  %5175 = vmatpush2.msra.mxu0 %v10586_v12  ;;  %v13731_v12 = vld [vmem:[#allocation122_spill] sm:$0xff] }
 0x32f   :  { %5318 = vmatpush2.msra.mxu1 %v13728_v3  ;;  %5178 = vmatprep.subr.mxu0 %v10695_v1 }
 0x330   :  { %5320 = vmatprep.subr.mxu1 %v13729_v35  ;;  %5181 = vmatpush2.msra.mxu0 %v10640_v55  ;;  %v13732_v55 = vld [vmem:[#allocation117_spill] sm:$0xff] }
 0x331   :  { %5322 = vmatpush2.msra.mxu1 %v10453_v30  ;;  %5184 = vmatprep.subr.mxu0 %v10717_v45  ;;  %v13733_v45 = vld [vmem:[#allocation125_spill] sm:$0xff] }
 0x332   :  { %5324 = vmatprep.subr.mxu1 %v13730_v62  ;;  %5187 = vmatpush2.msra.mxu0 %v10653_v61  ;;  %v13734_v61 = vld [vmem:[#allocation124_spill] sm:$0xff] }
 0x333   :  { %5326 = vmatpush2.msra.mxu1 %v10491_v22  ;;  %5190 = vmatprep.subr.mxu0 %v10738_v51 }
 0x334   :  { %5328 = vmatprep.subr.mxu1 %v13731_v12  ;;  %5193 = vmatpush2.msra.mxu0 %v10691_v10 }
 0x335   :  { %5330 = vmatpush2.msra.mxu1 %v10507_v8  ;;  %5196 = vmatprep.subr.mxu0 %v10759_v40  ;;  %v13735_v40 = vand.u32 4294901760, %v13645_v5  ;;  %v13743_v5 = vld [vmem:[#allocation123_spill] sm:$0xff] }
 0x336   :  { %5332 = vmatprep.subr.mxu1 %v13732_v55  ;;  %5199 = vmatpush2.msra.mxu0 %v10763_v53 }
 0x337   :  { %5334 = vmatpush2.msra.mxu1 %v13733_v45  ;;  %5202 = vmatprep.subr.mxu0 %v10785_v14  ;;  %v13736_v45 = vand.u32 4294901760, %v13647_v11  ;;  %v13746_v11 = vand.u32 4294901760, %v10720_v17 }
 0x338   :  { %5336 = vmatprep.subr.mxu1 %v13734_v61  ;;  %5205 = vmatpush2.msra.mxu0 %v10789_v32  ;;  %v13737_v32 = vand.u32 4294901760, %v13648_v26  ;;  %v13739_v61 = vand.u32 4294901760, %v13649_v29  ;;  %v13747_v26 = vand.u32 4294901760, %v13654_v2  ;;  %v13748_v29 = vand.u32 4294901760, %v10749_v58  ;;  %v13754_v2 = vld [vmem:[#allocation30_spill] sm:$0xff] }
 0x339   :  { %5338 = vmatpush2.msra.mxu1 %v10599_v41  ;;  %5211 = vmatmul.mubr.f32.vlgmr.msra.gmra.mxu0 %v10720_v17  ;;  %v13738_v41 = vld [vmem:[#allocation58_spill] sm:$0xff]  ;;  %v13752_v17 = vld [vmem:[#allocation17_spill] sm:$0xff] }
 0x33a   :  { %5340 = vmatprep.subr.mxu1 %v10617_v34  ;;  %5383 = vmatprep.subr.mxu0 %v13735_v40  ;;  %v13740_v34 = vld [vmem:[#allocation119_spill] sm:$0xff]  ;;  %v13741_v40 = vand.u32 4294901760, %v13650_v15  ;;  %v13749_v15 = vand.u32 4294901760, %v13656_v48 }
 0x33b   :  { %5218 = vmatprep.mubr.f32.mxu0 %v10749_v58  ;;  %5342 = vmatpush2.msra.mxu1 %v10605_v43  ;;  %v13757_v58 = vand.u32 4294901760, %v10782_v44  ;;  %v13758_v48 = vld [vmem:[#allocation15_spill] sm:$0xff] }
 0x33c   :  { %5387 = vmatpush1.msra.mxu0 %v13736_v45  ;;  %5344 = vmatprep.subr.mxu1 %v10683_v7  ;;  %v13742_v45 = vand.u32 4294901760, %v13651_v20  ;;  %v13750_v20 = vand.u32 4294901760, %v13658_v13  ;;  %v13760_v13 = vld [vmem:[#allocation19_spill] sm:$0xff] }
 0x33d   :  { %5391 = vmatprep.subr.mxu0 %v13737_v32  ;;  %5346 = vmatpush2.msra.mxu1 %v13738_v41  ;;  %v13744_v32 = vand.u32 4294901760, %v13652_v49  ;;  %v13751_v49 = vld [vmem:[#allocation24_spill] sm:$0xff] }
 0x33e   :  { %5395 = vmatpush1.msra.mxu0 %v13739_v61  ;;  %5348 = vmatprep.subr.mxu1 %v13740_v34  ;;  %v13745_v61 = vand.u32 4294901760, %v13653_v36  ;;  %v13753_v36 = vand.u32 4294901760, %v13752_v17  ;;  %v13774_v17 = vld [vmem:[#allocation93_spill] sm:$0xff] }
 0x33f   :  { %5221 = vmatmul.mubr.f32.gmra.mxu0 %v10782_v44  ;;  %5399 = vmatprep.subr.mxu0 %v13741_v40  ;;  %v13755_v40 = vld [vmem:[#allocation72_spill] sm:$0xff]  ;;  %v13765_v44 = vld [vmem:[#allocation109_spill] sm:$0xff] }
 0x340   :  { %5350 = vmatpush2.msra.mxu1 %v10726_v46  ;;  %5403 = vmatpush1.msra.mxu0 %v13742_v45  ;;  %v13761_v45 = vand.u32 4294901760, %v13666_v27 }
 0x341   :  { %5637 = vmatprep.mubr.f32.mxu0 %v13743_v5  ;;  %5352 = vmatprep.subr.mxu1 %v10746_v54 }
 0x342   :  { %5407 = vmatprep.subr.mxu0 %v13744_v32  ;;  %5354 = vmatpush2.msra.mxu1 %v10755_v24  ;;  %v13762_v32 = vld [vmem:[#allocation23_spill] sm:$0xff] }
 0x343   :  { %5411 = vmatpush1.msra.mxu0 %v13745_v61  ;;  %5362 = vmatmul.mubr.f32.vlgmr.msra.gmra.mxu1 %v13746_v11  ;;  %v13763_v61 = vand.u32 4294901760, %v13668_v63  ;;  %v13764_v11 = vld [vmem:[#allocation56_spill] sm:$0xff]  ;;  %v13775_v63 = vand.u32 4294901760, %v13774_v17  ;;  %v13797_v17 = vld [vmem:[#allocation63_spill] sm:$0xff] }
 0x344   :  { %5415 = vmatprep.subr.mxu0 %v13747_v26  ;;  %5654 = vmatprep.subr.mxu1 %v13655_v42  ;;  %v13756_v42 = vand.u32 4294901760, %v13755_v40  ;;  %v13766_v26 = vand.u32 4294901760, %v13765_v44  ;;  %v13788_v44 = vld [vmem:[#allocation44_spill] sm:$0xff] }
 0x345   :  { %5370 = vmatprep.mubr.f32.mxu1 %v13748_v29  ;;  %5419 = vmatpush1.msra.mxu0 %v13749_v15  ;;  %v13767_v29 = vld [vmem:[#allocation49_spill] sm:$0xff] }
 0x346   :  { %5656 = vmatpush1.msra.mxu1 %v13657_v39  ;;  %5423 = vmatprep.subr.mxu0 %v13750_v20  ;;  %v13759_v39 = vand.u32 4294901760, %v13664_v31  ;;  %v13768_v31 = vld [vmem:[#allocation89_spill] sm:$0xff]  ;;  %v13770_v20 = vld [vmem:[#allocation39_spill] sm:$0xff] }
 0x347   :  { %5658 = vmatprep.subr.mxu1 %v13751_v49  ;;  %5427 = vmatpush1.msra.mxu0 %v13753_v36  ;;  %v13769_v15 = vand.u32 4294901760, %v13768_v31  ;;  %v13773_v49 = vld [vmem:[#allocation47_spill] sm:$0xff]  ;;  %v13776_v36 = vld [vmem:[#allocation25_spill] sm:$0xff]  ;;  %v13791_v31 = vld [vmem:[#allocation60_spill] sm:$0xff] }
 0x348   :  { %5660 = vmatpush1.msra.mxu1 %v13754_v2  ;;  %5431 = vmatprep.subr.mxu0 %v13756_v42  ;;  %v13777_v2 = vld [vmem:[#allocation11_spill] sm:$0xff]  ;;  %v13779_v42 = vld [vmem:[#allocation18_spill] sm:$0xff] }
 0x349   :  { %5374 = vmatmul.mubr.f32.gmra.mxu1 %v13757_v58  ;;  %5662 = vmatprep.subr.mxu1 %v13758_v48  ;;  %v13778_v40 = vand.u32 4294901760, %v13777_v2  ;;  %v13780_v58 = vld [vmem:[#allocation87_spill] sm:$0xff] }
 0x34a   :  { %5435 = vmatpush1.msra.mxu0 %v13759_v39  ;;  %5664 = vmatpush1.msra.mxu1 %v13760_v13  ;;  %v13781_v48 = vand.u32 4294901760, %v13780_v58  ;;  %v13782_v39 = vld [vmem:[#allocation22_spill] sm:$0xff]  ;;  %v13800_v2 = vld [vmem:[#allocation111_spill] sm:$0xff]  ;;  %v13803_v58 = vld [vmem:[#allocation65_spill] sm:$0xff] }
 0x34b   :  { %5782 = vmatprep.mubr.f32.mxu1 %v13743_v5  ;;  %5439 = vmatprep.subr.mxu0 %v13761_v45  ;;  %v13771_v5 = vld [vmem:[#allocation88_spill] sm:$0xff]  ;;  %v13783_v13 = vld [vmem:[#allocation82_spill] sm:$0xff] }
 0x34c   :  { %5666 = vmatprep.subr.mxu1 %v13762_v32  ;;  %5443 = vmatpush1.msra.mxu0 %v13763_v61  ;;  %v13772_v27 = vand.u32 4294901760, %v13771_v5  ;;  %v13784_v45 = vand.u32 4294901760, %v13783_v13  ;;  %v13785_v32 = vld [vmem:[#allocation35_spill] sm:$0xff]  ;;  %v13786_v61 = vld [vmem:[#allocation40_spill] sm:$0xff]  ;;  %v13794_v5 = vld [vmem:[#allocation66_spill] sm:$0xff] }
 0x34d   :  { %5668 = vmatpush1.msra.mxu1 %v13764_v11  ;;  %5447 = vmatprep.subr.mxu0 %v13766_v26  ;;  %v13787_v11 = vand.u32 4294901760, %v13786_v61  ;;  %v13789_v26 = vld [vmem:[#allocation57_spill] sm:$0xff] }
 0x34e   :  { %5670 = vmatprep.subr.mxu1 %v13767_v29  ;;  %5451 = vmatpush1.msra.mxu0 %v13769_v15  ;;  %v13790_v29 = vand.u32 4294901760, %v13789_v26  ;;  %v13792_v15 = vld [vmem:[#allocation52_spill] sm:$0xff]  ;;  %v13806_v13 = vld [vmem:[#allocation85_spill] sm:$0xff]  ;;  %v13812_v26 = vld [vmem:[#allocation79_spill] sm:$0xff] }
 0x34f   :  { %5672 = vmatpush1.msra.mxu1 %v13770_v20  ;;  %5455 = vmatprep.subr.mxu0 %v13772_v27  ;;  %v13793_v20 = vand.u32 4294901760, %v13792_v15  ;;  %v13795_v27 = vld [vmem:[#allocation99_spill] sm:$0xff]  ;;  %v13809_v61 = vld [vmem:[#allocation69_spill] sm:$0xff] }
 0x350   :  { %5674 = vmatprep.subr.mxu1 %v13773_v49  ;;  %5459 = vmatpush1.msra.mxu0 %v13775_v63  ;;  %v13796_v49 = vand.u32 4294901760, %v13795_v27  ;;  %v13798_v63 = vld [vmem:[#allocation78_spill] sm:$0xff]  ;;  %v13815_v15 = vld [vmem:[#allocation61_spill] sm:$0xff]  ;;  %v13818_v27 = vld [vmem:[#allocation104_spill] sm:$0xff] }
 0x351   :  { %5676 = vmatpush1.msra.mxu1 %v13776_v36  ;;  %5463 = vmatprep.subr.mxu0 %v13778_v40  ;;  %v13799_v36 = vand.u32 4294901760, %v13798_v63  ;;  %v13801_v40 = vld [vmem:[#allocation13_spill] sm:$0xff]  ;;  %v13821_v63 = vld [vmem:[#allocation71_spill] sm:$0xff] }
 0x352   :  { %5678 = vmatprep.subr.mxu1 %v13779_v42  ;;  %5467 = vmatpush1.msra.mxu0 %v13781_v48  ;;  %v13802_v42 = vand.u32 4294901760, %v13801_v40  ;;  %v13804_v48 = vld [vmem:[#allocation112_spill] sm:$0xff] }
 0x353   :  { %5680 = vmatpush1.msra.mxu1 %v13782_v39  ;;  %5471 = vmatprep.subr.mxu0 %v13784_v45  ;;  %v13805_v39 = vand.u32 4294901760, %v13804_v48  ;;  %v13807_v45 = vld [vmem:[#allocation70_spill] sm:$0xff]  ;;  %v13824_v40 = vld [vmem:[#allocation20_spill] sm:$0xff]  ;;  %v13827_v48 = vld [vmem:[#allocation81_spill] sm:$0xff] }
 0x354   :  { %5682 = vmatprep.subr.mxu1 %v13785_v32  ;;  %5475 = vmatpush1.msra.mxu0 %v13787_v11  ;;  %v13808_v32 = vand.u32 4294901760, %v13807_v45  ;;  %v13810_v11 = vld [vmem:[#allocation96_spill] sm:$0xff]  ;;  %v13830_v45 = vld [vmem:[#allocation10_spill] sm:$0xff] }
 0x355   :  { %5684 = vmatpush1.msra.mxu1 %v13788_v44  ;;  %5479 = vmatprep.subr.mxu0 %v13790_v29  ;;  %v13811_v44 = vand.u32 4294901760, %v13810_v11  ;;  %v13813_v29 = vld [vmem:[#allocation16_spill] sm:$0xff] }
 0x356   :  { %5686 = vmatprep.subr.mxu1 %v13791_v31  ;;  %5483 = vmatpush1.msra.mxu0 %v13793_v20  ;;  %v13814_v31 = vand.u32 4294901760, %v13813_v29  ;;  %v13816_v20 = vld [vmem:[#allocation106_spill] sm:$0xff]  ;;  %v13837_v29 = vld [vmem:[#allocation37_spill] sm:$0xff] }
 0x357   :  { %5688 = vmatpush1.msra.mxu1 %v13794_v5  ;;  %5487 = vmatprep.subr.mxu0 %v13796_v49  ;;  %v13817_v5 = vand.u32 4294901760, %v13816_v20  ;;  %v13819_v49 = vld [vmem:[#allocation48_spill] sm:$0xff] }
 0x358   :  { %5690 = vmatprep.subr.mxu1 %v13797_v17  ;;  %5491 = vmatpush1.msra.mxu0 %v13799_v36  ;;  %v13820_v17 = vand.u32 4294901760, %v13819_v49  ;;  %v13822_v36 = vld [vmem:[#allocation29_spill] sm:$0xff] }
 0x359   :  { %5692 = vmatpush1.msra.mxu1 %v13800_v2  ;;  %5495 = vmatprep.subr.mxu0 %v13802_v42  ;;  %v13823_v2 = vand.u32 4294901760, %v13822_v36  ;;  %v13825_v42 = vand.u32 4294901760, %v13824_v40  ;;  %v13876_v36 = vld [vmem:[#allocation133_spill] sm:$0xff] }
 0x35a   :  { %5694 = vmatprep.subr.mxu1 %v13803_v58  ;;  %5499 = vmatpush1.msra.mxu0 %v13805_v39  ;;  %v13826_v58 = vld [vmem:[#allocation33_spill] sm:$0xff]  ;;  %v13828_v39 = vand.u32 4294901760, %v13827_v48 }
 0x35b   :  { %5696 = vmatpush1.msra.mxu1 %v13806_v13  ;;  %5503 = vmatprep.subr.mxu0 %v13808_v32  ;;  %v13829_v13 = vld [vmem:[#allocation38_spill] sm:$0xff]  ;;  %v13831_v32 = vand.u32 4294901760, %v13830_v45 }
 0x35c   :  { %5698 = vmatprep.subr.mxu1 %v13809_v61  ;;  %5507 = vmatpush1.msra.mxu0 %v13811_v44  ;;  %v13832_v61 = vld [vmem:[#allocation28_spill] sm:$0xff] }
 0x35d   :  { %5700 = vmatpush1.msra.mxu1 %v13812_v26  ;;  %5511 = vmatprep.subr.mxu0 %v13814_v31  ;;  %v13833_v11 = vand.u32 4294901760, %v13832_v61  ;;  %v13836_v26 = vand.u32 4294901760, %v10396_v37  ;;  %v13838_v31 = vand.u32 4294901760, %v13837_v29 }
 0x35e   :  { %5702 = vmatprep.subr.mxu1 %v13815_v15  ;;  %5515 = vmatpush2.msra.mxu0 %v13817_v5 }
 0x35f   :  { %5704 = vmatpush1.msra.mxu1 %v13818_v27  ;;  %5519 = vmatprep.subr.mxu0 %v13820_v17  ;;  %v13869_v17 = vld [vmem:[#allocation125_spill] sm:$0xff] }
 0x360   :  { %5706 = vmatprep.subr.mxu1 %v13821_v63  ;;  %5523 = vmatpush2.msra.mxu0 %v13823_v2  ;;  %v13874_v63 = vld [vmem:[#allocation115_spill] sm:$0xff] }
 0x361   :  { %5708 = vmatpush1.msra.mxu1 %v13706_v52  ;;  %5527 = vmatprep.subr.mxu0 %v13825_v42  ;;  %v13834_v52 = vld [vmem:[#allocation59_spill] sm:$0xff] }
 0x362   :  { %5710 = vmatprep.subr.mxu1 %v13826_v58  ;;  %5531 = vmatpush2.msra.mxu0 %v13828_v39  ;;  %v13835_v44 = vand.u32 4294901760, %v13834_v52 }
 0x363   :  { %5712 = vmatpush1.msra.mxu1 %v13829_v13  ;;  %5535 = vmatprep.subr.mxu0 %v13831_v32 }
 0x364   :  { %5714 = vmatprep.subr.mxu1 %v13712_v25  ;;  %5539 = vmatpush2.msra.mxu0 %v13833_v11  ;;  %v13839_v25 = vld [vmem:[#allocation55_spill] sm:$0xff] }
 0x365   :  { %5716 = vmatpush1.msra.mxu1 %v13714_v38  ;;  %5543 = vmatprep.subr.mxu0 %v13835_v44  ;;  %v13840_v15 = vand.u32 4294901760, %v13839_v25  ;;  %v13841_v38 = vld [vmem:[#allocation41_spill] sm:$0xff] }
 0x366   :  { %5718 = vmatprep.subr.mxu1 %v13716_v57  ;;  %5547 = vmatpush2.msra.mxu0 %v13836_v26  ;;  %v13842_v20 = vand.u32 4294901760, %v13841_v38  ;;  %v13843_v57 = vld [vmem:[#allocation77_spill] sm:$0xff] }
 0x367   :  { %5720 = vmatpush2.msra.mxu1 %v13717_v28  ;;  %5551 = vmatprep.subr.mxu0 %v13838_v31  ;;  %v13844_v37 = vand.u32 4294901760, %v13843_v57  ;;  %v13845_v28 = vand.u32 4294901760, %v10549_v6  ;;  %v13854_v6 = vand.u32 4294901760, %v10670_v21 }
 0x368   :  { %5722 = vmatprep.subr.mxu1 %v13719_v18  ;;  %5555 = vmatpush2.msra.mxu0 %v13840_v15  ;;  %v13846_v18 = vand.u32 4294901760, %v10500_v50 }
 0x369   :  { %5724 = vmatpush2.msra.mxu1 %v13721_v56  ;;  %5559 = vmatprep.subr.mxu0 %v13842_v20  ;;  %v13847_v56 = vld [vmem:[#allocation94_spill] sm:$0xff]  ;;  %v3094_v20 = vld [vmem:[%s11213_s4] sm:$0x3] }
 0x36a   :  { %5726 = vmatprep.subr.mxu1 %v13722_v23  ;;  %5563 = vmatpush2.msra.mxu0 %v13844_v37  ;;  %v13848_v5 = vand.u32 4294901760, %v13847_v56  ;;  %v13849_v23 = vld [vmem:[#allocation67_spill] sm:$0xff]  ;;  %v13879_v37 = vld [vmem:[#allocation101_spill] sm:$0xff] }
 0x36b   :  { %5728 = vmatpush2.msra.mxu1 %v13723_v33  ;;  %5567 = vmatprep.subr.mxu0 %v13845_v28  ;;  %v13850_v27 = vand.u32 4294901760, %v13849_v23  ;;  %v13851_v33 = vand.u32 4294901760, %v10644_v59  ;;  %v13880_v28 = vsub.s32 0, %v13879_v37  ;;  %v13881_v23 = vsub.s32 1, %v13879_v37 }
 0x36c   :  { %5730 = vmatprep.subr.mxu1 %v10303_v16  ;;  %5571 = vmatpush2.msra.mxu0 %v13846_v18  ;;  %v13852_v16 = vld [vmem:[#allocation128_spill] sm:$0xff] }
 0x36d   :  { %5732 = vmatpush2.msra.mxu1 %v13724_v4  ;;  %5575 = vmatprep.subr.mxu0 %v13848_v5  ;;  %v13853_v50 = vand.u32 4294901760, %v13852_v16  ;;  %v13855_v4 = vld [vmem:[#allocation120_spill] sm:$0xff]  ;;  %v3099_v18 = vrot.slane %v3094_v20, %v13880_v28 }
 0x36e   :  { %5734 = vmatprep.subr.mxu1 %v13725_v19  ;;  %5579 = vmatpush2.msra.mxu0 %v13850_v27  ;;  %v13856_v19 = vand.u32 4294901760, %v13855_v4  ;;  %v3103_v27 = vrot.slane %v3094_v20, %v13881_v23 }
 0x36f   :  { %5736 = vmatpush2.msra.mxu1 %v13726_v47  ;;  %5583 = vmatprep.subr.mxu0 %v13851_v33  ;;  %v13857_v47 = vand.u32 4294901760, %v10695_v1 }
 0x370   :  { %5738 = vmatprep.subr.mxu1 %v13727_v9  ;;  %5587 = vmatpush2.msra.mxu0 %v13853_v50  ;;  %v13858_v9 = vld [vmem:[#allocation118_spill] sm:$0xff] }
 0x371   :  { %5740 = vmatpush2.msra.mxu1 %v10389_v60  ;;  %5591 = vmatprep.subr.mxu0 %v13854_v6  ;;  %v13859_v59 = vand.u32 4294901760, %v13858_v9  ;;  %v13860_v60 = vld [vmem:[#allocation126_spill] sm:$0xff] }
 0x372   :  { %5742 = vmatprep.subr.mxu1 %v10422_v0  ;;  %5595 = vmatpush2.msra.mxu0 %v13856_v19  ;;  %v13861_v21 = vand.u32 4294901760, %v13860_v60  ;;  %v13862_v0 = vld [vmem:[#allocation116_spill] sm:$0xff] }
 0x373   :  { %5744 = vmatpush2.msra.mxu1 %v13728_v3  ;;  %5599 = vmatprep.subr.mxu0 %v13857_v47  ;;  %v13863_v49 = vand.u32 4294901760, %v13862_v0  ;;  %v13864_v3 = vand.u32 4294901760, %v10738_v51  ;;  %v13871_v51 = vld [vmem:[#allocation124_spill] sm:$0xff] }
 0x374   :  { %5746 = vmatprep.subr.mxu1 %v13729_v35  ;;  %5603 = vmatpush2.msra.mxu0 %v13859_v59  ;;  %v13865_v35 = vand.u32 4294901760, %v10691_v10 }
 0x375   :  { %5748 = vmatpush2.msra.mxu1 %v10453_v30  ;;  %5607 = vmatprep.subr.mxu0 %v13861_v21  ;;  %v13866_v30 = vld [vmem:[#allocation113_spill] sm:$0xff] }
 0x376   :  { %5750 = vmatprep.subr.mxu1 %v13730_v62  ;;  %5611 = vmatpush2.msra.mxu0 %v13863_v49  ;;  %v13867_v1 = vand.u32 4294901760, %v13866_v30  ;;  %v13868_v62 = vand.u32 4294901760, %v10763_v53  ;;  %v13878_v53 = vld [vmem:[#allocation121_spill] sm:$0xff] }
 0x377   :  { %5752 = vmatpush2.msra.mxu1 %v10491_v22  ;;  %5615 = vmatprep.subr.mxu0 %v13864_v3  ;;  %v13870_v22 = vand.u32 4294901760, %v10785_v14 }
 0x378   :  { %5754 = vmatprep.subr.mxu1 %v13731_v12  ;;  %5619 = vmatpush2.msra.mxu0 %v13865_v35  ;;  %v13872_v12 = vld [vmem:[#allocation127_spill] sm:$0xff] }
 0x379   :  { %5756 = vmatpush2.msra.mxu1 %v10507_v8  ;;  %5623 = vmatprep.subr.mxu0 %v13867_v1  ;;  %v13873_v10 = vand.u32 4294901760, %v13872_v12  ;;  %v13875_v8 = vld [vmem:[#allocation110_spill] sm:$0xff] }
 0x37a   :  { %5758 = vmatprep.subr.mxu1 %v13732_v55  ;;  %5627 = vmatpush2.msra.mxu0 %v13868_v62  ;;  %v13877_v55 = vld [vmem:[#allocation83_spill] sm:$0xff] }
 0x37b   :  { %5760 = vmatpush2.msra.mxu1 %v13869_v17  ;;  %5631 = vmatprep.subr.mxu0 %v13870_v22 }
 0x37c   :  { %5762 = vmatprep.subr.mxu1 %v13871_v51  ;;  %5635 = vmatpush2.msra.mxu0 %v13873_v10 }
 0x37d   :  { %5764 = vmatpush2.msra.mxu1 %v13874_v63  ;;  %5639 = vmatmul.mubr.f32.vlgmr.msra.gmra.mxu0 %v13875_v8 }
 0x37e   :  { %5766 = vmatprep.subr.mxu1 %v13876_v36  ;;  %5645 = vmatprep.mubr.f32.mxu0 %v13877_v55 }
 0x37f   :  { %5768 = vmatpush2.msra.mxu1 %v10605_v43  ;;  %v3246_v43 = vpop.f32.mrf.mxu0 }
 0x380   :  { %5770 = vmatprep.subr.mxu1 %v10683_v7  ;;  %v3247_v16 = vadd.f32 %v3246_v43, %v3099_v18 }
 0x381   :  { %5772 = vmatpush2.msra.mxu1 %v13738_v41  ;;  %5647 = vmatmul.mubr.f32.gmra.mxu0 %v13878_v53  ;;  %v3248_v7 = vpop.f32.mrf.mxu0  ;;  %v3655_v41 = vpop.f32.mrf.mxu1 }
 0x382   :  { %5774 = vmatprep.subr.mxu1 %v13740_v34  ;;  %v3249_v6 = vadd.f32 %v3248_v7, %v3103_v27  ;;  %v3656_v4 = vadd.f32 %v3655_v41, %v3247_v16 }
 0x383   :  { %5776 = vmatpush2.msra.mxu1 %v10726_v46  ;;  %v3262_v14 = vpop.f32.mrf.mxu0  ;;  %v3657_v40 = vpop.f32.mrf.mxu1 }
 0x384   :  { %5778 = vmatprep.subr.mxu1 %v10746_v54  ;;  %v3263_v47 = vadd.f32 %v3262_v14, %v3099_v18  ;;  %v3658_v9 = vadd.f32 %v3657_v40, %v3249_v6 }
 0x385   :  { %5780 = vmatpush2.msra.mxu1 %v10755_v24  ;;  %v3264_v2 = vpop.f32.mrf.mxu0  ;;  %v3663_v34 = vpop.f32.mrf.mxu1 }
 0x386   :  { %5784 = vmatmul.mubr.f32.vlgmr.msra.gmra.mxu1 %v13875_v8  ;;  %v3265_v21 = vadd.f32 %v3264_v2, %v3103_v27  ;;  %v3664_v0 = vadd.f32 %v3663_v34, %v3263_v47 }
 0x387   :  { %5790 = vmatprep.mubr.f32.mxu1 %v13877_v55  ;;  %v3866_v42 = vpop.f32.mrf.mxu0  ;;  %v3665_v46 = vpop.f32.mrf.mxu1 }
 0x388   :  { %v3867_v59 = vadd.f32 %v3866_v42, %v3656_v4  ;;  %v3666_v1 = vadd.f32 %v3665_v46, %v3265_v21 }
 0x389   :  { %v3868_v58 = vpop.f32.mrf.mxu0  ;;  %v4017_v54 = vpop.f32.mrf.mxu1 }
 0x38a   :  { %5792 = vmatmul.mubr.f32.gmra.mxu1 %v13878_v53  ;;  %v3869_v49 = vadd.f32 %v3868_v58, %v3658_v9  ;;  %v4018_v3 = vadd.f32 %v4017_v54, %v3867_v59 }
 0x38b   :  { %v3876_v48 = vpop.f32.mrf.mxu0  ;;  %v4019_v24 = vpop.f32.mrf.mxu1 }
 0x38c   :  { %v3877_v62 = vadd.f32 %v3876_v48, %v3664_v0  ;;  %v4020_v17 = vadd.f32 %v4019_v24, %v3869_v49 }
 0x38d   :  { %v3878_v39 = vpop.f32.mrf.mxu0  ;;  %v4029_v45 = vpop.f32.mrf.mxu1 }
 0x38e   :  { %v3879_v51 = vadd.f32 %v3878_v39, %v3666_v1  ;;  %v4030_v12 = vadd.f32 %v4029_v45, %v3877_v62 }
 0x38f   :  { %v4294_v13 = vpop.f32.mrf.mxu0  ;;  %v4031_v61 = vpop.f32.mrf.mxu1 }
 0x390   :  { %v4295_v22 = vadd.f32 %v4294_v13, %v4018_v3  ;;  %v4032_v55 = vadd.f32 %v4031_v61, %v3879_v51 }
 0x391   :  { %v4296_v32 = vpop.f32.mrf.mxu0  ;;  %v4439_v52 = vpop.f32.mrf.mxu1 }
 0x392   :  { %v4297_v10 = vadd.f32 %v4296_v32, %v4020_v17  ;;  %v4440_v63 = vadd.f32 %v4439_v52, %v4295_v22 }
 0x393   :  { %v4302_v11 = vpop.f32.mrf.mxu0  ;;  %v4441_v26 = vpop.f32.mrf.mxu1 }
 0x394   :  { %v4303_v53 = vadd.f32 %v4302_v11, %v4030_v12  ;;  %v4442_v43 = vadd.f32 %v4441_v26, %v4297_v10 }
 0x395   :  { %v4304_v44 = vpop.f32.mrf.mxu0  ;;  %v4447_v31 = vpop.f32.mrf.mxu1 }
 0x396   :  { %v4305_v41 = vadd.f32 %v4304_v44, %v4032_v55  ;;  %v4448_v2 = vadd.f32 %v4447_v31, %v4303_v53 }
 0x397   :  { %v4449_v15 = vpop.f32.mrf.mxu1 }
 0x398   :  { %v4450_v46 = vadd.f32 %v4449_v15, %v4305_v41 }
 0x3b4   :  { %v4592_v29 = vpop.f32.mrf.mxu0 }
 0x3b5   :  { %v4593_v7 = vadd.f32 %v4592_v29, %v4440_v63 }
 0x3b6   :  { %v4594_v25 = vpop.f32.mrf.mxu0 }
 0x3b7   :  { %v4595_v40 = vadd.f32 %v4594_v25, %v4442_v43 }
 0x3ba   :  { %v4608_v38 = vpop.f32.mrf.mxu0 }
 0x3bb   :  { %v4609_v48 = vadd.f32 %v4608_v38, %v4448_v2 }
 0x3bc   :  { %v4610_v56 = vpop.f32.mrf.mxu0 }
 0x3bd   :  { %v4611_v24 = vadd.f32 %v4610_v56, %v4450_v46  ;;  %v5835_v56 = vld [vmem:[%s11209_s0] sm:$0xff] }
 0x3bf   :  { %v5001_v57 = vpop.f32.mrf.mxu1 }
 0x3c0   :  { %v5002_v42 = vadd.f32 %v5001_v57, %v4593_v7 }
 0x3c1   :  { %v5003_v5 = vpop.f32.mrf.mxu1 }
 0x3c2   :  { %v5004_v54 = vadd.f32 %v5003_v5, %v4595_v40 }
 0x3c5   :  { %v5009_v50 = vpop.f32.mrf.mxu1 }
 0x3c6   :  { %v5010_v13 = vadd.f32 %v5009_v50, %v4609_v48 }
 0x3c7   :  { %v5011_v60 = vpop.f32.mrf.mxu1 }
 0x3c8   :  { %v5012_v11 = vadd.f32 %v5011_v60, %v4611_v24 }
 0x3f9   :  { %v5212_v33 = vpop.f32.mrf.mxu0 }
 0x3fa   :  { %v5213_v39 = vadd.f32 %v5212_v33, %v5002_v42 }
 0x3fb   :  { %v5214_v19 = vpop.f32.mrf.mxu0 }
 0x3fc   :  { %v5215_v45 = vadd.f32 %v5214_v19, %v5004_v54 }
 0x3ff   :  { %v5222_v35 = vpop.f32.mrf.mxu0 }
 0x400   :  { %v5223_v26 = vadd.f32 %v5222_v35, %v5010_v13 }
 0x401   :  { %v5224_v8 = vpop.f32.mrf.mxu0 }
 0x402   :  { %v5225_v31 = vadd.f32 %v5224_v8, %v5012_v11 }
 0x403   :  { %v5363_v30 = vpop.f32.mrf.mxu1 }
 0x404   :  { %v5364_v32 = vadd.f32 %v5363_v30, %v5213_v39 }
 0x405   :  { %v5365_v36 = vpop.f32.mrf.mxu1 }
 0x406   :  { %v5366_v29 = vadd.f32 %v5365_v36, %v5215_v45 }
 0x409   :  { %v5375_v34 = vpop.f32.mrf.mxu1 }
 0x40a   :  { %v5376_v25 = vadd.f32 %v5375_v34, %v5223_v26 }
 0x40b   :  { %v5377_v52 = vpop.f32.mrf.mxu1 }
 0x40c   :  { %v5378_v38 = vadd.f32 %v5377_v52, %v5225_v31 }
 0x43d   :  { %v5640_v14 = vpop.f32.mrf.mxu0 }
 0x43e   :  { %v5641_v20 = vadd.f32 %v5640_v14, %v5364_v32 }
 0x43f   :  { %v5642_v58 = vpop.f32.mrf.mxu0 }
 0x440   :  { %v5643_v57 = vadd.f32 %v5642_v58, %v5366_v29 }
 0x441   :  { %v5648_v61 = vpop.f32.mrf.mxu0 }
 0x442   :  { %v5649_v18 = vadd.f32 %v5648_v61, %v5376_v25 }
 0x443   :  { %v5650_v28 = vpop.f32.mrf.mxu0 }
 0x444   :  { %v5651_v33 = vadd.f32 %v5650_v28, %v5378_v38 }
 0x446   :  { %v5785_v44 = vpop.f32.mrf.mxu1 }
 0x447   :  { %v5786_v37 = vadd.f32 %v5785_v44, %v5641_v20 }
 0x448   :  { %v5787_v15 = vpop.f32.mrf.mxu1 }
 0x449   :  { %v5798_v5 = vadd.f32 %v5835_v56, %v5786_v37  ;;  %v5788_v23 = vadd.f32 %v5787_v15, %v5643_v57 }
 0x44a   :  { %v5793_v27 = vpop.f32.mrf.mxu1 }
 0x44b   :  { %5802 = vst [vmem:[%s11214_s5] sm:$0xff] %v5798_v5  ;;  %v5794_v6 = vadd.f32 %v5793_v27, %v5649_v18 }
 0x44c   :  { %v5795_v4 = vpop.f32.mrf.mxu1 }
 0x44d   :  { %v5796_v9 = vadd.f32 %v5795_v4, %v5651_v33 }
 0x452   :  { %v5836_v16 = vld [vmem:[%s11209_s0 + $0x8] sm:$0xff] }
 0x453   :  { %v5799_v50 = vadd.f32 %v5836_v16, %v5788_v23 }
 0x455   :  { %5803 = vst [vmem:[%s11214_s5 + $0x8] sm:$0xff] %v5799_v50 }
 0x45c   :  { %v5837_v19 = vld [vmem:[%s11209_s0 + $0x10] sm:$0xff] }
 0x45d   :  { %v5800_v47 = vadd.f32 %v5837_v19, %v5794_v6 }
 0x45f   :  { %5804 = vst [vmem:[%s11214_s5 + $0x10] sm:$0xff] %v5800_v47 }
 0x466   :  { %v5838_v59 = vld [vmem:[%s11209_s0 + $0x18] sm:$0xff] }
 0x467   :  { %v5801_v60 = vadd.f32 %v5838_v59, %v5796_v9 }
 0x469   :  { %5805 = vst [vmem:[%s11214_s5 + $0x18] sm:$0xff] %v5801_v60 }
 0x46a   :  { %5810 = vsyncpa [#allocation3], 1 }
 0x46b   :  { %5811 = vsyncpa [#allocation5], 1 }

</bundles_post_ra>
